<compile_context>
chip_gen: v7x
topology: tpu7x:2x2x1
jax: 0.10.0
libtpu: 0.0.40
codegen_flags: <defaults>
</compile_context>

<pallas_src>
import functools

import jax
import jax.numpy as jnp
from jax import lax
from jax.experimental import pallas as pl
from jax.experimental.pallas import tpu as pltpu

BN_EPS = 1e-5
LANE = 128  # padded channel width (TPU lane dimension)


# ----------------------------- Pallas kernel --------------------------------
def _fused_block_kernel(x_ref, w_ref, s_ref, b_ref, out_ref,
                        buf_a, buf_b, buf_c1, *, H, W, C):
    """Whole Conv_residual_conv block for one batch item, VMEM-resident.

    x_ref:   (1, H, W, C)      channel-padded NHWC input tile
    w_ref:   (5, 9, C, C)      per-layer weights, tap-major (dy*3+dx, Cin, Cout)
    s_ref:   (5, C)            folded BN scale per layer
    b_ref:   (5, C)            folded BN bias  per layer
    out_ref: (1, H, W, C)      channel-padded output tile
    buf_*:   (H+2, W+2, C)     zero-halo VMEM activation buffers
    """
    HW = H * W

    # Zero the halo buffers (interiors are overwritten; borders stay 0).
    zeros = jnp.zeros((H + 2, W + 2, C), jnp.float32)
    buf_a[...] = zeros
    buf_b[...] = zeros
    buf_c1[...] = zeros

    # Load input into the interior of buf_a.
    buf_a[1:H + 1, 1:W + 1, :] = x_ref[0]

    def conv_bn(src_buf, layer, relu):
        """3x3 conv (as 9 shifted-slab matmuls) + folded BN (+ ReLU)."""
        acc = jnp.zeros((HW, C), jnp.float32)
        for t in range(9):
            dy, dx = divmod(t, 3)
            slab = src_buf[dy:dy + H, dx:dx + W, :].reshape(HW, C)
            acc = acc + jnp.dot(slab, w_ref[layer, t, :, :],
                                preferred_element_type=jnp.float32)
        y = acc * s_ref[layer:layer + 1, :] + b_ref[layer:layer + 1, :]
        if relu:
            y = jnp.maximum(y, 0.0)
        return y

    # conv_1: Conv -> BN -> ReLU  (kept around for the residual add)
    c1 = conv_bn(buf_a, 0, True)
    buf_c1[1:H + 1, 1:W + 1, :] = c1.reshape(H, W, C)

    # conv_2: (Conv -> BN -> ReLU) x2, then Conv -> BN (no activation)
    h = conv_bn(buf_c1, 1, True)
    buf_a[1:H + 1, 1:W + 1, :] = h.reshape(H, W, C)
    h = conv_bn(buf_a, 2, True)
    buf_b[1:H + 1, 1:W + 1, :] = h.reshape(H, W, C)
    c2 = conv_bn(buf_b, 3, False)

    # res = conv_1 + conv_2 (conv_1 read back from its VMEM buffer interior)
    res = c2 + buf_c1[1:H + 1, 1:W + 1, :].reshape(HW, C)
    buf_a[1:H + 1, 1:W + 1, :] = res.reshape(H, W, C)

    # conv_3: Conv -> BN -> ReLU
    out = conv_bn(buf_a, 4, True)
    out_ref[0] = out.reshape(H, W, C).astype(out_ref.dtype)


# ------------------------------ JAX wrapper ----------------------------------
def _fold(layer, C):
    """Fold conv bias + eval-mode BN into channel-padded (w9, scale, bias)."""
    w_hwio = jnp.transpose(layer["w"], (2, 3, 1, 0))          # OIHW -> HWIO
    ci, co = w_hwio.shape[2], w_hwio.shape[3]
    w9 = w_hwio.reshape(9, ci, co)                            # tap-major (dy*3+dx)
    w9 = jnp.pad(w9, ((0, 0), (0, C - ci), (0, C - co)))
    scale = layer["gamma"] / jnp.sqrt(layer["var"] + BN_EPS)
    bias = (layer["b"] - layer["mean"]) * scale + layer["beta"]
    scale = jnp.pad(scale, (0, C - co), constant_values=1.0)
    bias = jnp.pad(bias, (0, C - co))
    return w9, scale, bias


def conv_residual_conv(x_nchw, layers):
    """Forward of Conv_residual_conv. x_nchw: (N, in_dim, H, W) -> (N, out_dim, H, W)."""
    N, Cin, H, W = x_nchw.shape
    Cout = layers[0]["w"].shape[0]
    C = LANE

    # NCHW -> NHWC, pad channels to the lane width (128) for lane-dense DMA.
    x = jnp.transpose(x_nchw, (0, 2, 3, 1)).astype(jnp.float32)
    x = jnp.pad(x, ((0, 0), (0, 0), (0, 0), (0, C - Cin)))

    folded = [_fold(layer, C) for layer in layers]
    w_all = jnp.stack([f[0] for f in folded])                 # (5, 9, C, C)
    s_all = jnp.stack([f[1] for f in folded])                 # (5, C)
    b_all = jnp.stack([f[2] for f in folded])                 # (5, C)

    kernel = functools.partial(_fused_block_kernel, H=H, W=W, C=C)
    out = pl.pallas_call(
        kernel,
        out_shape=jax.ShapeDtypeStruct((N, H, W, C), jnp.float32),
        grid=(N,),
        in_specs=[
            pl.BlockSpec((1, H, W, C), lambda b: (b, 0, 0, 0)),
            pl.BlockSpec((5, 9, C, C), lambda b: (0, 0, 0, 0)),  # resident
            pl.BlockSpec((5, C), lambda b: (0, 0)),              # resident
            pl.BlockSpec((5, C), lambda b: (0, 0)),              # resident
        ],
        out_specs=pl.BlockSpec((1, H, W, C), lambda b: (b, 0, 0, 0)),
        scratch_shapes=[
            pltpu.VMEM((H + 2, W + 2, C), jnp.float32),
            pltpu.VMEM((H + 2, W + 2, C), jnp.float32),
            pltpu.VMEM((H + 2, W + 2, C), jnp.float32),
        ],
        compiler_params=pltpu.CompilerParams(
            dimension_semantics=("parallel",),
            vmem_limit_bytes=32 * 1024 * 1024,
        ),
    )(x, w_all, s_all, b_all)

    out = out[..., :Cout]                                     # drop channel padding
    return jnp.transpose(out, (0, 3, 1, 2))                   # NHWC -> NCHW


# --------------------------- pure-JAX reference -------------------------------
def _ref_conv_bn(x, layer, relu):
    y = lax.conv_general_dilated(x, layer["w"], (1, 1), ((1, 1), (1, 1)),
                                 dimension_numbers=("NCHW", "OIHW", "NCHW"))
    y = y + layer["b"][None, :, None, None]
    y = (y - layer["mean"][None, :, None, None]) / jnp.sqrt(
        layer["var"][None, :, None, None] + BN_EPS)
    y = y * layer["gamma"][None, :, None, None] + layer["beta"][None, :, None, None]
    if relu:
        y = jnp.maximum(y, 0.0)
    return y


def conv_residual_conv_ref(x, layers):
    c1 = _ref_conv_bn(x, layers[0], True)
    h = _ref_conv_bn(c1, layers[1], True)
    h = _ref_conv_bn(h, layers[2], True)
    c2 = _ref_conv_bn(h, layers[3], False)
    res = c1 + c2
    return _ref_conv_bn(res, layers[4], True)


# ------------------------------- params --------------------------------------
def make_layer(key, cin, cout):
    kw, kb, kg, kbe, km, kv = jax.random.split(key, 6)
    return {
        "w": 0.1 * jax.random.normal(kw, (cout, cin, 3, 3), jnp.float32),
        "b": 0.05 * jax.random.normal(kb, (cout,), jnp.float32),
        "gamma": 1.0 + 0.1 * jax.random.normal(kg, (cout,), jnp.float32),
        "beta": 0.05 * jax.random.normal(kbe, (cout,), jnp.float32),
        "mean": 0.1 * jax.random.normal(km, (cout,), jnp.float32),
        "var": 1.0 + 0.1 * jnp.abs(jax.random.normal(kv, (cout,), jnp.float32)),
    }


if __name__ == "__main__":
    N, in_dim, out_dim, H, W = 2, 4, 8, 16, 16

    key = jax.random.PRNGKey(0)
    kx, *kls = jax.random.split(key, 6)
    x = jax.random.normal(kx, (N, in_dim, H, W), jnp.float32)

    dims = [(in_dim, out_dim)] + [(out_dim, out_dim)] * 4
    layers = [make_layer(k, ci, co) for k, (ci, co) in zip(kls, dims)]

    out = jax.jit(conv_residual_conv)(x, layers)
    out = jax.block_until_ready(out)

    ref = conv_residual_conv_ref(x, layers)
    assert out.shape == (N, out_dim, H, W)
    assert jnp.allclose(out, ref, atol=1e-3, rtol=1e-3), float(jnp.abs(out - ref).max())

    print("KERNEL_OK")
</pallas_src>

<mosaic_0001>
module attributes {stable_mosaic.version = 11 : i64} {
  func.func @_fused_block_kernel(%arg0: i32, %arg1: memref<1x16x16x128xf32, #tpu.memory_space<vmem>>, %arg2: memref<5x9x128x128xf32, #tpu.memory_space<vmem>>, %arg3: memref<5x128xf32, #tpu.memory_space<vmem>>, %arg4: memref<5x128xf32, #tpu.memory_space<vmem>>, %arg5: memref<1x16x16x128xf32, #tpu.memory_space<vmem>>, %arg6: memref<18x18x128xf32, #tpu.memory_space<vmem>>, %arg7: memref<18x18x128xf32, #tpu.memory_space<vmem>>, %arg8: memref<18x18x128xf32, #tpu.memory_space<vmem>>) attributes {dimension_semantics = [#tpu.dimension_semantics<parallel>], iteration_bounds = array<i64: 2>, scalar_prefetch = 0 : i64, scratch_operands = 3 : i64, tpu.core_type = #tpu.core_type<tc>, window_params = [{transform_indices = @transform_0, window_bounds = array<i64: 1, 16, 16, 128>}, {pipeline_mode = #tpu.pipeline_mode<synchronous>, transform_indices = @transform_1, window_bounds = array<i64: 5, 9, 128, 128>}, {pipeline_mode = #tpu.pipeline_mode<synchronous>, transform_indices = @transform_2, window_bounds = array<i64: 5, 128>}, {pipeline_mode = #tpu.pipeline_mode<synchronous>, transform_indices = @transform_3, window_bounds = array<i64: 5, 128>}, {transform_indices = @transform_4, window_bounds = array<i64: 1, 16, 16, 128>}]} {
    %cst = arith.constant 0.000000e+00 : f32
    %0 = vector.broadcast %cst : f32 to vector<18x18x128xf32>
    %c0 = arith.constant 0 : index
    %c0_0 = arith.constant 0 : index
    %c0_1 = arith.constant 0 : index
    %1 = vector.load %arg6[%c0, %c0_0, %c0_1] : memref<18x18x128xf32, #tpu.memory_space<vmem>>, vector<18x18x128xf32>
    tpu.vector_store %arg6[%c0, %c0_0, %c0_1], %0 {strides = array<i32>} : memref<18x18x128xf32, #tpu.memory_space<vmem>>, vector<18x18x128xf32>,
    %c0_2 = arith.constant 0 : index
    %c0_3 = arith.constant 0 : index
    %c0_4 = arith.constant 0 : index
    %2 = vector.load %arg7[%c0_2, %c0_3, %c0_4] : memref<18x18x128xf32, #tpu.memory_space<vmem>>, vector<18x18x128xf32>
    tpu.vector_store %arg7[%c0_2, %c0_3, %c0_4], %0 {strides = array<i32>} : memref<18x18x128xf32, #tpu.memory_space<vmem>>, vector<18x18x128xf32>,
    %c0_5 = arith.constant 0 : index
    %c0_6 = arith.constant 0 : index
    %c0_7 = arith.constant 0 : index
    %3 = vector.load %arg8[%c0_5, %c0_6, %c0_7] : memref<18x18x128xf32, #tpu.memory_space<vmem>>, vector<18x18x128xf32>
    tpu.vector_store %arg8[%c0_5, %c0_6, %c0_7], %0 {strides = array<i32>} : memref<18x18x128xf32, #tpu.memory_space<vmem>>, vector<18x18x128xf32>,
    %c0_8 = arith.constant 0 : index
    %c0_9 = arith.constant 0 : index
    %c0_10 = arith.constant 0 : index
    %c0_11 = arith.constant 0 : index
    %4 = vector.load %arg1[%c0_8, %c0_9, %c0_10, %c0_11] : memref<1x16x16x128xf32, #tpu.memory_space<vmem>>, vector<1x16x16x128xf32>
    %5 = vector.shape_cast %4 : vector<1x16x16x128xf32> to vector<16x16x128xf32>
    %c1 = arith.constant 1 : index
    %c1_12 = arith.constant 1 : index
    %c0_13 = arith.constant 0 : index
    %6 = vector.load %arg6[%c1, %c1_12, %c0_13] : memref<18x18x128xf32, #tpu.memory_space<vmem>>, vector<16x16x128xf32>
    tpu.vector_store %arg6[%c1, %c1_12, %c0_13], %5 {strides = array<i32>} : memref<18x18x128xf32, #tpu.memory_space<vmem>>, vector<16x16x128xf32>,
    %cst_14 = arith.constant 0.000000e+00 : f32
    %7 = vector.broadcast %cst_14 : f32 to vector<256x128xf32>
    %c0_15 = arith.constant 0 : index
    %c0_16 = arith.constant 0 : index
    %c0_17 = arith.constant 0 : index
    %8 = vector.load %arg6[%c0_15, %c0_16, %c0_17] : memref<18x18x128xf32, #tpu.memory_space<vmem>>, vector<16x16x128xf32>
    %9 = vector.shape_cast %8 : vector<16x16x128xf32> to vector<256x128xf32>
    %c0_18 = arith.constant 0 : index
    %c0_19 = arith.constant 0 : index
    %c0_20 = arith.constant 0 : index
    %c0_21 = arith.constant 0 : index
    %10 = vector.load %arg2[%c0_18, %c0_19, %c0_20, %c0_21] : memref<5x9x128x128xf32, #tpu.memory_space<vmem>>, vector<1x1x128x128xf32>
    %11 = vector.shape_cast %10 : vector<1x1x128x128xf32> to vector<128x128xf32>
    %cst_22 = arith.constant dense<0.000000e+00> : vector<256x128xf32>
    %12 = tpu.matmul %9, %11, %cst_22 {dimension_numbers = #tpu.dot_dimension_numbers<[1], [0], [0], [1], [0, 0, 1, 1], [], []>} : vector<256x128xf32>, vector<128x128xf32>, vector<256x128xf32> -> vector<256x128xf32>
    %13 = arith.addf %7, %12 : vector<256x128xf32>
    %c0_23 = arith.constant 0 : index
    %c1_24 = arith.constant 1 : index
    %c0_25 = arith.constant 0 : index
    %14 = vector.load %arg6[%c0_23, %c1_24, %c0_25] : memref<18x18x128xf32, #tpu.memory_space<vmem>>, vector<16x16x128xf32>
    %15 = vector.shape_cast %14 : vector<16x16x128xf32> to vector<256x128xf32>
    %c0_26 = arith.constant 0 : index
    %c1_27 = arith.constant 1 : index
    %c0_28 = arith.constant 0 : index
    %c0_29 = arith.constant 0 : index
    %16 = vector.load %arg2[%c0_26, %c1_27, %c0_28, %c0_29] : memref<5x9x128x128xf32, #tpu.memory_space<vmem>>, vector<1x1x128x128xf32>
    %17 = vector.shape_cast %16 : vector<1x1x128x128xf32> to vector<128x128xf32>
    %cst_30 = arith.constant dense<0.000000e+00> : vector<256x128xf32>
    %18 = tpu.matmul %15, %17, %cst_30 {dimension_numbers = #tpu.dot_dimension_numbers<[1], [0], [0], [1], [0, 0, 1, 1], [], []>} : vector<256x128xf32>, vector<128x128xf32>, vector<256x128xf32> -> vector<256x128xf32>
    %19 = arith.addf %13, %18 : vector<256x128xf32>
    %c0_31 = arith.constant 0 : index
    %c2 = arith.constant 2 : index
    %c0_32 = arith.constant 0 : index
    %20 = vector.load %arg6[%c0_31, %c2, %c0_32] : memref<18x18x128xf32, #tpu.memory_space<vmem>>, vector<16x16x128xf32>
    %21 = vector.shape_cast %20 : vector<16x16x128xf32> to vector<256x128xf32>
    %c0_33 = arith.constant 0 : index
    %c2_34 = arith.constant 2 : index
    %c0_35 = arith.constant 0 : index
    %c0_36 = arith.constant 0 : index
    %22 = vector.load %arg2[%c0_33, %c2_34, %c0_35, %c0_36] : memref<5x9x128x128xf32, #tpu.memory_space<vmem>>, vector<1x1x128x128xf32>
    %23 = vector.shape_cast %22 : vector<1x1x128x128xf32> to vector<128x128xf32>
    %cst_37 = arith.constant dense<0.000000e+00> : vector<256x128xf32>
    %24 = tpu.matmul %21, %23, %cst_37 {dimension_numbers = #tpu.dot_dimension_numbers<[1], [0], [0], [1], [0, 0, 1, 1], [], []>} : vector<256x128xf32>, vector<128x128xf32>, vector<256x128xf32> -> vector<256x128xf32>
    %25 = arith.addf %19, %24 : vector<256x128xf32>
    %c1_38 = arith.constant 1 : index
    %c0_39 = arith.constant 0 : index
    %c0_40 = arith.constant 0 : index
    %26 = vector.load %arg6[%c1_38, %c0_39, %c0_40] : memref<18x18x128xf32, #tpu.memory_space<vmem>>, vector<16x16x128xf32>
    %27 = vector.shape_cast %26 : vector<16x16x128xf32> to vector<256x128xf32>
    %c0_41 = arith.constant 0 : index
    %c3 = arith.constant 3 : index
    %c0_42 = arith.constant 0 : index
    %c0_43 = arith.constant 0 : index
    %28 = vector.load %arg2[%c0_41, %c3, %c0_42, %c0_43] : memref<5x9x128x128xf32, #tpu.memory_space<vmem>>, vector<1x1x128x128xf32>
    %29 = vector.shape_cast %28 : vector<1x1x128x128xf32> to vector<128x128xf32>
    %cst_44 = arith.constant dense<0.000000e+00> : vector<256x128xf32>
    %30 = tpu.matmul %27, %29, %cst_44 {dimension_numbers = #tpu.dot_dimension_numbers<[1], [0], [0], [1], [0, 0, 1, 1], [], []>} : vector<256x128xf32>, vector<128x128xf32>, vector<256x128xf32> -> vector<256x128xf32>
    %31 = arith.addf %25, %30 : vector<256x128xf32>
    %c1_45 = arith.constant 1 : index
    %c1_46 = arith.constant 1 : index
    %c0_47 = arith.constant 0 : index
    %32 = vector.load %arg6[%c1_45, %c1_46, %c0_47] : memref<18x18x128xf32, #tpu.memory_space<vmem>>, vector<16x16x128xf32>
    %33 = vector.shape_cast %32 : vector<16x16x128xf32> to vector<256x128xf32>
    %c0_48 = arith.constant 0 : index
    %c4 = arith.constant 4 : index
    %c0_49 = arith.constant 0 : index
    %c0_50 = arith.constant 0 : index
    %34 = vector.load %arg2[%c0_48, %c4, %c0_49, %c0_50] : memref<5x9x128x128xf32, #tpu.memory_space<vmem>>, vector<1x1x128x128xf32>
    %35 = vector.shape_cast %34 : vector<1x1x128x128xf32> to vector<128x128xf32>
    %cst_51 = arith.constant dense<0.000000e+00> : vector<256x128xf32>
    %36 = tpu.matmul %33, %35, %cst_51 {dimension_numbers = #tpu.dot_dimension_numbers<[1], [0], [0], [1], [0, 0, 1, 1], [], []>} : vector<256x128xf32>, vector<128x128xf32>, vector<256x128xf32> -> vector<256x128xf32>
    %37 = arith.addf %31, %36 : vector<256x128xf32>
    %c1_52 = arith.constant 1 : index
    %c2_53 = arith.constant 2 : index
    %c0_54 = arith.constant 0 : index
    %38 = vector.load %arg6[%c1_52, %c2_53, %c0_54] : memref<18x18x128xf32, #tpu.memory_space<vmem>>, vector<16x16x128xf32>
    %39 = vector.shape_cast %38 : vector<16x16x128xf32> to vector<256x128xf32>
    %c0_55 = arith.constant 0 : index
    %c5 = arith.constant 5 : index
    %c0_56 = arith.constant 0 : index
    %c0_57 = arith.constant 0 : index
    %40 = vector.load %arg2[%c0_55, %c5, %c0_56, %c0_57] : memref<5x9x128x128xf32, #tpu.memory_space<vmem>>, vector<1x1x128x128xf32>
    %41 = vector.shape_cast %40 : vector<1x1x128x128xf32> to vector<128x128xf32>
    %cst_58 = arith.constant dense<0.000000e+00> : vector<256x128xf32>
    %42 = tpu.matmul %39, %41, %cst_58 {dimension_numbers = #tpu.dot_dimension_numbers<[1], [0], [0], [1], [0, 0, 1, 1], [], []>} : vector<256x128xf32>, vector<128x128xf32>, vector<256x128xf32> -> vector<256x128xf32>
    %43 = arith.addf %37, %42 : vector<256x128xf32>
    %c2_59 = arith.constant 2 : index
    %c0_60 = arith.constant 0 : index
    %c0_61 = arith.constant 0 : index
    %44 = vector.load %arg6[%c2_59, %c0_60, %c0_61] : memref<18x18x128xf32, #tpu.memory_space<vmem>>, vector<16x16x128xf32>
    %45 = vector.shape_cast %44 : vector<16x16x128xf32> to vector<256x128xf32>
    %c0_62 = arith.constant 0 : index
    %c6 = arith.constant 6 : index
    %c0_63 = arith.constant 0 : index
    %c0_64 = arith.constant 0 : index
    %46 = vector.load %arg2[%c0_62, %c6, %c0_63, %c0_64] : memref<5x9x128x128xf32, #tpu.memory_space<vmem>>, vector<1x1x128x128xf32>
    %47 = vector.shape_cast %46 : vector<1x1x128x128xf32> to vector<128x128xf32>
    %cst_65 = arith.constant dense<0.000000e+00> : vector<256x128xf32>
    %48 = tpu.matmul %45, %47, %cst_65 {dimension_numbers = #tpu.dot_dimension_numbers<[1], [0], [0], [1], [0, 0, 1, 1], [], []>} : vector<256x128xf32>, vector<128x128xf32>, vector<256x128xf32> -> vector<256x128xf32>
    %49 = arith.addf %43, %48 : vector<256x128xf32>
    %c2_66 = arith.constant 2 : index
    %c1_67 = arith.constant 1 : index
    %c0_68 = arith.constant 0 : index
    %50 = vector.load %arg6[%c2_66, %c1_67, %c0_68] : memref<18x18x128xf32, #tpu.memory_space<vmem>>, vector<16x16x128xf32>
    %51 = vector.shape_cast %50 : vector<16x16x128xf32> to vector<256x128xf32>
    %c0_69 = arith.constant 0 : index
    %c7 = arith.constant 7 : index
    %c0_70 = arith.constant 0 : index
    %c0_71 = arith.constant 0 : index
    %52 = vector.load %arg2[%c0_69, %c7, %c0_70, %c0_71] : memref<5x9x128x128xf32, #tpu.memory_space<vmem>>, vector<1x1x128x128xf32>
    %53 = vector.shape_cast %52 : vector<1x1x128x128xf32> to vector<128x128xf32>
    %cst_72 = arith.constant dense<0.000000e+00> : vector<256x128xf32>
    %54 = tpu.matmul %51, %53, %cst_72 {dimension_numbers = #tpu.dot_dimension_numbers<[1], [0], [0], [1], [0, 0, 1, 1], [], []>} : vector<256x128xf32>, vector<128x128xf32>, vector<256x128xf32> -> vector<256x128xf32>
    %55 = arith.addf %49, %54 : vector<256x128xf32>
    %c2_73 = arith.constant 2 : index
    %c2_74 = arith.constant 2 : index
    %c0_75 = arith.constant 0 : index
    %56 = vector.load %arg6[%c2_73, %c2_74, %c0_75] : memref<18x18x128xf32, #tpu.memory_space<vmem>>, vector<16x16x128xf32>
    %57 = vector.shape_cast %56 : vector<16x16x128xf32> to vector<256x128xf32>
    %c0_76 = arith.constant 0 : index
    %c8 = arith.constant 8 : index
    %c0_77 = arith.constant 0 : index
    %c0_78 = arith.constant 0 : index
    %58 = vector.load %arg2[%c0_76, %c8, %c0_77, %c0_78] : memref<5x9x128x128xf32, #tpu.memory_space<vmem>>, vector<1x1x128x128xf32>
    %59 = vector.shape_cast %58 : vector<1x1x128x128xf32> to vector<128x128xf32>
    %cst_79 = arith.constant dense<0.000000e+00> : vector<256x128xf32>
    %60 = tpu.matmul %57, %59, %cst_79 {dimension_numbers = #tpu.dot_dimension_numbers<[1], [0], [0], [1], [0, 0, 1, 1], [], []>} : vector<256x128xf32>, vector<128x128xf32>, vector<256x128xf32> -> vector<256x128xf32>
    %61 = arith.addf %55, %60 : vector<256x128xf32>
    %c0_80 = arith.constant 0 : index
    %c0_81 = arith.constant 0 : index
    %62 = vector.load %arg3[%c0_80, %c0_81] : memref<5x128xf32, #tpu.memory_space<vmem>>, vector<1x128xf32>
    %63 = vector.broadcast %62 : vector<1x128xf32> to vector<256x128xf32>
    %64 = arith.mulf %61, %63 : vector<256x128xf32>
    %c0_82 = arith.constant 0 : index
    %c0_83 = arith.constant 0 : index
    %65 = vector.load %arg4[%c0_82, %c0_83] : memref<5x128xf32, #tpu.memory_space<vmem>>, vector<1x128xf32>
    %66 = vector.broadcast %65 : vector<1x128xf32> to vector<256x128xf32>
    %67 = arith.addf %64, %66 : vector<256x128xf32>
    %cst_84 = arith.constant 0.000000e+00 : f32
    %68 = vector.broadcast %cst_84 : f32 to vector<256x128xf32>
    %69 = arith.maximumf %67, %68 : vector<256x128xf32>
    %70 = vector.shape_cast %69 : vector<256x128xf32> to vector<16x16x128xf32>
    %c1_85 = arith.constant 1 : index
    %c1_86 = arith.constant 1 : index
    %c0_87 = arith.constant 0 : index
    %71 = vector.load %arg8[%c1_85, %c1_86, %c0_87] : memref<18x18x128xf32, #tpu.memory_space<vmem>>, vector<16x16x128xf32>
    tpu.vector_store %arg8[%c1_85, %c1_86, %c0_87], %70 {strides = array<i32>} : memref<18x18x128xf32, #tpu.memory_space<vmem>>, vector<16x16x128xf32>,
    %cst_88 = arith.constant 0.000000e+00 : f32
    %72 = vector.broadcast %cst_88 : f32 to vector<256x128xf32>
    %c0_89 = arith.constant 0 : index
    %c0_90 = arith.constant 0 : index
    %c0_91 = arith.constant 0 : index
    %73 = vector.load %arg8[%c0_89, %c0_90, %c0_91] : memref<18x18x128xf32, #tpu.memory_space<vmem>>, vector<16x16x128xf32>
    %74 = vector.shape_cast %73 : vector<16x16x128xf32> to vector<256x128xf32>
    %c1_92 = arith.constant 1 : index
    %c0_93 = arith.constant 0 : index
    %c0_94 = arith.constant 0 : index
    %c0_95 = arith.constant 0 : index
    %75 = vector.load %arg2[%c1_92, %c0_93, %c0_94, %c0_95] : memref<5x9x128x128xf32, #tpu.memory_space<vmem>>, vector<1x1x128x128xf32>
    %76 = vector.shape_cast %75 : vector<1x1x128x128xf32> to vector<128x128xf32>
    %cst_96 = arith.constant dense<0.000000e+00> : vector<256x128xf32>
    %77 = tpu.matmul %74, %76, %cst_96 {dimension_numbers = #tpu.dot_dimension_numbers<[1], [0], [0], [1], [0, 0, 1, 1], [], []>} : vector<256x128xf32>, vector<128x128xf32>, vector<256x128xf32> -> vector<256x128xf32>
    %78 = arith.addf %72, %77 : vector<256x128xf32>
    %c0_97 = arith.constant 0 : index
    %c1_98 = arith.constant 1 : index
    %c0_99 = arith.constant 0 : index
    %79 = vector.load %arg8[%c0_97, %c1_98, %c0_99] : memref<18x18x128xf32, #tpu.memory_space<vmem>>, vector<16x16x128xf32>
    %80 = vector.shape_cast %79 : vector<16x16x128xf32> to vector<256x128xf32>
    %c1_100 = arith.constant 1 : index
    %c1_101 = arith.constant 1 : index
    %c0_102 = arith.constant 0 : index
    %c0_103 = arith.constant 0 : index
    %81 = vector.load %arg2[%c1_100, %c1_101, %c0_102, %c0_103] : memref<5x9x128x128xf32, #tpu.memory_space<vmem>>, vector<1x1x128x128xf32>
    %82 = vector.shape_cast %81 : vector<1x1x128x128xf32> to vector<128x128xf32>
    %cst_104 = arith.constant dense<0.000000e+00> : vector<256x128xf32>
    %83 = tpu.matmul %80, %82, %cst_104 {dimension_numbers = #tpu.dot_dimension_numbers<[1], [0], [0], [1], [0, 0, 1, 1], [], []>} : vector<256x128xf32>, vector<128x128xf32>, vector<256x128xf32> -> vector<256x128xf32>
    %84 = arith.addf %78, %83 : vector<256x128xf32>
    %c0_105 = arith.constant 0 : index
    %c2_106 = arith.constant 2 : index
    %c0_107 = arith.constant 0 : index
    %85 = vector.load %arg8[%c0_105, %c2_106, %c0_107] : memref<18x18x128xf32, #tpu.memory_space<vmem>>, vector<16x16x128xf32>
    %86 = vector.shape_cast %85 : vector<16x16x128xf32> to vector<256x128xf32>
    %c1_108 = arith.constant 1 : index
    %c2_109 = arith.constant 2 : index
    %c0_110 = arith.constant 0 : index
    %c0_111 = arith.constant 0 : index
    %87 = vector.load %arg2[%c1_108, %c2_109, %c0_110, %c0_111] : memref<5x9x128x128xf32, #tpu.memory_space<vmem>>, vector<1x1x128x128xf32>
    %88 = vector.shape_cast %87 : vector<1x1x128x128xf32> to vector<128x128xf32>
    %cst_112 = arith.constant dense<0.000000e+00> : vector<256x128xf32>
    %89 = tpu.matmul %86, %88, %cst_112 {dimension_numbers = #tpu.dot_dimension_numbers<[1], [0], [0], [1], [0, 0, 1, 1], [], []>} : vector<256x128xf32>, vector<128x128xf32>, vector<256x128xf32> -> vector<256x128xf32>
    %90 = arith.addf %84, %89 : vector<256x128xf32>
    %c1_113 = arith.constant 1 : index
    %c0_114 = arith.constant 0 : index
    %c0_115 = arith.constant 0 : index
    %91 = vector.load %arg8[%c1_113, %c0_114, %c0_115] : memref<18x18x128xf32, #tpu.memory_space<vmem>>, vector<16x16x128xf32>
    %92 = vector.shape_cast %91 : vector<16x16x128xf32> to vector<256x128xf32>
    %c1_116 = arith.constant 1 : index
    %c3_117 = arith.constant 3 : index
    %c0_118 = arith.constant 0 : index
    %c0_119 = arith.constant 0 : index
    %93 = vector.load %arg2[%c1_116, %c3_117, %c0_118, %c0_119] : memref<5x9x128x128xf32, #tpu.memory_space<vmem>>, vector<1x1x128x128xf32>
    %94 = vector.shape_cast %93 : vector<1x1x128x128xf32> to vector<128x128xf32>
    %cst_120 = arith.constant dense<0.000000e+00> : vector<256x128xf32>
    %95 = tpu.matmul %92, %94, %cst_120 {dimension_numbers = #tpu.dot_dimension_numbers<[1], [0], [0], [1], [0, 0, 1, 1], [], []>} : vector<256x128xf32>, vector<128x128xf32>, vector<256x128xf32> -> vector<256x128xf32>
    %96 = arith.addf %90, %95 : vector<256x128xf32>
    %c1_121 = arith.constant 1 : index
    %c1_122 = arith.constant 1 : index
    %c0_123 = arith.constant 0 : index
    %97 = vector.load %arg8[%c1_121, %c1_122, %c0_123] : memref<18x18x128xf32, #tpu.memory_space<vmem>>, vector<16x16x128xf32>
    %98 = vector.shape_cast %97 : vector<16x16x128xf32> to vector<256x128xf32>
    %c1_124 = arith.constant 1 : index
    %c4_125 = arith.constant 4 : index
    %c0_126 = arith.constant 0 : index
    %c0_127 = arith.constant 0 : index
    %99 = vector.load %arg2[%c1_124, %c4_125, %c0_126, %c0_127] : memref<5x9x128x128xf32, #tpu.memory_space<vmem>>, vector<1x1x128x128xf32>
    %100 = vector.shape_cast %99 : vector<1x1x128x128xf32> to vector<128x128xf32>
    %cst_128 = arith.constant dense<0.000000e+00> : vector<256x128xf32>
    %101 = tpu.matmul %98, %100, %cst_128 {dimension_numbers = #tpu.dot_dimension_numbers<[1], [0], [0], [1], [0, 0, 1, 1], [], []>} : vector<256x128xf32>, vector<128x128xf32>, vector<256x128xf32> -> vector<256x128xf32>
    %102 = arith.addf %96, %101 : vector<256x128xf32>
    %c1_129 = arith.constant 1 : index
    %c2_130 = arith.constant 2 : index
    %c0_131 = arith.constant 0 : index
    %103 = vector.load %arg8[%c1_129, %c2_130, %c0_131] : memref<18x18x128xf32, #tpu.memory_space<vmem>>, vector<16x16x128xf32>
    %104 = vector.shape_cast %103 : vector<16x16x128xf32> to vector<256x128xf32>
    %c1_132 = arith.constant 1 : index
    %c5_133 = arith.constant 5 : index
    %c0_134 = arith.constant 0 : index
    %c0_135 = arith.constant 0 : index
    %105 = vector.load %arg2[%c1_132, %c5_133, %c0_134, %c0_135] : memref<5x9x128x128xf32, #tpu.memory_space<vmem>>, vector<1x1x128x128xf32>
    %106 = vector.shape_cast %105 : vector<1x1x128x128xf32> to vector<128x128xf32>
    %cst_136 = arith.constant dense<0.000000e+00> : vector<256x128xf32>
    %107 = tpu.matmul %104, %106, %cst_136 {dimension_numbers = #tpu.dot_dimension_numbers<[1], [0], [0], [1], [0, 0, 1, 1], [], []>} : vector<256x128xf32>, vector<128x128xf32>, vector<256x128xf32> -> vector<256x128xf32>
    %108 = arith.addf %102, %107 : vector<256x128xf32>
    %c2_137 = arith.constant 2 : index
    %c0_138 = arith.constant 0 : index
    %c0_139 = arith.constant 0 : index
    %109 = vector.load %arg8[%c2_137, %c0_138, %c0_139] : memref<18x18x128xf32, #tpu.memory_space<vmem>>, vector<16x16x128xf32>
    %110 = vector.shape_cast %109 : vector<16x16x128xf32> to vector<256x128xf32>
    %c1_140 = arith.constant 1 : index
    %c6_141 = arith.constant 6 : index
    %c0_142 = arith.constant 0 : index
    %c0_143 = arith.constant 0 : index
    %111 = vector.load %arg2[%c1_140, %c6_141, %c0_142, %c0_143] : memref<5x9x128x128xf32, #tpu.memory_space<vmem>>, vector<1x1x128x128xf32>
    %112 = vector.shape_cast %111 : vector<1x1x128x128xf32> to vector<128x128xf32>
    %cst_144 = arith.constant dense<0.000000e+00> : vector<256x128xf32>
    %113 = tpu.matmul %110, %112, %cst_144 {dimension_numbers = #tpu.dot_dimension_numbers<[1], [0], [0], [1], [0, 0, 1, 1], [], []>} : vector<256x128xf32>, vector<128x128xf32>, vector<256x128xf32> -> vector<256x128xf32>
    %114 = arith.addf %108, %113 : vector<256x128xf32>
    %c2_145 = arith.constant 2 : index
    %c1_146 = arith.constant 1 : index
    %c0_147 = arith.constant 0 : index
    %115 = vector.load %arg8[%c2_145, %c1_146, %c0_147] : memref<18x18x128xf32, #tpu.memory_space<vmem>>, vector<16x16x128xf32>
    %116 = vector.shape_cast %115 : vector<16x16x128xf32> to vector<256x128xf32>
    %c1_148 = arith.constant 1 : index
    %c7_149 = arith.constant 7 : index
    %c0_150 = arith.constant 0 : index
    %c0_151 = arith.constant 0 : index
    %117 = vector.load %arg2[%c1_148, %c7_149, %c0_150, %c0_151] : memref<5x9x128x128xf32, #tpu.memory_space<vmem>>, vector<1x1x128x128xf32>
    %118 = vector.shape_cast %117 : vector<1x1x128x128xf32> to vector<128x128xf32>
    %cst_152 = arith.constant dense<0.000000e+00> : vector<256x128xf32>
    %119 = tpu.matmul %116, %118, %cst_152 {dimension_numbers = #tpu.dot_dimension_numbers<[1], [0], [0], [1], [0, 0, 1, 1], [], []>} : vector<256x128xf32>, vector<128x128xf32>, vector<256x128xf32> -> vector<256x128xf32>
    %120 = arith.addf %114, %119 : vector<256x128xf32>
    %c2_153 = arith.constant 2 : index
    %c2_154 = arith.constant 2 : index
    %c0_155 = arith.constant 0 : index
    %121 = vector.load %arg8[%c2_153, %c2_154, %c0_155] : memref<18x18x128xf32, #tpu.memory_space<vmem>>, vector<16x16x128xf32>
    %122 = vector.shape_cast %121 : vector<16x16x128xf32> to vector<256x128xf32>
    %c1_156 = arith.constant 1 : index
    %c8_157 = arith.constant 8 : index
    %c0_158 = arith.constant 0 : index
    %c0_159 = arith.constant 0 : index
    %123 = vector.load %arg2[%c1_156, %c8_157, %c0_158, %c0_159] : memref<5x9x128x128xf32, #tpu.memory_space<vmem>>, vector<1x1x128x128xf32>
    %124 = vector.shape_cast %123 : vector<1x1x128x128xf32> to vector<128x128xf32>
    %cst_160 = arith.constant dense<0.000000e+00> : vector<256x128xf32>
    %125 = tpu.matmul %122, %124, %cst_160 {dimension_numbers = #tpu.dot_dimension_numbers<[1], [0], [0], [1], [0, 0, 1, 1], [], []>} : vector<256x128xf32>, vector<128x128xf32>, vector<256x128xf32> -> vector<256x128xf32>
    %126 = arith.addf %120, %125 : vector<256x128xf32>
    %c1_161 = arith.constant 1 : index
    %c0_162 = arith.constant 0 : index
    %127 = vector.load %arg3[%c1_161, %c0_162] : memref<5x128xf32, #tpu.memory_space<vmem>>, vector<1x128xf32>
    %128 = vector.broadcast %127 : vector<1x128xf32> to vector<256x128xf32>
    %129 = arith.mulf %126, %128 : vector<256x128xf32>
    %c1_163 = arith.constant 1 : index
    %c0_164 = arith.constant 0 : index
    %130 = vector.load %arg4[%c1_163, %c0_164] : memref<5x128xf32, #tpu.memory_space<vmem>>, vector<1x128xf32>
    %131 = vector.broadcast %130 : vector<1x128xf32> to vector<256x128xf32>
    %132 = arith.addf %129, %131 : vector<256x128xf32>
    %cst_165 = arith.constant 0.000000e+00 : f32
    %133 = vector.broadcast %cst_165 : f32 to vector<256x128xf32>
    %134 = arith.maximumf %132, %133 : vector<256x128xf32>
    %135 = vector.shape_cast %134 : vector<256x128xf32> to vector<16x16x128xf32>
    %c1_166 = arith.constant 1 : index
    %c1_167 = arith.constant 1 : index
    %c0_168 = arith.constant 0 : index
    %136 = vector.load %arg6[%c1_166, %c1_167, %c0_168] : memref<18x18x128xf32, #tpu.memory_space<vmem>>, vector<16x16x128xf32>
    tpu.vector_store %arg6[%c1_166, %c1_167, %c0_168], %135 {strides = array<i32>} : memref<18x18x128xf32, #tpu.memory_space<vmem>>, vector<16x16x128xf32>,
    %cst_169 = arith.constant 0.000000e+00 : f32
    %137 = vector.broadcast %cst_169 : f32 to vector<256x128xf32>
    %c0_170 = arith.constant 0 : index
    %c0_171 = arith.constant 0 : index
    %c0_172 = arith.constant 0 : index
    %138 = vector.load %arg6[%c0_170, %c0_171, %c0_172] : memref<18x18x128xf32, #tpu.memory_space<vmem>>, vector<16x16x128xf32>
    %139 = vector.shape_cast %138 : vector<16x16x128xf32> to vector<256x128xf32>
    %c2_173 = arith.constant 2 : index
    %c0_174 = arith.constant 0 : index
    %c0_175 = arith.constant 0 : index
    %c0_176 = arith.constant 0 : index
    %140 = vector.load %arg2[%c2_173, %c0_174, %c0_175, %c0_176] : memref<5x9x128x128xf32, #tpu.memory_space<vmem>>, vector<1x1x128x128xf32>
    %141 = vector.shape_cast %140 : vector<1x1x128x128xf32> to vector<128x128xf32>
    %cst_177 = arith.constant dense<0.000000e+00> : vector<256x128xf32>
    %142 = tpu.matmul %139, %141, %cst_177 {dimension_numbers = #tpu.dot_dimension_numbers<[1], [0], [0], [1], [0, 0, 1, 1], [], []>} : vector<256x128xf32>, vector<128x128xf32>, vector<256x128xf32> -> vector<256x128xf32>
    %143 = arith.addf %137, %142 : vector<256x128xf32>
    %c0_178 = arith.constant 0 : index
    %c1_179 = arith.constant 1 : index
    %c0_180 = arith.constant 0 : index
    %144 = vector.load %arg6[%c0_178, %c1_179, %c0_180] : memref<18x18x128xf32, #tpu.memory_space<vmem>>, vector<16x16x128xf32>
    %145 = vector.shape_cast %144 : vector<16x16x128xf32> to vector<256x128xf32>
    %c2_181 = arith.constant 2 : index
    %c1_182 = arith.constant 1 : index
    %c0_183 = arith.constant 0 : index
    %c0_184 = arith.constant 0 : index
    %146 = vector.load %arg2[%c2_181, %c1_182, %c0_183, %c0_184] : memref<5x9x128x128xf32, #tpu.memory_space<vmem>>, vector<1x1x128x128xf32>
    %147 = vector.shape_cast %146 : vector<1x1x128x128xf32> to vector<128x128xf32>
    %cst_185 = arith.constant dense<0.000000e+00> : vector<256x128xf32>
    %148 = tpu.matmul %145, %147, %cst_185 {dimension_numbers = #tpu.dot_dimension_numbers<[1], [0], [0], [1], [0, 0, 1, 1], [], []>} : vector<256x128xf32>, vector<128x128xf32>, vector<256x128xf32> -> vector<256x128xf32>
    %149 = arith.addf %143, %148 : vector<256x128xf32>
    %c0_186 = arith.constant 0 : index
    %c2_187 = arith.constant 2 : index
    %c0_188 = arith.constant 0 : index
    %150 = vector.load %arg6[%c0_186, %c2_187, %c0_188] : memref<18x18x128xf32, #tpu.memory_space<vmem>>, vector<16x16x128xf32>
    %151 = vector.shape_cast %150 : vector<16x16x128xf32> to vector<256x128xf32>
    %c2_189 = arith.constant 2 : index
    %c2_190 = arith.constant 2 : index
    %c0_191 = arith.constant 0 : index
    %c0_192 = arith.constant 0 : index
    %152 = vector.load %arg2[%c2_189, %c2_190, %c0_191, %c0_192] : memref<5x9x128x128xf32, #tpu.memory_space<vmem>>, vector<1x1x128x128xf32>
    %153 = vector.shape_cast %152 : vector<1x1x128x128xf32> to vector<128x128xf32>
    %cst_193 = arith.constant dense<0.000000e+00> : vector<256x128xf32>
    %154 = tpu.matmul %151, %153, %cst_193 {dimension_numbers = #tpu.dot_dimension_numbers<[1], [0], [0], [1], [0, 0, 1, 1], [], []>} : vector<256x128xf32>, vector<128x128xf32>, vector<256x128xf32> -> vector<256x128xf32>
    %155 = arith.addf %149, %154 : vector<256x128xf32>
    %c1_194 = arith.constant 1 : index
    %c0_195 = arith.constant 0 : index
    %c0_196 = arith.constant 0 : index
    %156 = vector.load %arg6[%c1_194, %c0_195, %c0_196] : memref<18x18x128xf32, #tpu.memory_space<vmem>>, vector<16x16x128xf32>
    %157 = vector.shape_cast %156 : vector<16x16x128xf32> to vector<256x128xf32>
    %c2_197 = arith.constant 2 : index
    %c3_198 = arith.constant 3 : index
    %c0_199 = arith.constant 0 : index
    %c0_200 = arith.constant 0 : index
    %158 = vector.load %arg2[%c2_197, %c3_198, %c0_199, %c0_200] : memref<5x9x128x128xf32, #tpu.memory_space<vmem>>, vector<1x1x128x128xf32>
    %159 = vector.shape_cast %158 : vector<1x1x128x128xf32> to vector<128x128xf32>
    %cst_201 = arith.constant dense<0.000000e+00> : vector<256x128xf32>
    %160 = tpu.matmul %157, %159, %cst_201 {dimension_numbers = #tpu.dot_dimension_numbers<[1], [0], [0], [1], [0, 0, 1, 1], [], []>} : vector<256x128xf32>, vector<128x128xf32>, vector<256x128xf32> -> vector<256x128xf32>
    %161 = arith.addf %155, %160 : vector<256x128xf32>
    %c1_202 = arith.constant 1 : index
    %c1_203 = arith.constant 1 : index
    %c0_204 = arith.constant 0 : index
    %162 = vector.load %arg6[%c1_202, %c1_203, %c0_204] : memref<18x18x128xf32, #tpu.memory_space<vmem>>, vector<16x16x128xf32>
    %163 = vector.shape_cast %162 : vector<16x16x128xf32> to vector<256x128xf32>
    %c2_205 = arith.constant 2 : index
    %c4_206 = arith.constant 4 : index
    %c0_207 = arith.constant 0 : index
    %c0_208 = arith.constant 0 : index
    %164 = vector.load %arg2[%c2_205, %c4_206, %c0_207, %c0_208] : memref<5x9x128x128xf32, #tpu.memory_space<vmem>>, vector<1x1x128x128xf32>
    %165 = vector.shape_cast %164 : vector<1x1x128x128xf32> to vector<128x128xf32>
    %cst_209 = arith.constant dense<0.000000e+00> : vector<256x128xf32>
    %166 = tpu.matmul %163, %165, %cst_209 {dimension_numbers = #tpu.dot_dimension_numbers<[1], [0], [0], [1], [0, 0, 1, 1], [], []>} : vector<256x128xf32>, vector<128x128xf32>, vector<256x128xf32> -> vector<256x128xf32>
    %167 = arith.addf %161, %166 : vector<256x128xf32>
    %c1_210 = arith.constant 1 : index
    %c2_211 = arith.constant 2 : index
    %c0_212 = arith.constant 0 : index
    %168 = vector.load %arg6[%c1_210, %c2_211, %c0_212] : memref<18x18x128xf32, #tpu.memory_space<vmem>>, vector<16x16x128xf32>
    %169 = vector.shape_cast %168 : vector<16x16x128xf32> to vector<256x128xf32>
    %c2_213 = arith.constant 2 : index
    %c5_214 = arith.constant 5 : index
    %c0_215 = arith.constant 0 : index
    %c0_216 = arith.constant 0 : index
    %170 = vector.load %arg2[%c2_213, %c5_214, %c0_215, %c0_216] : memref<5x9x128x128xf32, #tpu.memory_space<vmem>>, vector<1x1x128x128xf32>
    %171 = vector.shape_cast %170 : vector<1x1x128x128xf32> to vector<128x128xf32>
    %cst_217 = arith.constant dense<0.000000e+00> : vector<256x128xf32>
    %172 = tpu.matmul %169, %171, %cst_217 {dimension_numbers = #tpu.dot_dimension_numbers<[1], [0], [0], [1], [0, 0, 1, 1], [], []>} : vector<256x128xf32>, vector<128x128xf32>, vector<256x128xf32> -> vector<256x128xf32>
    %173 = arith.addf %167, %172 : vector<256x128xf32>
    %c2_218 = arith.constant 2 : index
    %c0_219 = arith.constant 0 : index
    %c0_220 = arith.constant 0 : index
    %174 = vector.load %arg6[%c2_218, %c0_219, %c0_220] : memref<18x18x128xf32, #tpu.memory_space<vmem>>, vector<16x16x128xf32>
    %175 = vector.shape_cast %174 : vector<16x16x128xf32> to vector<256x128xf32>
    %c2_221 = arith.constant 2 : index
    %c6_222 = arith.constant 6 : index
    %c0_223 = arith.constant 0 : index
    %c0_224 = arith.constant 0 : index
    %176 = vector.load %arg2[%c2_221, %c6_222, %c0_223, %c0_224] : memref<5x9x128x128xf32, #tpu.memory_space<vmem>>, vector<1x1x128x128xf32>
    %177 = vector.shape_cast %176 : vector<1x1x128x128xf32> to vector<128x128xf32>
    %cst_225 = arith.constant dense<0.000000e+00> : vector<256x128xf32>
    %178 = tpu.matmul %175, %177, %cst_225 {dimension_numbers = #tpu.dot_dimension_numbers<[1], [0], [0], [1], [0, 0, 1, 1], [], []>} : vector<256x128xf32>, vector<128x128xf32>, vector<256x128xf32> -> vector<256x128xf32>
    %179 = arith.addf %173, %178 : vector<256x128xf32>
    %c2_226 = arith.constant 2 : index
    %c1_227 = arith.constant 1 : index
    %c0_228 = arith.constant 0 : index
    %180 = vector.load %arg6[%c2_226, %c1_227, %c0_228] : memref<18x18x128xf32, #tpu.memory_space<vmem>>, vector<16x16x128xf32>
    %181 = vector.shape_cast %180 : vector<16x16x128xf32> to vector<256x128xf32>
    %c2_229 = arith.constant 2 : index
    %c7_230 = arith.constant 7 : index
    %c0_231 = arith.constant 0 : index
    %c0_232 = arith.constant 0 : index
    %182 = vector.load %arg2[%c2_229, %c7_230, %c0_231, %c0_232] : memref<5x9x128x128xf32, #tpu.memory_space<vmem>>, vector<1x1x128x128xf32>
    %183 = vector.shape_cast %182 : vector<1x1x128x128xf32> to vector<128x128xf32>
    %cst_233 = arith.constant dense<0.000000e+00> : vector<256x128xf32>
    %184 = tpu.matmul %181, %183, %cst_233 {dimension_numbers = #tpu.dot_dimension_numbers<[1], [0], [0], [1], [0, 0, 1, 1], [], []>} : vector<256x128xf32>, vector<128x128xf32>, vector<256x128xf32> -> vector<256x128xf32>
    %185 = arith.addf %179, %184 : vector<256x128xf32>
    %c2_234 = arith.constant 2 : index
    %c2_235 = arith.constant 2 : index
    %c0_236 = arith.constant 0 : index
    %186 = vector.load %arg6[%c2_234, %c2_235, %c0_236] : memref<18x18x128xf32, #tpu.memory_space<vmem>>, vector<16x16x128xf32>
    %187 = vector.shape_cast %186 : vector<16x16x128xf32> to vector<256x128xf32>
    %c2_237 = arith.constant 2 : index
    %c8_238 = arith.constant 8 : index
    %c0_239 = arith.constant 0 : index
    %c0_240 = arith.constant 0 : index
    %188 = vector.load %arg2[%c2_237, %c8_238, %c0_239, %c0_240] : memref<5x9x128x128xf32, #tpu.memory_space<vmem>>, vector<1x1x128x128xf32>
    %189 = vector.shape_cast %188 : vector<1x1x128x128xf32> to vector<128x128xf32>
    %cst_241 = arith.constant dense<0.000000e+00> : vector<256x128xf32>
    %190 = tpu.matmul %187, %189, %cst_241 {dimension_numbers = #tpu.dot_dimension_numbers<[1], [0], [0], [1], [0, 0, 1, 1], [], []>} : vector<256x128xf32>, vector<128x128xf32>, vector<256x128xf32> -> vector<256x128xf32>
    %191 = arith.addf %185, %190 : vector<256x128xf32>
    %c2_242 = arith.constant 2 : index
    %c0_243 = arith.constant 0 : index
    %192 = vector.load %arg3[%c2_242, %c0_243] : memref<5x128xf32, #tpu.memory_space<vmem>>, vector<1x128xf32>
    %193 = vector.broadcast %192 : vector<1x128xf32> to vector<256x128xf32>
    %194 = arith.mulf %191, %193 : vector<256x128xf32>
    %c2_244 = arith.constant 2 : index
    %c0_245 = arith.constant 0 : index
    %195 = vector.load %arg4[%c2_244, %c0_245] : memref<5x128xf32, #tpu.memory_space<vmem>>, vector<1x128xf32>
    %196 = vector.broadcast %195 : vector<1x128xf32> to vector<256x128xf32>
    %197 = arith.addf %194, %196 : vector<256x128xf32>
    %cst_246 = arith.constant 0.000000e+00 : f32
    %198 = vector.broadcast %cst_246 : f32 to vector<256x128xf32>
    %199 = arith.maximumf %197, %198 : vector<256x128xf32>
    %200 = vector.shape_cast %199 : vector<256x128xf32> to vector<16x16x128xf32>
    %c1_247 = arith.constant 1 : index
    %c1_248 = arith.constant 1 : index
    %c0_249 = arith.constant 0 : index
    %201 = vector.load %arg7[%c1_247, %c1_248, %c0_249] : memref<18x18x128xf32, #tpu.memory_space<vmem>>, vector<16x16x128xf32>
    tpu.vector_store %arg7[%c1_247, %c1_248, %c0_249], %200 {strides = array<i32>} : memref<18x18x128xf32, #tpu.memory_space<vmem>>, vector<16x16x128xf32>,
    %cst_250 = arith.constant 0.000000e+00 : f32
    %202 = vector.broadcast %cst_250 : f32 to vector<256x128xf32>
    %c0_251 = arith.constant 0 : index
    %c0_252 = arith.constant 0 : index
    %c0_253 = arith.constant 0 : index
    %203 = vector.load %arg7[%c0_251, %c0_252, %c0_253] : memref<18x18x128xf32, #tpu.memory_space<vmem>>, vector<16x16x128xf32>
    %204 = vector.shape_cast %203 : vector<16x16x128xf32> to vector<256x128xf32>
    %c3_254 = arith.constant 3 : index
    %c0_255 = arith.constant 0 : index
    %c0_256 = arith.constant 0 : index
    %c0_257 = arith.constant 0 : index
    %205 = vector.load %arg2[%c3_254, %c0_255, %c0_256, %c0_257] : memref<5x9x128x128xf32, #tpu.memory_space<vmem>>, vector<1x1x128x128xf32>
    %206 = vector.shape_cast %205 : vector<1x1x128x128xf32> to vector<128x128xf32>
    %cst_258 = arith.constant dense<0.000000e+00> : vector<256x128xf32>
    %207 = tpu.matmul %204, %206, %cst_258 {dimension_numbers = #tpu.dot_dimension_numbers<[1], [0], [0], [1], [0, 0, 1, 1], [], []>} : vector<256x128xf32>, vector<128x128xf32>, vector<256x128xf32> -> vector<256x128xf32>
    %208 = arith.addf %202, %207 : vector<256x128xf32>
    %c0_259 = arith.constant 0 : index
    %c1_260 = arith.constant 1 : index
    %c0_261 = arith.constant 0 : index
    %209 = vector.load %arg7[%c0_259, %c1_260, %c0_261] : memref<18x18x128xf32, #tpu.memory_space<vmem>>, vector<16x16x128xf32>
    %210 = vector.shape_cast %209 : vector<16x16x128xf32> to vector<256x128xf32>
    %c3_262 = arith.constant 3 : index
    %c1_263 = arith.constant 1 : index
    %c0_264 = arith.constant 0 : index
    %c0_265 = arith.constant 0 : index
    %211 = vector.load %arg2[%c3_262, %c1_263, %c0_264, %c0_265] : memref<5x9x128x128xf32, #tpu.memory_space<vmem>>, vector<1x1x128x128xf32>
    %212 = vector.shape_cast %211 : vector<1x1x128x128xf32> to vector<128x128xf32>
    %cst_266 = arith.constant dense<0.000000e+00> : vector<256x128xf32>
    %213 = tpu.matmul %210, %212, %cst_266 {dimension_numbers = #tpu.dot_dimension_numbers<[1], [0], [0], [1], [0, 0, 1, 1], [], []>} : vector<256x128xf32>, vector<128x128xf32>, vector<256x128xf32> -> vector<256x128xf32>
    %214 = arith.addf %208, %213 : vector<256x128xf32>
    %c0_267 = arith.constant 0 : index
    %c2_268 = arith.constant 2 : index
    %c0_269 = arith.constant 0 : index
    %215 = vector.load %arg7[%c0_267, %c2_268, %c0_269] : memref<18x18x128xf32, #tpu.memory_space<vmem>>, vector<16x16x128xf32>
    %216 = vector.shape_cast %215 : vector<16x16x128xf32> to vector<256x128xf32>
    %c3_270 = arith.constant 3 : index
    %c2_271 = arith.constant 2 : index
    %c0_272 = arith.constant 0 : index
    %c0_273 = arith.constant 0 : index
    %217 = vector.load %arg2[%c3_270, %c2_271, %c0_272, %c0_273] : memref<5x9x128x128xf32, #tpu.memory_space<vmem>>, vector<1x1x128x128xf32>
    %218 = vector.shape_cast %217 : vector<1x1x128x128xf32> to vector<128x128xf32>
    %cst_274 = arith.constant dense<0.000000e+00> : vector<256x128xf32>
    %219 = tpu.matmul %216, %218, %cst_274 {dimension_numbers = #tpu.dot_dimension_numbers<[1], [0], [0], [1], [0, 0, 1, 1], [], []>} : vector<256x128xf32>, vector<128x128xf32>, vector<256x128xf32> -> vector<256x128xf32>
    %220 = arith.addf %214, %219 : vector<256x128xf32>
    %c1_275 = arith.constant 1 : index
    %c0_276 = arith.constant 0 : index
    %c0_277 = arith.constant 0 : index
    %221 = vector.load %arg7[%c1_275, %c0_276, %c0_277] : memref<18x18x128xf32, #tpu.memory_space<vmem>>, vector<16x16x128xf32>
    %222 = vector.shape_cast %221 : vector<16x16x128xf32> to vector<256x128xf32>
    %c3_278 = arith.constant 3 : index
    %c3_279 = arith.constant 3 : index
    %c0_280 = arith.constant 0 : index
    %c0_281 = arith.constant 0 : index
    %223 = vector.load %arg2[%c3_278, %c3_279, %c0_280, %c0_281] : memref<5x9x128x128xf32, #tpu.memory_space<vmem>>, vector<1x1x128x128xf32>
    %224 = vector.shape_cast %223 : vector<1x1x128x128xf32> to vector<128x128xf32>
    %cst_282 = arith.constant dense<0.000000e+00> : vector<256x128xf32>
    %225 = tpu.matmul %222, %224, %cst_282 {dimension_numbers = #tpu.dot_dimension_numbers<[1], [0], [0], [1], [0, 0, 1, 1], [], []>} : vector<256x128xf32>, vector<128x128xf32>, vector<256x128xf32> -> vector<256x128xf32>
    %226 = arith.addf %220, %225 : vector<256x128xf32>
    %c1_283 = arith.constant 1 : index
    %c1_284 = arith.constant 1 : index
    %c0_285 = arith.constant 0 : index
    %227 = vector.load %arg7[%c1_283, %c1_284, %c0_285] : memref<18x18x128xf32, #tpu.memory_space<vmem>>, vector<16x16x128xf32>
    %228 = vector.shape_cast %227 : vector<16x16x128xf32> to vector<256x128xf32>
    %c3_286 = arith.constant 3 : index
    %c4_287 = arith.constant 4 : index
    %c0_288 = arith.constant 0 : index
    %c0_289 = arith.constant 0 : index
    %229 = vector.load %arg2[%c3_286, %c4_287, %c0_288, %c0_289] : memref<5x9x128x128xf32, #tpu.memory_space<vmem>>, vector<1x1x128x128xf32>
    %230 = vector.shape_cast %229 : vector<1x1x128x128xf32> to vector<128x128xf32>
    %cst_290 = arith.constant dense<0.000000e+00> : vector<256x128xf32>
    %231 = tpu.matmul %228, %230, %cst_290 {dimension_numbers = #tpu.dot_dimension_numbers<[1], [0], [0], [1], [0, 0, 1, 1], [], []>} : vector<256x128xf32>, vector<128x128xf32>, vector<256x128xf32> -> vector<256x128xf32>
    %232 = arith.addf %226, %231 : vector<256x128xf32>
    %c1_291 = arith.constant 1 : index
    %c2_292 = arith.constant 2 : index
    %c0_293 = arith.constant 0 : index
    %233 = vector.load %arg7[%c1_291, %c2_292, %c0_293] : memref<18x18x128xf32, #tpu.memory_space<vmem>>, vector<16x16x128xf32>
    %234 = vector.shape_cast %233 : vector<16x16x128xf32> to vector<256x128xf32>
    %c3_294 = arith.constant 3 : index
    %c5_295 = arith.constant 5 : index
    %c0_296 = arith.constant 0 : index
    %c0_297 = arith.constant 0 : index
    %235 = vector.load %arg2[%c3_294, %c5_295, %c0_296, %c0_297] : memref<5x9x128x128xf32, #tpu.memory_space<vmem>>, vector<1x1x128x128xf32>
    %236 = vector.shape_cast %235 : vector<1x1x128x128xf32> to vector<128x128xf32>
    %cst_298 = arith.constant dense<0.000000e+00> : vector<256x128xf32>
    %237 = tpu.matmul %234, %236, %cst_298 {dimension_numbers = #tpu.dot_dimension_numbers<[1], [0], [0], [1], [0, 0, 1, 1], [], []>} : vector<256x128xf32>, vector<128x128xf32>, vector<256x128xf32> -> vector<256x128xf32>
    %238 = arith.addf %232, %237 : vector<256x128xf32>
    %c2_299 = arith.constant 2 : index
    %c0_300 = arith.constant 0 : index
    %c0_301 = arith.constant 0 : index
    %239 = vector.load %arg7[%c2_299, %c0_300, %c0_301] : memref<18x18x128xf32, #tpu.memory_space<vmem>>, vector<16x16x128xf32>
    %240 = vector.shape_cast %239 : vector<16x16x128xf32> to vector<256x128xf32>
    %c3_302 = arith.constant 3 : index
    %c6_303 = arith.constant 6 : index
    %c0_304 = arith.constant 0 : index
    %c0_305 = arith.constant 0 : index
    %241 = vector.load %arg2[%c3_302, %c6_303, %c0_304, %c0_305] : memref<5x9x128x128xf32, #tpu.memory_space<vmem>>, vector<1x1x128x128xf32>
    %242 = vector.shape_cast %241 : vector<1x1x128x128xf32> to vector<128x128xf32>
    %cst_306 = arith.constant dense<0.000000e+00> : vector<256x128xf32>
    %243 = tpu.matmul %240, %242, %cst_306 {dimension_numbers = #tpu.dot_dimension_numbers<[1], [0], [0], [1], [0, 0, 1, 1], [], []>} : vector<256x128xf32>, vector<128x128xf32>, vector<256x128xf32> -> vector<256x128xf32>
    %244 = arith.addf %238, %243 : vector<256x128xf32>
    %c2_307 = arith.constant 2 : index
    %c1_308 = arith.constant 1 : index
    %c0_309 = arith.constant 0 : index
    %245 = vector.load %arg7[%c2_307, %c1_308, %c0_309] : memref<18x18x128xf32, #tpu.memory_space<vmem>>, vector<16x16x128xf32>
    %246 = vector.shape_cast %245 : vector<16x16x128xf32> to vector<256x128xf32>
    %c3_310 = arith.constant 3 : index
    %c7_311 = arith.constant 7 : index
    %c0_312 = arith.constant 0 : index
    %c0_313 = arith.constant 0 : index
    %247 = vector.load %arg2[%c3_310, %c7_311, %c0_312, %c0_313] : memref<5x9x128x128xf32, #tpu.memory_space<vmem>>, vector<1x1x128x128xf32>
    %248 = vector.shape_cast %247 : vector<1x1x128x128xf32> to vector<128x128xf32>
    %cst_314 = arith.constant dense<0.000000e+00> : vector<256x128xf32>
    %249 = tpu.matmul %246, %248, %cst_314 {dimension_numbers = #tpu.dot_dimension_numbers<[1], [0], [0], [1], [0, 0, 1, 1], [], []>} : vector<256x128xf32>, vector<128x128xf32>, vector<256x128xf32> -> vector<256x128xf32>
    %250 = arith.addf %244, %249 : vector<256x128xf32>
    %c2_315 = arith.constant 2 : index
    %c2_316 = arith.constant 2 : index
    %c0_317 = arith.constant 0 : index
    %251 = vector.load %arg7[%c2_315, %c2_316, %c0_317] : memref<18x18x128xf32, #tpu.memory_space<vmem>>, vector<16x16x128xf32>
    %252 = vector.shape_cast %251 : vector<16x16x128xf32> to vector<256x128xf32>
    %c3_318 = arith.constant 3 : index
    %c8_319 = arith.constant 8 : index
    %c0_320 = arith.constant 0 : index
    %c0_321 = arith.constant 0 : index
    %253 = vector.load %arg2[%c3_318, %c8_319, %c0_320, %c0_321] : memref<5x9x128x128xf32, #tpu.memory_space<vmem>>, vector<1x1x128x128xf32>
    %254 = vector.shape_cast %253 : vector<1x1x128x128xf32> to vector<128x128xf32>
    %cst_322 = arith.constant dense<0.000000e+00> : vector<256x128xf32>
    %255 = tpu.matmul %252, %254, %cst_322 {dimension_numbers = #tpu.dot_dimension_numbers<[1], [0], [0], [1], [0, 0, 1, 1], [], []>} : vector<256x128xf32>, vector<128x128xf32>, vector<256x128xf32> -> vector<256x128xf32>
    %256 = arith.addf %250, %255 : vector<256x128xf32>
    %c3_323 = arith.constant 3 : index
    %c0_324 = arith.constant 0 : index
    %257 = vector.load %arg3[%c3_323, %c0_324] : memref<5x128xf32, #tpu.memory_space<vmem>>, vector<1x128xf32>
    %258 = vector.broadcast %257 : vector<1x128xf32> to vector<256x128xf32>
    %259 = arith.mulf %256, %258 : vector<256x128xf32>
    %c3_325 = arith.constant 3 : index
    %c0_326 = arith.constant 0 : index
    %260 = vector.load %arg4[%c3_325, %c0_326] : memref<5x128xf32, #tpu.memory_space<vmem>>, vector<1x128xf32>
    %261 = vector.broadcast %260 : vector<1x128xf32> to vector<256x128xf32>
    %262 = arith.addf %259, %261 : vector<256x128xf32>
    %c1_327 = arith.constant 1 : index
    %c1_328 = arith.constant 1 : index
    %c0_329 = arith.constant 0 : index
    %263 = vector.load %arg8[%c1_327, %c1_328, %c0_329] : memref<18x18x128xf32, #tpu.memory_space<vmem>>, vector<16x16x128xf32>
    %264 = vector.shape_cast %263 : vector<16x16x128xf32> to vector<256x128xf32>
    %265 = arith.addf %262, %264 : vector<256x128xf32>
    %266 = vector.shape_cast %265 : vector<256x128xf32> to vector<16x16x128xf32>
    %c1_330 = arith.constant 1 : index
    %c1_331 = arith.constant 1 : index
    %c0_332 = arith.constant 0 : index
    %267 = vector.load %arg6[%c1_330, %c1_331, %c0_332] : memref<18x18x128xf32, #tpu.memory_space<vmem>>, vector<16x16x128xf32>
    tpu.vector_store %arg6[%c1_330, %c1_331, %c0_332], %266 {strides = array<i32>} : memref<18x18x128xf32, #tpu.memory_space<vmem>>, vector<16x16x128xf32>,
    %cst_333 = arith.constant 0.000000e+00 : f32
    %268 = vector.broadcast %cst_333 : f32 to vector<256x128xf32>
    %c0_334 = arith.constant 0 : index
    %c0_335 = arith.constant 0 : index
    %c0_336 = arith.constant 0 : index
    %269 = vector.load %arg6[%c0_334, %c0_335, %c0_336] : memref<18x18x128xf32, #tpu.memory_space<vmem>>, vector<16x16x128xf32>
    %270 = vector.shape_cast %269 : vector<16x16x128xf32> to vector<256x128xf32>
    %c4_337 = arith.constant 4 : index
    %c0_338 = arith.constant 0 : index
    %c0_339 = arith.constant 0 : index
    %c0_340 = arith.constant 0 : index
    %271 = vector.load %arg2[%c4_337, %c0_338, %c0_339, %c0_340] : memref<5x9x128x128xf32, #tpu.memory_space<vmem>>, vector<1x1x128x128xf32>
    %272 = vector.shape_cast %271 : vector<1x1x128x128xf32> to vector<128x128xf32>
    %cst_341 = arith.constant dense<0.000000e+00> : vector<256x128xf32>
    %273 = tpu.matmul %270, %272, %cst_341 {dimension_numbers = #tpu.dot_dimension_numbers<[1], [0], [0], [1], [0, 0, 1, 1], [], []>} : vector<256x128xf32>, vector<128x128xf32>, vector<256x128xf32> -> vector<256x128xf32>
    %274 = arith.addf %268, %273 : vector<256x128xf32>
    %c0_342 = arith.constant 0 : index
    %c1_343 = arith.constant 1 : index
    %c0_344 = arith.constant 0 : index
    %275 = vector.load %arg6[%c0_342, %c1_343, %c0_344] : memref<18x18x128xf32, #tpu.memory_space<vmem>>, vector<16x16x128xf32>
    %276 = vector.shape_cast %275 : vector<16x16x128xf32> to vector<256x128xf32>
    %c4_345 = arith.constant 4 : index
    %c1_346 = arith.constant 1 : index
    %c0_347 = arith.constant 0 : index
    %c0_348 = arith.constant 0 : index
    %277 = vector.load %arg2[%c4_345, %c1_346, %c0_347, %c0_348] : memref<5x9x128x128xf32, #tpu.memory_space<vmem>>, vector<1x1x128x128xf32>
    %278 = vector.shape_cast %277 : vector<1x1x128x128xf32> to vector<128x128xf32>
    %cst_349 = arith.constant dense<0.000000e+00> : vector<256x128xf32>
    %279 = tpu.matmul %276, %278, %cst_349 {dimension_numbers = #tpu.dot_dimension_numbers<[1], [0], [0], [1], [0, 0, 1, 1], [], []>} : vector<256x128xf32>, vector<128x128xf32>, vector<256x128xf32> -> vector<256x128xf32>
    %280 = arith.addf %274, %279 : vector<256x128xf32>
    %c0_350 = arith.constant 0 : index
    %c2_351 = arith.constant 2 : index
    %c0_352 = arith.constant 0 : index
    %281 = vector.load %arg6[%c0_350, %c2_351, %c0_352] : memref<18x18x128xf32, #tpu.memory_space<vmem>>, vector<16x16x128xf32>
    %282 = vector.shape_cast %281 : vector<16x16x128xf32> to vector<256x128xf32>
    %c4_353 = arith.constant 4 : index
    %c2_354 = arith.constant 2 : index
    %c0_355 = arith.constant 0 : index
    %c0_356 = arith.constant 0 : index
    %283 = vector.load %arg2[%c4_353, %c2_354, %c0_355, %c0_356] : memref<5x9x128x128xf32, #tpu.memory_space<vmem>>, vector<1x1x128x128xf32>
    %284 = vector.shape_cast %283 : vector<1x1x128x128xf32> to vector<128x128xf32>
    %cst_357 = arith.constant dense<0.000000e+00> : vector<256x128xf32>
    %285 = tpu.matmul %282, %284, %cst_357 {dimension_numbers = #tpu.dot_dimension_numbers<[1], [0], [0], [1], [0, 0, 1, 1], [], []>} : vector<256x128xf32>, vector<128x128xf32>, vector<256x128xf32> -> vector<256x128xf32>
    %286 = arith.addf %280, %285 : vector<256x128xf32>
    %c1_358 = arith.constant 1 : index
    %c0_359 = arith.constant 0 : index
    %c0_360 = arith.constant 0 : index
    %287 = vector.load %arg6[%c1_358, %c0_359, %c0_360] : memref<18x18x128xf32, #tpu.memory_space<vmem>>, vector<16x16x128xf32>
    %288 = vector.shape_cast %287 : vector<16x16x128xf32> to vector<256x128xf32>
    %c4_361 = arith.constant 4 : index
    %c3_362 = arith.constant 3 : index
    %c0_363 = arith.constant 0 : index
    %c0_364 = arith.constant 0 : index
    %289 = vector.load %arg2[%c4_361, %c3_362, %c0_363, %c0_364] : memref<5x9x128x128xf32, #tpu.memory_space<vmem>>, vector<1x1x128x128xf32>
    %290 = vector.shape_cast %289 : vector<1x1x128x128xf32> to vector<128x128xf32>
    %cst_365 = arith.constant dense<0.000000e+00> : vector<256x128xf32>
    %291 = tpu.matmul %288, %290, %cst_365 {dimension_numbers = #tpu.dot_dimension_numbers<[1], [0], [0], [1], [0, 0, 1, 1], [], []>} : vector<256x128xf32>, vector<128x128xf32>, vector<256x128xf32> -> vector<256x128xf32>
    %292 = arith.addf %286, %291 : vector<256x128xf32>
    %c1_366 = arith.constant 1 : index
    %c1_367 = arith.constant 1 : index
    %c0_368 = arith.constant 0 : index
    %293 = vector.load %arg6[%c1_366, %c1_367, %c0_368] : memref<18x18x128xf32, #tpu.memory_space<vmem>>, vector<16x16x128xf32>
    %294 = vector.shape_cast %293 : vector<16x16x128xf32> to vector<256x128xf32>
    %c4_369 = arith.constant 4 : index
    %c4_370 = arith.constant 4 : index
    %c0_371 = arith.constant 0 : index
    %c0_372 = arith.constant 0 : index
    %295 = vector.load %arg2[%c4_369, %c4_370, %c0_371, %c0_372] : memref<5x9x128x128xf32, #tpu.memory_space<vmem>>, vector<1x1x128x128xf32>
    %296 = vector.shape_cast %295 : vector<1x1x128x128xf32> to vector<128x128xf32>
    %cst_373 = arith.constant dense<0.000000e+00> : vector<256x128xf32>
    %297 = tpu.matmul %294, %296, %cst_373 {dimension_numbers = #tpu.dot_dimension_numbers<[1], [0], [0], [1], [0, 0, 1, 1], [], []>} : vector<256x128xf32>, vector<128x128xf32>, vector<256x128xf32> -> vector<256x128xf32>
    %298 = arith.addf %292, %297 : vector<256x128xf32>
    %c1_374 = arith.constant 1 : index
    %c2_375 = arith.constant 2 : index
    %c0_376 = arith.constant 0 : index
    %299 = vector.load %arg6[%c1_374, %c2_375, %c0_376] : memref<18x18x128xf32, #tpu.memory_space<vmem>>, vector<16x16x128xf32>
    %300 = vector.shape_cast %299 : vector<16x16x128xf32> to vector<256x128xf32>
    %c4_377 = arith.constant 4 : index
    %c5_378 = arith.constant 5 : index
    %c0_379 = arith.constant 0 : index
    %c0_380 = arith.constant 0 : index
    %301 = vector.load %arg2[%c4_377, %c5_378, %c0_379, %c0_380] : memref<5x9x128x128xf32, #tpu.memory_space<vmem>>, vector<1x1x128x128xf32>
    %302 = vector.shape_cast %301 : vector<1x1x128x128xf32> to vector<128x128xf32>
    %cst_381 = arith.constant dense<0.000000e+00> : vector<256x128xf32>
    %303 = tpu.matmul %300, %302, %cst_381 {dimension_numbers = #tpu.dot_dimension_numbers<[1], [0], [0], [1], [0, 0, 1, 1], [], []>} : vector<256x128xf32>, vector<128x128xf32>, vector<256x128xf32> -> vector<256x128xf32>
    %304 = arith.addf %298, %303 : vector<256x128xf32>
    %c2_382 = arith.constant 2 : index
    %c0_383 = arith.constant 0 : index
    %c0_384 = arith.constant 0 : index
    %305 = vector.load %arg6[%c2_382, %c0_383, %c0_384] : memref<18x18x128xf32, #tpu.memory_space<vmem>>, vector<16x16x128xf32>
    %306 = vector.shape_cast %305 : vector<16x16x128xf32> to vector<256x128xf32>
    %c4_385 = arith.constant 4 : index
    %c6_386 = arith.constant 6 : index
    %c0_387 = arith.constant 0 : index
    %c0_388 = arith.constant 0 : index
    %307 = vector.load %arg2[%c4_385, %c6_386, %c0_387, %c0_388] : memref<5x9x128x128xf32, #tpu.memory_space<vmem>>, vector<1x1x128x128xf32>
    %308 = vector.shape_cast %307 : vector<1x1x128x128xf32> to vector<128x128xf32>
    %cst_389 = arith.constant dense<0.000000e+00> : vector<256x128xf32>
    %309 = tpu.matmul %306, %308, %cst_389 {dimension_numbers = #tpu.dot_dimension_numbers<[1], [0], [0], [1], [0, 0, 1, 1], [], []>} : vector<256x128xf32>, vector<128x128xf32>, vector<256x128xf32> -> vector<256x128xf32>
    %310 = arith.addf %304, %309 : vector<256x128xf32>
    %c2_390 = arith.constant 2 : index
    %c1_391 = arith.constant 1 : index
    %c0_392 = arith.constant 0 : index
    %311 = vector.load %arg6[%c2_390, %c1_391, %c0_392] : memref<18x18x128xf32, #tpu.memory_space<vmem>>, vector<16x16x128xf32>
    %312 = vector.shape_cast %311 : vector<16x16x128xf32> to vector<256x128xf32>
    %c4_393 = arith.constant 4 : index
    %c7_394 = arith.constant 7 : index
    %c0_395 = arith.constant 0 : index
    %c0_396 = arith.constant 0 : index
    %313 = vector.load %arg2[%c4_393, %c7_394, %c0_395, %c0_396] : memref<5x9x128x128xf32, #tpu.memory_space<vmem>>, vector<1x1x128x128xf32>
    %314 = vector.shape_cast %313 : vector<1x1x128x128xf32> to vector<128x128xf32>
    %cst_397 = arith.constant dense<0.000000e+00> : vector<256x128xf32>
    %315 = tpu.matmul %312, %314, %cst_397 {dimension_numbers = #tpu.dot_dimension_numbers<[1], [0], [0], [1], [0, 0, 1, 1], [], []>} : vector<256x128xf32>, vector<128x128xf32>, vector<256x128xf32> -> vector<256x128xf32>
    %316 = arith.addf %310, %315 : vector<256x128xf32>
    %c2_398 = arith.constant 2 : index
    %c2_399 = arith.constant 2 : index
    %c0_400 = arith.constant 0 : index
    %317 = vector.load %arg6[%c2_398, %c2_399, %c0_400] : memref<18x18x128xf32, #tpu.memory_space<vmem>>, vector<16x16x128xf32>
    %318 = vector.shape_cast %317 : vector<16x16x128xf32> to vector<256x128xf32>
    %c4_401 = arith.constant 4 : index
    %c8_402 = arith.constant 8 : index
    %c0_403 = arith.constant 0 : index
    %c0_404 = arith.constant 0 : index
    %319 = vector.load %arg2[%c4_401, %c8_402, %c0_403, %c0_404] : memref<5x9x128x128xf32, #tpu.memory_space<vmem>>, vector<1x1x128x128xf32>
    %320 = vector.shape_cast %319 : vector<1x1x128x128xf32> to vector<128x128xf32>
    %cst_405 = arith.constant dense<0.000000e+00> : vector<256x128xf32>
    %321 = tpu.matmul %318, %320, %cst_405 {dimension_numbers = #tpu.dot_dimension_numbers<[1], [0], [0], [1], [0, 0, 1, 1], [], []>} : vector<256x128xf32>, vector<128x128xf32>, vector<256x128xf32> -> vector<256x128xf32>
    %322 = arith.addf %316, %321 : vector<256x128xf32>
    %c4_406 = arith.constant 4 : index
    %c0_407 = arith.constant 0 : index
    %323 = vector.load %arg3[%c4_406, %c0_407] : memref<5x128xf32, #tpu.memory_space<vmem>>, vector<1x128xf32>
    %324 = vector.broadcast %323 : vector<1x128xf32> to vector<256x128xf32>
    %325 = arith.mulf %322, %324 : vector<256x128xf32>
    %c4_408 = arith.constant 4 : index
    %c0_409 = arith.constant 0 : index
    %326 = vector.load %arg4[%c4_408, %c0_409] : memref<5x128xf32, #tpu.memory_space<vmem>>, vector<1x128xf32>
    %327 = vector.broadcast %326 : vector<1x128xf32> to vector<256x128xf32>
    %328 = arith.addf %325, %327 : vector<256x128xf32>
    %cst_410 = arith.constant 0.000000e+00 : f32
    %329 = vector.broadcast %cst_410 : f32 to vector<256x128xf32>
    %330 = arith.maximumf %328, %329 : vector<256x128xf32>
    %331 = vector.shape_cast %330 : vector<256x128xf32> to vector<16x16x128xf32>
    %c0_411 = arith.constant 0 : index
    %c0_412 = arith.constant 0 : index
    %c0_413 = arith.constant 0 : index
    %c0_414 = arith.constant 0 : index
    %332 = vector.load %arg5[%c0_411, %c0_412, %c0_413, %c0_414] : memref<1x16x16x128xf32, #tpu.memory_space<vmem>>, vector<1x16x16x128xf32>
    %333 = vector.shape_cast %332 : vector<1x16x16x128xf32> to vector<16x16x128xf32>
    %334 = vector.shape_cast %331 : vector<16x16x128xf32> to vector<1x16x16x128xf32>
    tpu.vector_store %arg5[%c0_411, %c0_412, %c0_413, %c0_414], %334 {strides = array<i32>} : memref<1x16x16x128xf32, #tpu.memory_space<vmem>>, vector<1x16x16x128xf32>,
    return
  }
  func.func @transform_0(%arg0: i32) -> (i32, i32, i32, i32) {
    %c0_i32 = arith.constant 0 : i32
    %c0_i32_0 = arith.constant 0 : i32
    %c0_i32_1 = arith.constant 0 : i32
    %c0_i32_2 = arith.constant 0 : i32
    return %arg0, %c0_i32, %c0_i32_0, %c0_i32_1 : i32, i32, i32, i32
  }
  func.func @transform_1(%arg0: i32) -> (i32, i32, i32, i32) {
    %c0_i32 = arith.constant 0 : i32
    %c0_i32_0 = arith.constant 0 : i32
    %c0_i32_1 = arith.constant 0 : i32
    %c0_i32_2 = arith.constant 0 : i32
    %c0_i32_3 = arith.constant 0 : i32
    return %c0_i32, %c0_i32_0, %c0_i32_1, %c0_i32_2 : i32, i32, i32, i32
  }
  func.func @transform_2(%arg0: i32) -> (i32, i32) {
    %c0_i32 = arith.constant 0 : i32
    %c0_i32_0 = arith.constant 0 : i32
    %c0_i32_1 = arith.constant 0 : i32
    return %c0_i32, %c0_i32_0 : i32, i32
  }
  func.func @transform_3(%arg0: i32) -> (i32, i32) {
    %c0_i32 = arith.constant 0 : i32
    %c0_i32_0 = arith.constant 0 : i32
    %c0_i32_1 = arith.constant 0 : i32
    return %c0_i32, %c0_i32_0 : i32, i32
  }
  func.func @transform_4(%arg0: i32) -> (i32, i32, i32, i32) {
    %c0_i32 = arith.constant 0 : i32
    %c0_i32_0 = arith.constant 0 : i32
    %c0_i32_1 = arith.constant 0 : i32
    %c0_i32_2 = arith.constant 0 : i32
    return %arg0, %c0_i32, %c0_i32_0, %c0_i32_1 : i32, i32, i32, i32
  }
}

</mosaic_0001>

<bundles_post_ra>
// kernel: conv_residual_conv.1
= control target key start
LH: loop header
LB: loop body
LE: loop exit
PB: predicated region body
PF: predicated region fallthrough
CT: control target
= control target key end

     0   :  { %s23936_s15 = smov 0   ;;  %s28994_s0 = inlined_call_operand.vmem [shape: f32[2,16,16,128], index: 0, kind: input, shape index: {}]   ;;  %s28995_s1 = inlined_call_operand.vmem [shape: f32[5,9,128,128], index: 1, kind: input, shape index: {}]   ;;  %s28996_s2 = inlined_call_operand.vmem [shape: f32[5,128], index: 2, kind: input, shape index: {}]   ;;  %s28997_s3 = inlined_call_operand.vmem [shape: f32[5,128], index: 3, kind: input, shape index: {}]   ;;  %s28998_s4 = inlined_call_operand.vmem [shape: f32[2,16,16,128], index: 4, kind: output, shape index: {}]  }
   0x1 LB: > { %s14656_s16 = sadd.s32 4294967295, %s23908_s15   ;;  %p14660_p0 = scmp.ge.s32.totalorder %s23908_s15, 1  ;;  %s23908_s15 = sphi %s23936_s15, %s14_s15  }
   0x2   : > { %p162_p1 = scmp.lt.s32.totalorder %s23908_s15, 3 }
   0x4   : > { %p163_p2 = pnand %p14660_p0, %p162_p1 }
   0x6   : > { %166 = sbr.rel (%p163_p2) target bundleno = 3505 (0xdb1), region = 36 }
   0xd   : > { %v14665_v0 = vld [vmem:[%s28995_s1 + $0x80] sm:$0xff]  ;;  %v14666_v1 = vld [vmem:[%s28995_s1 + $0x88] sm:$0xff]  ;;  %p23957_p3 = scmp.lt.s32.totalorder %s14656_s16, 1  ;;  %v23971_v5 = vld [vmem:[%s28995_s1 + $0x90] sm:$0xff]  ;;  %v23910_v7 = vmov 0.0  }
   0xe   : > { %v23953_v2 = vld [vmem:[%s28995_s1 + $0x200] sm:$0xff]  ;;  %v23961_v3 = vpack.c.bf16 %v14666_v1, %v14665_v0  ;;  %v23966_v4 = vld [vmem:[%s28995_s1 + $0x208] sm:$0xff]  ;;  %v23976_v6 = vld [vmem:[%s28995_s1 + $0x98] sm:$0xff]  ;;  %198 = vst [vmem:[#allocation2] sm:$0xff] %v23910_v7 }
   0xf   : > { %199 = vst [vmem:[#allocation2 + $0x8] sm:$0xff] %v23910_v7  ;;  %200 = vst [vmem:[#allocation2 + $0x10] sm:$0x3] %v23910_v7  ;;  %v24142_v8 = vpack.c.bf16 %v23966_v4, %v23953_v2  ;;  %v21147_v9 = vpack.c.bf16 %v23976_v6, %v23971_v5  ;;  %v14715_v10 = vld [vmem:[%s28995_s1 + $0x210] sm:$0xff]  ;;  %v14716_v11 = vld [vmem:[%s28995_s1 + $0x218] sm:$0xff]  ;;  %s29441_s16 = smov (!%p23957_p3, %s14656_s16), 1 }
  0x10   : > { %201 = vst [vmem:[#allocation2 + $0x18] sm:$0xff] %v23910_v7  ;;  %202 = vst [vmem:[#allocation2 + $0x20] sm:$0xff] %v23910_v7  ;;  %v14669_v12 = vld [vmem:[%s28995_s1 + $0xa0] sm:$0xff]  ;;  %21144 = vmatprep.subr.bf16.mxu1 %v23961_v3  ;;  %v24162_v13 = vpack.c.bf16 %v14716_v11, %v14715_v10  ;;  %v14670_v14 = vld [vmem:[%s28995_s1 + $0xa8] sm:$0xff]  ;;  %s15381_s18 = sshll.u32 %s29441_s16, 8 }
  0x11   : > { %203 = vst [vmem:[#allocation2 + $0x28] sm:$0x3] %v23910_v7  ;;  %204 = vst [vmem:[#allocation2 + $0x30] sm:$0xff] %v23910_v7  ;;  %v14717_v15 = vld [vmem:[%s28995_s1 + $0x220] sm:$0xff]  ;;  %v14718_v16 = vld [vmem:[%s28995_s1 + $0x228] sm:$0xff]  ;;  %21272 = vmatprep.subr.bf16.mxu0 %v24142_v8  ;;  %21146 = vmatpush3.bf16.msra.mxu1 %v23961_v3  ;;  %v21151_v17 = vpack.c.bf16 %v14670_v14, %v14669_v12  ;;  %s24197_s29 = scalar_lea.vmem %s28994_s0, %s15381_s18  ;;  %s28896_s11 = scalar_lea.vmem %s28998_s4, %s15381_s18 }
  0x12   : > { %205 = vst [vmem:[#allocation2 + $0x38] sm:$0xff] %v23910_v7  ;;  %206 = vst [vmem:[#allocation2 + $0x40] sm:$0x3] %v23910_v7  ;;  %21274 = vmatpush3.bf16.msra.mxu0 %v24142_v8  ;;  %21148 = vmatprep.subr.bf16.mxu1 %v21147_v9  ;;  %v24178_v18 = vpack.c.bf16 %v14718_v16, %v14717_v15  ;;  %v14671_v19 = vld [vmem:[%s28995_s1 + $0xb0] sm:$0xff]  ;;  %v14672_v20 = vld [vmem:[%s28995_s1 + $0xb8] sm:$0xff] }
  0x13   : > { %207 = vst [vmem:[#allocation2 + $0x48] sm:$0xff] %v23910_v7  ;;  %208 = vst [vmem:[#allocation2 + $0x50] sm:$0xff] %v23910_v7  ;;  %21276 = vmatprep.subr.bf16.mxu0 %v24162_v13  ;;  %v14719_v21 = vld [vmem:[%s28995_s1 + $0x230] sm:$0xff]  ;;  %v14720_v22 = vld [vmem:[%s28995_s1 + $0x238] sm:$0xff]  ;;  %v21155_v23 = vpack.c.bf16 %v14672_v20, %v14671_v19 }
  0x14   : > { %209 = vst [vmem:[#allocation2 + $0x58] sm:$0x3] %v23910_v7  ;;  %210 = vst [vmem:[#allocation2 + $0x60] sm:$0xff] %v23910_v7  ;;  %v24201_v24 = vpack.c.bf16 %v14720_v22, %v14719_v21  ;;  %v14673_v25 = vld [vmem:[%s28995_s1 + $0xc0] sm:$0xff]  ;;  %v14674_v26 = vld [vmem:[%s28995_s1 + $0xc8] sm:$0xff] }
  0x15   : > { %211 = vst [vmem:[#allocation2 + $0x68] sm:$0xff] %v23910_v7  ;;  %212 = vst [vmem:[#allocation2 + $0x70] sm:$0x3] %v23910_v7  ;;  %21150 = vmatpush3.bf16.msra.mxu1 %v21147_v9  ;;  %v14721_v28 = vld [vmem:[%s28995_s1 + $0x240] sm:$0xff]  ;;  %v14722_v29 = vld [vmem:[%s28995_s1 + $0x248] sm:$0xff]  ;;  %v21159_v32 = vpack.c.bf16 %v14674_v26, %v14673_v25 }
  0x16   : > { %213 = vst [vmem:[#allocation2 + $0x78] sm:$0xff] %v23910_v7  ;;  %214 = vst [vmem:[#allocation2 + $0x80] sm:$0xff] %v23910_v7  ;;  %21278 = vmatpush3.bf16.msra.mxu0 %v24162_v13  ;;  %21152 = vmatprep.subr.bf16.mxu1 %v21151_v17  ;;  %v473_v27 = vld [vmem:[#allocation2 + $0x1] sm:$0xff]  ;;  %v24226_v33 = vld [vmem:[%s24197_s29 + $0x10] sm:$0xff]  ;;  %v24232_v35 = vpack.c.bf16 %v14722_v29, %v14721_v28 }
  0x17   : > { %215 = vst [vmem:[#allocation2 + $0x88] sm:$0x3] %v23910_v7  ;;  %216 = vst [vmem:[#allocation2 + $0x90] sm:$0xff] %v23910_v7  ;;  %21280 = vmatprep.subr.bf16.mxu0 %v24178_v18  ;;  %17575 = vmatprep.mubr.f32.mxu1 %v473_v27  ;;  %v24216_v30 = vld [vmem:[%s24197_s29] sm:$0xff]  ;;  %v24221_v31 = vld [vmem:[%s24197_s29 + $0x8] sm:$0xff] }
  0x18   : > { %217 = vst [vmem:[#allocation2 + $0x98] sm:$0xff] %v23910_v7  ;;  %218 = vst [vmem:[#allocation2 + $0xa0] sm:$0x3] %v23910_v7  ;;  %17895 = vmatprep.mubr.f32.mxu0 %v24216_v30  ;;  %v24229_v34 = vld [vmem:[%s24197_s29 + $0x18] sm:$0xff]  ;;  %v14675_v36 = vld [vmem:[%s28995_s1 + $0xd0] sm:$0xff] }
  0x19   : > { %219 = vst [vmem:[#allocation2 + $0xa8] sm:$0xff] %v23910_v7  ;;  %220 = vst [vmem:[#allocation2 + $0xb0] sm:$0xff] %v23910_v7  ;;  %21154 = vmatpush3.bf16.msra.mxu1 %v21151_v17  ;;  %v14676_v37 = vld [vmem:[%s28995_s1 + $0xd8] sm:$0xff]  ;;  %v24243_v38 = vld [vmem:[%s24197_s29 + $0x20] sm:$0xff] }
  0x1a   : > { %221 = vst [vmem:[#allocation2 + $0xb8] sm:$0x3] %v23910_v7  ;;  %222 = vst [vmem:[#allocation2 + $0xc0] sm:$0xff] %v23910_v7  ;;  %21282 = vmatpush3.bf16.msra.mxu0 %v24178_v18  ;;  %21156 = vmatprep.subr.bf16.mxu1 %v21155_v23  ;;  %v14723_v39 = vld [vmem:[%s28995_s1 + $0x250] sm:$0xff]  ;;  %v14724_v40 = vld [vmem:[%s28995_s1 + $0x258] sm:$0xff]  ;;  %v21163_v43 = vpack.c.bf16 %v14676_v37, %v14675_v36 }
  0x1b   : > { %223 = vst [vmem:[#allocation2 + $0xc8] sm:$0xff] %v23910_v7  ;;  %224 = vst [vmem:[#allocation2 + $0xd0] sm:$0x3] %v23910_v7  ;;  %21284 = vmatprep.subr.bf16.mxu0 %v24201_v24  ;;  %v24253_v41 = vld [vmem:[%s24197_s29 + $0x28] sm:$0xff]  ;;  %v24257_v42 = vld [vmem:[%s24197_s29 + $0x30] sm:$0xff]  ;;  %v24265_v45 = vpack.c.bf16 %v14724_v40, %v14723_v39 }
  0x1c   : > { %225 = vst [vmem:[#allocation2 + $0xd8] sm:$0xff] %v23910_v7  ;;  %226 = vst [vmem:[#allocation2 + $0xe0] sm:$0xff] %v23910_v7  ;;  %v24262_v44 = vld [vmem:[%s24197_s29 + $0x38] sm:$0xff]  ;;  %v14677_v46 = vld [vmem:[%s28995_s1 + $0xe0] sm:$0xff] }
  0x1d   : > { %227 = vst [vmem:[#allocation2 + $0xe8] sm:$0x3] %v23910_v7  ;;  %228 = vst [vmem:[#allocation2 + $0xf0] sm:$0xff] %v23910_v7  ;;  %21158 = vmatpush3.bf16.msra.mxu1 %v21155_v23  ;;  %v14678_v47 = vld [vmem:[%s28995_s1 + $0xe8] sm:$0xff]  ;;  %v24275_v48 = vld [vmem:[%s24197_s29 + $0x40] sm:$0xff] }
  0x1e   : > { %229 = vst [vmem:[#allocation2 + $0xf8] sm:$0xff] %v23910_v7  ;;  %230 = vst [vmem:[#allocation2 + $0x100] sm:$0x3] %v23910_v7  ;;  %21286 = vmatpush3.bf16.msra.mxu0 %v24201_v24  ;;  %21160 = vmatprep.subr.bf16.mxu1 %v21159_v32  ;;  %v14725_v49 = vld [vmem:[%s28995_s1 + $0x260] sm:$0xff]  ;;  %v14726_v50 = vld [vmem:[%s28995_s1 + $0x268] sm:$0xff]  ;;  %v21167_v54 = vpack.c.bf16 %v14678_v47, %v14677_v46 }
  0x1f   : > { %231 = vst [vmem:[#allocation2 + $0x108] sm:$0xff] %v23910_v7  ;;  %232 = vst [vmem:[#allocation2 + $0x110] sm:$0xff] %v23910_v7  ;;  %21288 = vmatprep.subr.bf16.mxu0 %v24232_v35  ;;  %v24285_v51 = vld [vmem:[%s24197_s29 + $0x48] sm:$0xff]  ;;  %v24289_v52 = vld [vmem:[%s24197_s29 + $0x50] sm:$0xff]  ;;  %v24304_v57 = vpack.c.bf16 %v14726_v50, %v14725_v49 }
  0x20   : > { %233 = vst [vmem:[#allocation2 + $0x118] sm:$0x3] %v23910_v7  ;;  %234 = vst [vmem:[#allocation2 + $0x120] sm:$0xff] %v23910_v7  ;;  %v24292_v53 = vld [vmem:[%s24197_s29 + $0x58] sm:$0xff]  ;;  %v14679_v55 = vld [vmem:[%s28995_s1 + $0xf0] sm:$0xff] }
  0x21   : > { %235 = vst [vmem:[#allocation2 + $0x128] sm:$0xff] %v23910_v7  ;;  %236 = vst [vmem:[#allocation2 + $0x130] sm:$0x3] %v23910_v7  ;;  %21162 = vmatpush3.bf16.msra.mxu1 %v21159_v32  ;;  %v24301_v56 = vld [vmem:[%s24197_s29 + $0x60] sm:$0xff]  ;;  %v14680_v58 = vld [vmem:[%s28995_s1 + $0xf8] sm:$0xff] }
  0x22   : > { %237 = vst [vmem:[#allocation2 + $0x138] sm:$0xff] %v23910_v7  ;;  %238 = vst [vmem:[#allocation2 + $0x140] sm:$0xff] %v23910_v7  ;;  %21290 = vmatpush3.bf16.msra.mxu0 %v24232_v35  ;;  %21164 = vmatprep.subr.bf16.mxu1 %v21163_v43  ;;  %v14727_v59 = vld [vmem:[%s28995_s1 + $0x270] sm:$0xff]  ;;  %v24314_v60 = vld [vmem:[%s24197_s29 + $0x68] sm:$0xff]  ;;  %v21171_v0 = vpack.c.bf16 %v14680_v58, %v14679_v55 }
  0x23   : > { %239 = vst [vmem:[#allocation2 + $0x148] sm:$0x3] %v23910_v7  ;;  %240 = vst [vmem:[#allocation2 + $0x150] sm:$0xff] %v23910_v7  ;;  %21292 = vmatprep.subr.bf16.mxu0 %v24265_v45  ;;  %v14728_v61 = vld [vmem:[%s28995_s1 + $0x278] sm:$0xff]  ;;  %v24321_v62 = vld [vmem:[%s24197_s29 + $0x70] sm:$0xff] }
  0x24   : > { %241 = vst [vmem:[#allocation2 + $0x158] sm:$0xff] %v23910_v7  ;;  %242 = vst [vmem:[#allocation2 + $0x160] sm:$0x3] %v23910_v7  ;;  %v24324_v63 = vld [vmem:[%s24197_s29 + $0x78] sm:$0xff]  ;;  %v24330_v1 = vpack.c.bf16 %v14728_v61, %v14727_v59  ;;  %v457_v2 = vld [vmem:[%s28995_s1] sm:$0xff] }
  0x25   : > { %243 = vst [vmem:[#allocation2 + $0x168] sm:$0xff] %v23910_v7  ;;  %244 = vst [vmem:[#allocation2 + $0x170] sm:$0xff] %v23910_v7  ;;  %21166 = vmatpush3.bf16.msra.mxu1 %v21163_v43  ;;  %v458_v3 = vld [vmem:[%s28995_s1 + $0x8] sm:$0xff]  ;;  %v24339_v4 = vld [vmem:[%s24197_s29 + $0x80] sm:$0xff] }
  0x26   : > { %245 = vst [vmem:[#allocation2 + $0x178] sm:$0x3] %v23910_v7  ;;  %246 = vst [vmem:[#allocation2 + $0x180] sm:$0xff] %v23910_v7  ;;  %21294 = vmatpush3.bf16.msra.mxu0 %v24265_v45  ;;  %21168 = vmatprep.subr.bf16.mxu1 %v21167_v54  ;;  %v14729_v5 = vld [vmem:[%s28995_s1 + $0x280] sm:$0xff]  ;;  %v14730_v6 = vld [vmem:[%s28995_s1 + $0x288] sm:$0xff]  ;;  %v21175_v11 = vpack.c.bf16 %v458_v3, %v457_v2 }
  0x27   : > { %247 = vst [vmem:[#allocation2 + $0x188] sm:$0xff] %v23910_v7  ;;  %248 = vst [vmem:[#allocation2 + $0x190] sm:$0x3] %v23910_v7  ;;  %21296 = vmatprep.subr.bf16.mxu0 %v24304_v57  ;;  %v24353_v9 = vld [vmem:[%s24197_s29 + $0x90] sm:$0xff]  ;;  %v24356_v10 = vld [vmem:[%s24197_s29 + $0x98] sm:$0xff]  ;;  %v21303_v14 = vpack.c.bf16 %v14730_v6, %v14729_v5 }
  0x28   : > { %249 = vst [vmem:[#allocation2 + $0x198] sm:$0xff] %v23910_v7  ;;  %250 = vst [vmem:[#allocation2 + $0x1a0] sm:$0xff] %v23910_v7  ;;  %v474_v12 = vld [vmem:[#allocation2 + $0x9] sm:$0xff]  ;;  %v24366_v16 = vld [vmem:[%s24197_s29 + $0xa0] sm:$0xff] }
  0x29   : > { %251 = vst [vmem:[#allocation2 + $0x1a8] sm:$0x3] %v23910_v7  ;;  %252 = vst [vmem:[#allocation3] sm:$0xff] %v23910_v7  ;;  %21170 = vmatpush3.bf16.msra.mxu1 %v21167_v54  ;;  %v14731_v15 = vld [vmem:[%s28995_s1 + $0x290] sm:$0xff]  ;;  %v14732_v17 = vld [vmem:[%s28995_s1 + $0x298] sm:$0xff] }
  0x2a   : > { %253 = vst [vmem:[#allocation3 + $0x8] sm:$0xff] %v23910_v7  ;;  %254 = vst [vmem:[#allocation3 + $0x10] sm:$0x3] %v23910_v7  ;;  %21298 = vmatpush3.bf16.msra.mxu0 %v24304_v57  ;;  %21172 = vmatprep.subr.bf16.mxu1 %v21171_v0  ;;  %v459_v19 = vld [vmem:[%s28995_s1 + $0x10] sm:$0xff]  ;;  %v24376_v20 = vld [vmem:[%s24197_s29 + $0xa8] sm:$0xff]  ;;  %v21307_v25 = vpack.c.bf16 %v14732_v17, %v14731_v15 }
  0x2b   : > { %255 = vst [vmem:[#allocation3 + $0x18] sm:$0xff] %v23910_v7  ;;  %256 = vst [vmem:[#allocation3 + $0x20] sm:$0xff] %v23910_v7  ;;  %21300 = vmatprep.subr.bf16.mxu0 %v24330_v1  ;;  %v460_v21 = vld [vmem:[%s28995_s1 + $0x18] sm:$0xff]  ;;  %v24383_v22 = vld [vmem:[%s24197_s29 + $0xb0] sm:$0xff] }
  0x2c   : > { %257 = vst [vmem:[#allocation3 + $0x28] sm:$0x3] %v23910_v7  ;;  %258 = vst [vmem:[#allocation3 + $0x30] sm:$0xff] %v23910_v7  ;;  %v24386_v23 = vld [vmem:[%s24197_s29 + $0xb8] sm:$0xff]  ;;  %v14733_v26 = vld [vmem:[%s28995_s1 + $0x2a0] sm:$0xff]  ;;  %v21179_v28 = vpack.c.bf16 %v460_v21, %v459_v19 }
  0x2d   : > { %259 = vst [vmem:[#allocation3 + $0x38] sm:$0xff] %v23910_v7  ;;  %260 = vst [vmem:[#allocation3 + $0x40] sm:$0x3] %v23910_v7  ;;  %21174 = vmatpush3.bf16.msra.mxu1 %v21171_v0  ;;  %v24395_v27 = vld [vmem:[%s24197_s29 + $0xc0] sm:$0xff]  ;;  %v14734_v29 = vld [vmem:[%s28995_s1 + $0x2a8] sm:$0xff] }
  0x2e   : > { %261 = vst [vmem:[#allocation3 + $0x48] sm:$0xff] %v23910_v7  ;;  %262 = vst [vmem:[#allocation3 + $0x50] sm:$0xff] %v23910_v7  ;;  %21302 = vmatpush3.bf16.msra.mxu0 %v24330_v1  ;;  %21176 = vmatprep.subr.bf16.mxu1 %v21175_v11  ;;  %v461_v32 = vld [vmem:[%s28995_s1 + $0x20] sm:$0xff]  ;;  %v24405_v36 = vld [vmem:[%s24197_s29 + $0xc8] sm:$0xff]  ;;  %v21311_v43 = vpack.c.bf16 %v14734_v29, %v14733_v26 }
  0x2f   : > { %263 = vst [vmem:[#allocation3 + $0x58] sm:$0x3] %v23910_v7  ;;  %264 = vst [vmem:[#allocation3 + $0x60] sm:$0xff] %v23910_v7  ;;  %21304 = vmatprep.subr.bf16.mxu0 %v21303_v14  ;;  %v462_v37 = vld [vmem:[%s28995_s1 + $0x28] sm:$0xff]  ;;  %v24413_v39 = vld [vmem:[%s24197_s29 + $0xd0] sm:$0xff] }
  0x30   : > { %265 = vst [vmem:[#allocation3 + $0x68] sm:$0xff] %v23910_v7  ;;  %266 = vst [vmem:[#allocation3 + $0x70] sm:$0x3] %v23910_v7  ;;  %17576 = vmatmul.mubr.f32.vlgmr.msra.gmra.mrb[0].mxu1 %v474_v12  ;;  %v24416_v40 = vld [vmem:[%s24197_s29 + $0xd8] sm:$0xff]  ;;  %v24423_v46 = vld [vmem:[%s24197_s29 + $0xe0] sm:$0xff]  ;;  %v21183_v49 = vpack.c.bf16 %v462_v37, %v461_v32 }
  0x31   : > { %267 = vst [vmem:[#allocation3 + $0x78] sm:$0xff] %v23910_v7  ;;  %268 = vst [vmem:[#allocation3 + $0x80] sm:$0xff] %v23910_v7  ;;  %17896 = vmatmul.mubr.f32.vlgmr.msra.gmra.mrb[0].mxu0 %v24221_v31  ;;  %21178 = vmatpush3.bf16.msra.mxu1 %v21175_v11  ;;  %v14735_v47 = vld [vmem:[%s28995_s1 + $0x2b0] sm:$0xff]  ;;  %v24434_v50 = vld [vmem:[%s24197_s29 + $0xe8] sm:$0xff] }
  0x32   : > { %269 = vst [vmem:[#allocation3 + $0x88] sm:$0x3] %v23910_v7  ;;  %270 = vst [vmem:[#allocation3 + $0x90] sm:$0xff] %v23910_v7  ;;  %21306 = vmatpush3.bf16.msra.mxu0 %v21303_v14  ;;  %17578 = vmatprep.mubr.f32.mxu1 %v24216_v30  ;;  %v464_v54 = vld [vmem:[%s28995_s1 + $0x38] sm:$0xff]  ;;  %v14738_v58 = vld [vmem:[%s28995_s1 + $0x2c8] sm:$0xff] }
  0x33   : > { %271 = vst [vmem:[#allocation3 + $0x98] sm:$0xff] %v23910_v7  ;;  %272 = vst [vmem:[#allocation3 + $0xa0] sm:$0x3] %v23910_v7  ;;  %17898 = vmatprep.mubr.f32.mxu0 %v24226_v33  ;;  %21308 = vmatprep.subr.bf16.mxu0 %v21307_v25  ;;  %v465_v61 = vld [vmem:[%s28995_s1 + $0x40] sm:$0xff]  ;;  %v14740_v2 = vld [vmem:[%s28995_s1 + $0x2d8] sm:$0xff] }
  0x34   : > { %273 = vst [vmem:[#allocation3 + $0xa8] sm:$0xff] %v23910_v7  ;;  %274 = vst [vmem:[#allocation3 + $0xb0] sm:$0xff] %v23910_v7  ;;  %17579 = vmatmul.mubr.f32.gmra.mrb[2].mxu1 %v24221_v31  ;;  %21180 = vmatprep.subr.bf16.mxu1 %v21179_v28  ;;  %v467_v5 = vld [vmem:[%s28995_s1 + $0x50] sm:$0xff]  ;;  %v14742_v11 = vld [vmem:[%s28995_s1 + $0x2e8] sm:$0xff] }
  0x35   : > { %275 = vst [vmem:[#allocation3 + $0xb8] sm:$0x3] %v23910_v7  ;;  %276 = vst [vmem:[#allocation3 + $0xc0] sm:$0xff] %v23910_v7  ;;  %17899 = vmatmul.mubr.f32.gmra.mrb[2].mxu0 %v24229_v34  ;;  %17581 = vmatprep.mubr.f32.mxu1 %v24226_v33  ;;  %v469_v14 = vld [vmem:[%s28995_s1 + $0x60] sm:$0xff]  ;;  %v24495_v17 = vld [vmem:[%s24197_s29 + $0xf0] sm:$0xff] }
  0x36   : > { %277 = vst [vmem:[#allocation3 + $0xc8] sm:$0xff] %v23910_v7  ;;  %278 = vst [vmem:[#allocation3 + $0xd0] sm:$0x3] %v23910_v7  ;;  %21310 = vmatpush3.bf16.msra.mxu0 %v21307_v25  ;;  %17901 = vmatprep.mubr.f32.mxu0 %v24243_v38  ;;  %v24498_v19 = vld [vmem:[%s24197_s29 + $0xf8] sm:$0xff]  ;;  %v14746_v29 = vld [vmem:[%s28995_s1 + $0x308] sm:$0xff] }
  0x37   : > { %279 = vst [vmem:[#allocation3 + $0xd8] sm:$0xff] %v23910_v7  ;;  %280 = vst [vmem:[#allocation3 + $0xe0] sm:$0xff] %v23910_v7  ;;  %21312 = vmatprep.subr.bf16.mxu0 %v21311_v43  ;;  %21182 = vmatpush3.bf16.msra.mxu1 %v21179_v28  ;;  %v14744_v21 = vld [vmem:[%s28995_s1 + $0x2f8] sm:$0xff]  ;;  %v14681_v37 = vld [vmem:[%s28995_s1 + $0x100] sm:$0xff] }
  0x38   : > { %281 = vst [vmem:[#allocation3 + $0xe8] sm:$0x3] %v23910_v7  ;;  %282 = vst [vmem:[#allocation3 + $0xf0] sm:$0xff] %v23910_v7  ;;  %17582 = vmatmul.mubr.f32.gmra.mrb[4].mxu1 %v24229_v34  ;;  %21184 = vmatprep.subr.bf16.mxu1 %v21183_v49  ;;  %v472_v26 = vld [vmem:[%s28995_s1 + $0x78] sm:$0xff] }
  0x39   : > { %283 = vst [vmem:[#allocation3 + $0xf8] sm:$0xff] %v23910_v7  ;;  %284 = vst [vmem:[#allocation3 + $0x100] sm:$0x3] %v23910_v7  ;;  %17902 = vmatmul.mubr.f32.gmra.mrb[4].mxu0 %v24253_v41  ;;  %17584 = vmatprep.mubr.f32.mxu1 %v24243_v38 }
  0x3a   : > { %285 = vst [vmem:[#allocation3 + $0x108] sm:$0xff] %v23910_v7  ;;  %286 = vst [vmem:[#allocation3 + $0x110] sm:$0xff] %v23910_v7  ;;  %21314 = vmatpush3.bf16.msra.mxu0 %v21311_v43  ;;  %17904 = vmatprep.mubr.f32.mxu0 %v24257_v42 }
  0x3b   : > { %287 = vst [vmem:[#allocation3 + $0x118] sm:$0x3] %v23910_v7  ;;  %288 = vst [vmem:[#allocation3 + $0x120] sm:$0xff] %v23910_v7  ;;  %21186 = vmatpush3.bf16.msra.mxu1 %v21183_v49 }
  0x3c   : > { %289 = vst [vmem:[#allocation3 + $0x128] sm:$0xff] %v23910_v7  ;;  %290 = vst [vmem:[#allocation3 + $0x130] sm:$0x3] %v23910_v7  ;;  %17585 = vmatmul.mubr.f32.gmra.mrb[6].mxu1 %v24253_v41 }
  0x3d   : > { %291 = vst [vmem:[#allocation3 + $0x138] sm:$0xff] %v23910_v7  ;;  %292 = vst [vmem:[#allocation3 + $0x140] sm:$0xff] %v23910_v7  ;;  %17905 = vmatmul.mubr.f32.gmra.mrb[6].mxu0 %v24262_v44  ;;  %17587 = vmatprep.mubr.f32.mxu1 %v24257_v42 }
  0x3e   : > { %293 = vst [vmem:[#allocation3 + $0x148] sm:$0x3] %v23910_v7  ;;  %294 = vst [vmem:[#allocation3 + $0x150] sm:$0xff] %v23910_v7  ;;  %17907 = vmatprep.mubr.f32.mxu0 %v24275_v48 }
  0x3f   : > { %295 = vst [vmem:[#allocation3 + $0x158] sm:$0xff] %v23910_v7  ;;  %296 = vst [vmem:[#allocation3 + $0x160] sm:$0x3] %v23910_v7 }
  0x40   : > { %297 = vst [vmem:[#allocation3 + $0x168] sm:$0xff] %v23910_v7  ;;  %298 = vst [vmem:[#allocation3 + $0x170] sm:$0xff] %v23910_v7  ;;  %17588 = vmatmul.mubr.f32.gmra.mrb[8].mxu1 %v24262_v44 }
  0x41   : > { %299 = vst [vmem:[#allocation3 + $0x178] sm:$0x3] %v23910_v7  ;;  %300 = vst [vmem:[#allocation3 + $0x180] sm:$0xff] %v23910_v7  ;;  %17908 = vmatmul.mubr.f32.gmra.mrb[8].mxu0 %v24285_v51  ;;  %17590 = vmatprep.mubr.f32.mxu1 %v24275_v48 }
  0x42   : > { %301 = vst [vmem:[#allocation3 + $0x188] sm:$0xff] %v23910_v7  ;;  %302 = vst [vmem:[#allocation3 + $0x190] sm:$0x3] %v23910_v7  ;;  %17910 = vmatprep.mubr.f32.mxu0 %v24289_v52 }
  0x43   : > { %303 = vst [vmem:[#allocation3 + $0x198] sm:$0xff] %v23910_v7  ;;  %304 = vst [vmem:[#allocation3 + $0x1a0] sm:$0xff] %v23910_v7 }
  0x44   : > { %305 = vst [vmem:[#allocation3 + $0x1a8] sm:$0x3] %v23910_v7  ;;  %306 = vst [vmem:[#allocation4] sm:$0xff] %v23910_v7  ;;  %17591 = vmatmul.mubr.f32.gmra.mrb[10].mxu1 %v24285_v51 }
  0x45   : > { %307 = vst [vmem:[#allocation4 + $0x8] sm:$0xff] %v23910_v7  ;;  %308 = vst [vmem:[#allocation4 + $0x10] sm:$0x3] %v23910_v7  ;;  %17911 = vmatmul.mubr.f32.gmra.mrb[10].mxu0 %v24292_v53  ;;  %17593 = vmatprep.mubr.f32.mxu1 %v24289_v52 }
  0x46   : > { %309 = vst [vmem:[#allocation4 + $0x18] sm:$0xff] %v23910_v7  ;;  %310 = vst [vmem:[#allocation4 + $0x20] sm:$0xff] %v23910_v7  ;;  %17913 = vmatprep.mubr.f32.mxu0 %v24301_v56 }
  0x47   : > { %311 = vst [vmem:[#allocation4 + $0x28] sm:$0x3] %v23910_v7  ;;  %312 = vst [vmem:[#allocation4 + $0x30] sm:$0xff] %v23910_v7 }
  0x48   : > { %313 = vst [vmem:[#allocation4 + $0x38] sm:$0xff] %v23910_v7  ;;  %314 = vst [vmem:[#allocation4 + $0x40] sm:$0x3] %v23910_v7  ;;  %17594 = vmatmul.mubr.f32.gmra.mrb[12].mxu1 %v24292_v53 }
  0x49   : > { %315 = vst [vmem:[#allocation4 + $0x48] sm:$0xff] %v23910_v7  ;;  %316 = vst [vmem:[#allocation4 + $0x50] sm:$0xff] %v23910_v7  ;;  %17914 = vmatmul.mubr.f32.gmra.mrb[12].mxu0 %v24314_v60  ;;  %17596 = vmatprep.mubr.f32.mxu1 %v24301_v56 }
  0x4a   : > { %317 = vst [vmem:[#allocation4 + $0x58] sm:$0x3] %v23910_v7  ;;  %318 = vst [vmem:[#allocation4 + $0x60] sm:$0xff] %v23910_v7  ;;  %17916 = vmatprep.mubr.f32.mxu0 %v24321_v62 }
  0x4b   : > { %319 = vst [vmem:[#allocation4 + $0x68] sm:$0xff] %v23910_v7  ;;  %320 = vst [vmem:[#allocation4 + $0x70] sm:$0x3] %v23910_v7 }
  0x4c   : > { %321 = vst [vmem:[#allocation4 + $0x78] sm:$0xff] %v23910_v7  ;;  %322 = vst [vmem:[#allocation4 + $0x80] sm:$0xff] %v23910_v7  ;;  %17597 = vmatmul.mubr.f32.gmra.mrb[14].mxu1 %v24314_v60 }
  0x4d   : > { %323 = vst [vmem:[#allocation4 + $0x88] sm:$0x3] %v23910_v7  ;;  %324 = vst [vmem:[#allocation4 + $0x90] sm:$0xff] %v23910_v7  ;;  %17917 = vmatmul.mubr.f32.gmra.mrb[14].mxu0 %v24324_v63  ;;  %17599 = vmatprep.mubr.f32.mxu1 %v24321_v62 }
  0x4e   : > { %325 = vst [vmem:[#allocation4 + $0x98] sm:$0xff] %v23910_v7  ;;  %326 = vst [vmem:[#allocation4 + $0xa0] sm:$0x3] %v23910_v7 }
  0x4f   : > { %327 = vst [vmem:[#allocation4 + $0xa8] sm:$0xff] %v23910_v7  ;;  %328 = vst [vmem:[#allocation4 + $0xb0] sm:$0xff] %v23910_v7 }
  0x50   : > { %329 = vst [vmem:[#allocation4 + $0xb8] sm:$0x3] %v23910_v7  ;;  %330 = vst [vmem:[#allocation4 + $0xc0] sm:$0xff] %v23910_v7  ;;  %17600 = vmatmul.mubr.f32.gmra.mrb[16].mxu1 %v24324_v63 }
  0x51   : > { %331 = vst [vmem:[#allocation4 + $0xc8] sm:$0xff] %v23910_v7  ;;  %332 = vst [vmem:[#allocation4 + $0xd0] sm:$0x3] %v23910_v7  ;;  %17602 = vmatprep.mubr.f32.mxu1 %v24339_v4 }
  0x52   : > { %333 = vst [vmem:[#allocation4 + $0xd8] sm:$0xff] %v23910_v7  ;;  %334 = vst [vmem:[#allocation4 + $0xe0] sm:$0xff] %v23910_v7 }
  0x53   : > { %335 = vst [vmem:[#allocation4 + $0xe8] sm:$0x3] %v23910_v7  ;;  %336 = vst [vmem:[#allocation4 + $0xf0] sm:$0xff] %v23910_v7 }
  0x54   : > { %337 = vst [vmem:[#allocation4 + $0xf8] sm:$0xff] %v23910_v7  ;;  %338 = vst [vmem:[#allocation4 + $0x100] sm:$0x3] %v23910_v7 }
  0x55   : > { %339 = vst [vmem:[#allocation4 + $0x108] sm:$0xff] %v23910_v7  ;;  %340 = vst [vmem:[#allocation4 + $0x110] sm:$0xff] %v23910_v7 }
  0x56   : > { %341 = vst [vmem:[#allocation4 + $0x118] sm:$0x3] %v23910_v7  ;;  %342 = vst [vmem:[#allocation4 + $0x120] sm:$0xff] %v23910_v7 }
  0x57   : > { %343 = vst [vmem:[#allocation4 + $0x128] sm:$0xff] %v23910_v7  ;;  %344 = vst [vmem:[#allocation4 + $0x130] sm:$0x3] %v23910_v7 }
  0x58   : > { %345 = vst [vmem:[#allocation4 + $0x138] sm:$0xff] %v23910_v7  ;;  %346 = vst [vmem:[#allocation4 + $0x140] sm:$0xff] %v23910_v7 }
  0x59   : > { %347 = vst [vmem:[#allocation4 + $0x148] sm:$0x3] %v23910_v7  ;;  %348 = vst [vmem:[#allocation4 + $0x150] sm:$0xff] %v23910_v7 }
  0x5a   : > { %349 = vst [vmem:[#allocation4 + $0x158] sm:$0xff] %v23910_v7  ;;  %350 = vst [vmem:[#allocation4 + $0x160] sm:$0x3] %v23910_v7 }
  0x5b   : > { %351 = vst [vmem:[#allocation4 + $0x168] sm:$0xff] %v23910_v7  ;;  %352 = vst [vmem:[#allocation4 + $0x170] sm:$0xff] %v23910_v7 }
  0x5c   : > { %353 = vst [vmem:[#allocation4 + $0x178] sm:$0x3] %v23910_v7  ;;  %354 = vst [vmem:[#allocation4 + $0x180] sm:$0xff] %v23910_v7 }
  0x5d   : > { %355 = vst [vmem:[#allocation4 + $0x188] sm:$0xff] %v23910_v7  ;;  %356 = vst [vmem:[#allocation4 + $0x190] sm:$0x3] %v23910_v7 }
  0x5e   : > { %357 = vst [vmem:[#allocation4 + $0x198] sm:$0xff] %v23910_v7  ;;  %358 = vst [vmem:[#allocation4 + $0x1a0] sm:$0xff] %v23910_v7 }
  0x5f   : > { %359 = vst [vmem:[#allocation4 + $0x1a8] sm:$0x3] %v23910_v7  ;;  %29152 = vst [vmem:[#allocation5_spill] sm:$0xff] %v24201_v24  ;;  %v24349_v7 = vld [vmem:[%s24197_s29 + $0x88] sm:$0xff] }
  0x60   : > { %393 = vst [vmem:[#allocation2 + $0x19] sm:$0xff] %v24216_v30  ;;  %394 = vst [vmem:[#allocation2 + $0x21] sm:$0xff] %v24221_v31  ;;  %v14736_v30 = vld [vmem:[%s28995_s1 + $0x2b8] sm:$0xff]  ;;  %v463_v31 = vld [vmem:[%s28995_s1 + $0x30] sm:$0xff]  ;;  %17603 = vmatmul.mubr.f32.gmra.mrb[18].mxu1 %v24349_v7 }
  0x61   : > { %29153 = vst [vmem:[#allocation6_spill] sm:$0xff] %v24232_v35  ;;  %395 = vst [vmem:[#allocation2 + $0x31] sm:$0xff] %v24226_v33  ;;  %v21315_v55 = vpack.c.bf16 %v14736_v30, %v14735_v47  ;;  %v14737_v33 = vld [vmem:[%s28995_s1 + $0x2c0] sm:$0xff]  ;;  %v21187_v59 = vpack.c.bf16 %v464_v54, %v463_v31  ;;  %v14748_v30 = vld [vmem:[%s28995_s1 + $0x318] sm:$0xff]  ;;  %17605 = vmatprep.mubr.f32.mxu1 %v24353_v9 }
  0x62   : > { %396 = vst [vmem:[#allocation2 + $0x39] sm:$0xff] %v24229_v34  ;;  %397 = vst [vmem:[#allocation2 + $0x49] sm:$0xff] %v24243_v38  ;;  %v466_v34 = vld [vmem:[%s28995_s1 + $0x48] sm:$0xff]  ;;  %v21319_v0 = vpack.c.bf16 %v14738_v58, %v14737_v33  ;;  %v14739_v38 = vld [vmem:[%s28995_s1 + $0x2d0] sm:$0xff] }
  0x63   : > { %398 = vst [vmem:[#allocation2 + $0x51] sm:$0xff] %v24253_v41  ;;  %399 = vst [vmem:[#allocation2 + $0x61] sm:$0xff] %v24257_v42  ;;  %21316 = vmatprep.subr.bf16.mxu0 %v21315_v55  ;;  %21188 = vmatprep.subr.bf16.mxu1 %v21187_v59  ;;  %v21191_v3 = vpack.c.bf16 %v466_v34, %v465_v61  ;;  %v468_v41 = vld [vmem:[%s28995_s1 + $0x58] sm:$0xff]  ;;  %v21323_v6 = vpack.c.bf16 %v14740_v2, %v14739_v38  ;;  %v14741_v42 = vld [vmem:[%s28995_s1 + $0x2e0] sm:$0xff] }
  0x64   : > { %29154 = vst [vmem:[#allocation7_spill] sm:$0xff] %v24265_v45  ;;  %400 = vst [vmem:[#allocation2 + $0x69] sm:$0xff] %v24262_v44  ;;  %21318 = vmatpush3.bf16.msra.mxu0 %v21315_v55  ;;  %21190 = vmatpush3.bf16.msra.mxu1 %v21187_v59  ;;  %v21195_v12 = vpack.c.bf16 %v468_v41, %v467_v5  ;;  %v470_v44 = vld [vmem:[%s28995_s1 + $0x68] sm:$0xff]  ;;  %v21327_v15 = vpack.c.bf16 %v14742_v11, %v14741_v42  ;;  %v14749_v55 = vld [vmem:[%s28995_s1 + $0x320] sm:$0xff] }
  0x65   : > { %401 = vst [vmem:[#allocation2 + $0x79] sm:$0xff] %v24275_v48  ;;  %402 = vst [vmem:[#allocation2 + $0x81] sm:$0xff] %v24285_v51  ;;  %21320 = vmatprep.subr.bf16.mxu0 %v21319_v0  ;;  %21192 = vmatprep.subr.bf16.mxu1 %v21191_v3  ;;  %v14743_v48 = vld [vmem:[%s28995_s1 + $0x2f0] sm:$0xff]  ;;  %v21199_v25 = vpack.c.bf16 %v470_v44, %v469_v14  ;;  %v14752_v61 = vld [vmem:[%s28995_s1 + $0x338] sm:$0xff] }
  0x66   : > { %403 = vst [vmem:[#allocation2 + $0x91] sm:$0xff] %v24289_v52  ;;  %404 = vst [vmem:[#allocation2 + $0x99] sm:$0xff] %v24292_v53  ;;  %v471_v51 = vld [vmem:[%s28995_s1 + $0x70] sm:$0xff]  ;;  %v21331_v28 = vpack.c.bf16 %v14744_v21, %v14743_v48  ;;  %v14745_v52 = vld [vmem:[%s28995_s1 + $0x300] sm:$0xff]  ;;  %17606 = vmatmul.mubr.f32.gmra.mrb[20].mxu1 %v24356_v10 }
  0x67   : > { %29155 = vst [vmem:[#allocation8_spill] sm:$0xff] %v24304_v57  ;;  %405 = vst [vmem:[#allocation2 + $0xa9] sm:$0xff] %v24301_v56  ;;  %v21203_v32 = vpack.c.bf16 %v472_v26, %v471_v51  ;;  %v14682_v53 = vld [vmem:[%s28995_s1 + $0x108] sm:$0xff]  ;;  %v24534_v43 = vld [vmem:[#allocation2 + $0x1a] sm:$0xff]  ;;  %v21335_v47 = vpack.c.bf16 %v14746_v29, %v14745_v52  ;;  %17608 = vmatprep.mubr.f32.mxu1 %v24366_v16 }
  0x68   : > { %406 = vst [vmem:[#allocation2 + $0xb1] sm:$0xff] %v24314_v60  ;;  %407 = vst [vmem:[#allocation2 + $0xc1] sm:$0xff] %v24321_v62  ;;  %21322 = vmatpush3.bf16.msra.mxu0 %v21319_v0  ;;  %21194 = vmatpush3.bf16.msra.mxu1 %v21191_v3  ;;  %v14747_v56 = vld [vmem:[%s28995_s1 + $0x310] sm:$0xff]  ;;  %v24543_v49 = vpack.c.bf16 %v14682_v53, %v14681_v37  ;;  %v24548_v31 = vld [vmem:[#allocation2 + $0x22] sm:$0xff] }
  0x69   : > { %408 = vst [vmem:[#allocation2 + $0xc9] sm:$0xff] %v24324_v63  ;;  %29156 = vst [vmem:[#allocation9_spill] sm:$0xff] %v24330_v1  ;;  %21324 = vmatprep.subr.bf16.mxu0 %v21323_v6  ;;  %21196 = vmatprep.subr.bf16.mxu1 %v21195_v12  ;;  %v24550_v60 = vld [vmem:[#allocation2 + $0x32] sm:$0xff]  ;;  %v21339_v54 = vpack.c.bf16 %v14748_v30, %v14747_v56  ;;  %v14750_v62 = vld [vmem:[%s28995_s1 + $0x328] sm:$0xff] }
  0x6a   : > { %409 = vst [vmem:[#allocation2 + $0xd9] sm:$0xff] %v24339_v4  ;;  %410 = vst [vmem:[#allocation2 + $0xe1] sm:$0xff] %v24349_v7  ;;  %17975 = vmatprep.mubr.f32.mxu0 %v24534_v43  ;;  %v24563_v33 = vld [vmem:[#allocation2 + $0x3a] sm:$0xff]  ;;  %v24565_v63 = vld [vmem:[#allocation2 + $0x4a] sm:$0xff]  ;;  %v21343_v58 = vpack.c.bf16 %v14750_v62, %v14749_v55  ;;  %17609 = vmatmul.mubr.f32.gmra.mrb[22].mxu1 %v24376_v20 }
  0x6b   : > { %411 = vst [vmem:[#allocation2 + $0xf1] sm:$0xff] %v24353_v9  ;;  %412 = vst [vmem:[#allocation2 + $0xf9] sm:$0xff] %v24356_v10  ;;  %v14751_v59 = vld [vmem:[%s28995_s1 + $0x330] sm:$0xff]  ;;  %v24579_v34 = vld [vmem:[#allocation2 + $0x62] sm:$0xff]  ;;  %17611 = vmatprep.mubr.f32.mxu1 %v24383_v22 }
  0x6c   : > { %413 = vst [vmem:[#allocation2 + $0x109] sm:$0xff] %v24366_v16  ;;  %414 = vst [vmem:[#allocation2 + $0x111] sm:$0xff] %v24376_v20  ;;  %21326 = vmatpush3.bf16.msra.mxu0 %v21323_v6  ;;  %21198 = vmatpush3.bf16.msra.mxu1 %v21195_v12  ;;  %v24577_v4 = vld [vmem:[#allocation2 + $0x52] sm:$0xff]  ;;  %v21347_v7 = vpack.c.bf16 %v14752_v61, %v14751_v59  ;;  %v14753_v0 = vld [vmem:[%s28995_s1 + $0x340] sm:$0xff] }
  0x6d   : > { %415 = vst [vmem:[#allocation2 + $0x121] sm:$0xff] %v24383_v22  ;;  %416 = vst [vmem:[#allocation2 + $0x129] sm:$0xff] %v24386_v23  ;;  %21328 = vmatprep.subr.bf16.mxu0 %v21327_v15  ;;  %21200 = vmatprep.subr.bf16.mxu1 %v21199_v25  ;;  %v14754_v38 = vld [vmem:[%s28995_s1 + $0x348] sm:$0xff]  ;;  %v24593_v2 = vld [vmem:[#allocation2 + $0x7a] sm:$0xff] }
  0x6e   : > { %417 = vst [vmem:[#allocation2 + $0x139] sm:$0xff] %v24395_v27  ;;  %418 = vst [vmem:[#allocation2 + $0x141] sm:$0xff] %v24405_v36  ;;  %v24591_v9 = vld [vmem:[#allocation2 + $0x6a] sm:$0xff]  ;;  %v21351_v10 = vpack.c.bf16 %v14754_v38, %v14753_v0  ;;  %v14756_v5 = vld [vmem:[%s28995_s1 + $0x358] sm:$0xff]  ;;  %17612 = vmatmul.mubr.f32.gmra.mrb[24].mxu1 %v24386_v23 }
  0x6f   : > { %419 = vst [vmem:[#allocation2 + $0x151] sm:$0xff] %v24413_v39  ;;  %420 = vst [vmem:[#allocation2 + $0x159] sm:$0xff] %v24416_v40  ;;  %v14755_v3 = vld [vmem:[%s28995_s1 + $0x350] sm:$0xff]  ;;  %v24605_v16 = vld [vmem:[#allocation2 + $0x82] sm:$0xff]  ;;  %17614 = vmatprep.mubr.f32.mxu1 %v24395_v27 }
  0x70   : > { %421 = vst [vmem:[#allocation2 + $0x169] sm:$0xff] %v24423_v46  ;;  %422 = vst [vmem:[#allocation2 + $0x171] sm:$0xff] %v24434_v50  ;;  %21330 = vmatpush3.bf16.msra.mxu0 %v21327_v15  ;;  %21202 = vmatpush3.bf16.msra.mxu1 %v21199_v25  ;;  %v24607_v41 = vld [vmem:[#allocation2 + $0x92] sm:$0xff]  ;;  %v21355_v20 = vpack.c.bf16 %v14756_v5, %v14755_v3  ;;  %v14757_v6 = vld [vmem:[%s28995_s1 + $0x360] sm:$0xff] }
  0x71   : > { %29157 = vst [vmem:[#allocation10_spill] sm:$0xff] %v24495_v17  ;;  %29158 = vst [vmem:[#allocation11_spill] sm:$0xff] %v24498_v19  ;;  %21332 = vmatprep.subr.bf16.mxu0 %v21331_v28  ;;  %21204 = vmatprep.subr.bf16.mxu1 %v21203_v32  ;;  %v14758_v42 = vld [vmem:[%s28995_s1 + $0x368] sm:$0xff]  ;;  %v24619_v22 = vld [vmem:[#allocation2 + $0x9a] sm:$0xff] }
  0x72   : > { %423 = vst [vmem:[#allocation2 + $0x181] sm:$0xff] %v24495_v17  ;;  %424 = vst [vmem:[#allocation2 + $0x189] sm:$0xff] %v24498_v19  ;;  %v24621_v11 = vld [vmem:[#allocation2 + $0xaa] sm:$0xff]  ;;  %v21359_v23 = vpack.c.bf16 %v14758_v42, %v14757_v6  ;;  %17615 = vmatmul.mubr.f32.gmra.mrb[26].mxu1 %v24405_v36  ;;  %v14760_v14 = vld [vmem:[%s28995_s1 + $0x378] sm:$0xff] }
  0x73   : > { %v14759_v12 = vld [vmem:[%s28995_s1 + $0x370] sm:$0xff]  ;;  %17617 = vmatprep.mubr.f32.mxu1 %v24413_v39  ;;  %v24635_v44 = vld [vmem:[#allocation2 + $0xc2] sm:$0xff]  ;;  %v24649_v21 = vld [vmem:[#allocation2 + $0xda] sm:$0xff] }
  0x74   : > { %21334 = vmatpush3.bf16.msra.mxu0 %v21331_v28  ;;  %21206 = vmatpush3.bf16.msra.mxu1 %v21203_v32  ;;  %v24633_v27 = vld [vmem:[#allocation2 + $0xb2] sm:$0xff]  ;;  %v21363_v36 = vpack.c.bf16 %v14760_v14, %v14759_v12  ;;  %v14761_v15 = vld [vmem:[%s28995_s1 + $0x380] sm:$0xff]  ;;  %v14762_v48 = vld [vmem:[%s28995_s1 + $0x388] sm:$0xff] }
  0x75   : > { %21336 = vmatprep.subr.bf16.mxu0 %v21335_v47  ;;  %21208 = vmatprep.subr.bf16.mxu1 %v24543_v49  ;;  %v24647_v39 = vld [vmem:[#allocation2 + $0xca] sm:$0xff]  ;;  %v24661_v51 = vld [vmem:[#allocation2] sm:$0xff]  ;;  %v24669_v28 = vld [vmem:[#allocation2 + $0xf2] sm:$0xff] }
  0x76   : > { %17618 = vmatmul.mubr.f32.gmra.mrb[28].mxu1 %v24416_v40  ;;  %v24651_v40 = vpack.c.bf16 %v14762_v48, %v14761_v15  ;;  %v14683_v25 = vld [vmem:[%s28995_s1 + $0x110] sm:$0xff]  ;;  %v24665_v26 = vld [vmem:[#allocation2 + $0xe2] sm:$0xff]  ;;  %v24685_v53 = vld [vmem:[#allocation2 + $0xfa] sm:$0xff] }
  0x77   : > { %17976 = vmatmul.mubr.f32.vlgmr.msra.gmra.mrb[0].mxu0 %v24548_v31  ;;  %17620 = vmatprep.mubr.f32.mxu1 %v24423_v46  ;;  %v14684_v46 = vld [vmem:[%s28995_s1 + $0x118] sm:$0xff]  ;;  %v14685_v29 = vld [vmem:[%s28995_s1 + $0x120] sm:$0xff]  ;;  %v14686_v32 = vld [vmem:[%s28995_s1 + $0x128] sm:$0xff] }
  0x78   : > { %21338 = vmatpush3.bf16.msra.mxu0 %v21335_v47  ;;  %17978 = vmatprep.mubr.f32.mxu0 %v24550_v60  ;;  %v21211_v52 = vpack.c.bf16 %v14684_v46, %v14683_v25  ;;  %v24681_v37 = vld [vmem:[#allocation2 + $0x20] sm:$0xff]  ;;  %v24687_v47 = vld [vmem:[#allocation2 + $0x30] sm:$0xff]  ;;  %v21215_v30 = vpack.c.bf16 %v14686_v32, %v14685_v29  ;;  %v24700_v55 = vld [vmem:[#allocation2 + $0x38] sm:$0xff] }
  0x79   : > { %21340 = vmatprep.subr.bf16.mxu0 %v21339_v54  ;;  %v24689_v56 = vld [vmem:[#allocation2 + $0x10a] sm:$0xff]  ;;  %v24703_v62 = vld [vmem:[#allocation2 + $0x112] sm:$0xff]  ;;  %v24707_v59 = vld [vmem:[#allocation2 + $0x122] sm:$0xff] }
  0x7a   : > { %17621 = vmatmul.mubr.f32.gmra.mrb[30].mxu1 %v24434_v50  ;;  %v24667_v50 = vld [vmem:[#allocation2 + $0x18] sm:$0xff]  ;;  %v14690_v0 = vld [vmem:[%s28995_s1 + $0x148] sm:$0xff]  ;;  %v24718_v38 = vld [vmem:[#allocation2 + $0x50] sm:$0xff] }
  0x7b   : > { %17979 = vmatmul.mubr.f32.gmra.mrb[2].mxu0 %v24563_v33  ;;  %17655 = vmatprep.mubr.f32.mxu1 %v24661_v51  ;;  %v24723_v3 = vld [vmem:[#allocation2 + $0x60] sm:$0xff]  ;;  %v14691_v6 = vld [vmem:[%s28995_s1 + $0x150] sm:$0xff]  ;;  %v14692_v42 = vld [vmem:[%s28995_s1 + $0x158] sm:$0xff] }
  0x7c   : > { %17981 = vmatprep.mubr.f32.mxu0 %v24565_v63  ;;  %21342 = vmatpush3.bf16.msra.mxu0 %v21339_v54  ;;  %v14688_v54 = vld [vmem:[%s28995_s1 + $0x138] sm:$0xff]  ;;  %29159 = vst [vmem:[#allocation12_spill] sm:$0xff] %v24723_v3  ;;  %v24739_v12 = vld [vmem:[#allocation2 + $0x142] sm:$0xff]  ;;  %v21227_v15 = vpack.c.bf16 %v14692_v42, %v14691_v6  ;;  %v24759_v29 = vld [vmem:[#allocation2 + $0x90] sm:$0xff] }
  0x7d   : > { %21344 = vmatprep.subr.bf16.mxu0 %v21343_v58  ;;  %v24725_v5 = vld [vmem:[#allocation2 + $0x13a] sm:$0xff]  ;;  %v14694_v25 = vld [vmem:[%s28995_s1 + $0x168] sm:$0xff]  ;;  %29163 = vst [vmem:[#allocation16_spill] sm:$0xff] %v24759_v29  ;;  %v24846_v24 = vld [vmem:[#allocation2 + $0x110] sm:$0xff] }
  0x7e   : > { %17656 = vmatmul.mubr.f32.vlgmr.msra.gmra.mrb[0].mxu1 %v24661_v51  ;;  %v24741_v14 = vld [vmem:[#allocation2 + $0x78] sm:$0xff]  ;;  %v14693_v48 = vld [vmem:[%s28995_s1 + $0x160] sm:$0xff]  ;;  %v24761_v32 = vld [vmem:[#allocation2 + $0x16a] sm:$0xff] }
  0x7f   : > { %17982 = vmatmul.mubr.f32.gmra.mrb[4].mxu0 %v24577_v4  ;;  %21210 = vmatpush3.bf16.msra.mxu1 %v24543_v49  ;;  %v14687_v49 = vld [vmem:[%s28995_s1 + $0x130] sm:$0xff]  ;;  %29161 = vst [vmem:[#allocation14_spill] sm:$0xff] %v24741_v14  ;;  %v24754_v46 = vld [vmem:[#allocation2 + $0x80] sm:$0xff]  ;;  %v14764_v19 = vld [vmem:[%s28995_s1 + $0x398] sm:$0xff] }
  0x80   : > { %17984 = vmatprep.mubr.f32.mxu0 %v24579_v34  ;;  %21346 = vmatpush3.bf16.msra.mxu0 %v21343_v58  ;;  %v24705_v58 = vld [vmem:[#allocation2 + $0x48] sm:$0xff]  ;;  %v21219_v61 = vpack.c.bf16 %v14688_v54, %v14687_v49  ;;  %29162 = vst [vmem:[#allocation15_spill] sm:$0xff] %v24754_v46  ;;  %v14695_v49 = vld [vmem:[%s28995_s1 + $0x170] sm:$0xff]  ;;  %v14696_v54 = vld [vmem:[%s28995_s1 + $0x178] sm:$0xff] }
  0x81   : > { %21348 = vmatprep.subr.bf16.mxu0 %v21347_v7  ;;  %17658 = vmatprep.mubr.f32.mxu1 %v24667_v50  ;;  %v21235_v6 = vpack.c.bf16 %v14696_v54, %v14695_v49  ;;  %v14697_v42 = vld [vmem:[%s28995_s1 + $0x180] sm:$0xff]  ;;  %v14763_v54 = vld [vmem:[%s28995_s1 + $0x390] sm:$0xff]  ;;  %v14768_v17 = vld [vmem:[%s28995_s1 + $0x3b8] sm:$0xff] }
  0x82   : > { %21212 = vmatprep.subr.bf16.mxu1 %v21211_v52  ;;  %17659 = vmatmul.mubr.f32.gmra.mrb[2].mxu1 %v24681_v37  ;;  %v24790_v1 = vld [vmem:[#allocation2 + $0xc0] sm:$0xff]  ;;  %v14770_v35 = vld [vmem:[%s28995_s1 + $0x3c8] sm:$0xff] }
  0x83   : > { %17985 = vmatmul.mubr.f32.gmra.mrb[6].mxu0 %v24591_v9  ;;  %17661 = vmatprep.mubr.f32.mxu1 %v24687_v47  ;;  %29167 = vst [vmem:[#allocation20_spill] sm:$0xff] %v24790_v1  ;;  %v24817_v57 = vld [vmem:[#allocation2 + $0xe0] sm:$0xff] }
  0x84   : > { %17987 = vmatprep.mubr.f32.mxu0 %v24593_v2  ;;  %21350 = vmatpush3.bf16.msra.mxu0 %v21347_v7  ;;  %v14689_v7 = vld [vmem:[%s28995_s1 + $0x140] sm:$0xff] }
  0x85   : > { %21352 = vmatprep.subr.bf16.mxu0 %v21351_v10  ;;  %21214 = vmatpush3.bf16.msra.mxu1 %v21211_v52  ;;  %v24757_v52 = vld [vmem:[#allocation2 + $0x15a] sm:$0xff] }
  0x86   : > { %21216 = vmatprep.subr.bf16.mxu1 %v21215_v30  ;;  %17662 = vmatmul.mubr.f32.gmra.mrb[4].mxu1 %v24700_v55  ;;  %v14769_v45 = vld [vmem:[%s28995_s1 + $0x3c0] sm:$0xff] }
  0x87   : > { %17988 = vmatmul.mubr.f32.gmra.mrb[8].mxu0 %v24605_v16  ;;  %17664 = vmatprep.mubr.f32.mxu1 %v24705_v58 }
  0x88   : > { %17990 = vmatprep.mubr.f32.mxu0 %v24607_v41  ;;  %21354 = vmatpush3.bf16.msra.mxu0 %v21351_v10  ;;  %v24721_v10 = vld [vmem:[#allocation2 + $0x12a] sm:$0xff] }
  0x89   : > { %21356 = vmatprep.subr.bf16.mxu0 %v21355_v20  ;;  %21218 = vmatpush3.bf16.msra.mxu1 %v21215_v30  ;;  %v21231_v30 = vpack.c.bf16 %v14694_v25, %v14693_v48  ;;  %v14698_v48 = vld [vmem:[%s28995_s1 + $0x188] sm:$0xff]  ;;  %v24788_v25 = vld [vmem:[#allocation2 + $0xb0] sm:$0xff] }
  0x8a   : > { %21220 = vmatprep.subr.bf16.mxu1 %v21219_v61  ;;  %17665 = vmatmul.mubr.f32.gmra.mrb[6].mxu1 %v24718_v38  ;;  %29166 = vst [vmem:[#allocation19_spill] sm:$0xff] %v24788_v25  ;;  %v24792_v49 = vpack.c.bf16 %v14698_v48, %v14697_v42  ;;  %v21371_v42 = vpack.c.bf16 %v14764_v19, %v14763_v54  ;;  %v14765_v48 = vld [vmem:[%s28995_s1 + $0x3a0] sm:$0xff]  ;;  %v24821_v19 = vld [vmem:[#allocation2 + $0xf0] sm:$0xff] }
  0x8b   : > { %17991 = vmatmul.mubr.f32.gmra.mrb[10].mxu0 %v24619_v22  ;;  %17667 = vmatprep.mubr.f32.mxu1 %v24723_v3  ;;  %v14767_v54 = vld [vmem:[%s28995_s1 + $0x3b0] sm:$0xff] }
  0x8c   : > { %17993 = vmatprep.mubr.f32.mxu0 %v24621_v11  ;;  %21358 = vmatpush3.bf16.msra.mxu0 %v21355_v20  ;;  %v21223_v20 = vpack.c.bf16 %v14690_v0, %v14689_v7  ;;  %v24775_v7 = vld [vmem:[#allocation2 + $0x172] sm:$0xff]  ;;  %v24777_v0 = vld [vmem:[#allocation2 + $0xa8] sm:$0xff] }
  0x8d   : > { %21360 = vmatprep.subr.bf16.mxu0 %v21359_v23  ;;  %21222 = vmatpush3.bf16.msra.mxu1 %v21219_v61  ;;  %v24772_v61 = vld [vmem:[#allocation2 + $0x98] sm:$0xff]  ;;  %29165 = vst [vmem:[#allocation18_spill] sm:$0xff] %v24777_v0 }
  0x8e   : > { %21224 = vmatprep.subr.bf16.mxu1 %v21223_v20  ;;  %29164 = vst [vmem:[#allocation17_spill] sm:$0xff] %v24772_v61 }
  0x8f   : > { %17994 = vmatmul.mubr.f32.gmra.mrb[12].mxu0 %v24633_v27 }
  0x90   : > { %17996 = vmatprep.mubr.f32.mxu0 %v24635_v44  ;;  %21362 = vmatpush3.bf16.msra.mxu0 %v21359_v23  ;;  %v24736_v23 = vld [vmem:[#allocation2 + $0x68] sm:$0xff] }
  0x91   : > { %21364 = vmatprep.subr.bf16.mxu0 %v21363_v36  ;;  %29160 = vst [vmem:[#allocation13_spill] sm:$0xff] %v24736_v23  ;;  %17668 = vmatmul.mubr.f32.gmra.mrb[8].mxu1 %v24736_v23 }
  0x92   : > { %17670 = vmatprep.mubr.f32.mxu1 %v24741_v14  ;;  %21226 = vmatpush3.bf16.msra.mxu1 %v21223_v20  ;;  %v1920_v20 = vld [vmem:[#allocation2 + $0x182] sm:$0xff] }
  0x93   : > { %17997 = vmatmul.mubr.f32.gmra.mrb[14].mxu0 %v24647_v39  ;;  %21228 = vmatprep.subr.bf16.mxu1 %v21227_v15 }
  0x94   : > { %17999 = vmatprep.mubr.f32.mxu0 %v24649_v21  ;;  %21366 = vmatpush3.bf16.msra.mxu0 %v21363_v36  ;;  %v24743_v36 = vld [vmem:[#allocation2 + $0x152] sm:$0xff] }
  0x95   : > { %21368 = vmatprep.subr.bf16.mxu0 %v24651_v40  ;;  %17671 = vmatmul.mubr.f32.gmra.mrb[10].mxu1 %v24754_v46 }
  0x96   : > { %17673 = vmatprep.mubr.f32.mxu1 %v24759_v29  ;;  %21230 = vmatpush3.bf16.msra.mxu1 %v21227_v15  ;;  %v1921_v15 = vld [vmem:[#allocation2 + $0x18a] sm:$0xff] }
  0x97   : > { %18000 = vmatmul.mubr.f32.gmra.mrb[16].mxu0 %v24665_v26  ;;  %21232 = vmatprep.subr.bf16.mxu1 %v21231_v30 }
  0x98   : > { %18002 = vmatprep.mubr.f32.mxu0 %v24669_v28 }
  0x99   : > { %17674 = vmatmul.mubr.f32.gmra.mrb[12].mxu1 %v24772_v61 }
  0x9a   : > { %17676 = vmatprep.mubr.f32.mxu1 %v24777_v0  ;;  %21234 = vmatpush3.bf16.msra.mxu1 %v21231_v30  ;;  %v24805_v30 = vld [vmem:[#allocation2 + $0xd8] sm:$0xff] }
  0x9b   : > { %18003 = vmatmul.mubr.f32.gmra.mrb[18].mxu0 %v24685_v53  ;;  %21236 = vmatprep.subr.bf16.mxu1 %v21235_v6 }
  0x9c   : > { %18005 = vmatprep.mubr.f32.mxu0 %v24689_v56 }
  0x9d   : > { %17677 = vmatmul.mubr.f32.gmra.mrb[14].mxu1 %v24788_v25 }
  0x9e   : > { %17679 = vmatprep.mubr.f32.mxu1 %v24790_v1  ;;  %21238 = vmatpush3.bf16.msra.mxu1 %v21235_v6 }
  0x9f   : > { %18006 = vmatmul.mubr.f32.gmra.mrb[20].mxu0 %v24703_v62  ;;  %21240 = vmatprep.subr.bf16.mxu1 %v24792_v49 }
  0xa0   : > { %18008 = vmatprep.mubr.f32.mxu0 %v24707_v59 }
  0xa3   : > { %18009 = vmatmul.mubr.f32.gmra.mrb[22].mxu0 %v24721_v10 }
  0xa4   : > { %18011 = vmatprep.mubr.f32.mxu0 %v24725_v5 }
  0xa7   : > { %18012 = vmatmul.mubr.f32.gmra.mrb[24].mxu0 %v24739_v12 }
  0xa8   : > { %18014 = vmatprep.mubr.f32.mxu0 %v24743_v36 }
  0xab   : > { %18015 = vmatmul.mubr.f32.gmra.mrb[26].mxu0 %v24757_v52 }
  0xac   : > { %18017 = vmatprep.mubr.f32.mxu0 %v24761_v32 }
  0xaf   : > { %18018 = vmatmul.mubr.f32.gmra.mrb[28].mxu0 %v24775_v7 }
  0xb0   : > { %18020 = vmatprep.mubr.f32.mxu0 %v1920_v20  ;;  %v24802_v20 = vld [vmem:[#allocation2 + $0xc8] sm:$0xff] }
  0xb1   : > { %29168 = vst [vmem:[#allocation21_spill] sm:$0xff] %v24802_v20  ;;  %17680 = vmatmul.mubr.f32.gmra.mrb[16].mxu1 %v24802_v20 }
  0xb2   : > { %17682 = vmatprep.mubr.f32.mxu1 %v24805_v30 }
  0xb3   : > { %18021 = vmatmul.mubr.f32.gmra.mrb[30].mxu0 %v1921_v15  ;;  %v14766_v15 = vld [vmem:[%s28995_s1 + $0x3a8] sm:$0xff] }
  0xb4   : > { %18055 = vmatprep.mubr.f32.mxu0 %v24687_v47  ;;  %v21375_v6 = vpack.c.bf16 %v14766_v15, %v14765_v48  ;;  %v24835_v48 = vld [vmem:[#allocation2 + $0x108] sm:$0xff]  ;;  %v21379_v15 = vpack.c.bf16 %v14768_v17, %v14767_v54  ;;  %v21383_v17 = vpack.c.bf16 %v14770_v35, %v14769_v45  ;;  %v14771_v54 = vld [vmem:[%s28995_s1 + $0x3d0] sm:$0xff]  ;;  %v14773_v45 = vld [vmem:[%s28995_s1 + $0x3e0] sm:$0xff] }
  0xb5   : > { %17683 = vmatmul.mubr.f32.gmra.mrb[18].mxu1 %v24817_v57 }
  0xb6   : > { %17685 = vmatprep.mubr.f32.mxu1 %v24821_v19 }
  0xb7   : > { %18056 = vmatmul.mubr.f32.vlgmr.msra.gmra.mrb[0].mxu0 %v24700_v55 }
  0xb8   : > { %21370 = vmatpush3.bf16.msra.mxu0 %v24651_v40  ;;  %18058 = vmatprep.mubr.f32.mxu0 %v24705_v58  ;;  %v24832_v40 = vld [vmem:[#allocation2 + $0xf8] sm:$0xff] }
  0xb9   : > { %21372 = vmatprep.subr.bf16.mxu0 %v21371_v42  ;;  %17686 = vmatmul.mubr.f32.gmra.mrb[20].mxu1 %v24832_v40 }
  0xba   : > { %17688 = vmatprep.mubr.f32.mxu1 %v24835_v48 }
  0xbb   : > { %18059 = vmatmul.mubr.f32.gmra.mrb[2].mxu0 %v24718_v38 }
  0xbc   : > { %18061 = vmatprep.mubr.f32.mxu0 %v24723_v3  ;;  %21374 = vmatpush3.bf16.msra.mxu0 %v21371_v42  ;;  %v24849_v42 = vld [vmem:[#allocation2 + $0x120] sm:$0xff]  ;;  %v973_v3 = vld [vmem:[#allocation2 + $0xa] sm:$0xff] }
  0xbd   : > { %21376 = vmatprep.subr.bf16.mxu0 %v21375_v6  ;;  %17689 = vmatmul.mubr.f32.gmra.mrb[22].mxu1 %v24846_v24 }
  0xbe   : > { %17691 = vmatprep.mubr.f32.mxu1 %v24849_v42 }
  0xbf   : > { %18062 = vmatmul.mubr.f32.gmra.mrb[4].mxu0 %v24736_v23  ;;  %v14772_v23 = vld [vmem:[%s28995_s1 + $0x3d8] sm:$0xff] }
  0xc0   : > { %18064 = vmatprep.mubr.f32.mxu0 %v24741_v14  ;;  %21378 = vmatpush3.bf16.msra.mxu0 %v21375_v6  ;;  %v24860_v14 = vld [vmem:[#allocation2 + $0x128] sm:$0xff]  ;;  %v24863_v6 = vld [vmem:[#allocation2 + $0x138] sm:$0xff]  ;;  %v21387_v35 = vpack.c.bf16 %v14772_v23, %v14771_v54  ;;  %v14775_v54 = vld [vmem:[%s28995_s1 + $0x3f0] sm:$0xff] }
  0xc1   : > { %21380 = vmatprep.subr.bf16.mxu0 %v21379_v15  ;;  %17692 = vmatmul.mubr.f32.gmra.mrb[24].mxu1 %v24860_v14 }
  0xc2   : > { %17694 = vmatprep.mubr.f32.mxu1 %v24863_v6 }
  0xc3   : > { %18065 = vmatmul.mubr.f32.gmra.mrb[6].mxu0 %v24754_v46  ;;  %v14774_v46 = vld [vmem:[%s28995_s1 + $0x3e8] sm:$0xff] }
  0xc4   : > { %18067 = vmatprep.mubr.f32.mxu0 %v24759_v29  ;;  %21382 = vmatpush3.bf16.msra.mxu0 %v21379_v15  ;;  %v24874_v29 = vld [vmem:[#allocation2 + $0x140] sm:$0xff]  ;;  %v24877_v15 = vld [vmem:[#allocation2 + $0x150] sm:$0xff]  ;;  %v21391_v23 = vpack.c.bf16 %v14774_v46, %v14773_v45 }
  0xc5   : > { %21384 = vmatprep.subr.bf16.mxu0 %v21383_v17  ;;  %17695 = vmatmul.mubr.f32.gmra.mrb[26].mxu1 %v24874_v29  ;;  %v14777_v45 = vld [vmem:[%s28995_s1 + $0x400] sm:$0xff] }
  0xc6   : > { %17697 = vmatprep.mubr.f32.mxu1 %v24877_v15 }
  0xc7   : > { %18068 = vmatmul.mubr.f32.gmra.mrb[8].mxu0 %v24772_v61  ;;  %v14776_v61 = vld [vmem:[%s28995_s1 + $0x3f8] sm:$0xff] }
  0xc8   : > { %18070 = vmatprep.mubr.f32.mxu0 %v24777_v0  ;;  %21386 = vmatpush3.bf16.msra.mxu0 %v21383_v17  ;;  %v24888_v0 = vld [vmem:[#allocation2 + $0x158] sm:$0xff]  ;;  %v24891_v17 = vld [vmem:[#allocation2 + $0x168] sm:$0xff]  ;;  %v21395_v46 = vpack.c.bf16 %v14776_v61, %v14775_v54  ;;  %v14699_v54 = vld [vmem:[%s28995_s1 + $0x190] sm:$0xff] }
  0xc9   : > { %21388 = vmatprep.subr.bf16.mxu0 %v21387_v35  ;;  %17698 = vmatmul.mubr.f32.gmra.mrb[28].mxu1 %v24888_v0 }
  0xca   : > { %17700 = vmatprep.mubr.f32.mxu1 %v24891_v17 }
  0xcb   : > { %18071 = vmatmul.mubr.f32.gmra.mrb[10].mxu0 %v24788_v25  ;;  %v14778_v25 = vld [vmem:[%s28995_s1 + $0x408] sm:$0xff] }
  0xcc   : > { %18073 = vmatprep.mubr.f32.mxu0 %v24790_v1  ;;  %21390 = vmatpush3.bf16.msra.mxu0 %v21387_v35  ;;  %v24902_v1 = vld [vmem:[#allocation2 + $0x170] sm:$0xff]  ;;  %v972_v35 = vld [vmem:[#allocation2 + $0x2] sm:$0xff]  ;;  %v24905_v61 = vpack.c.bf16 %v14778_v25, %v14777_v45 }
  0xcd   : > { %21392 = vmatprep.subr.bf16.mxu0 %v21391_v23  ;;  %17701 = vmatmul.mubr.f32.gmra.mrb[30].mxu1 %v24902_v1  ;;  %v14701_v25 = vld [vmem:[%s28995_s1 + $0x1a0] sm:$0xff]  ;;  %v14702_v45 = vld [vmem:[%s28995_s1 + $0x1a8] sm:$0xff] }
  0xce   : > { %17735 = vmatprep.mubr.f32.mxu1 %v972_v35  ;;  %v14708_v35 = vld [vmem:[%s28995_s1 + $0x1d8] sm:$0xff] }
  0xcf   : > { %18074 = vmatmul.mubr.f32.gmra.mrb[12].mxu0 %v24802_v20  ;;  %v14700_v20 = vld [vmem:[%s28995_s1 + $0x198] sm:$0xff] }
  0xd0   : > { %18076 = vmatprep.mubr.f32.mxu0 %v24805_v30  ;;  %21394 = vmatpush3.bf16.msra.mxu0 %v21391_v23  ;;  %v21243_v23 = vpack.c.bf16 %v14700_v20, %v14699_v54  ;;  %v21247_v20 = vpack.c.bf16 %v14702_v45, %v14701_v25  ;;  %v14710_v54 = vld [vmem:[%s28995_s1 + $0x1e8] sm:$0xff]  ;;  %v14712_v25 = vld [vmem:[%s28995_s1 + $0x1f8] sm:$0xff] }
  0xd1   : > { %21396 = vmatprep.subr.bf16.mxu0 %v21395_v46  ;;  %17736 = vmatmul.mubr.f32.vlgmr.msra.gmra.mrb[0].mxu1 %v973_v3  ;;  %v14703_v3 = vld [vmem:[%s28995_s1 + $0x1b0] sm:$0xff] }
  0xd2   : > { %21242 = vmatpush3.bf16.msra.mxu1 %v24792_v49  ;;  %17738 = vmatprep.mubr.f32.mxu1 %v24534_v43  ;;  %v14706_v49 = vld [vmem:[%s28995_s1 + $0x1c8] sm:$0xff] }
  0xd3   : > { %18077 = vmatmul.mubr.f32.gmra.mrb[14].mxu0 %v24817_v57  ;;  %21244 = vmatprep.subr.bf16.mxu1 %v21243_v23 }
  0xd4   : > { %18079 = vmatprep.mubr.f32.mxu0 %v24821_v19  ;;  %21398 = vmatpush3.bf16.msra.mxu0 %v21395_v46  ;;  %v14704_v46 = vld [vmem:[%s28995_s1 + $0x1b8] sm:$0xff] }
  0xd5   : > { %21400 = vmatprep.subr.bf16.mxu0 %v24905_v61  ;;  %17739 = vmatmul.mubr.f32.gmra.mrb[2].mxu1 %v24548_v31  ;;  %v21251_v43 = vpack.c.bf16 %v14704_v46, %v14703_v3  ;;  %v14705_v31 = vld [vmem:[%s28995_s1 + $0x1c0] sm:$0xff]  ;;  %v14782_v46 = vld [vmem:[%s28995_s1 + $0x428] sm:$0xff] }
  0xd6   : > { %17741 = vmatprep.mubr.f32.mxu1 %v24550_v60  ;;  %21246 = vmatpush3.bf16.msra.mxu1 %v21243_v23  ;;  %v21255_v60 = vpack.c.bf16 %v14706_v49, %v14705_v31  ;;  %v14784_v31 = vld [vmem:[%s28995_s1 + $0x438] sm:$0xff] }
  0xd7   : > { %18080 = vmatmul.mubr.f32.gmra.mrb[16].mxu0 %v24832_v40  ;;  %21248 = vmatprep.subr.bf16.mxu1 %v21247_v20 }
  0xd8   : > { %18082 = vmatprep.mubr.f32.mxu0 %v24835_v48 }
  0xd9   : > { %17742 = vmatmul.mubr.f32.gmra.mrb[4].mxu1 %v24563_v33  ;;  %v14707_v33 = vld [vmem:[%s28995_s1 + $0x1d0] sm:$0xff] }
  0xda   : > { %17744 = vmatprep.mubr.f32.mxu1 %v24565_v63  ;;  %21250 = vmatpush3.bf16.msra.mxu1 %v21247_v20  ;;  %v21259_v63 = vpack.c.bf16 %v14708_v35, %v14707_v33  ;;  %v14780_v20 = vld [vmem:[%s28995_s1 + $0x418] sm:$0xff] }
  0xdb   : > { %18083 = vmatmul.mubr.f32.gmra.mrb[18].mxu0 %v24846_v24  ;;  %21252 = vmatprep.subr.bf16.mxu1 %v21251_v43  ;;  %v2511_v33 = vld [vmem:[#allocation2 + $0x91] sm:$0xff] }
  0xdc   : > { %18085 = vmatprep.mubr.f32.mxu0 %v24849_v42 }
  0xdd   : > { %17745 = vmatmul.mubr.f32.gmra.mrb[6].mxu1 %v24577_v4  ;;  %v14709_v4 = vld [vmem:[%s28995_s1 + $0x1e0] sm:$0xff] }
  0xde   : > { %17747 = vmatprep.mubr.f32.mxu1 %v24579_v34  ;;  %21254 = vmatpush3.bf16.msra.mxu1 %v21251_v43  ;;  %v24967_v34 = vld [vmem:[#allocation2 + $0x180] sm:$0xff]  ;;  %v21263_v23 = vpack.c.bf16 %v14710_v54, %v14709_v4  ;;  %v2513_v4 = vld [vmem:[#allocation2 + $0xa9] sm:$0xff] }
  0xdf   : > { %18086 = vmatmul.mubr.f32.gmra.mrb[20].mxu0 %v24860_v14  ;;  %21256 = vmatprep.subr.bf16.mxu1 %v21255_v60 }
  0xe0   : > { %18088 = vmatprep.mubr.f32.mxu0 %v24863_v6 }
  0xe1   : > { %17748 = vmatmul.mubr.f32.gmra.mrb[8].mxu1 %v24591_v9  ;;  %v14711_v9 = vld [vmem:[%s28995_s1 + $0x1f0] sm:$0xff] }
  0xe2   : > { %17750 = vmatprep.mubr.f32.mxu1 %v24593_v2  ;;  %21258 = vmatpush3.bf16.msra.mxu1 %v21255_v60  ;;  %v24979_v2 = vld [vmem:[#allocation2 + $0x188] sm:$0xff]  ;;  %v21267_v45 = vpack.c.bf16 %v14712_v25, %v14711_v9 }
  0xe3   : > { %18089 = vmatmul.mubr.f32.gmra.mrb[22].mxu0 %v24874_v29  ;;  %21260 = vmatprep.subr.bf16.mxu1 %v21259_v63  ;;  %v14786_v60 = vld [vmem:[%s28995_s1 + $0x448] sm:$0xff] }
  0xe4   : > { %18091 = vmatprep.mubr.f32.mxu0 %v24877_v15  ;;  %v2515_v9 = vld [vmem:[#allocation2 + $0xc1] sm:$0xff] }
  0xe5   : > { %17751 = vmatmul.mubr.f32.gmra.mrb[10].mxu1 %v24605_v16  ;;  %v2503_v16 = vld [vmem:[#allocation2 + $0x31] sm:$0xff] }
  0xe6   : > { %17753 = vmatprep.mubr.f32.mxu1 %v24607_v41  ;;  %21262 = vmatpush3.bf16.msra.mxu1 %v21259_v63  ;;  %v14779_v41 = vld [vmem:[%s28995_s1 + $0x410] sm:$0xff]  ;;  %v14788_v63 = vld [vmem:[%s28995_s1 + $0x458] sm:$0xff] }
  0xe7   : > { %18092 = vmatmul.mubr.f32.gmra.mrb[24].mxu0 %v24888_v0  ;;  %21264 = vmatprep.subr.bf16.mxu1 %v21263_v23  ;;  %v21403_v3 = vpack.c.bf16 %v14780_v20, %v14779_v41  ;;  %v25051_v20 = vld [vmem:[#allocation2 + $0xf1] sm:$0xff] }
  0xe8   : > { %18094 = vmatprep.mubr.f32.mxu0 %v24891_v17 }
  0xe9   : > { %17754 = vmatmul.mubr.f32.gmra.mrb[12].mxu1 %v24619_v22  ;;  %v2504_v22 = vld [vmem:[#allocation2 + $0x39] sm:$0xff] }
  0xea   : > { %17756 = vmatprep.mubr.f32.mxu1 %v24621_v11  ;;  %21266 = vmatpush3.bf16.msra.mxu1 %v21263_v23  ;;  %v2505_v11 = vld [vmem:[#allocation2 + $0x49] sm:$0xff] }
  0xeb   : > { %18095 = vmatmul.mubr.f32.gmra.mrb[26].mxu0 %v24902_v1  ;;  %21268 = vmatprep.subr.bf16.mxu1 %v21267_v45  ;;  %v14790_v23 = vld [vmem:[%s28995_s1 + $0x468] sm:$0xff] }
  0xec   : > { %18097 = vmatprep.mubr.f32.mxu0 %v24967_v34 }
  0xed   : > { %17757 = vmatmul.mubr.f32.gmra.mrb[14].mxu1 %v24633_v27  ;;  %v14781_v27 = vld [vmem:[%s28995_s1 + $0x420] sm:$0xff] }
  0xee   : > { %17759 = vmatprep.mubr.f32.mxu1 %v24635_v44  ;;  %21270 = vmatpush3.bf16.msra.mxu1 %v21267_v45  ;;  %v2506_v44 = vld [vmem:[#allocation2 + $0x51] sm:$0xff]  ;;  %v21407_v43 = vpack.c.bf16 %v14782_v46, %v14781_v27  ;;  %v29175_v27 = vld [vmem:[#allocation16_spill] sm:$0xff]  ;;  %v29176_v46 = vld [vmem:[#allocation7_spill] sm:$0xff] }
  0xef   : > { %18098 = vmatmul.mubr.f32.gmra.mrb[28].mxu0 %v24979_v2  ;;  %22583 = vmatprep.subr.bf16.mxu1 %v24142_v8  ;;  %v14792_v45 = vld [vmem:[%s28995_s1 + $0x478] sm:$0xff] }
  0xf0   : > { %18100 = vmatprep.mubr.f32.mxu0 %v24661_v51 }
  0xf1   : > { %17760 = vmatmul.mubr.f32.gmra.mrb[16].mxu1 %v24647_v39  ;;  %v14783_v39 = vld [vmem:[%s28995_s1 + $0x430] sm:$0xff] }
  0xf2   : > { %17762 = vmatprep.mubr.f32.mxu1 %v24649_v21  ;;  %v2508_v21 = vld [vmem:[#allocation2 + $0x69] sm:$0xff]  ;;  %v21411_v49 = vpack.c.bf16 %v14784_v31, %v14783_v39  ;;  %v29179_v39 = vld [vmem:[#allocation10_spill] sm:$0xff] }
  0xf3   : > { %18101 = vmatmul.mubr.f32.gmra.mrb[30].mxu0 %v24661_v51  ;;  %v2507_v51 = vld [vmem:[#allocation2 + $0x61] sm:$0xff]  ;;  %v2533_v31 = vld [vmem:[#allocation2 + $0x199] sm:$0xff] }
  0xf4   : > { %18135 = vmatprep.mubr.f32.mxu0 %v2503_v16  ;;  %v25044_v16 = vld [vmem:[#allocation2 + $0xd9] sm:$0xff] }
  0xf5   : > { %17763 = vmatmul.mubr.f32.gmra.mrb[18].mxu1 %v24665_v26  ;;  %v14785_v26 = vld [vmem:[%s28995_s1 + $0x440] sm:$0xff] }
  0xf6   : > { %17765 = vmatprep.mubr.f32.mxu1 %v24669_v28  ;;  %v2510_v28 = vld [vmem:[#allocation2 + $0x81] sm:$0xff]  ;;  %v21415_v35 = vpack.c.bf16 %v14786_v60, %v14785_v26 }
  0xf7   : > { %18136 = vmatmul.mubr.f32.vlgmr.msra.gmra.mrb[0].mxu0 %v2504_v22  ;;  %v29172_v22 = vld [vmem:[#allocation14_spill] sm:$0xff]  ;;  %v29183_v26 = vld [vmem:[#allocation20_spill] sm:$0xff] }
  0xf8   : > { %21402 = vmatpush3.bf16.msra.mxu0 %v24905_v61  ;;  %18138 = vmatprep.mubr.f32.mxu0 %v2505_v11  ;;  %v2509_v61 = vld [vmem:[#allocation2 + $0x79] sm:$0xff]  ;;  %v2534_v60 = vld [vmem:[#allocation2 + $0x1a1] sm:$0xff] }
  0xf9   : > { %21404 = vmatprep.subr.bf16.mxu0 %v21403_v3  ;;  %17766 = vmatmul.mubr.f32.gmra.mrb[20].mxu1 %v24685_v53  ;;  %v14787_v53 = vld [vmem:[%s28995_s1 + $0x450] sm:$0xff]  ;;  %v29174_v11 = vld [vmem:[#allocation15_spill] sm:$0xff] }
  0xfa   : > { %17768 = vmatprep.mubr.f32.mxu1 %v24689_v56  ;;  %v2512_v56 = vld [vmem:[#allocation2 + $0x99] sm:$0xff]  ;;  %v21419_v54 = vpack.c.bf16 %v14788_v63, %v14787_v53  ;;  %v2811_v63 = vld [vmem:[#allocation2 + $0x4a] sm:$0xff] }
  0xfb   : > { %18139 = vmatmul.mubr.f32.gmra.mrb[2].mxu0 %v2506_v44  ;;  %v29177_v44 = vld [vmem:[#allocation17_spill] sm:$0xff]  ;;  %v2810_v53 = vld [vmem:[#allocation2 + $0x3a] sm:$0xff] }
  0xfc   : > { %18141 = vmatprep.mubr.f32.mxu0 %v2507_v51  ;;  %21406 = vmatpush3.bf16.msra.mxu0 %v21403_v3  ;;  %v23894_v3 = vld [vmem:[#allocation2 + $0x159] sm:$0xff]  ;;  %v23896_v51 = vld [vmem:[#allocation2 + $0x171] sm:$0xff] }
  0xfd   : > { %21408 = vmatprep.subr.bf16.mxu0 %v21407_v43  ;;  %17769 = vmatmul.mubr.f32.gmra.mrb[22].mxu1 %v24703_v62  ;;  %v14789_v62 = vld [vmem:[%s28995_s1 + $0x460] sm:$0xff] }
  0xfe   : > { %17771 = vmatprep.mubr.f32.mxu1 %v24707_v59  ;;  %v2514_v59 = vld [vmem:[#allocation2 + $0xb1] sm:$0xff]  ;;  %v21423_v25 = vpack.c.bf16 %v14790_v23, %v14789_v62  ;;  %v2831_v23 = vld [vmem:[#allocation2 + $0x13a] sm:$0xff] }
  0xff   : > { %18142 = vmatmul.mubr.f32.gmra.mrb[4].mxu0 %v2508_v21  ;;  %v29180_v21 = vld [vmem:[#allocation8_spill] sm:$0xff]  ;;  %v2817_v62 = vld [vmem:[#allocation2 + $0x92] sm:$0xff] }
 0x100   : > { %18144 = vmatprep.mubr.f32.mxu0 %v2509_v61  ;;  %21410 = vmatpush3.bf16.msra.mxu0 %v21407_v43  ;;  %v29178_v43 = vld [vmem:[#allocation18_spill] sm:$0xff]  ;;  %v29181_v61 = vld [vmem:[#allocation19_spill] sm:$0xff] }
 0x101   : > { %21412 = vmatprep.subr.bf16.mxu0 %v21411_v49  ;;  %17772 = vmatmul.mubr.f32.gmra.mrb[24].mxu1 %v24721_v10  ;;  %v14791_v10 = vld [vmem:[%s28995_s1 + $0x470] sm:$0xff] }
 0x102   : > { %17774 = vmatprep.mubr.f32.mxu1 %v24725_v5  ;;  %v2516_v5 = vld [vmem:[#allocation2 + $0xc9] sm:$0xff]  ;;  %v21427_v41 = vpack.c.bf16 %v14792_v45, %v14791_v10  ;;  %v2833_v10 = vld [vmem:[#allocation2 + $0x152] sm:$0xff]  ;;  %v1609_v45 = vld [vmem:[#allocation2 + $0x141] sm:$0xff] }
 0x103   : > { %18145 = vmatmul.mubr.f32.gmra.mrb[6].mxu0 %v2510_v28  ;;  %v2809_v28 = vld [vmem:[#allocation2 + $0x32] sm:$0xff] }
 0x104   : > { %18147 = vmatprep.mubr.f32.mxu0 %v2511_v33  ;;  %21414 = vmatpush3.bf16.msra.mxu0 %v21411_v49  ;;  %v29182_v49 = vld [vmem:[#allocation11_spill] sm:$0xff]  ;;  %v29184_v33 = vld [vmem:[#allocation9_spill] sm:$0xff] }
 0x105   : > { %21416 = vmatprep.subr.bf16.mxu0 %v21415_v35  ;;  %17775 = vmatmul.mubr.f32.gmra.mrb[26].mxu1 %v24739_v12  ;;  %v25049_v12 = vld [vmem:[#allocation2 + $0xe1] sm:$0xff] }
 0x106   : > { %17777 = vmatprep.mubr.f32.mxu1 %v24743_v36  ;;  %v25057_v36 = vld [vmem:[#allocation2 + $0xf9] sm:$0xff] }
 0x107   : > { %18148 = vmatmul.mubr.f32.gmra.mrb[8].mxu0 %v2512_v56  ;;  %v2812_v56 = vld [vmem:[#allocation2 + $0x52] sm:$0xff] }
 0x108   : > { %18150 = vmatprep.mubr.f32.mxu0 %v2513_v4  ;;  %21418 = vmatpush3.bf16.msra.mxu0 %v21415_v35  ;;  %v29185_v35 = vld [vmem:[#allocation21_spill] sm:$0xff]  ;;  %v2813_v4 = vld [vmem:[#allocation2 + $0x62] sm:$0xff] }
 0x109   : > { %21420 = vmatprep.subr.bf16.mxu0 %v21419_v54  ;;  %17778 = vmatmul.mubr.f32.gmra.mrb[28].mxu1 %v24757_v52  ;;  %v25059_v52 = vld [vmem:[#allocation2 + $0x109] sm:$0xff] }
 0x10a   : > { %17780 = vmatprep.mubr.f32.mxu1 %v24761_v32  ;;  %v25066_v32 = vld [vmem:[#allocation2 + $0x111] sm:$0xff] }
 0x10b   : > { %18151 = vmatmul.mubr.f32.gmra.mrb[10].mxu0 %v2514_v59  ;;  %v1607_v59 = vld [vmem:[#allocation2 + $0x129] sm:$0xff] }
 0x10c   : > { %18153 = vmatprep.mubr.f32.mxu0 %v2515_v9  ;;  %21422 = vmatpush3.bf16.msra.mxu0 %v21419_v54  ;;  %v2815_v54 = vld [vmem:[#allocation2 + $0x7a] sm:$0xff]  ;;  %v2832_v9 = vld [vmem:[#allocation2 + $0x142] sm:$0xff] }
 0x10d   : > { %21424 = vmatprep.subr.bf16.mxu0 %v21423_v25  ;;  %17781 = vmatmul.mubr.f32.gmra.mrb[30].mxu1 %v24775_v7  ;;  %v29171_v7 = vld [vmem:[#allocation13_spill] sm:$0xff] }
 0x10e   : > { %17815 = vmatprep.mubr.f32.mxu1 %v24667_v50  ;;  %v23889_v50 = vld [vmem:[#allocation2 + $0x121] sm:$0xff] }
 0x10f   : > { %18154 = vmatmul.mubr.f32.gmra.mrb[12].mxu0 %v2516_v5  ;;  %v2834_v5 = vld [vmem:[#allocation2 + $0x15a] sm:$0xff] }
 0x110   : > { %18156 = vmatprep.mubr.f32.mxu0 %v25044_v16  ;;  %21426 = vmatpush3.bf16.msra.mxu0 %v21423_v25  ;;  %v1608_v25 = vld [vmem:[#allocation2 + $0x139] sm:$0xff] }
 0x111   : > { %21428 = vmatprep.subr.bf16.mxu0 %v21427_v41  ;;  %17816 = vmatmul.mubr.f32.vlgmr.msra.gmra.mrb[0].mxu1 %v24681_v37  ;;  %v29169_v37 = vld [vmem:[#allocation12_spill] sm:$0xff] }
 0x112   : > { %22591 = vmatpush3.bf16.msra.mxu1 %v24142_v8  ;;  %17818 = vmatprep.mubr.f32.mxu1 %v24687_v47  ;;  %v23890_v8 = vld [vmem:[#allocation2 + $0x129] sm:$0xff]  ;;  %v23891_v47 = vld [vmem:[#allocation2 + $0x139] sm:$0xff] }
 0x113   : > { %18157 = vmatmul.mubr.f32.gmra.mrb[14].mxu0 %v25049_v12  ;;  %22584 = vmatprep.subr.bf16.mxu1 %v24162_v13 }
 0x114   : > { %18159 = vmatprep.mubr.f32.mxu0 %v25051_v20  ;;  %21430 = vmatpush3.bf16.msra.mxu0 %v21427_v41  ;;  %v2835_v41 = vld [vmem:[#allocation2 + $0x16a] sm:$0xff] }
 0x115   : > { %17819 = vmatmul.mubr.f32.gmra.mrb[2].mxu1 %v24700_v55  ;;  %v29170_v55 = vld [vmem:[#allocation5_spill] sm:$0xff] }
 0x116   : > { %17821 = vmatprep.mubr.f32.mxu1 %v24705_v58  ;;  %22592 = vmatpush3.bf16.msra.mxu1 %v24162_v13  ;;  %v23892_v58 = vld [vmem:[#allocation2 + $0x141] sm:$0xff]  ;;  %v23893_v13 = vld [vmem:[#allocation2 + $0x151] sm:$0xff] }
 0x117   : > { %18160 = vmatmul.mubr.f32.gmra.mrb[16].mxu0 %v25057_v36  ;;  %22585 = vmatprep.subr.bf16.mxu1 %v24178_v18 }
 0x118   : > { %18162 = vmatprep.mubr.f32.mxu0 %v25059_v52 }
 0x119   : > { %17822 = vmatmul.mubr.f32.gmra.mrb[4].mxu1 %v24718_v38  ;;  %v29173_v38 = vld [vmem:[#allocation6_spill] sm:$0xff] }
 0x11a   : > { %17824 = vmatprep.mubr.f32.mxu1 %v29169_v37  ;;  %22593 = vmatpush3.bf16.msra.mxu1 %v24178_v18  ;;  %v23895_v18 = vld [vmem:[#allocation2 + $0x169] sm:$0xff]  ;;  %v2839_v37 = vld [vmem:[#allocation2 + $0x19a] sm:$0xff] }
 0x11b   : > { %18163 = vmatmul.mubr.f32.gmra.mrb[18].mxu0 %v25066_v32  ;;  %22586 = vmatprep.subr.bf16.mxu1 %v29170_v55 }
 0x11c   : > { %18165 = vmatprep.mubr.f32.mxu0 %v23889_v50  ;;  %v2838_v50 = vld [vmem:[#allocation2 + $0x18a] sm:$0xff] }
 0x11d   : > { %17825 = vmatmul.mubr.f32.gmra.mrb[6].mxu1 %v29171_v7  ;;  %v1615_v7 = vld [vmem:[#allocation2 + $0x189] sm:$0xff] }
 0x11e   : > { %17827 = vmatprep.mubr.f32.mxu1 %v29172_v22  ;;  %22594 = vmatpush3.bf16.msra.mxu1 %v29170_v55  ;;  %v14812_v55 = vld [vmem:[%s28995_s1 + $0x508] sm:$0xff] }
 0x11f   : > { %18166 = vmatmul.mubr.f32.gmra.mrb[20].mxu0 %v23890_v8  ;;  %22587 = vmatprep.subr.bf16.mxu1 %v29173_v38  ;;  %v1614_v8 = vld [vmem:[#allocation2 + $0x181] sm:$0xff] }
 0x120   : > { %18168 = vmatprep.mubr.f32.mxu0 %v23891_v47  ;;  %v14811_v47 = vld [vmem:[%s28995_s1 + $0x500] sm:$0xff] }
 0x121   : > { %17828 = vmatmul.mubr.f32.gmra.mrb[8].mxu1 %v29174_v11  ;;  %v2840_v22 = vld [vmem:[#allocation2 + $0x1a2] sm:$0xff] }
 0x122   : > { %17830 = vmatprep.mubr.f32.mxu1 %v29175_v27  ;;  %22595 = vmatpush3.bf16.msra.mxu1 %v29173_v38  ;;  %v14814_v38 = vld [vmem:[%s28995_s1 + $0x518] sm:$0xff]  ;;  %v14816_v27 = vld [vmem:[%s28995_s1 + $0x528] sm:$0xff] }
 0x123   : > { %18169 = vmatmul.mubr.f32.gmra.mrb[22].mxu0 %v23892_v58  ;;  %22588 = vmatprep.subr.bf16.mxu1 %v29176_v46  ;;  %v21431_v58 = vpack.c.bf16 %v14812_v55, %v14811_v47 }
 0x124   : > { %18171 = vmatprep.mubr.f32.mxu0 %v23893_v13  ;;  %v14813_v13 = vld [vmem:[%s28995_s1 + $0x510] sm:$0xff] }
 0x125   : > { %17831 = vmatmul.mubr.f32.gmra.mrb[10].mxu1 %v29177_v44  ;;  %v21435_v11 = vpack.c.bf16 %v14814_v38, %v14813_v13  ;;  %v14818_v44 = vld [vmem:[%s28995_s1 + $0x538] sm:$0xff] }
 0x126   : > { %17833 = vmatprep.mubr.f32.mxu1 %v29178_v43  ;;  %22596 = vmatpush3.bf16.msra.mxu1 %v29176_v46  ;;  %v14817_v46 = vld [vmem:[%s28995_s1 + $0x530] sm:$0xff]  ;;  %v14819_v43 = vld [vmem:[%s28995_s1 + $0x540] sm:$0xff] }
 0x127   : > { %18172 = vmatmul.mubr.f32.gmra.mrb[24].mxu0 %v23894_v3  ;;  %22589 = vmatprep.subr.bf16.mxu1 %v29180_v21  ;;  %v14815_v3 = vld [vmem:[%s28995_s1 + $0x520] sm:$0xff] }
 0x128   : > { %18174 = vmatprep.mubr.f32.mxu0 %v23895_v18  ;;  %v21439_v18 = vpack.c.bf16 %v14816_v27, %v14815_v3  ;;  %v25240_v3 = vld [vmem:[%s28996_s2] ss:$0 sm:$0xff] }
 0x129   : > { %17834 = vmatmul.mubr.f32.gmra.mrb[12].mxu1 %v29181_v61  ;;  %v14822_v61 = vld [vmem:[%s28995_s1 + $0x558] sm:$0xff] }
 0x12a   : > { %17836 = vmatprep.mubr.f32.mxu1 %v29183_v26  ;;  %22597 = vmatpush3.bf16.msra.mxu1 %v29180_v21  ;;  %v14821_v21 = vld [vmem:[%s28995_s1 + $0x550] sm:$0xff]  ;;  %v14823_v26 = vld [vmem:[%s28995_s1 + $0x560] sm:$0xff] }
 0x12b   : > { %18175 = vmatmul.mubr.f32.gmra.mrb[26].mxu0 %v23896_v51  ;;  %22590 = vmatprep.subr.bf16.mxu1 %v29184_v33  ;;  %v21443_v51 = vpack.c.bf16 %v14818_v44, %v14817_v46  ;;  %v25245_v46 = vld [vmem:[%s28997_s3] ss:$0 sm:$0xff] }
 0x12c   : > { %18177 = vmatprep.mubr.f32.mxu0 %v29179_v39  ;;  %v14820_v39 = vld [vmem:[%s28995_s1 + $0x548] sm:$0xff] }
 0x12d   : > { %17837 = vmatmul.mubr.f32.gmra.mrb[14].mxu1 %v29185_v35  ;;  %v14826_v35 = vld [vmem:[%s28995_s1 + $0x578] sm:$0xff] }
 0x12e   : > { %17839 = vmatprep.mubr.f32.mxu1 %v24805_v30  ;;  %22598 = vmatpush3.bf16.msra.mxu1 %v29184_v33  ;;  %v2814_v30 = vld [vmem:[#allocation2 + $0x6a] sm:$0xff] }
 0x12f   : > { %18178 = vmatmul.mubr.f32.gmra.mrb[28].mxu0 %v29182_v49  ;;  %21432 = vmatprep.subr.bf16.mxu1 %v21431_v58  ;;  %v21451_v49 = vpack.c.bf16 %v14822_v61, %v14821_v21  ;;  %v14825_v33 = vld [vmem:[%s28995_s1 + $0x570] sm:$0xff] }
 0x130   : > { %18180 = vmatprep.mubr.f32.mxu0 %v2533_v31  ;;  %v21447_v31 = vpack.c.bf16 %v14820_v39, %v14819_v43 }
 0x131   : > { %17840 = vmatmul.mubr.f32.gmra.mrb[16].mxu1 %v24817_v57  ;;  %v2816_v57 = vld [vmem:[#allocation2 + $0x82] sm:$0xff] }
 0x132   : > { %17842 = vmatprep.mubr.f32.mxu1 %v24821_v19  ;;  %v2818_v19 = vld [vmem:[#allocation2 + $0x9a] sm:$0xff] }
 0x133   : > { %18181 = vmatmul.mubr.f32.gmra.mrb[30].mxu0 %v2534_v60  ;;  %v14824_v60 = vld [vmem:[%s28995_s1 + $0x568] sm:$0xff] }
 0x134   : > { %18215 = vmatprep.mubr.f32.mxu0 %v2809_v28  ;;  %v21455_v28 = vpack.c.bf16 %v14824_v60, %v14823_v26 }
 0x135   : > { %17843 = vmatmul.mubr.f32.gmra.mrb[18].mxu1 %v24832_v40  ;;  %v2819_v40 = vld [vmem:[#allocation2 + $0xaa] sm:$0xff] }
 0x136   : > { %17845 = vmatprep.mubr.f32.mxu1 %v24835_v48  ;;  %v2821_v48 = vld [vmem:[#allocation2 + $0xc2] sm:$0xff] }
 0x137   : > { %18216 = vmatmul.mubr.f32.vlgmr.msra.gmra.mrb[0].mxu0 %v2810_v53  ;;  %v21459_v53 = vpack.c.bf16 %v14826_v35, %v14825_v33 }
 0x138   : > { %18218 = vmatprep.mubr.f32.mxu0 %v2811_v63  ;;  %v3303_v63 = vld [vmem:[#allocation4 + $0x1] sm:$0xff] }
 0x139   : > { %17846 = vmatmul.mubr.f32.gmra.mrb[20].mxu1 %v24846_v24  ;;  %v2820_v24 = vld [vmem:[#allocation2 + $0xb2] sm:$0xff] }
 0x13a   : > { %17848 = vmatprep.mubr.f32.mxu1 %v24849_v42  ;;  %v2823_v42 = vld [vmem:[#allocation2 + $0xda] sm:$0xff] }
 0x13b   : > { %18219 = vmatmul.mubr.f32.gmra.mrb[2].mxu0 %v2812_v56  ;;  %v3304_v56 = vld [vmem:[#allocation4 + $0x9] sm:$0xff] }
 0x13c   : > { %18221 = vmatprep.mubr.f32.mxu0 %v2813_v4  ;;  %v14795_v4 = vld [vmem:[%s28995_s1 + $0x480] sm:$0xff] }
 0x13d   : > { %17849 = vmatmul.mubr.f32.gmra.mrb[22].mxu1 %v24860_v14  ;;  %v2822_v14 = vld [vmem:[#allocation2 + $0xca] sm:$0xff] }
 0x13e   : > { %17851 = vmatprep.mubr.f32.mxu1 %v24863_v6  ;;  %v2825_v6 = vld [vmem:[#allocation2 + $0xf2] sm:$0xff] }
 0x13f   : > { %18222 = vmatmul.mubr.f32.gmra.mrb[4].mxu0 %v2814_v30  ;;  %v14796_v30 = vld [vmem:[%s28995_s1 + $0x488] sm:$0xff] }
 0x140   : > { %18224 = vmatprep.mubr.f32.mxu0 %v2815_v54  ;;  %v21463_v54 = vpack.c.bf16 %v14796_v30, %v14795_v4 }
 0x141   : > { %17852 = vmatmul.mubr.f32.gmra.mrb[24].mxu1 %v24874_v29  ;;  %v2824_v29 = vld [vmem:[#allocation2 + $0xe2] sm:$0xff] }
 0x142   : > { %17854 = vmatprep.mubr.f32.mxu1 %v24877_v15  ;;  %v2827_v15 = vld [vmem:[#allocation2 + $0x10a] sm:$0xff] }
 0x143   : > { %18225 = vmatmul.mubr.f32.gmra.mrb[6].mxu0 %v2816_v57  ;;  %v14797_v57 = vld [vmem:[%s28995_s1 + $0x490] sm:$0xff] }
 0x144   : > { %18227 = vmatprep.mubr.f32.mxu0 %v2817_v62  ;;  %v14798_v62 = vld [vmem:[%s28995_s1 + $0x498] sm:$0xff] }
 0x145   : > { %17855 = vmatmul.mubr.f32.gmra.mrb[26].mxu1 %v24888_v0  ;;  %v2826_v0 = vld [vmem:[#allocation2 + $0xfa] sm:$0xff] }
 0x146   : > { %17857 = vmatprep.mubr.f32.mxu1 %v24891_v17  ;;  %v2829_v17 = vld [vmem:[#allocation2 + $0x122] sm:$0xff] }
 0x147   : > { %18228 = vmatmul.mubr.f32.gmra.mrb[8].mxu0 %v2818_v19  ;;  %v21467_v19 = vpack.c.bf16 %v14798_v62, %v14797_v57 }
 0x148   : > { %18230 = vmatprep.mubr.f32.mxu0 %v2819_v40  ;;  %v14799_v40 = vld [vmem:[%s28995_s1 + $0x4a0] sm:$0xff] }
 0x149   : > { %17858 = vmatmul.mubr.f32.gmra.mrb[28].mxu1 %v24902_v1  ;;  %v2828_v1 = vld [vmem:[#allocation2 + $0x112] sm:$0xff] }
 0x14a   : > { %17860 = vmatprep.mubr.f32.mxu1 %v24967_v34  ;;  %v2830_v34 = vld [vmem:[#allocation2 + $0x12a] sm:$0xff] }
 0x14b   : > { %18231 = vmatmul.mubr.f32.gmra.mrb[10].mxu0 %v2820_v24  ;;  %v14800_v24 = vld [vmem:[%s28995_s1 + $0x4a8] sm:$0xff] }
 0x14c   : > { %18233 = vmatprep.mubr.f32.mxu0 %v2821_v48  ;;  %v21471_v48 = vpack.c.bf16 %v14800_v24, %v14799_v40 }
 0x14d   : > { %17861 = vmatmul.mubr.f32.gmra.mrb[30].mxu1 %v24979_v2  ;;  %v1606_v2 = vld [vmem:[#allocation2 + $0x121] sm:$0xff] }
 0x14e   : > { %17919 = vmatprep.mubr.f32.mxu1 %v25044_v16  ;;  %v1610_v16 = vld [vmem:[#allocation2 + $0x151] sm:$0xff] }
 0x14f   : > { %18234 = vmatmul.mubr.f32.gmra.mrb[12].mxu0 %v2822_v14  ;;  %v14801_v14 = vld [vmem:[%s28995_s1 + $0x4b0] sm:$0xff] }
 0x150   : > { %18236 = vmatprep.mubr.f32.mxu0 %v2823_v42  ;;  %v14802_v42 = vld [vmem:[%s28995_s1 + $0x4b8] sm:$0xff] }
 0x151   : > { %17920 = vmatmul.mubr.f32.vlgmr.msra.gmra.mrb[16].mxu1 %v25049_v12  ;;  %v1611_v12 = vld [vmem:[#allocation2 + $0x159] sm:$0xff] }
 0x152   : > { %17922 = vmatprep.mubr.f32.mxu1 %v25051_v20  ;;  %v2836_v20 = vld [vmem:[#allocation2 + $0x172] sm:$0xff]  ;;  %21434 = vmatpush3.bf16.msra.mxu1 %v21431_v58 }
 0x153   : > { %18237 = vmatmul.mubr.f32.gmra.mrb[14].mxu0 %v2824_v29  ;;  %21436 = vmatprep.subr.bf16.mxu1 %v21435_v11  ;;  %v21475_v29 = vpack.c.bf16 %v14802_v42, %v14801_v14 }
 0x154   : > { %18239 = vmatprep.mubr.f32.mxu0 %v2825_v6  ;;  %v14803_v6 = vld [vmem:[%s28995_s1 + $0x4c0] sm:$0xff] }
 0x155   : > { %17923 = vmatmul.mubr.f32.gmra.mrb[18].mxu1 %v25057_v36  ;;  %v1612_v36 = vld [vmem:[#allocation2 + $0x169] sm:$0xff] }
 0x156   : > { %17925 = vmatprep.mubr.f32.mxu1 %v25059_v52  ;;  %v2837_v52 = vld [vmem:[#allocation2 + $0x182] sm:$0xff]  ;;  %21438 = vmatpush3.bf16.msra.mxu1 %v21435_v11 }
 0x157   : > { %18240 = vmatmul.mubr.f32.gmra.mrb[16].mxu0 %v2826_v0  ;;  %21440 = vmatprep.subr.bf16.mxu1 %v21439_v18  ;;  %v14804_v0 = vld [vmem:[%s28995_s1 + $0x4c8] sm:$0xff] }
 0x158   : > { %18242 = vmatprep.mubr.f32.mxu0 %v2827_v15  ;;  %v21479_v15 = vpack.c.bf16 %v14804_v0, %v14803_v6 }
 0x159   : > { %17926 = vmatmul.mubr.f32.gmra.mrb[20].mxu1 %v25066_v32  ;;  %v1613_v32 = vld [vmem:[#allocation2 + $0x171] sm:$0xff] }
 0x15a   : > { %17928 = vmatprep.mubr.f32.mxu1 %v1606_v2  ;;  %21442 = vmatpush3.bf16.msra.mxu1 %v21439_v18  ;;  %v14807_v2 = vld [vmem:[%s28995_s1 + $0x4e0] sm:$0xff] }
 0x15b   : > { %18243 = vmatmul.mubr.f32.gmra.mrb[18].mxu0 %v2828_v1  ;;  %21444 = vmatprep.subr.bf16.mxu1 %v21443_v51  ;;  %v14805_v1 = vld [vmem:[%s28995_s1 + $0x4d0] sm:$0xff] }
 0x15c   : > { %18245 = vmatprep.mubr.f32.mxu0 %v2829_v17  ;;  %v14806_v17 = vld [vmem:[%s28995_s1 + $0x4d8] sm:$0xff] }
 0x15d   : > { %17929 = vmatmul.mubr.f32.gmra.mrb[22].mxu1 %v1607_v59 }
 0x15e   : > { %17931 = vmatprep.mubr.f32.mxu1 %v1608_v25  ;;  %21446 = vmatpush3.bf16.msra.mxu1 %v21443_v51  ;;  %v14810_v25 = vld [vmem:[%s28995_s1 + $0x4f8] sm:$0xff] }
 0x15f   : > { %18246 = vmatmul.mubr.f32.gmra.mrb[20].mxu0 %v2830_v34  ;;  %21448 = vmatprep.subr.bf16.mxu1 %v21447_v31  ;;  %v21483_v34 = vpack.c.bf16 %v14806_v17, %v14805_v1 }
 0x160   : > { %18248 = vmatprep.mubr.f32.mxu0 %v2831_v23  ;;  %v14808_v23 = vld [vmem:[%s28995_s1 + $0x4e8] sm:$0xff] }
 0x161   : > { %17932 = vmatmul.mubr.f32.gmra.mrb[24].mxu1 %v1609_v45  ;;  %v21487_v59 = vpack.c.bf16 %v14808_v23, %v14807_v2  ;;  %v14827_v45 = vld [vmem:[%s28995_s1 + $0x580] sm:$0xff] }
 0x162   : > { %17934 = vmatprep.mubr.f32.mxu1 %v1610_v16  ;;  %21450 = vmatpush3.bf16.msra.mxu1 %v21447_v31 }
 0x163   : > { %18249 = vmatmul.mubr.f32.gmra.mrb[22].mxu0 %v2832_v9  ;;  %21452 = vmatprep.subr.bf16.mxu1 %v21451_v49  ;;  %v14809_v9 = vld [vmem:[%s28995_s1 + $0x4f0] sm:$0xff] }
 0x164   : > { %18251 = vmatprep.mubr.f32.mxu0 %v2833_v10  ;;  %v21491_v10 = vpack.c.bf16 %v14810_v25, %v14809_v9 }
 0x165   : > { %17935 = vmatmul.mubr.f32.gmra.mrb[26].mxu1 %v1611_v12 }
 0x166   : > { %17937 = vmatprep.mubr.f32.mxu1 %v1612_v36  ;;  %21454 = vmatpush3.bf16.msra.mxu1 %v21451_v49 }
 0x167   : > { %18252 = vmatmul.mubr.f32.gmra.mrb[24].mxu0 %v2834_v5  ;;  %21456 = vmatprep.subr.bf16.mxu1 %v21455_v28  ;;  %v14828_v5 = vld [vmem:[%s28995_s1 + $0x588] sm:$0xff] }
 0x168   : > { %18254 = vmatprep.mubr.f32.mxu0 %v2835_v41  ;;  %v25222_v16 = vpack.c.bf16 %v14828_v5, %v14827_v45 }
 0x169   : > { %17938 = vmatmul.mubr.f32.gmra.mrb[28].mxu1 %v1613_v32 }
 0x16a   : > { %17940 = vmatprep.mubr.f32.mxu1 %v1614_v8  ;;  %21458 = vmatpush3.bf16.msra.mxu1 %v21455_v28 }
 0x16b   : > { %18255 = vmatmul.mubr.f32.gmra.mrb[26].mxu0 %v2836_v20  ;;  %21460 = vmatprep.subr.bf16.mxu1 %v21459_v53 }
 0x16c   : > { %18257 = vmatprep.mubr.f32.mxu0 %v2837_v52 }
 0x16d   : > { %17941 = vmatmul.mubr.f32.gmra.mrb[30].mxu1 %v1615_v7 }
 0x16e   : > { %21462 = vmatpush3.bf16.msra.mxu1 %v21459_v53  ;;  %18295 = vmatprep.mubr.f32.mxu1 %v3303_v63 }
 0x16f   : > { %18258 = vmatmul.mubr.f32.gmra.mrb[28].mxu0 %v2838_v50  ;;  %21464 = vmatprep.subr.bf16.mxu1 %v21463_v54 }
 0x170   : > { %18260 = vmatprep.mubr.f32.mxu0 %v2839_v37 }
 0x171   : > { %18296 = vmatmul.mubr.f32.vlgmr.msra.gmra.mrb[32].mxu1 %v3304_v56 }
 0x172   : > { %21466 = vmatpush3.bf16.msra.mxu1 %v21463_v54 }
 0x173   : > { %18261 = vmatmul.mubr.f32.gmra.mrb[30].mxu0 %v2840_v22  ;;  %21468 = vmatprep.subr.bf16.mxu1 %v21467_v19 }
 0x176   : > { %21470 = vmatpush3.bf16.msra.mxu1 %v21467_v19 }
 0x177   : > { %21472 = vmatprep.subr.bf16.mxu1 %v21471_v48 }
 0x17a   : > { %21474 = vmatpush3.bf16.msra.mxu1 %v21471_v48 }
 0x17b   : > { %21476 = vmatprep.subr.bf16.mxu1 %v21475_v29 }
 0x17e   : > { %21478 = vmatpush3.bf16.msra.mxu1 %v21475_v29 }
 0x17f   : > { %21480 = vmatprep.subr.bf16.mxu1 %v21479_v15 }
 0x182   : > { %21482 = vmatpush3.bf16.msra.mxu1 %v21479_v15 }
 0x183   : > { %21484 = vmatprep.subr.bf16.mxu1 %v21483_v34 }
 0x186   : > { %21486 = vmatpush3.bf16.msra.mxu1 %v21483_v34 }
 0x187   : > { %21488 = vmatprep.subr.bf16.mxu1 %v21487_v59 }
 0x18a   : > { %21490 = vmatpush3.bf16.msra.mxu1 %v21487_v59 }
 0x18b   : > { %21492 = vmatprep.subr.bf16.mxu1 %v21491_v10 }
 0x18e   : > { %21494 = vmatpush3.bf16.msra.mxu1 %v21491_v10 }
 0x18f   : > { %21496 = vmatprep.subr.bf16.mxu1 %v25222_v16 }
 0x1e4   : > { %v17817_v41 = vpop.f32.mrb[0].mxu1 }
 0x1e5   : > { %v1393_v12 = vpop.f32.mrb[1].mxu1 }
 0x1e8   : > { %v17820_v20 = vpop.f32.mrb[2].mxu1 }
 0x1e9   : > { %v1403_v36 = vpop.f32.mrb[3].mxu1 }
 0x1ec   : > { %v17823_v52 = vpop.f32.mrb[4].mxu1 }
 0x1ed   : > { %v1413_v32 = vpop.f32.mrb[5].mxu1 }
 0x1f0   : > { %v17826_v50 = vpop.f32.mrb[6].mxu1 }
 0x1f1   : > { %v1423_v8 = vpop.f32.mrb[7].mxu1 }
 0x1f4   : > { %v17829_v37 = vpop.f32.mrb[8].mxu1 }
 0x1f5   : > { %v1433_v47 = vpop.f32.mrb[9].mxu1 }
 0x1f8   : > { %v25225_v55 = vpop.f32.mrb[10].mxu1 }
 0x1f9   : > { %v25227_v7 = vpop.f32.mrb[11].mxu1 }
 0x1fc   : > { %v25229_v58 = vpop.f32.mrb[12].mxu1 }
 0x1fd   : > { %v25231_v22 = vpop.f32.mrb[13].mxu1 }
 0x200   : > { %v25233_v13 = vpop.f32.mrb[14].mxu1 }
 0x201   : > { %v25235_v38 = vpop.f32.mrb[15].mxu1 }
 0x20a   : > { %v18217_v11 = vpop.f32.mrb[0].mxu0 }
 0x20b   : > { %v22599_v27 = vadd.f32 %v18217_v11, %v17817_v41  ;;  %v2924_v18 = vpop.f32.mrb[1].mxu0 }
 0x20c   : > { %v22600_v44 = vadd.f32 %v2924_v18, %v1393_v12 }
 0x20d   : > { %v3121_v51 = vmul.f32 %v22599_v27, %v25240_v3 }
 0x20e   : > { %v3120_v43 = vmul.f32 %v22600_v44, %v25240_v3  ;;  %v18220_v39 = vpop.f32.mrb[2].mxu0 }
 0x20f   : > { %v3158_v31 = vadd.f32 %v25245_v46, %v3121_v51  ;;  %v22601_v21 = vadd.f32 %v18220_v39, %v17820_v20  ;;  %v2934_v61 = vpop.f32.mrb[3].mxu0 }
 0x210   : > { %v3157_v49 = vadd.f32 %v25245_v46, %v3120_v43  ;;  %v22602_v26 = vadd.f32 %v2934_v61, %v1403_v36 }
 0x211   : > { %v3190_v60 = vmax.f32 %v3158_v31, 0.0  ;;  %v3123_v28 = vmul.f32 %v22601_v21, %v25240_v3 }
 0x212   : > { %v3189_v33 = vmax.f32 %v3157_v49, 0.0  ;;  %v3122_v35 = vmul.f32 %v22602_v26, %v25240_v3  ;;  %v18223_v53 = vpop.f32.mrb[4].mxu0 }
 0x213   : > { %3223 = vst [vmem:[#allocation4 + $0x21] sm:$0xff] %v3190_v60  ;;  %v3160_v63 = vadd.f32 %v25245_v46, %v3123_v28  ;;  %v22603_v56 = vadd.f32 %v18223_v53, %v17823_v52  ;;  %v2944_v4 = vpop.f32.mrb[5].mxu0 }
 0x214   : > { %3222 = vst [vmem:[#allocation4 + $0x19] sm:$0xff] %v3189_v33  ;;  %v3159_v30 = vadd.f32 %v25245_v46, %v3122_v35  ;;  %v22604_v54 = vadd.f32 %v2944_v4, %v1413_v32  ;;  %18298 = vmatprep.mubr.f32.mxu1 %v3189_v33 }
 0x215   : > { %v3192_v57 = vmax.f32 %v3160_v63, 0.0  ;;  %v3125_v62 = vmul.f32 %v22603_v56, %v25240_v3  ;;  %18299 = vmatmul.mubr.f32.gmra.mrb[34].mxu1 %v3190_v60 }
 0x216   : > { %v3191_v19 = vmax.f32 %v3159_v30, 0.0  ;;  %v3124_v40 = vmul.f32 %v22604_v54, %v25240_v3  ;;  %v18226_v24 = vpop.f32.mrb[6].mxu0 }
 0x217   : > { %3225 = vst [vmem:[#allocation4 + $0x39] sm:$0xff] %v3192_v57  ;;  %v3162_v48 = vadd.f32 %v25245_v46, %v3125_v62  ;;  %v22605_v14 = vadd.f32 %v18226_v24, %v17826_v50  ;;  %v2954_v42 = vpop.f32.mrb[7].mxu0 }
 0x218   : > { %3224 = vst [vmem:[#allocation4 + $0x31] sm:$0xff] %v3191_v19  ;;  %v3161_v29 = vadd.f32 %v25245_v46, %v3124_v40  ;;  %v22606_v6 = vadd.f32 %v2954_v42, %v1423_v8  ;;  %18301 = vmatprep.mubr.f32.mxu1 %v3191_v19 }
 0x219   : > { %v3194_v0 = vmax.f32 %v3162_v48, 0.0  ;;  %v3127_v15 = vmul.f32 %v22605_v14, %v25240_v3  ;;  %18302 = vmatmul.mubr.f32.gmra.mrb[36].mxu1 %v3192_v57 }
 0x21a   : > { %v3193_v1 = vmax.f32 %v3161_v29, 0.0  ;;  %v3126_v17 = vmul.f32 %v22606_v6, %v25240_v3  ;;  %v18229_v34 = vpop.f32.mrb[8].mxu0 }
 0x21b   : > { %3227 = vst [vmem:[#allocation4 + $0x51] sm:$0xff] %v3194_v0  ;;  %v3164_v2 = vadd.f32 %v25245_v46, %v3127_v15  ;;  %v22607_v23 = vadd.f32 %v18229_v34, %v17829_v37  ;;  %v2964_v59 = vpop.f32.mrb[9].mxu0 }
 0x21c   : > { %3226 = vst [vmem:[#allocation4 + $0x49] sm:$0xff] %v3193_v1  ;;  %v3163_v9 = vadd.f32 %v25245_v46, %v3126_v17  ;;  %v22608_v25 = vadd.f32 %v2964_v59, %v1433_v47  ;;  %18304 = vmatprep.mubr.f32.mxu1 %v3193_v1 }
 0x21d   : > { %v3196_v10 = vmax.f32 %v3164_v2, 0.0  ;;  %v3129_v45 = vmul.f32 %v22607_v23, %v25240_v3  ;;  %18305 = vmatmul.mubr.f32.gmra.mrb[38].mxu1 %v3194_v0 }
 0x21e   : > { %v3195_v5 = vmax.f32 %v3163_v9, 0.0  ;;  %v3128_v41 = vmul.f32 %v22608_v25, %v25240_v3  ;;  %v18232_v12 = vpop.f32.mrb[10].mxu0 }
 0x21f   : > { %3229 = vst [vmem:[#allocation4 + $0x69] sm:$0xff] %v3196_v10  ;;  %v3166_v20 = vadd.f32 %v25245_v46, %v3129_v45  ;;  %v22609_v36 = vadd.f32 %v18232_v12, %v25225_v55  ;;  %v2974_v52 = vpop.f32.mrb[11].mxu0 }
 0x220   : > { %3228 = vst [vmem:[#allocation4 + $0x61] sm:$0xff] %v3195_v5  ;;  %v3165_v32 = vadd.f32 %v25245_v46, %v3128_v41  ;;  %v22610_v50 = vadd.f32 %v2974_v52, %v25227_v7  ;;  %18307 = vmatprep.mubr.f32.mxu1 %v3195_v5 }
 0x221   : > { %v3198_v8 = vmax.f32 %v3166_v20, 0.0  ;;  %v3131_v37 = vmul.f32 %v22609_v36, %v25240_v3  ;;  %18308 = vmatmul.mubr.f32.gmra.mrb[40].mxu1 %v3196_v10 }
 0x222   : > { %v3197_v47 = vmax.f32 %v3165_v32, 0.0  ;;  %v3130_v11 = vmul.f32 %v22610_v50, %v25240_v3  ;;  %v18235_v27 = vpop.f32.mrb[12].mxu0 }
 0x223   : > { %3231 = vst [vmem:[#allocation4 + $0x81] sm:$0xff] %v3198_v8  ;;  %v3168_v18 = vadd.f32 %v25245_v46, %v3131_v37  ;;  %v22611_v55 = vadd.f32 %v18235_v27, %v25229_v58  ;;  %v2984_v44 = vpop.f32.mrb[13].mxu0 }
 0x224   : > { %3230 = vst [vmem:[#allocation4 + $0x79] sm:$0xff] %v3197_v47  ;;  %v3167_v51 = vadd.f32 %v25245_v46, %v3130_v11  ;;  %v22612_v7 = vadd.f32 %v2984_v44, %v25231_v22  ;;  %18310 = vmatprep.mubr.f32.mxu1 %v3197_v47  ;;  %v17921_v35 = vpop.f32.mrb[16].mxu1 }
 0x225   : > { %v3200_v43 = vmax.f32 %v3168_v18, 0.0  ;;  %v3133_v39 = vmul.f32 %v22611_v55, %v25240_v3  ;;  %18311 = vmatmul.mubr.f32.gmra.mrb[42].mxu1 %v3198_v8  ;;  %v1779_v4 = vpop.f32.mrb[17].mxu1 }
 0x226   : > { %v3199_v31 = vmax.f32 %v3167_v51, 0.0  ;;  %v3132_v21 = vmul.f32 %v22612_v7, %v25240_v3  ;;  %v18238_v61 = vpop.f32.mrb[14].mxu0 }
 0x227   : > { %3233 = vst [vmem:[#allocation4 + $0x99] sm:$0xff] %v3200_v43  ;;  %v3170_v49 = vadd.f32 %v25245_v46, %v3133_v39  ;;  %v22613_v58 = vadd.f32 %v18238_v61, %v25233_v13  ;;  %v2994_v26 = vpop.f32.mrb[15].mxu0 }
 0x228   : > { %3232 = vst [vmem:[#allocation4 + $0x91] sm:$0xff] %v3199_v31  ;;  %v3169_v60 = vadd.f32 %v25245_v46, %v3132_v21  ;;  %v22614_v22 = vadd.f32 %v2994_v26, %v25235_v38  ;;  %18313 = vmatprep.mubr.f32.mxu1 %v3199_v31  ;;  %v17924_v40 = vpop.f32.mrb[18].mxu1 }
 0x229   : > { %v3202_v28 = vmax.f32 %v3170_v49, 0.0  ;;  %v3135_v33 = vmul.f32 %v22613_v58, %v25240_v3  ;;  %18314 = vmatmul.mubr.f32.gmra.mrb[44].mxu1 %v3200_v43  ;;  %v1789_v42 = vpop.f32.mrb[19].mxu1 }
 0x22a   : > { %v3201_v53 = vmax.f32 %v3169_v60, 0.0  ;;  %v3134_v63 = vmul.f32 %v22614_v22, %v25240_v3  ;;  %v18241_v56 = vpop.f32.mrb[16].mxu0 }
 0x22b   : > { %3235 = vst [vmem:[#allocation4 + $0xb1] sm:$0xff] %v3202_v28  ;;  %v3172_v13 = vadd.f32 %v25245_v46, %v3135_v33  ;;  %v22615_v30 = vadd.f32 %v18241_v56, %v17921_v35  ;;  %v3004_v54 = vpop.f32.mrb[17].mxu0 }
 0x22c   : > { %3234 = vst [vmem:[#allocation4 + $0xa9] sm:$0xff] %v3201_v53  ;;  %v3171_v57 = vadd.f32 %v25245_v46, %v3134_v63  ;;  %v22616_v38 = vadd.f32 %v3004_v54, %v1779_v4  ;;  %18316 = vmatprep.mubr.f32.mxu1 %v3201_v53  ;;  %v17927_v2 = vpop.f32.mrb[20].mxu1 }
 0x22d   : > { %v3204_v62 = vmax.f32 %v3172_v13, 0.0  ;;  %v3137_v19 = vmul.f32 %v22615_v30, %v25240_v3  ;;  %18317 = vmatmul.mubr.f32.gmra.mrb[46].mxu1 %v3202_v28  ;;  %v1799_v25 = vpop.f32.mrb[21].mxu1 }
 0x22e   : > { %v3203_v24 = vmax.f32 %v3171_v57, 0.0  ;;  %v3136_v48 = vmul.f32 %v22616_v38, %v25240_v3  ;;  %v18244_v14 = vpop.f32.mrb[18].mxu0 }
 0x22f   : > { %3237 = vst [vmem:[#allocation4 + $0xc9] sm:$0xff] %v3204_v62  ;;  %v3174_v29 = vadd.f32 %v25245_v46, %v3137_v19  ;;  %v22617_v6 = vadd.f32 %v18244_v14, %v17924_v40  ;;  %v3014_v0 = vpop.f32.mrb[19].mxu0 }
 0x230   : > { %3236 = vst [vmem:[#allocation4 + $0xc1] sm:$0xff] %v3203_v24  ;;  %v3173_v15 = vadd.f32 %v25245_v46, %v3136_v48  ;;  %v22618_v1 = vadd.f32 %v3014_v0, %v1789_v42  ;;  %18319 = vmatprep.mubr.f32.mxu1 %v3203_v24  ;;  %v17930_v52 = vpop.f32.mrb[22].mxu1 }
 0x231   : > { %v3206_v17 = vmax.f32 %v3174_v29, 0.0  ;;  %v3139_v34 = vmul.f32 %v22617_v6, %v25240_v3  ;;  %18320 = vmatmul.mubr.f32.gmra.mrb[48].mxu1 %v3204_v62  ;;  %v1809_v37 = vpop.f32.mrb[23].mxu1 }
 0x232   : > { %v3205_v23 = vmax.f32 %v3173_v15, 0.0  ;;  %v3138_v59 = vmul.f32 %v22618_v1, %v25240_v3  ;;  %v18247_v9 = vpop.f32.mrb[20].mxu0 }
 0x233   : > { %3239 = vst [vmem:[#allocation4 + $0xe1] sm:$0xff] %v3206_v17  ;;  %v3176_v10 = vadd.f32 %v25245_v46, %v3139_v34  ;;  %v22619_v45 = vadd.f32 %v18247_v9, %v17927_v2  ;;  %v3024_v5 = vpop.f32.mrb[21].mxu0 }
 0x234   : > { %3238 = vst [vmem:[#allocation4 + $0xd9] sm:$0xff] %v3205_v23  ;;  %v3175_v41 = vadd.f32 %v25245_v46, %v3138_v59  ;;  %v22620_v12 = vadd.f32 %v3024_v5, %v1799_v25  ;;  %18322 = vmatprep.mubr.f32.mxu1 %v3205_v23  ;;  %v17933_v7 = vpop.f32.mrb[24].mxu1 }
 0x235   : > { %v3208_v20 = vmax.f32 %v3176_v10, 0.0  ;;  %v3141_v36 = vmul.f32 %v22619_v45, %v25240_v3  ;;  %18323 = vmatmul.mubr.f32.gmra.mrb[50].mxu1 %v3206_v17  ;;  %v1819_v21 = vpop.f32.mrb[25].mxu1 }
 0x236   : > { %v3207_v32 = vmax.f32 %v3175_v41, 0.0  ;;  %v3140_v50 = vmul.f32 %v22620_v12, %v25240_v3  ;;  %v18250_v8 = vpop.f32.mrb[22].mxu0 }
 0x237   : > { %3241 = vst [vmem:[#allocation4 + $0xf9] sm:$0xff] %v3208_v20  ;;  %v3178_v47 = vadd.f32 %v25245_v46, %v3141_v36  ;;  %v22621_v11 = vadd.f32 %v18250_v8, %v17930_v52  ;;  %v3034_v27 = vpop.f32.mrb[23].mxu0  ;;  %v14829_v8 = vld [vmem:[%s28995_s1 + $0x590] sm:$0xff] }
 0x238   : > { %3240 = vst [vmem:[#allocation4 + $0xf1] sm:$0xff] %v3207_v32  ;;  %v3177_v18 = vadd.f32 %v25245_v46, %v3140_v50  ;;  %v22622_v55 = vadd.f32 %v3034_v27, %v1809_v37  ;;  %18325 = vmatprep.mubr.f32.mxu1 %v3207_v32  ;;  %v17936_v33 = vpop.f32.mrb[26].mxu1  ;;  %v14831_v27 = vld [vmem:[%s28995_s1 + $0x5a0] sm:$0xff] }
 0x239   : > { %v3210_v44 = vmax.f32 %v3178_v47, 0.0  ;;  %v3143_v51 = vmul.f32 %v22621_v11, %v25240_v3  ;;  %18326 = vmatmul.mubr.f32.gmra.mrb[52].mxu1 %v3208_v20  ;;  %v1829_v56 = vpop.f32.mrb[27].mxu1  ;;  %v23897_v11 = vld [vmem:[#allocation2] sm:$0xff] }
 0x23a   : > { %v25298_v43 = vmax.f32 %v3177_v18, 0.0  ;;  %v3142_v39 = vmul.f32 %v22622_v55, %v25240_v3  ;;  %v18253_v31 = vpop.f32.mrb[24].mxu0  ;;  %v14832_v18 = vld [vmem:[%s28995_s1 + $0x5a8] sm:$0xff]  ;;  %v25375_v55 = vld [vmem:[#allocation4 + $0x18] sm:$0xff] }
 0x23b   : > { %3243 = vst [vmem:[#allocation4 + $0x111] sm:$0xff] %v3210_v44  ;;  %v3180_v61 = vadd.f32 %v25245_v46, %v3143_v51  ;;  %v22623_v49 = vadd.f32 %v18253_v31, %v17933_v7  ;;  %v3044_v58 = vpop.f32.mrb[25].mxu0  ;;  %v25379_v51 = vld [vmem:[#allocation4 + $0x20] sm:$0xff]  ;;  %v14833_v7 = vld [vmem:[%s28995_s1 + $0x5b0] sm:$0xff] }
 0x23c   : > { %3242 = vst [vmem:[#allocation4 + $0x109] sm:$0xff] %v25298_v43  ;;  %v3179_v26 = vadd.f32 %v25245_v46, %v3142_v39  ;;  %v22624_v60 = vadd.f32 %v3044_v58, %v1819_v21  ;;  %18328 = vmatprep.mubr.f32.mxu1 %v25298_v43  ;;  %v17939_v19 = vpop.f32.mrb[28].mxu1  ;;  %v14834_v39 = vld [vmem:[%s28995_s1 + $0x5b8] sm:$0xff]  ;;  %v25388_v31 = vld [vmem:[#allocation4 + $0x30] sm:$0xff]  ;;  %v25400_v58 = vld [vmem:[#allocation4 + $0x48] sm:$0xff] }
 0x23d   : > { %v25305_v22 = vmax.f32 %v3180_v61, 0.0  ;;  %v3145_v28 = vmul.f32 %v22623_v49, %v25240_v3  ;;  %18329 = vmatmul.mubr.f32.gmra.mrb[54].mxu1 %v3210_v44  ;;  %v1839_v14 = vpop.f32.mrb[29].mxu1  ;;  %v21503_v44 = vpack.c.bf16 %v14832_v18, %v14831_v27  ;;  %v25391_v21 = vld [vmem:[#allocation4 + $0x38] sm:$0xff]  ;;  %v14835_v61 = vld [vmem:[%s28995_s1 + $0x5c0] sm:$0xff]  ;;  %v14836_v49 = vld [vmem:[%s28995_s1 + $0x5c8] sm:$0xff] }
 0x23e   : > { %v25308_v35 = vmax.f32 %v3179_v26, 0.0  ;;  %v3144_v53 = vmul.f32 %v22624_v60, %v25240_v3  ;;  %v18256_v63 = vpop.f32.mrb[26].mxu0  ;;  %v21511_v26 = vpack.c.bf16 %v14836_v49, %v14835_v61  ;;  %v25403_v60 = vld [vmem:[#allocation4 + $0x50] sm:$0xff]  ;;  %v14848_v61 = vld [vmem:[%s28995_s1 + $0x628] sm:$0xff]  ;;  %v25514_v49 = vld [vmem:[#allocation4 + $0x1a] sm:$0xff] }
 0x23f   : > { %3245 = vst [vmem:[#allocation4 + $0x129] sm:$0xff] %v25305_v22  ;;  %v3182_v4 = vadd.f32 %v25245_v46, %v3145_v28  ;;  %v22625_v13 = vadd.f32 %v18256_v63, %v17936_v33  ;;  %v3054_v30 = vpop.f32.mrb[27].mxu0  ;;  %v14837_v28 = vld [vmem:[%s28995_s1 + $0x5d0] sm:$0xff]  ;;  %v14838_v33 = vld [vmem:[%s28995_s1 + $0x5d8] sm:$0xff] }
 0x240   : > { %3244 = vst [vmem:[#allocation4 + $0x121] sm:$0xff] %v25308_v35  ;;  %v3181_v54 = vadd.f32 %v25245_v46, %v3144_v53  ;;  %v22626_v57 = vadd.f32 %v3054_v30, %v1829_v56  ;;  %18331 = vmatprep.mubr.f32.mxu1 %v25308_v35  ;;  %v17942_v34 = vpop.f32.mrb[30].mxu1  ;;  %v25412_v53 = vld [vmem:[#allocation4 + $0x60] sm:$0xff]  ;;  %v21515_v63 = vpack.c.bf16 %v14838_v33, %v14837_v28  ;;  %v25415_v56 = vld [vmem:[#allocation4 + $0x68] sm:$0xff]  ;;  %v25424_v30 = vld [vmem:[#allocation4 + $0x78] sm:$0xff] }
 0x241   : > { %v25316_v38 = vmax.f32 %v3182_v4, 0.0  ;;  %v3147_v62 = vmul.f32 %v22625_v13, %v25240_v3  ;;  %18332 = vmatmul.mubr.f32.gmra.mrb[56].mxu1 %v25305_v22  ;;  %v1849_v9 = vpop.f32.mrb[31].mxu1  ;;  %v14839_v4 = vld [vmem:[%s28995_s1 + $0x5e0] sm:$0xff]  ;;  %v14840_v13 = vld [vmem:[%s28995_s1 + $0x5e8] sm:$0xff]  ;;  %v14845_v18 = vld [vmem:[%s28995_s1 + $0x610] sm:$0xff] }
 0x242   : > { %v25320_v40 = vmax.f32 %v3181_v54, 0.0  ;;  %v3146_v24 = vmul.f32 %v22626_v57, %v25240_v3  ;;  %v18259_v48 = vpop.f32.mrb[28].mxu0  ;;  %v21519_v54 = vpack.c.bf16 %v14840_v13, %v14839_v4  ;;  %v25427_v57 = vld [vmem:[#allocation4 + $0x80] sm:$0xff]  ;;  %v14849_v33 = vld [vmem:[%s28995_s1 + $0x630] sm:$0xff] }
 0x243   : > { %3247 = vst [vmem:[#allocation4 + $0x141] sm:$0xff] %v25316_v38  ;;  %v3184_v42 = vadd.f32 %v25245_v46, %v3147_v62  ;;  %v22627_v29 = vadd.f32 %v18259_v48, %v17939_v19  ;;  %v3064_v6 = vpop.f32.mrb[29].mxu0  ;;  %v14841_v62 = vld [vmem:[%s28995_s1 + $0x5f0] sm:$0xff]  ;;  %v14842_v19 = vld [vmem:[%s28995_s1 + $0x5f8] sm:$0xff]  ;;  %v25517_v28 = vld [vmem:[#allocation4 + $0x22] sm:$0xff] }
 0x244   : > { %3246 = vst [vmem:[#allocation4 + $0x139] sm:$0xff] %v25320_v40  ;;  %v3183_v0 = vadd.f32 %v25245_v46, %v3146_v24  ;;  %v22628_v15 = vadd.f32 %v3064_v6, %v1839_v14  ;;  %18334 = vmatprep.mubr.f32.mxu1 %v25320_v40  ;;  %v25436_v24 = vld [vmem:[#allocation4 + $0x90] sm:$0xff]  ;;  %v21523_v48 = vpack.c.bf16 %v14842_v19, %v14841_v62  ;;  %v25439_v14 = vld [vmem:[#allocation4 + $0x98] sm:$0xff]  ;;  %v25448_v6 = vld [vmem:[#allocation4 + $0xa8] sm:$0xff] }
 0x245   : > { %v25328_v1 = vmax.f32 %v3184_v42, 0.0  ;;  %v3149_v17 = vmul.f32 %v22627_v29, %v25240_v3  ;;  %18335 = vmatmul.mubr.f32.gmra.mrb[58].mxu1 %v25316_v38  ;;  %v14843_v42 = vld [vmem:[%s28995_s1 + $0x600] sm:$0xff]  ;;  %v14844_v29 = vld [vmem:[%s28995_s1 + $0x608] sm:$0xff]  ;;  %v25526_v4 = vld [vmem:[#allocation4 + $0x32] sm:$0xff] }
 0x246   : > { %v25332_v2 = vmax.f32 %v3183_v0, 0.0  ;;  %v3148_v23 = vmul.f32 %v22628_v15, %v25240_v3  ;;  %v18262_v59 = vpop.f32.mrb[30].mxu0  ;;  %v21527_v0 = vpack.c.bf16 %v14844_v29, %v14843_v42  ;;  %v25451_v15 = vld [vmem:[#allocation4 + $0xb0] sm:$0xff]  ;;  %v14851_v62 = vld [vmem:[%s28995_s1 + $0x640] sm:$0xff]  ;;  %v14852_v19 = vld [vmem:[%s28995_s1 + $0x648] sm:$0xff] }
 0x247   : > { %3249 = vst [vmem:[#allocation4 + $0x159] sm:$0xff] %v25328_v1  ;;  %v3186_v25 = vadd.f32 %v25245_v46, %v3149_v17  ;;  %v22629_v10 = vadd.f32 %v18262_v59, %v17942_v34  ;;  %v3074_v45 = vpop.f32.mrb[31].mxu0  ;;  %v25454_v17 = vld [vmem:[#allocation4 + $0xc0] sm:$0xff]  ;;  %v25457_v34 = vld [vmem:[#allocation4 + $0xc8] sm:$0xff]  ;;  %v21543_v42 = vpack.c.bf16 %v14852_v19, %v14851_v62  ;;  %v25541_v29 = vld [vmem:[#allocation4 + $0x52] sm:$0xff] }
 0x248   : > { %3248 = vst [vmem:[#allocation4 + $0x151] sm:$0xff] %v25332_v2  ;;  %v3185_v5 = vadd.f32 %v25245_v46, %v3148_v23  ;;  %v22630_v41 = vadd.f32 %v3074_v45, %v1849_v9  ;;  %18337 = vmatprep.mubr.f32.mxu1 %v25332_v2  ;;  %v25460_v23 = vld [vmem:[#allocation4 + $0xd8] sm:$0xff]  ;;  %v25463_v59 = vld [vmem:[#allocation4 + $0xe0] sm:$0xff]  ;;  %v25466_v9 = vld [vmem:[#allocation4 + $0xf0] sm:$0xff] }
 0x249   : > { %v25340_v12 = vmax.f32 %v3186_v25, 0.0  ;;  %v3151_v20 = vmul.f32 %v22629_v10, %v25240_v3  ;;  %18338 = vmatmul.mubr.f32.gmra.mrb[60].mxu1 %v25328_v1  ;;  %v25469_v25 = vld [vmem:[#allocation4 + $0xf8] sm:$0xff]  ;;  %v25472_v10 = vld [vmem:[#allocation4 + $0x108] sm:$0xff]  ;;  %v25475_v45 = vld [vmem:[#allocation4 + $0x110] sm:$0xff] }
 0x24a   : > { %v25344_v36 = vmax.f32 %v3185_v5, 0.0  ;;  %v3150_v52 = vmul.f32 %v22630_v41, %v25240_v3  ;;  %v14830_v3 = vld [vmem:[%s28995_s1 + $0x598] sm:$0xff]  ;;  %v25478_v5 = vld [vmem:[#allocation4 + $0x120] sm:$0xff]  ;;  %v25481_v41 = vld [vmem:[#allocation4 + $0x128] sm:$0xff] }
 0x24b   : > { %3251 = vst [vmem:[#allocation4 + $0x171] sm:$0xff] %v25340_v12  ;;  %v25349_v32 = vadd.f32 %v25245_v46, %v3151_v20  ;;  %v25484_v20 = vld [vmem:[#allocation4 + $0x138] sm:$0xff] }
 0x24c   : > { %3250 = vst [vmem:[#allocation4 + $0x169] sm:$0xff] %v25344_v36  ;;  %v25353_v50 = vadd.f32 %v25245_v46, %v3150_v52  ;;  %18340 = vmatprep.mubr.f32.mxu1 %v25344_v36  ;;  %v21499_v46 = vpack.c.bf16 %v14830_v3, %v14829_v8  ;;  %v25487_v52 = vld [vmem:[#allocation4 + $0x140] sm:$0xff]  ;;  %v25574_v62 = vld [vmem:[#allocation4 + $0x92] sm:$0xff] }
 0x24d   : > { %v29021_v37 = vmax.f32 %v25349_v32, 0.0  ;;  %18341 = vmatmul.mubr.f32.gmra.mrb[62].mxu1 %v25340_v12 }
 0x24e   : > { %v29022_v47 = vmax.f32 %v25353_v50, 0.0  ;;  %18375 = vmatprep.mubr.f32.mxu1 %v23897_v11 }
 0x24f   : > { %3253 = vst [vmem:[#allocation4 + $0x189] sm:$0xff] %v29021_v37  ;;  %v25490_v8 = vld [vmem:[#allocation4 + $0x150] sm:$0xff]  ;;  %v25493_v3 = vld [vmem:[#allocation4 + $0x158] sm:$0xff] }
 0x250   : > { %3252 = vst [vmem:[#allocation4 + $0x181] sm:$0xff] %v29022_v47  ;;  %v25598_v37 = vld [vmem:[#allocation4 + $0xda] sm:$0xff]  ;;  %v25613_v47 = vld [vmem:[#allocation4 + $0x112] sm:$0xff] }
 0x251   : > { %18376 = vmatmul.mubr.f32.vlgmr.msra.gmra.mrb[32].mxu1 %v23897_v11  ;;  %29189 = vst [vmem:[#allocation14_spill] sm:$0xff] %v25598_v37  ;;  %29194 = vst [vmem:[#allocation17_spill] sm:$0xff] %v25613_v47 }
 0x252   : > { %18378 = vmatprep.mubr.f32.mxu1 %v25375_v55  ;;  %21498 = vmatpush3.bf16.msra.mxu1 %v25222_v16  ;;  %v21507_v16 = vpack.c.bf16 %v14834_v39, %v14833_v7  ;;  %v3803_v7 = vld [vmem:[#allocation4 + $0xa] sm:$0xff] }
 0x253   : > { %21500 = vmatprep.subr.bf16.mxu1 %v21499_v46  ;;  %v25496_v11 = vld [vmem:[#allocation4 + $0x168] sm:$0xff]  ;;  %v25499_v27 = vld [vmem:[#allocation4 + $0x170] sm:$0xff] }
 0x254   : > { %29186 = vst [vmem:[#allocation12_spill] sm:$0xff] %v25496_v11  ;;  %29187 = vst [vmem:[#allocation5_spill] sm:$0xff] %v25499_v27 }
 0x255   : > { %18379 = vmatmul.mubr.f32.gmra.mrb[34].mxu1 %v25379_v51 }
 0x256   : > { %18381 = vmatprep.mubr.f32.mxu1 %v25388_v31  ;;  %21502 = vmatpush3.bf16.msra.mxu1 %v21499_v46  ;;  %v3802_v46 = vld [vmem:[#allocation4 + $0x2] sm:$0xff] }
 0x257   : > { %21504 = vmatprep.subr.bf16.mxu1 %v21503_v44 }
 0x259   : > { %18382 = vmatmul.mubr.f32.gmra.mrb[36].mxu1 %v25391_v21 }
 0x25a   : > { %18384 = vmatprep.mubr.f32.mxu1 %v25400_v58  ;;  %21506 = vmatpush3.bf16.msra.mxu1 %v21503_v44  ;;  %v14846_v44 = vld [vmem:[%s28995_s1 + $0x618] sm:$0xff] }
 0x25b   : > { %21508 = vmatprep.subr.bf16.mxu1 %v21507_v16  ;;  %v21531_v39 = vpack.c.bf16 %v14846_v44, %v14845_v18  ;;  %v25550_v18 = vld [vmem:[#allocation4 + $0x62] sm:$0xff] }
 0x25d   : > { %18385 = vmatmul.mubr.f32.gmra.mrb[38].mxu1 %v25403_v60 }
 0x25e   : > { %18387 = vmatprep.mubr.f32.mxu1 %v25412_v53  ;;  %21510 = vmatpush3.bf16.msra.mxu1 %v21507_v16  ;;  %v14847_v16 = vld [vmem:[%s28995_s1 + $0x620] sm:$0xff] }
 0x25f   : > { %21512 = vmatprep.subr.bf16.mxu1 %v21511_v26 }
 0x261   : > { %18388 = vmatmul.mubr.f32.gmra.mrb[40].mxu1 %v25415_v56 }
 0x262   : > { %18390 = vmatprep.mubr.f32.mxu1 %v25424_v30  ;;  %21514 = vmatpush3.bf16.msra.mxu1 %v21511_v26  ;;  %v21535_v26 = vpack.c.bf16 %v14848_v61, %v14847_v16  ;;  %v14856_v16 = vld [vmem:[%s28995_s1 + $0x668] sm:$0xff]  ;;  %v25562_v61 = vld [vmem:[#allocation4 + $0x7a] sm:$0xff] }
 0x263   : > { %21516 = vmatprep.subr.bf16.mxu1 %v21515_v63 }
 0x265   : > { %18391 = vmatmul.mubr.f32.gmra.mrb[42].mxu1 %v25427_v57 }
 0x266   : > { %18393 = vmatprep.mubr.f32.mxu1 %v25436_v24  ;;  %21518 = vmatpush3.bf16.msra.mxu1 %v21515_v63  ;;  %v14850_v63 = vld [vmem:[%s28995_s1 + $0x638] sm:$0xff] }
 0x267   : > { %21520 = vmatprep.subr.bf16.mxu1 %v21519_v54  ;;  %v21539_v13 = vpack.c.bf16 %v14850_v63, %v14849_v33  ;;  %v25565_v33 = vld [vmem:[#allocation4 + $0x82] sm:$0xff]  ;;  %v14857_v63 = vld [vmem:[%s28995_s1 + $0x670] sm:$0xff] }
 0x269   : > { %18394 = vmatmul.mubr.f32.gmra.mrb[44].mxu1 %v25439_v14 }
 0x26a   : > { %18396 = vmatprep.mubr.f32.mxu1 %v25448_v6  ;;  %21522 = vmatpush3.bf16.msra.mxu1 %v21519_v54  ;;  %v25529_v54 = vld [vmem:[#allocation4 + $0x3a] sm:$0xff] }
 0x26b   : > { %21524 = vmatprep.subr.bf16.mxu1 %v21523_v48 }
 0x26d   : > { %18397 = vmatmul.mubr.f32.gmra.mrb[46].mxu1 %v25451_v15 }
 0x26e   : > { %18399 = vmatprep.mubr.f32.mxu1 %v25454_v17  ;;  %21526 = vmatpush3.bf16.msra.mxu1 %v21523_v48  ;;  %v25538_v48 = vld [vmem:[#allocation4 + $0x4a] sm:$0xff] }
 0x26f   : > { %21528 = vmatprep.subr.bf16.mxu1 %v21527_v0 }
 0x271   : > { %18400 = vmatmul.mubr.f32.gmra.mrb[48].mxu1 %v25457_v34 }
 0x272   : > { %18402 = vmatprep.mubr.f32.mxu1 %v25460_v23 }
 0x275   : > { %18403 = vmatmul.mubr.f32.gmra.mrb[50].mxu1 %v25463_v59 }
 0x276   : > { %18405 = vmatprep.mubr.f32.mxu1 %v25466_v9 }
 0x279   : > { %18406 = vmatmul.mubr.f32.gmra.mrb[52].mxu1 %v25469_v25 }
 0x27a   : > { %18408 = vmatprep.mubr.f32.mxu1 %v25472_v10 }
 0x27d   : > { %18409 = vmatmul.mubr.f32.gmra.mrb[54].mxu1 %v25475_v45 }
 0x27e   : > { %18411 = vmatprep.mubr.f32.mxu1 %v25478_v5 }
 0x281   : > { %18412 = vmatmul.mubr.f32.gmra.mrb[56].mxu1 %v25481_v41 }
 0x282   : > { %18414 = vmatprep.mubr.f32.mxu1 %v25484_v20 }
 0x285   : > { %18415 = vmatmul.mubr.f32.gmra.mrb[58].mxu1 %v25487_v52 }
 0x286   : > { %18417 = vmatprep.mubr.f32.mxu1 %v25490_v8 }
 0x289   : > { %18418 = vmatmul.mubr.f32.gmra.mrb[60].mxu1 %v25493_v3 }
 0x28a   : > { %18420 = vmatprep.mubr.f32.mxu1 %v25496_v11 }
 0x28d   : > { %18421 = vmatmul.mubr.f32.gmra.mrb[62].mxu1 %v25499_v27 }
 0x28e   : > { %18455 = vmatprep.mubr.f32.mxu1 %v3802_v46  ;;  %v14854_v46 = vld [vmem:[%s28995_s1 + $0x658] sm:$0xff] }
 0x291   : > { %18456 = vmatmul.mubr.f32.vlgmr.msra.gmra.mrb[32].mxu1 %v3803_v7  ;;  %v25553_v7 = vld [vmem:[#allocation4 + $0x6a] sm:$0xff] }
 0x292   : > { %18458 = vmatprep.mubr.f32.mxu1 %v25514_v49  ;;  %21530 = vmatpush3.bf16.msra.mxu1 %v21527_v0  ;;  %v14853_v0 = vld [vmem:[%s28995_s1 + $0x650] sm:$0xff] }
 0x293   : > { %21532 = vmatprep.subr.bf16.mxu1 %v21531_v39  ;;  %v21547_v44 = vpack.c.bf16 %v14854_v46, %v14853_v0  ;;  %v14859_v0 = vld [vmem:[%s28995_s1 + $0x680] sm:$0xff]  ;;  %v14860_v46 = vld [vmem:[%s28995_s1 + $0x688] sm:$0xff] }
 0x295   : > { %18459 = vmatmul.mubr.f32.gmra.mrb[34].mxu1 %v25517_v28 }
 0x296   : > { %18461 = vmatprep.mubr.f32.mxu1 %v25526_v4  ;;  %21534 = vmatpush3.bf16.msra.mxu1 %v21531_v39  ;;  %v14855_v39 = vld [vmem:[%s28995_s1 + $0x660] sm:$0xff] }
 0x297   : > { %21536 = vmatprep.subr.bf16.mxu1 %v21535_v26 }
 0x299   : > { %18462 = vmatmul.mubr.f32.gmra.mrb[36].mxu1 %v25529_v54 }
 0x29a   : > { %18464 = vmatprep.mubr.f32.mxu1 %v25538_v48  ;;  %21538 = vmatpush3.bf16.msra.mxu1 %v21535_v26  ;;  %v21551_v26 = vpack.c.bf16 %v14856_v16, %v14855_v39  ;;  %v25586_v39 = vld [vmem:[#allocation4 + $0xaa] sm:$0xff]  ;;  %v25589_v16 = vld [vmem:[#allocation4 + $0xb2] sm:$0xff] }
 0x29b   : > { %21540 = vmatprep.subr.bf16.mxu1 %v21539_v13 }
 0x29d   : > { %18465 = vmatmul.mubr.f32.gmra.mrb[38].mxu1 %v25541_v29 }
 0x29e   : > { %18467 = vmatprep.mubr.f32.mxu1 %v25550_v18  ;;  %21542 = vmatpush3.bf16.msra.mxu1 %v21539_v13  ;;  %v14858_v13 = vld [vmem:[%s28995_s1 + $0x678] sm:$0xff] }
 0x29f   : > { %21544 = vmatprep.subr.bf16.mxu1 %v21543_v42  ;;  %v21555_v19 = vpack.c.bf16 %v14858_v13, %v14857_v63  ;;  %v25592_v63 = vld [vmem:[#allocation4 + $0xc2] sm:$0xff]  ;;  %v25595_v13 = vld [vmem:[#allocation4 + $0xca] sm:$0xff] }
 0x2a0   : > { %29188 = vst [vmem:[#allocation13_spill] sm:$0xff] %v25595_v13 }
 0x2a1   : > { %18468 = vmatmul.mubr.f32.gmra.mrb[40].mxu1 %v25553_v7 }
 0x2a2   : > { %18470 = vmatprep.mubr.f32.mxu1 %v25562_v61  ;;  %21546 = vmatpush3.bf16.msra.mxu1 %v21543_v42  ;;  %v25577_v42 = vld [vmem:[#allocation4 + $0x9a] sm:$0xff] }
 0x2a3   : > { %21548 = vmatprep.subr.bf16.mxu1 %v21547_v44 }
 0x2a5   : > { %18471 = vmatmul.mubr.f32.gmra.mrb[42].mxu1 %v25565_v33 }
 0x2a6   : > { %18473 = vmatprep.mubr.f32.mxu1 %v25574_v62  ;;  %21550 = vmatpush3.bf16.msra.mxu1 %v21547_v44  ;;  %v21559_v44 = vpack.c.bf16 %v14860_v46, %v14859_v0  ;;  %v25604_v0 = vld [vmem:[#allocation4 + $0xf2] sm:$0xff]  ;;  %v25607_v46 = vld [vmem:[#allocation4 + $0xfa] sm:$0xff] }
 0x2a7   : > { %21552 = vmatprep.subr.bf16.mxu1 %v21551_v26  ;;  %29191 = vst [vmem:[#allocation15_spill] sm:$0xff] %v25604_v0  ;;  %29192 = vst [vmem:[#allocation16_spill] sm:$0xff] %v25607_v46 }
 0x2a9   : > { %18474 = vmatmul.mubr.f32.gmra.mrb[44].mxu1 %v25577_v42 }
 0x2aa   : > { %18476 = vmatprep.mubr.f32.mxu1 %v25586_v39  ;;  %21554 = vmatpush3.bf16.msra.mxu1 %v21551_v26  ;;  %v25601_v26 = vld [vmem:[#allocation4 + $0xe2] sm:$0xff] }
 0x2ab   : > { %21556 = vmatprep.subr.bf16.mxu1 %v21555_v19  ;;  %29190 = vst [vmem:[#allocation6_spill] sm:$0xff] %v25601_v26 }
 0x2ad   : > { %18477 = vmatmul.mubr.f32.gmra.mrb[46].mxu1 %v25589_v16 }
 0x2ae   : > { %18479 = vmatprep.mubr.f32.mxu1 %v25592_v63  ;;  %21558 = vmatpush3.bf16.msra.mxu1 %v21555_v19  ;;  %v25610_v19 = vld [vmem:[#allocation4 + $0x10a] sm:$0xff] }
 0x2af   : > { %21560 = vmatprep.subr.bf16.mxu1 %v21559_v44  ;;  %29193 = vst [vmem:[#allocation7_spill] sm:$0xff] %v25610_v19 }
 0x2b1   : > { %18480 = vmatmul.mubr.f32.gmra.mrb[48].mxu1 %v25595_v13 }
 0x2b2   : > { %18482 = vmatprep.mubr.f32.mxu1 %v25598_v37  ;;  %v25616_v37 = vld [vmem:[#allocation4 + $0x122] sm:$0xff] }
 0x2b3   : > { %29195 = vst [vmem:[#allocation18_spill] sm:$0xff] %v25616_v37 }
 0x2b5   : > { %18483 = vmatmul.mubr.f32.gmra.mrb[50].mxu1 %v25601_v26  ;;  %v25619_v26 = vld [vmem:[#allocation4 + $0x12a] sm:$0xff] }
 0x2b6   : > { %18485 = vmatprep.mubr.f32.mxu1 %v25604_v0  ;;  %29196 = vst [vmem:[#allocation10_spill] sm:$0xff] %v25619_v26  ;;  %v25622_v0 = vld [vmem:[#allocation4 + $0x13a] sm:$0xff] }
 0x2b7   : > { %29197 = vst [vmem:[#allocation8_spill] sm:$0xff] %v25622_v0 }
 0x2b9   : > { %18486 = vmatmul.mubr.f32.gmra.mrb[52].mxu1 %v25607_v46  ;;  %v25625_v46 = vld [vmem:[#allocation4 + $0x142] sm:$0xff] }
 0x2ba   : > { %18488 = vmatprep.mubr.f32.mxu1 %v25610_v19  ;;  %29198 = vst [vmem:[#allocation19_spill] sm:$0xff] %v25625_v46  ;;  %v25628_v19 = vld [vmem:[#allocation4 + $0x152] sm:$0xff] }
 0x2bb   : > { %29199 = vst [vmem:[#allocation11_spill] sm:$0xff] %v25628_v19 }
 0x2bd   : > { %18489 = vmatmul.mubr.f32.gmra.mrb[54].mxu1 %v25613_v47  ;;  %v25631_v47 = vld [vmem:[#allocation4 + $0x15a] sm:$0xff] }
 0x2be   : > { %18491 = vmatprep.mubr.f32.mxu1 %v25616_v37  ;;  %29200 = vst [vmem:[#allocation20_spill] sm:$0xff] %v25631_v47  ;;  %v25634_v37 = vld [vmem:[#allocation4 + $0x16a] sm:$0xff] }
 0x2bf   : > { %29201 = vst [vmem:[#allocation9_spill] sm:$0xff] %v25634_v37 }
 0x2c1   : > { %18492 = vmatmul.mubr.f32.gmra.mrb[56].mxu1 %v25619_v26  ;;  %v25637_v26 = vld [vmem:[#allocation4 + $0x172] sm:$0xff] }
 0x2c2   : > { %18494 = vmatprep.mubr.f32.mxu1 %v25622_v0  ;;  %v14861_v0 = vld [vmem:[%s28995_s1 + $0x690] sm:$0xff] }
 0x2c5   : > { %18495 = vmatmul.mubr.f32.gmra.mrb[58].mxu1 %v25625_v46  ;;  %v14862_v46 = vld [vmem:[%s28995_s1 + $0x698] sm:$0xff] }
 0x2c6   : > { %18497 = vmatprep.mubr.f32.mxu1 %v25628_v19  ;;  %v21563_v19 = vpack.c.bf16 %v14862_v46, %v14861_v0  ;;  %v14866_v0 = vld [vmem:[%s28995_s1 + $0x6b8] sm:$0xff]  ;;  %v14869_v46 = vld [vmem:[%s28995_s1 + $0x6d0] sm:$0xff] }
 0x2c9   : > { %18498 = vmatmul.mubr.f32.gmra.mrb[60].mxu1 %v25631_v47  ;;  %v14863_v47 = vld [vmem:[%s28995_s1 + $0x6a0] sm:$0xff] }
 0x2ca   : > { %18500 = vmatprep.mubr.f32.mxu1 %v25634_v37  ;;  %v14864_v37 = vld [vmem:[%s28995_s1 + $0x6a8] sm:$0xff] }
 0x2cb   : > { %v21567_v13 = vpack.c.bf16 %v14864_v37, %v14863_v47  ;;  %v14868_v37 = vld [vmem:[%s28995_s1 + $0x6c8] sm:$0xff] }
 0x2cd   : > { %18501 = vmatmul.mubr.f32.gmra.mrb[62].mxu1 %v25637_v26 }
 0x2ce   : > { %18535 = vmatprep.mubr.f32.mxu1 %v25375_v55  ;;  %v14865_v55 = vld [vmem:[%s28995_s1 + $0x6b0] sm:$0xff] }
 0x2d1   : > { %18536 = vmatmul.mubr.f32.vlgmr.msra.gmra.mrb[32].mxu1 %v25379_v51  ;;  %v21571_v51 = vpack.c.bf16 %v14866_v0, %v14865_v55  ;;  %v14872_v0 = vld [vmem:[%s28995_s1 + $0x6e8] sm:$0xff] }
 0x2d2   : > { %18538 = vmatprep.mubr.f32.mxu1 %v25388_v31  ;;  %21562 = vmatpush3.bf16.msra.mxu1 %v21559_v44  ;;  %v14867_v44 = vld [vmem:[%s28995_s1 + $0x6c0] sm:$0xff] }
 0x2d3   : > { %21564 = vmatprep.subr.bf16.mxu1 %v21563_v19  ;;  %v21575_v47 = vpack.c.bf16 %v14868_v37, %v14867_v44  ;;  %v14874_v37 = vld [vmem:[%s28995_s1 + $0x6f8] sm:$0xff] }
 0x2d5   : > { %18539 = vmatmul.mubr.f32.gmra.mrb[34].mxu1 %v25391_v21 }
 0x2d6   : > { %18541 = vmatprep.mubr.f32.mxu1 %v25400_v58  ;;  %21566 = vmatpush3.bf16.msra.mxu1 %v21563_v19  ;;  %v14870_v19 = vld [vmem:[%s28995_s1 + $0x6d8] sm:$0xff] }
 0x2d7   : > { %21568 = vmatprep.subr.bf16.mxu1 %v21567_v13  ;;  %v21579_v55 = vpack.c.bf16 %v14870_v19, %v14869_v46  ;;  %v14876_v19 = vld [vmem:[%s28995_s1 + $0x708] sm:$0xff] }
 0x2d9   : > { %18542 = vmatmul.mubr.f32.gmra.mrb[36].mxu1 %v25403_v60 }
 0x2da   : > { %18544 = vmatprep.mubr.f32.mxu1 %v25412_v53  ;;  %21570 = vmatpush3.bf16.msra.mxu1 %v21567_v13  ;;  %v14871_v13 = vld [vmem:[%s28995_s1 + $0x6e0] sm:$0xff] }
 0x2db   : > { %21572 = vmatprep.subr.bf16.mxu1 %v21571_v51  ;;  %v21583_v44 = vpack.c.bf16 %v14872_v0, %v14871_v13  ;;  %v25721_v0 = vld [vmem:[#allocation4 + $0x188] sm:$0xff] }
 0x2dc   : > { %29203 = vst [vmem:[#allocation22_spill] sm:$0xff] %v25721_v0 }
 0x2dd   : > { %18545 = vmatmul.mubr.f32.gmra.mrb[38].mxu1 %v25415_v56 }
 0x2de   : > { %18547 = vmatprep.mubr.f32.mxu1 %v25424_v30  ;;  %21574 = vmatpush3.bf16.msra.mxu1 %v21571_v51  ;;  %v14873_v51 = vld [vmem:[%s28995_s1 + $0x6f0] sm:$0xff] }
 0x2df   : > { %21576 = vmatprep.subr.bf16.mxu1 %v21575_v47  ;;  %v21587_v46 = vpack.c.bf16 %v14874_v37, %v14873_v51  ;;  %v14878_v51 = vld [vmem:[%s28995_s1 + $0x718] sm:$0xff] }
 0x2e0   : > { %v4414_v37 = vld [vmem:[#allocation4 + $0x19] sm:$0xff] }
 0x2e1   : > { %18548 = vmatmul.mubr.f32.gmra.mrb[40].mxu1 %v25427_v57 }
 0x2e2   : > { %18550 = vmatprep.mubr.f32.mxu1 %v25436_v24  ;;  %21578 = vmatpush3.bf16.msra.mxu1 %v21575_v47  ;;  %v14875_v47 = vld [vmem:[%s28995_s1 + $0x700] sm:$0xff] }
 0x2e3   : > { %21580 = vmatprep.subr.bf16.mxu1 %v21579_v55  ;;  %v21591_v13 = vpack.c.bf16 %v14876_v19, %v14875_v47  ;;  %v4415_v47 = vld [vmem:[#allocation4 + $0x21] sm:$0xff] }
 0x2e4   : > { %v14879_v19 = vld [vmem:[%s28995_s1 + $0x720] sm:$0xff] }
 0x2e5   : > { %18551 = vmatmul.mubr.f32.gmra.mrb[42].mxu1 %v25439_v14 }
 0x2e6   : > { %18553 = vmatprep.mubr.f32.mxu1 %v25448_v6  ;;  %21582 = vmatpush3.bf16.msra.mxu1 %v21579_v55  ;;  %v25718_v55 = vld [vmem:[#allocation4 + $0x180] sm:$0xff] }
 0x2e7   : > { %21584 = vmatprep.subr.bf16.mxu1 %v21583_v44  ;;  %29202 = vst [vmem:[#allocation21_spill] sm:$0xff] %v25718_v55 }
 0x2e9   : > { %18554 = vmatmul.mubr.f32.gmra.mrb[44].mxu1 %v25451_v15 }
 0x2ea   : > { %18556 = vmatprep.mubr.f32.mxu1 %v25454_v17  ;;  %21586 = vmatpush3.bf16.msra.mxu1 %v21583_v44  ;;  %v14877_v44 = vld [vmem:[%s28995_s1 + $0x710] sm:$0xff] }
 0x2eb   : > { %21588 = vmatprep.subr.bf16.mxu1 %v21587_v46 }
 0x2ed   : > { %18557 = vmatmul.mubr.f32.gmra.mrb[46].mxu1 %v25457_v34 }
 0x2ee   : > { %18559 = vmatprep.mubr.f32.mxu1 %v25460_v23  ;;  %21590 = vmatpush3.bf16.msra.mxu1 %v21587_v46  ;;  %v21595_v46 = vpack.c.bf16 %v14878_v51, %v14877_v44  ;;  %v14881_v44 = vld [vmem:[%s28995_s1 + $0x730] sm:$0xff]  ;;  %v14882_v51 = vld [vmem:[%s28995_s1 + $0x738] sm:$0xff] }
 0x2ef   : > { %21592 = vmatprep.subr.bf16.mxu1 %v21591_v13 }
 0x2f1   : > { %18560 = vmatmul.mubr.f32.gmra.mrb[48].mxu1 %v25463_v59 }
 0x2f2   : > { %18562 = vmatprep.mubr.f32.mxu1 %v25466_v9 }
 0x2f5   : > { %18563 = vmatmul.mubr.f32.gmra.mrb[50].mxu1 %v25469_v25 }
 0x2f6   : > { %18565 = vmatprep.mubr.f32.mxu1 %v25472_v10 }
 0x2f9   : > { %18566 = vmatmul.mubr.f32.gmra.mrb[52].mxu1 %v25475_v45 }
 0x2fa   : > { %18568 = vmatprep.mubr.f32.mxu1 %v25478_v5 }
 0x2fd   : > { %18569 = vmatmul.mubr.f32.gmra.mrb[54].mxu1 %v25481_v41 }
 0x2fe   : > { %18571 = vmatprep.mubr.f32.mxu1 %v25484_v20 }
 0x301   : > { %18572 = vmatmul.mubr.f32.gmra.mrb[56].mxu1 %v25487_v52 }
 0x302   : > { %18574 = vmatprep.mubr.f32.mxu1 %v25490_v8 }
 0x305   : > { %18575 = vmatmul.mubr.f32.gmra.mrb[58].mxu1 %v25493_v3 }
 0x306   : > { %18577 = vmatprep.mubr.f32.mxu1 %v25496_v11  ;;  %v25739_v11 = vld [vmem:[#allocation4 + $0x39] sm:$0xff] }
 0x307   : > { %29204 = vst [vmem:[#allocation23_spill] sm:$0xff] %v25739_v11 }
 0x309   : > { %18578 = vmatmul.mubr.f32.gmra.mrb[60].mxu1 %v25499_v27  ;;  %v25736_v27 = vld [vmem:[#allocation4 + $0x31] sm:$0xff] }
 0x30a   : > { %18580 = vmatprep.mubr.f32.mxu1 %v25718_v55  ;;  %v14880_v55 = vld [vmem:[%s28995_s1 + $0x728] sm:$0xff] }
 0x30d   : > { %18581 = vmatmul.mubr.f32.gmra.mrb[62].mxu1 %v25721_v0  ;;  %v21599_v0 = vpack.c.bf16 %v14880_v55, %v14879_v19  ;;  %v25751_v55 = vld [vmem:[#allocation4 + $0x51] sm:$0xff]  ;;  %v14884_v19 = vld [vmem:[%s28995_s1 + $0x748] sm:$0xff] }
 0x30e   : > { %18615 = vmatprep.mubr.f32.mxu1 %v4414_v37  ;;  %v25748_v37 = vld [vmem:[#allocation4 + $0x49] sm:$0xff]  ;;  %29206 = vst [vmem:[#allocation25_spill] sm:$0xff] %v25751_v55 }
 0x30f   : > { %29205 = vst [vmem:[#allocation24_spill] sm:$0xff] %v25748_v37 }
 0x311   : > { %18616 = vmatmul.mubr.f32.vlgmr.msra.gmra.mrb[32].mxu1 %v4415_v47  ;;  %v14883_v47 = vld [vmem:[%s28995_s1 + $0x740] sm:$0xff] }
 0x312   : > { %18618 = vmatprep.mubr.f32.mxu1 %v25736_v27  ;;  %21594 = vmatpush3.bf16.msra.mxu1 %v21591_v13  ;;  %v21603_v13 = vpack.c.bf16 %v14882_v51, %v14881_v44  ;;  %v25763_v44 = vld [vmem:[#allocation4 + $0x69] sm:$0xff] }
 0x313   : > { %21596 = vmatprep.subr.bf16.mxu1 %v21595_v46  ;;  %29208 = vst [vmem:[#allocation27_spill] sm:$0xff] %v25763_v44  ;;  %v14885_v51 = vld [vmem:[%s28995_s1 + $0x750] sm:$0xff] }
 0x315   : > { %18619 = vmatmul.mubr.f32.gmra.mrb[34].mxu1 %v25739_v11  ;;  %v25760_v11 = vld [vmem:[#allocation4 + $0x61] sm:$0xff] }
 0x316   : > { %18621 = vmatprep.mubr.f32.mxu1 %v25748_v37  ;;  %21598 = vmatpush3.bf16.msra.mxu1 %v21595_v46  ;;  %29207 = vst [vmem:[#allocation26_spill] sm:$0xff] %v25760_v11  ;;  %v21607_v46 = vpack.c.bf16 %v14884_v19, %v14883_v47  ;;  %v14886_v37 = vld [vmem:[%s28995_s1 + $0x758] sm:$0xff]  ;;  %v25775_v47 = vld [vmem:[#allocation4 + $0x81] sm:$0xff] }
 0x317   : > { %21600 = vmatprep.subr.bf16.mxu1 %v21599_v0  ;;  %29210 = vst [vmem:[#allocation29_spill] sm:$0xff] %v25775_v47  ;;  %v14887_v19 = vld [vmem:[%s28995_s1 + $0x760] sm:$0xff] }
 0x319   : > { %18622 = vmatmul.mubr.f32.gmra.mrb[36].mxu1 %v25751_v55  ;;  %v25772_v55 = vld [vmem:[#allocation4 + $0x79] sm:$0xff] }
 0x31a   : > { %18624 = vmatprep.mubr.f32.mxu1 %v25760_v11  ;;  %21602 = vmatpush3.bf16.msra.mxu1 %v21599_v0  ;;  %29209 = vst [vmem:[#allocation28_spill] sm:$0xff] %v25772_v55  ;;  %v21611_v0 = vpack.c.bf16 %v14886_v37, %v14885_v51  ;;  %v14888_v11 = vld [vmem:[%s28995_s1 + $0x768] sm:$0xff]  ;;  %v25787_v37 = vld [vmem:[#allocation4 + $0x99] sm:$0xff]  ;;  %v14889_v51 = vld [vmem:[%s28995_s1 + $0x770] sm:$0xff] }
 0x31b   : > { %21604 = vmatprep.subr.bf16.mxu1 %v21603_v13  ;;  %29212 = vst [vmem:[#allocation31_spill] sm:$0xff] %v25787_v37 }
 0x31d   : > { %18625 = vmatmul.mubr.f32.gmra.mrb[38].mxu1 %v25763_v44  ;;  %v25784_v44 = vld [vmem:[#allocation4 + $0x91] sm:$0xff] }
 0x31e   : > { %18627 = vmatprep.mubr.f32.mxu1 %v25772_v55  ;;  %21606 = vmatpush3.bf16.msra.mxu1 %v21603_v13  ;;  %29211 = vst [vmem:[#allocation30_spill] sm:$0xff] %v25784_v44  ;;  %v21615_v13 = vpack.c.bf16 %v14888_v11, %v14887_v19  ;;  %v14890_v55 = vld [vmem:[%s28995_s1 + $0x778] sm:$0xff]  ;;  %v14891_v19 = vld [vmem:[%s28995_s1 + $0x780] sm:$0xff] }
 0x31f   : > { %21608 = vmatprep.subr.bf16.mxu1 %v21607_v46  ;;  %v25799_v11 = vld [vmem:[#allocation4 + $0xb1] sm:$0xff] }
 0x320   : > { %29214 = vst [vmem:[#allocation33_spill] sm:$0xff] %v25799_v11 }
 0x321   : > { %18628 = vmatmul.mubr.f32.gmra.mrb[40].mxu1 %v25775_v47  ;;  %v25796_v47 = vld [vmem:[#allocation4 + $0xa9] sm:$0xff] }
 0x322   : > { %18630 = vmatprep.mubr.f32.mxu1 %v25784_v44  ;;  %21610 = vmatpush3.bf16.msra.mxu1 %v21607_v46  ;;  %29213 = vst [vmem:[#allocation32_spill] sm:$0xff] %v25796_v47  ;;  %v21619_v46 = vpack.c.bf16 %v14890_v55, %v14889_v51  ;;  %v14892_v44 = vld [vmem:[%s28995_s1 + $0x788] sm:$0xff]  ;;  %v25814_v51 = vld [vmem:[#allocation4 + $0xd9] sm:$0xff] }
 0x323   : > { %21612 = vmatprep.subr.bf16.mxu1 %v21611_v0  ;;  %v25811_v55 = vld [vmem:[#allocation4 + $0xc9] sm:$0xff] }
 0x325   : > { %18631 = vmatmul.mubr.f32.gmra.mrb[42].mxu1 %v25787_v37  ;;  %v25808_v37 = vld [vmem:[#allocation4 + $0xc1] sm:$0xff] }
 0x326   : > { %18633 = vmatprep.mubr.f32.mxu1 %v25796_v47  ;;  %21614 = vmatpush3.bf16.msra.mxu1 %v21611_v0  ;;  %v21623_v0 = vpack.c.bf16 %v14892_v44, %v14891_v19  ;;  %v25817_v47 = vld [vmem:[#allocation4 + $0xe1] sm:$0xff]  ;;  %v25827_v44 = vld [vmem:[#allocation4 + $0x111] sm:$0xff] }
 0x327   : > { %21616 = vmatprep.subr.bf16.mxu1 %v21615_v13  ;;  %v14906_v19 = vld [vmem:[%s28995_s1 + $0x7f8] sm:$0xff] }
 0x329   : > { %18634 = vmatmul.mubr.f32.gmra.mrb[44].mxu1 %v25799_v11  ;;  %v25820_v11 = vld [vmem:[#allocation4 + $0xf1] sm:$0xff] }
 0x32a   : > { %18636 = vmatprep.mubr.f32.mxu1 %v25808_v37  ;;  %21618 = vmatpush3.bf16.msra.mxu1 %v21615_v13  ;;  %v25823_v13 = vld [vmem:[#allocation4 + $0xf9] sm:$0xff] }
 0x32b   : > { %21620 = vmatprep.subr.bf16.mxu1 %v21619_v46 }
 0x32d   : > { %18637 = vmatmul.mubr.f32.gmra.mrb[46].mxu1 %v25811_v55 }
 0x32e   : > { %18639 = vmatprep.mubr.f32.mxu1 %v25814_v51  ;;  %21622 = vmatpush3.bf16.msra.mxu1 %v21619_v46  ;;  %v14904_v46 = vld [vmem:[%s28995_s1 + $0x7e8] sm:$0xff] }
 0x32f   : > { %21624 = vmatprep.subr.bf16.mxu1 %v21623_v0 }
 0x331   : > { %18640 = vmatmul.mubr.f32.gmra.mrb[48].mxu1 %v25817_v47 }
 0x332   : > { %18642 = vmatprep.mubr.f32.mxu1 %v25820_v11 }
 0x335   : > { %18643 = vmatmul.mubr.f32.gmra.mrb[50].mxu1 %v25823_v13 }
 0x336   : > { %18645 = vmatprep.mubr.f32.mxu1 %v25298_v43  ;;  %v29215_v43 = vmax.f32 %v25353_v50, 0.0 }
 0x339   : > { %18646 = vmatmul.mubr.f32.gmra.mrb[52].mxu1 %v25827_v44 }
 0x33a   : > { %18648 = vmatprep.mubr.f32.mxu1 %v25308_v35  ;;  %v14893_v35 = vld [vmem:[%s28995_s1 + $0x790] sm:$0xff] }
 0x33d   : > { %18649 = vmatmul.mubr.f32.gmra.mrb[54].mxu1 %v25305_v22  ;;  %v14894_v22 = vld [vmem:[%s28995_s1 + $0x798] sm:$0xff] }
 0x33e   : > { %18651 = vmatprep.mubr.f32.mxu1 %v25320_v40  ;;  %v21627_v40 = vpack.c.bf16 %v14894_v22, %v14893_v35  ;;  %v29219_v35 = vld [vmem:[#allocation6_spill] sm:$0xff]  ;;  %v29220_v22 = vld [vmem:[#allocation15_spill] sm:$0xff] }
 0x341   : > { %18652 = vmatmul.mubr.f32.gmra.mrb[56].mxu1 %v25316_v38  ;;  %v29216_v38 = vmax.f32 %v25349_v32, 0.0  ;;  %v14898_v32 = vld [vmem:[%s28995_s1 + $0x7b8] sm:$0xff] }
 0x342   : > { %18654 = vmatprep.mubr.f32.mxu1 %v25332_v2  ;;  %v14896_v2 = vld [vmem:[%s28995_s1 + $0x7a8] sm:$0xff] }
 0x345   : > { %18655 = vmatmul.mubr.f32.gmra.mrb[58].mxu1 %v25328_v1  ;;  %v14895_v1 = vld [vmem:[%s28995_s1 + $0x7a0] sm:$0xff] }
 0x346   : > { %18657 = vmatprep.mubr.f32.mxu1 %v25344_v36  ;;  %v14897_v36 = vld [vmem:[%s28995_s1 + $0x7b0] sm:$0xff] }
 0x347   : > { %v21635_v50 = vpack.c.bf16 %v14898_v32, %v14897_v36  ;;  %v29228_v36 = vld [vmem:[#allocation11_spill] sm:$0xff]  ;;  %v29229_v32 = vld [vmem:[#allocation20_spill] sm:$0xff] }
 0x349   : > { %18658 = vmatmul.mubr.f32.gmra.mrb[60].mxu1 %v25340_v12  ;;  %v21631_v12 = vpack.c.bf16 %v14896_v2, %v14895_v1  ;;  %v29225_v1 = vld [vmem:[#allocation10_spill] sm:$0xff]  ;;  %v29226_v2 = vld [vmem:[#allocation8_spill] sm:$0xff] }
 0x34a   : > { %18660 = vmatprep.mubr.f32.mxu1 %v29215_v43  ;;  %v29217_v43 = vld [vmem:[#allocation13_spill] sm:$0xff] }
 0x34d   : > { %18661 = vmatmul.mubr.f32.gmra.mrb[62].mxu1 %v29216_v38  ;;  %v29221_v38 = vld [vmem:[#allocation16_spill] sm:$0xff] }
 0x34e   : > { %18695 = vmatprep.mubr.f32.mxu1 %v25514_v49  ;;  %v14899_v49 = vld [vmem:[%s28995_s1 + $0x7c0] sm:$0xff] }
 0x351   : > { %18696 = vmatmul.mubr.f32.vlgmr.msra.gmra.mrb[32].mxu1 %v25517_v28  ;;  %v14900_v28 = vld [vmem:[%s28995_s1 + $0x7c8] sm:$0xff] }
 0x352   : > { %18698 = vmatprep.mubr.f32.mxu1 %v25526_v4  ;;  %21626 = vmatpush3.bf16.msra.mxu1 %v21623_v0  ;;  %v21639_v4 = vpack.c.bf16 %v14900_v28, %v14899_v49  ;;  %v14908_v0 = vld [vmem:[%s28995_s1 + $0x808] sm:$0xff] }
 0x353   : > { %21628 = vmatprep.subr.bf16.mxu1 %v21627_v40  ;;  %v25920_v49 = vld [vmem:[#allocation4 + $0x182] sm:$0xff]  ;;  %v25923_v28 = vld [vmem:[#allocation4 + $0x18a] sm:$0xff] }
 0x355   : > { %18699 = vmatmul.mubr.f32.gmra.mrb[34].mxu1 %v25529_v54  ;;  %v14901_v54 = vld [vmem:[%s28995_s1 + $0x7d0] sm:$0xff] }
 0x356   : > { %18701 = vmatprep.mubr.f32.mxu1 %v25538_v48  ;;  %21630 = vmatpush3.bf16.msra.mxu1 %v21627_v40  ;;  %v14902_v48 = vld [vmem:[%s28995_s1 + $0x7d8] sm:$0xff]  ;;  %v29222_v40 = vld [vmem:[#allocation7_spill] sm:$0xff] }
 0x357   : > { %21632 = vmatprep.subr.bf16.mxu1 %v21631_v12 }
 0x359   : > { %18702 = vmatmul.mubr.f32.gmra.mrb[36].mxu1 %v25541_v29  ;;  %v21643_v29 = vpack.c.bf16 %v14902_v48, %v14901_v54  ;;  %v14910_v54 = vld [vmem:[%s28995_s1 + $0x818] sm:$0xff] }
 0x35a   : > { %18704 = vmatprep.mubr.f32.mxu1 %v25550_v18  ;;  %21634 = vmatpush3.bf16.msra.mxu1 %v21631_v12  ;;  %v14903_v18 = vld [vmem:[%s28995_s1 + $0x7e0] sm:$0xff] }
 0x35b   : > { %21636 = vmatprep.subr.bf16.mxu1 %v21635_v50  ;;  %v29227_v12 = vld [vmem:[#allocation19_spill] sm:$0xff] }
 0x35d   : > { %18705 = vmatmul.mubr.f32.gmra.mrb[38].mxu1 %v25553_v7  ;;  %v21647_v7 = vpack.c.bf16 %v14904_v46, %v14903_v18  ;;  %v14914_v46 = vld [vmem:[%s28995_s1 + $0x838] sm:$0xff] }
 0x35e   : > { %18707 = vmatprep.mubr.f32.mxu1 %v25562_v61  ;;  %21638 = vmatpush3.bf16.msra.mxu1 %v21635_v50  ;;  %v14905_v61 = vld [vmem:[%s28995_s1 + $0x7f0] sm:$0xff] }
 0x35f   : > { %21640 = vmatprep.subr.bf16.mxu1 %v21639_v4  ;;  %v29230_v50 = vld [vmem:[#allocation9_spill] sm:$0xff] }
 0x361   : > { %18708 = vmatmul.mubr.f32.gmra.mrb[40].mxu1 %v25565_v33  ;;  %v21651_v33 = vpack.c.bf16 %v14906_v19, %v14905_v61  ;;  %v14918_v61 = vld [vmem:[%s28995_s1 + $0x858] sm:$0xff]  ;;  %v14920_v19 = vld [vmem:[%s28995_s1 + $0x868] sm:$0xff] }
 0x362   : > { %18710 = vmatprep.mubr.f32.mxu1 %v25574_v62  ;;  %21642 = vmatpush3.bf16.msra.mxu1 %v21639_v4  ;;  %v14907_v62 = vld [vmem:[%s28995_s1 + $0x800] sm:$0xff]  ;;  %v14909_v4 = vld [vmem:[%s28995_s1 + $0x810] sm:$0xff] }
 0x363   : > { %21644 = vmatprep.subr.bf16.mxu1 %v21643_v29  ;;  %v21659_v48 = vpack.c.bf16 %v14910_v54, %v14909_v4  ;;  %v14932_v4 = vld [vmem:[%s28995_s1 + $0x8c8] sm:$0xff]  ;;  %v14965_v54 = vld [vmem:[%s28995_s1 + $0x9c0] sm:$0xff] }
 0x365   : > { %18711 = vmatmul.mubr.f32.gmra.mrb[42].mxu1 %v25577_v42  ;;  %v21655_v42 = vpack.c.bf16 %v14908_v0, %v14907_v62  ;;  %v14924_v62 = vld [vmem:[%s28995_s1 + $0x888] sm:$0xff] }
 0x366   : > { %18713 = vmatprep.mubr.f32.mxu1 %v25586_v39  ;;  %21646 = vmatpush3.bf16.msra.mxu1 %v21643_v29  ;;  %v29218_v39 = vld [vmem:[#allocation14_spill] sm:$0xff]  ;;  %v14912_v29 = vld [vmem:[%s28995_s1 + $0x828] sm:$0xff] }
 0x367   : > { %21648 = vmatprep.subr.bf16.mxu1 %v21647_v7 }
 0x369   : > { %18714 = vmatmul.mubr.f32.gmra.mrb[44].mxu1 %v25589_v16  ;;  %v29223_v16 = vld [vmem:[#allocation17_spill] sm:$0xff] }
 0x36a   : > { %18716 = vmatprep.mubr.f32.mxu1 %v25592_v63  ;;  %21650 = vmatpush3.bf16.msra.mxu1 %v21647_v7  ;;  %v29224_v63 = vld [vmem:[#allocation18_spill] sm:$0xff]  ;;  %v14916_v7 = vld [vmem:[%s28995_s1 + $0x848] sm:$0xff] }
 0x36b   : > { %21652 = vmatprep.subr.bf16.mxu1 %v21651_v33 }
 0x36d   : > { %18717 = vmatmul.mubr.f32.gmra.mrb[46].mxu1 %v29217_v43  ;;  %v14962_v43 = vld [vmem:[%s28995_s1 + $0x9a8] sm:$0xff] }
 0x36e   : > { %18719 = vmatprep.mubr.f32.mxu1 %v29218_v39  ;;  %21654 = vmatpush3.bf16.msra.mxu1 %v21651_v33  ;;  %v14922_v33 = vld [vmem:[%s28995_s1 + $0x878] sm:$0xff]  ;;  %v29235_v39 = vld [vmem:[#allocation23_spill] sm:$0xff] }
 0x36f   : > { %21656 = vmatprep.subr.bf16.mxu1 %v21655_v42 }
 0x371   : > { %18720 = vmatmul.mubr.f32.gmra.mrb[48].mxu1 %v29219_v35  ;;  %v29236_v35 = vld [vmem:[#allocation24_spill] sm:$0xff] }
 0x372   : > { %18722 = vmatprep.mubr.f32.mxu1 %v29220_v22 }
 0x375   : > { %18723 = vmatmul.mubr.f32.gmra.mrb[50].mxu1 %v29221_v38  ;;  %v14929_v38 = vld [vmem:[%s28995_s1 + $0x8b0] sm:$0xff] }
 0x376   : > { %18725 = vmatprep.mubr.f32.mxu1 %v29222_v40 }
 0x379   : > { %18726 = vmatmul.mubr.f32.gmra.mrb[52].mxu1 %v29223_v16  ;;  %v14930_v16 = vld [vmem:[%s28995_s1 + $0x8b8] sm:$0xff] }
 0x37a   : > { %18728 = vmatprep.mubr.f32.mxu1 %v29224_v63  ;;  %v14963_v63 = vld [vmem:[%s28995_s1 + $0x9b0] sm:$0xff] }
 0x37d   : > { %18729 = vmatmul.mubr.f32.gmra.mrb[54].mxu1 %v29225_v1  ;;  %v14964_v1 = vld [vmem:[%s28995_s1 + $0x9b8] sm:$0xff] }
 0x37e   : > { %18731 = vmatprep.mubr.f32.mxu1 %v29226_v2  ;;  %v29237_v2 = vld [vmem:[#allocation25_spill] sm:$0xff] }
 0x381   : > { %18732 = vmatmul.mubr.f32.gmra.mrb[56].mxu1 %v29227_v12  ;;  %v29238_v12 = vld [vmem:[#allocation26_spill] sm:$0xff] }
 0x382   : > { %18734 = vmatprep.mubr.f32.mxu1 %v29228_v36  ;;  %v21699_v36 = vpack.c.bf16 %v14930_v16, %v14929_v38  ;;  %v5650_v38 = vld [vmem:[#allocation4 + $0xb2] sm:$0xff]  ;;  %v5652_v16 = vld [vmem:[#allocation4 + $0xca] sm:$0xff] }
 0x385   : > { %18735 = vmatmul.mubr.f32.gmra.mrb[58].mxu1 %v29229_v32  ;;  %v14931_v32 = vld [vmem:[%s28995_s1 + $0x8c0] sm:$0xff] }
 0x386   : > { %18737 = vmatprep.mubr.f32.mxu1 %v29230_v50  ;;  %v21731_v50 = vpack.c.bf16 %v14964_v1, %v14963_v63  ;;  %v5653_v63 = vld [vmem:[#allocation4 + $0xda] sm:$0xff]  ;;  %v5654_v1 = vld [vmem:[#allocation4 + $0xe2] sm:$0xff] }
 0x389   : > { %18738 = vmatmul.mubr.f32.gmra.mrb[60].mxu1 %v25637_v26  ;;  %v14911_v26 = vld [vmem:[%s28995_s1 + $0x820] sm:$0xff] }
 0x38a   : > { %18740 = vmatprep.mubr.f32.mxu1 %v25920_v49  ;;  %v21663_v18 = vpack.c.bf16 %v14912_v29, %v14911_v26  ;;  %v29239_v26 = vld [vmem:[#allocation27_spill] sm:$0xff]  ;;  %v29240_v29 = vld [vmem:[#allocation28_spill] sm:$0xff] }
 0x38d   : > { %18741 = vmatmul.mubr.f32.gmra.mrb[62].mxu1 %v25923_v28 }
 0x38e   : > { %18775 = vmatprep.mubr.f32.mxu1 %v25388_v31  ;;  %v14913_v31 = vld [vmem:[%s28995_s1 + $0x830] sm:$0xff] }
 0x391   : > { %18776 = vmatmul.mubr.f32.vlgmr.msra.gmra.mrb[32].mxu1 %v25391_v21  ;;  %v21667_v21 = vpack.c.bf16 %v14914_v46, %v14913_v31  ;;  %v14933_v31 = vld [vmem:[%s28995_s1 + $0x8d0] sm:$0xff] }
 0x392   : > { %18778 = vmatprep.mubr.f32.mxu1 %v25400_v58  ;;  %21658 = vmatpush3.bf16.msra.mxu1 %v21655_v42  ;;  %v14915_v58 = vld [vmem:[%s28995_s1 + $0x840] sm:$0xff]  ;;  %v14928_v42 = vld [vmem:[%s28995_s1 + $0x8a8] sm:$0xff] }
 0x393   : > { %21660 = vmatprep.subr.bf16.mxu1 %v21659_v48 }
 0x395   : > { %18779 = vmatmul.mubr.f32.gmra.mrb[34].mxu1 %v25403_v60  ;;  %v21671_v60 = vpack.c.bf16 %v14916_v7, %v14915_v58  ;;  %v14967_v58 = vld [vmem:[%s28995_s1 + $0x9d0] sm:$0xff]  ;;  %v14968_v7 = vld [vmem:[%s28995_s1 + $0x9d8] sm:$0xff] }
 0x396   : > { %18781 = vmatprep.mubr.f32.mxu1 %v25412_v53  ;;  %21662 = vmatpush3.bf16.msra.mxu1 %v21659_v48  ;;  %v14917_v53 = vld [vmem:[%s28995_s1 + $0x850] sm:$0xff]  ;;  %v14966_v48 = vld [vmem:[%s28995_s1 + $0x9c8] sm:$0xff] }
 0x397   : > { %21664 = vmatprep.subr.bf16.mxu1 %v21663_v18  ;;  %v21735_v46 = vpack.c.bf16 %v14966_v48, %v14965_v54  ;;  %v5661_v54 = vld [vmem:[#allocation4 + $0x13a] sm:$0xff]  ;;  %v5662_v48 = vld [vmem:[#allocation4 + $0x142] sm:$0xff] }
 0x399   : > { %18782 = vmatmul.mubr.f32.gmra.mrb[36].mxu1 %v25415_v56  ;;  %v21675_v56 = vpack.c.bf16 %v14918_v61, %v14917_v53  ;;  %v29242_v53 = vld [vmem:[#allocation30_spill] sm:$0xff] }
 0x39a   : > { %18784 = vmatprep.mubr.f32.mxu1 %v25424_v30  ;;  %21666 = vmatpush3.bf16.msra.mxu1 %v21663_v18  ;;  %v14919_v30 = vld [vmem:[%s28995_s1 + $0x860] sm:$0xff]  ;;  %v21703_v18 = vpack.c.bf16 %v14932_v4, %v14931_v32  ;;  %v5658_v32 = vld [vmem:[#allocation4 + $0x112] sm:$0xff]  ;;  %v5660_v4 = vld [vmem:[#allocation4 + $0x12a] sm:$0xff] }
 0x39b   : > { %21668 = vmatprep.subr.bf16.mxu1 %v21667_v21 }
 0x39d   : > { %18785 = vmatmul.mubr.f32.gmra.mrb[38].mxu1 %v25427_v57  ;;  %v21679_v57 = vpack.c.bf16 %v14920_v19, %v14919_v30  ;;  %v21739_v30 = vpack.c.bf16 %v14968_v7, %v14967_v58  ;;  %v14936_v19 = vld [vmem:[%s28995_s1 + $0x8e8] sm:$0xff]  ;;  %v14971_v58 = vld [vmem:[%s28995_s1 + $0x9f0] sm:$0xff]  ;;  %v14972_v7 = vld [vmem:[%s28995_s1 + $0x9f8] sm:$0xff] }
 0x39e   : > { %18787 = vmatprep.mubr.f32.mxu1 %v25436_v24  ;;  %21670 = vmatpush3.bf16.msra.mxu1 %v21667_v21  ;;  %v14921_v24 = vld [vmem:[%s28995_s1 + $0x870] sm:$0xff]  ;;  %v14934_v21 = vld [vmem:[%s28995_s1 + $0x8d8] sm:$0xff] }
 0x39f   : > { %21672 = vmatprep.subr.bf16.mxu1 %v21671_v60  ;;  %v21707_v61 = vpack.c.bf16 %v14934_v21, %v14933_v31  ;;  %v5666_v31 = vld [vmem:[#allocation4 + $0x172] sm:$0xff]  ;;  %v5670_v21 = vld [vmem:[#allocation4 + $0x1a2] sm:$0xff] }
 0x3a1   : > { %18788 = vmatmul.mubr.f32.gmra.mrb[40].mxu1 %v25439_v14  ;;  %v21683_v14 = vpack.c.bf16 %v14922_v33, %v14921_v24  ;;  %v14970_v24 = vld [vmem:[%s28995_s1 + $0x9e8] sm:$0xff]  ;;  %v29243_v33 = vld [vmem:[#allocation31_spill] sm:$0xff] }
 0x3a2   : > { %18790 = vmatprep.mubr.f32.mxu1 %v25448_v6  ;;  %21674 = vmatpush3.bf16.msra.mxu1 %v21671_v60  ;;  %v14923_v6 = vld [vmem:[%s28995_s1 + $0x880] sm:$0xff]  ;;  %v29241_v60 = vld [vmem:[#allocation29_spill] sm:$0xff] }
 0x3a3   : > { %21676 = vmatprep.subr.bf16.mxu1 %v21675_v56 }
 0x3a5   : > { %18791 = vmatmul.mubr.f32.gmra.mrb[42].mxu1 %v25451_v15  ;;  %v21687_v15 = vpack.c.bf16 %v14924_v62, %v14923_v6 }
 0x3a6   : > { %18793 = vmatprep.mubr.f32.mxu1 %v25454_v17  ;;  %21678 = vmatpush3.bf16.msra.mxu1 %v21675_v56  ;;  %v29231_v17 = vld [vmem:[#allocation12_spill] sm:$0xff]  ;;  %v14935_v56 = vld [vmem:[%s28995_s1 + $0x8e0] sm:$0xff] }
 0x3a7   : > { %21680 = vmatprep.subr.bf16.mxu1 %v21679_v57  ;;  %v21711_v6 = vpack.c.bf16 %v14936_v19, %v14935_v56  ;;  %v14944_v19 = vld [vmem:[%s28995_s1 + $0x918] sm:$0xff] }
 0x3a9   : > { %18794 = vmatmul.mubr.f32.gmra.mrb[44].mxu1 %v25457_v34  ;;  %v29232_v34 = vld [vmem:[#allocation5_spill] sm:$0xff] }
 0x3aa   : > { %18796 = vmatprep.mubr.f32.mxu1 %v25460_v23  ;;  %21682 = vmatpush3.bf16.msra.mxu1 %v21679_v57  ;;  %v29233_v23 = vld [vmem:[#allocation21_spill] sm:$0xff]  ;;  %v14969_v57 = vld [vmem:[%s28995_s1 + $0x9e0] sm:$0xff] }
 0x3ab   : > { %21684 = vmatprep.subr.bf16.mxu1 %v21683_v14  ;;  %v21743_v62 = vpack.c.bf16 %v14970_v24, %v14969_v57  ;;  %v14945_v24 = vld [vmem:[%s28995_s1 + $0x920] sm:$0xff] }
 0x3ad   : > { %18797 = vmatmul.mubr.f32.gmra.mrb[46].mxu1 %v25463_v59  ;;  %v29234_v59 = vld [vmem:[#allocation22_spill] sm:$0xff] }
 0x3ae   : > { %18799 = vmatprep.mubr.f32.mxu1 %v25466_v9  ;;  %21686 = vmatpush3.bf16.msra.mxu1 %v21683_v14  ;;  %v26004_v9 = vld [vmem:[#allocation2] sm:$0xff]  ;;  %v29244_v14 = vld [vmem:[#allocation32_spill] sm:$0xff] }
 0x3af   : > { %21688 = vmatprep.subr.bf16.mxu1 %v21687_v15 }
 0x3b1   : > { %18800 = vmatmul.mubr.f32.gmra.mrb[48].mxu1 %v25469_v25  ;;  %v14925_v25 = vld [vmem:[%s28995_s1 + $0x890] sm:$0xff] }
 0x3b2   : > { %18802 = vmatprep.mubr.f32.mxu1 %v25472_v10  ;;  %v14926_v10 = vld [vmem:[%s28995_s1 + $0x898] sm:$0xff] }
 0x3b5   : > { %18803 = vmatmul.mubr.f32.gmra.mrb[50].mxu1 %v25475_v45  ;;  %v14957_v45 = vld [vmem:[%s28995_s1 + $0x980] sm:$0xff] }
 0x3b6   : > { %18805 = vmatprep.mubr.f32.mxu1 %v25478_v5  ;;  %v14958_v5 = vld [vmem:[%s28995_s1 + $0x988] sm:$0xff] }
 0x3b9   : > { %18806 = vmatmul.mubr.f32.gmra.mrb[52].mxu1 %v25481_v41  ;;  %v14959_v41 = vld [vmem:[%s28995_s1 + $0x990] sm:$0xff] }
 0x3ba   : > { %18808 = vmatprep.mubr.f32.mxu1 %v25484_v20  ;;  %v21719_v20 = vpack.c.bf16 %v14958_v5, %v14957_v45  ;;  %v5360_v45 = vld [vmem:[#allocation4 + $0x171] sm:$0xff]  ;;  %v5363_v5 = vld [vmem:[#allocation4 + $0x199] sm:$0xff] }
 0x3bc   : > { %21720 = vmatprep.subr.bf16.mxu0 %v21719_v20 }
 0x3bd   : > { %18809 = vmatmul.mubr.f32.gmra.mrb[54].mxu1 %v25487_v52  ;;  %v14960_v52 = vld [vmem:[%s28995_s1 + $0x998] sm:$0xff]  ;;  %21722 = vmatpush3.bf16.msra.mxu0 %v21719_v20 }
 0x3be   : > { %18811 = vmatprep.mubr.f32.mxu1 %v25490_v8  ;;  %v21691_v8 = vpack.c.bf16 %v14926_v10, %v14925_v25  ;;  %v21723_v0 = vpack.c.bf16 %v14960_v52, %v14959_v41  ;;  %v5354_v25 = vld [vmem:[#allocation4 + $0x129] sm:$0xff]  ;;  %v5357_v10 = vld [vmem:[#allocation4 + $0x151] sm:$0xff]  ;;  %v5364_v41 = vld [vmem:[#allocation4 + $0x1a1] sm:$0xff] }
 0x3bf   : > { %v5639_v20 = vld [vmem:[#allocation4 + $0x32] sm:$0xff]  ;;  %v5640_v52 = vld [vmem:[#allocation4 + $0x3a] sm:$0xff] }
 0x3c0   : > { %21724 = vmatprep.subr.bf16.mxu0 %v21723_v0 }
 0x3c1   : > { %18812 = vmatmul.mubr.f32.gmra.mrb[56].mxu1 %v25493_v3  ;;  %v14927_v3 = vld [vmem:[%s28995_s1 + $0x8a0] sm:$0xff]  ;;  %21726 = vmatpush3.bf16.msra.mxu0 %v21723_v0 }
 0x3c2   : > { %18814 = vmatprep.mubr.f32.mxu1 %v29231_v17  ;;  %v21695_v22 = vpack.c.bf16 %v14928_v42, %v14927_v3  ;;  %v14938_v17 = vld [vmem:[%s28995_s1 + $0x8f8] sm:$0xff]  ;;  %v5643_v0 = vld [vmem:[#allocation4 + $0x62] sm:$0xff]  ;;  %v5644_v42 = vld [vmem:[#allocation4 + $0x6a] sm:$0xff] }
 0x3c3   : > { %v5642_v3 = vld [vmem:[#allocation4 + $0x52] sm:$0xff] }
 0x3c5   : > { %18815 = vmatmul.mubr.f32.gmra.mrb[58].mxu1 %v29232_v34  ;;  %v29245_v34 = vld [vmem:[#allocation33_spill] sm:$0xff] }
 0x3c6   : > { %18817 = vmatprep.mubr.f32.mxu1 %v29233_v23 }
 0x3c9   : > { %18818 = vmatmul.mubr.f32.gmra.mrb[60].mxu1 %v29234_v59  ;;  %v5351_v59 = vld [vmem:[#allocation4 + $0x109] sm:$0xff] }
 0x3ca   : > { %18820 = vmatprep.mubr.f32.mxu1 %v26004_v9 }
 0x3cd   : > { %18821 = vmatmul.mubr.f32.gmra.mrb[62].mxu1 %v26004_v9 }
 0x3ce   : > { %18855 = vmatprep.mubr.f32.mxu1 %v25736_v27  ;;  %v14961_v27 = vld [vmem:[%s28995_s1 + $0x9a0] sm:$0xff] }
 0x3cf   : > { %v21727_v40 = vpack.c.bf16 %v14962_v43, %v14961_v27  ;;  %v5645_v27 = vld [vmem:[#allocation4 + $0x7a] sm:$0xff]  ;;  %v5646_v43 = vld [vmem:[#allocation4 + $0x82] sm:$0xff] }
 0x3d1   : > { %18856 = vmatmul.mubr.f32.vlgmr.msra.gmra.mrb[32].mxu1 %v29235_v39  ;;  %21728 = vmatprep.subr.bf16.mxu0 %v21727_v40  ;;  %v5647_v39 = vld [vmem:[#allocation4 + $0x92] sm:$0xff] }
 0x3d2   : > { %18858 = vmatprep.mubr.f32.mxu1 %v29236_v35  ;;  %21690 = vmatpush3.bf16.msra.mxu1 %v21687_v15  ;;  %v14937_v15 = vld [vmem:[%s28995_s1 + $0x8f0] sm:$0xff]  ;;  %v5648_v35 = vld [vmem:[#allocation4 + $0x9a] sm:$0xff] }
 0x3d3   : > { %21692 = vmatprep.subr.bf16.mxu1 %v21691_v8  ;;  %21730 = vmatpush3.bf16.msra.mxu0 %v21727_v40  ;;  %v21715_v23 = vpack.c.bf16 %v14938_v17, %v14937_v15  ;;  %v5651_v40 = vld [vmem:[#allocation4 + $0xc2] sm:$0xff] }
 0x3d4   : > { %21732 = vmatprep.subr.bf16.mxu0 %v21731_v50  ;;  %v14949_v17 = vld [vmem:[%s28995_s1 + $0x940] sm:$0xff] }
 0x3d5   : > { %18859 = vmatmul.mubr.f32.gmra.mrb[34].mxu1 %v29237_v2  ;;  %v5655_v2 = vld [vmem:[#allocation4 + $0xf2] sm:$0xff] }
 0x3d6   : > { %18861 = vmatprep.mubr.f32.mxu1 %v29238_v12  ;;  %21694 = vmatpush3.bf16.msra.mxu1 %v21691_v8  ;;  %v5641_v8 = vld [vmem:[#allocation4 + $0x4a] sm:$0xff]  ;;  %v5656_v12 = vld [vmem:[#allocation4 + $0xfa] sm:$0xff] }
 0x3d7   : > { %21696 = vmatprep.subr.bf16.mxu1 %v21695_v22  ;;  %21734 = vmatpush3.bf16.msra.mxu0 %v21731_v50  ;;  %v5659_v50 = vld [vmem:[#allocation4 + $0x122] sm:$0xff] }
 0x3d8   : > { %21736 = vmatprep.subr.bf16.mxu0 %v21735_v46 }
 0x3d9   : > { %18862 = vmatmul.mubr.f32.gmra.mrb[36].mxu1 %v29239_v26  ;;  %v5663_v26 = vld [vmem:[#allocation4 + $0x152] sm:$0xff] }
 0x3da   : > { %18864 = vmatprep.mubr.f32.mxu1 %v29240_v29  ;;  %21698 = vmatpush3.bf16.msra.mxu1 %v21695_v22  ;;  %v5649_v22 = vld [vmem:[#allocation4 + $0xaa] sm:$0xff]  ;;  %v5664_v29 = vld [vmem:[#allocation4 + $0x15a] sm:$0xff] }
 0x3db   : > { %21700 = vmatprep.subr.bf16.mxu1 %v21699_v36  ;;  %21738 = vmatpush3.bf16.msra.mxu0 %v21735_v46  ;;  %v5669_v46 = vld [vmem:[#allocation4 + $0x19a] sm:$0xff] }
 0x3dc   : > { %21740 = vmatprep.subr.bf16.mxu0 %v21739_v30 }
 0x3dd   : > { %18865 = vmatmul.mubr.f32.gmra.mrb[38].mxu1 %v29241_v60  ;;  %v21747_v60 = vpack.c.bf16 %v14972_v7, %v14971_v58 }
 0x3de   : > { %18867 = vmatprep.mubr.f32.mxu1 %v29242_v53  ;;  %21702 = vmatpush3.bf16.msra.mxu1 %v21699_v36  ;;  %v5657_v36 = vld [vmem:[#allocation4 + $0x10a] sm:$0xff]  ;;  %v6132_v53 = vld [vmem:[#allocation2 + $0x1] sm:$0xff] }
 0x3df   : > { %21704 = vmatprep.subr.bf16.mxu1 %v21703_v18  ;;  %21742 = vmatpush3.bf16.msra.mxu0 %v21739_v30  ;;  %v14943_v30 = vld [vmem:[%s28995_s1 + $0x910] sm:$0xff] }
 0x3e0   : > { %21744 = vmatprep.subr.bf16.mxu0 %v21743_v62  ;;  %19015 = vmatprep.mubr.f32.mxu0 %v6132_v53  ;;  %v21755_v57 = vpack.c.bf16 %v14944_v19, %v14943_v30 }
 0x3e1   : > { %18868 = vmatmul.mubr.f32.gmra.mrb[40].mxu1 %v29243_v33  ;;  %v14946_v33 = vld [vmem:[%s28995_s1 + $0x928] sm:$0xff] }
 0x3e2   : > { %18870 = vmatprep.mubr.f32.mxu1 %v29244_v14  ;;  %21706 = vmatpush3.bf16.msra.mxu1 %v21703_v18  ;;  %v5665_v18 = vld [vmem:[#allocation4 + $0x16a] sm:$0xff]  ;;  %v21759_v14 = vpack.c.bf16 %v14946_v33, %v14945_v24 }
 0x3e3   : > { %21708 = vmatprep.subr.bf16.mxu1 %v21707_v61  ;;  %21746 = vmatpush3.bf16.msra.mxu0 %v21743_v62  ;;  %v14948_v62 = vld [vmem:[%s28995_s1 + $0x938] sm:$0xff] }
 0x3e4   : > { %21748 = vmatprep.subr.bf16.mxu0 %v21747_v60 }
 0x3e5   : > { %18871 = vmatmul.mubr.f32.gmra.mrb[42].mxu1 %v29245_v34  ;;  %v14950_v34 = vld [vmem:[%s28995_s1 + $0x948] sm:$0xff] }
 0x3e6   : > { %18873 = vmatprep.mubr.f32.mxu1 %v25808_v37  ;;  %21710 = vmatpush3.bf16.msra.mxu1 %v21707_v61  ;;  %v5353_v37 = vld [vmem:[#allocation4 + $0x121] sm:$0xff] }
 0x3e7   : > { %21712 = vmatprep.subr.bf16.mxu1 %v21711_v6  ;;  %21750 = vmatpush3.bf16.msra.mxu0 %v21747_v60  ;;  %v14942_v61 = vld [vmem:[%s28995_s1 + $0x908] sm:$0xff] }
 0x3e9   : > { %18874 = vmatmul.mubr.f32.gmra.mrb[44].mxu1 %v25811_v55  ;;  %v5355_v55 = vld [vmem:[#allocation4 + $0x139] sm:$0xff] }
 0x3ea   : > { %18876 = vmatprep.mubr.f32.mxu1 %v25814_v51  ;;  %21714 = vmatpush3.bf16.msra.mxu1 %v21711_v6  ;;  %v5356_v51 = vld [vmem:[#allocation4 + $0x141] sm:$0xff]  ;;  %v14947_v6 = vld [vmem:[%s28995_s1 + $0x930] sm:$0xff] }
 0x3eb   : > { %21716 = vmatprep.subr.bf16.mxu1 %v21715_v23  ;;  %v21763_v15 = vpack.c.bf16 %v14948_v62, %v14947_v6 }
 0x3ed   : > { %18877 = vmatmul.mubr.f32.gmra.mrb[46].mxu1 %v25817_v47  ;;  %v5358_v47 = vld [vmem:[#allocation4 + $0x159] sm:$0xff] }
 0x3ee   : > { %18879 = vmatprep.mubr.f32.mxu1 %v25820_v11  ;;  %21718 = vmatpush3.bf16.msra.mxu1 %v21715_v23  ;;  %v5359_v11 = vld [vmem:[#allocation4 + $0x169] sm:$0xff]  ;;  %v21767_v23 = vpack.c.bf16 %v14950_v34, %v14949_v17 }
 0x3f1   : > { %18880 = vmatmul.mubr.f32.gmra.mrb[48].mxu1 %v25823_v13  ;;  %v5361_v13 = vld [vmem:[#allocation4 + $0x181] sm:$0xff] }
 0x3f2   : > { %18882 = vmatprep.mubr.f32.mxu1 %v5351_v59  ;;  %v14951_v59 = vld [vmem:[%s28995_s1 + $0x950] sm:$0xff] }
 0x3f5   : > { %18883 = vmatmul.mubr.f32.gmra.mrb[50].mxu1 %v25827_v44  ;;  %v5362_v44 = vld [vmem:[#allocation4 + $0x189] sm:$0xff] }
 0x3f6   : > { %18885 = vmatprep.mubr.f32.mxu1 %v5353_v37  ;;  %v14952_v37 = vld [vmem:[%s28995_s1 + $0x958] sm:$0xff] }
 0x3f9   : > { %18886 = vmatmul.mubr.f32.gmra.mrb[52].mxu1 %v5354_v25  ;;  %v21771_v25 = vpack.c.bf16 %v14952_v37, %v14951_v59 }
 0x3fa   : > { %18888 = vmatprep.mubr.f32.mxu1 %v5355_v55  ;;  %v14953_v55 = vld [vmem:[%s28995_s1 + $0x960] sm:$0xff] }
 0x3fd   : > { %18889 = vmatmul.mubr.f32.gmra.mrb[54].mxu1 %v5356_v51  ;;  %v14954_v51 = vld [vmem:[%s28995_s1 + $0x968] sm:$0xff] }
 0x3fe   : > { %18891 = vmatprep.mubr.f32.mxu1 %v5357_v10  ;;  %v21775_v10 = vpack.c.bf16 %v14954_v51, %v14953_v55 }
 0x401   : > { %18892 = vmatmul.mubr.f32.gmra.mrb[56].mxu1 %v5358_v47  ;;  %v14955_v47 = vld [vmem:[%s28995_s1 + $0x970] sm:$0xff] }
 0x402   : > { %18894 = vmatprep.mubr.f32.mxu1 %v5359_v11  ;;  %v14956_v11 = vld [vmem:[%s28995_s1 + $0x978] sm:$0xff] }
 0x405   : > { %18895 = vmatmul.mubr.f32.gmra.mrb[58].mxu1 %v5360_v45  ;;  %v21779_v45 = vpack.c.bf16 %v14956_v11, %v14955_v47 }
 0x406   : > { %18897 = vmatprep.mubr.f32.mxu1 %v5361_v13  ;;  %v14973_v13 = vld [vmem:[%s28995_s1 + $0xa00] sm:$0xff] }
 0x409   : > { %18898 = vmatmul.mubr.f32.gmra.mrb[60].mxu1 %v5362_v44 }
 0x40a   : > { %18900 = vmatprep.mubr.f32.mxu1 %v5363_v5  ;;  %v14974_v5 = vld [vmem:[%s28995_s1 + $0xa08] sm:$0xff] }
 0x40b   : > { %v26173_v44 = vpack.c.bf16 %v14974_v5, %v14973_v13 }
 0x40d   : > { %18901 = vmatmul.mubr.f32.gmra.mrb[62].mxu1 %v5364_v41  ;;  %v26179_v41 = vld [vmem:[%s28996_s2 + $0x1] ss:$0 sm:$0xff] }
 0x40e   : > { %18935 = vmatprep.mubr.f32.mxu1 %v5639_v20 }
 0x411   : > { %18936 = vmatmul.mubr.f32.vlgmr.msra.gmra.mrb[32].mxu1 %v5640_v52  ;;  %v26184_v52 = vld [vmem:[%s28997_s3 + $0x1] ss:$0 sm:$0xff] }
 0x412   : > { %18938 = vmatprep.mubr.f32.mxu1 %v5641_v8 }
 0x415   : > { %18939 = vmatmul.mubr.f32.gmra.mrb[34].mxu1 %v5642_v3 }
 0x416   : > { %18941 = vmatprep.mubr.f32.mxu1 %v5643_v0 }
 0x419   : > { %18942 = vmatmul.mubr.f32.gmra.mrb[36].mxu1 %v5644_v42 }
 0x41a   : > { %18944 = vmatprep.mubr.f32.mxu1 %v5645_v27 }
 0x41d   : > { %18945 = vmatmul.mubr.f32.gmra.mrb[38].mxu1 %v5646_v43 }
 0x41e   : > { %18947 = vmatprep.mubr.f32.mxu1 %v5647_v39 }
 0x421   : > { %18948 = vmatmul.mubr.f32.gmra.mrb[40].mxu1 %v5648_v35 }
 0x422   : > { %18950 = vmatprep.mubr.f32.mxu1 %v5649_v22 }
 0x425   : > { %18951 = vmatmul.mubr.f32.gmra.mrb[42].mxu1 %v5650_v38 }
 0x426   : > { %18953 = vmatprep.mubr.f32.mxu1 %v5651_v40 }
 0x429   : > { %18954 = vmatmul.mubr.f32.gmra.mrb[44].mxu1 %v5652_v16 }
 0x42a   : > { %18956 = vmatprep.mubr.f32.mxu1 %v5653_v63 }
 0x42d   : > { %18957 = vmatmul.mubr.f32.gmra.mrb[46].mxu1 %v5654_v1 }
 0x42e   : > { %18959 = vmatprep.mubr.f32.mxu1 %v5655_v2 }
 0x431   : > { %18960 = vmatmul.mubr.f32.gmra.mrb[48].mxu1 %v5656_v12 }
 0x432   : > { %18962 = vmatprep.mubr.f32.mxu1 %v5657_v36 }
 0x435   : > { %18963 = vmatmul.mubr.f32.gmra.mrb[50].mxu1 %v5658_v32 }
 0x436   : > { %18965 = vmatprep.mubr.f32.mxu1 %v5659_v50 }
 0x439   : > { %18966 = vmatmul.mubr.f32.gmra.mrb[52].mxu1 %v5660_v4 }
 0x43a   : > { %18968 = vmatprep.mubr.f32.mxu1 %v5661_v54 }
 0x43d   : > { %18969 = vmatmul.mubr.f32.gmra.mrb[54].mxu1 %v5662_v48 }
 0x43e   : > { %18971 = vmatprep.mubr.f32.mxu1 %v5663_v26 }
 0x441   : > { %18972 = vmatmul.mubr.f32.gmra.mrb[56].mxu1 %v5664_v29 }
 0x442   : > { %18974 = vmatprep.mubr.f32.mxu1 %v5665_v18 }
 0x445   : > { %18975 = vmatmul.mubr.f32.gmra.mrb[58].mxu1 %v5666_v31 }
 0x446   : > { %18977 = vmatprep.mubr.f32.mxu1 %v25920_v49  ;;  %v6133_v49 = vld [vmem:[#allocation2 + $0x9] sm:$0xff] }
 0x447   : > { %19016 = vmatmul.mubr.f32.vlgmr.msra.gmra.mrb[32].mxu0 %v6133_v49 }
 0x449   : > { %18978 = vmatmul.mubr.f32.gmra.mrb[60].mxu1 %v25923_v28  ;;  %v14941_v28 = vld [vmem:[%s28995_s1 + $0x900] sm:$0xff] }
 0x44a   : > { %18980 = vmatprep.mubr.f32.mxu1 %v5669_v46  ;;  %v21751_v56 = vpack.c.bf16 %v14942_v61, %v14941_v28 }
 0x44c   : > { %21752 = vmatprep.subr.bf16.mxu0 %v21751_v56 }
 0x44d   : > { %18981 = vmatmul.mubr.f32.gmra.mrb[62].mxu1 %v5670_v21  ;;  %21754 = vmatpush3.bf16.msra.mxu0 %v21751_v56 }
 0x44e   : > { %21756 = vmatprep.subr.bf16.mxu0 %v21755_v57 }
 0x451   : > { %21758 = vmatpush3.bf16.msra.mxu0 %v21755_v57 }
 0x452   : > { %21760 = vmatprep.subr.bf16.mxu0 %v21759_v14 }
 0x455   : > { %21762 = vmatpush3.bf16.msra.mxu0 %v21759_v14 }
 0x456   : > { %21764 = vmatprep.subr.bf16.mxu0 %v21763_v15 }
 0x459   : > { %21766 = vmatpush3.bf16.msra.mxu0 %v21763_v15 }
 0x45a   : > { %21768 = vmatprep.subr.bf16.mxu0 %v21767_v23 }
 0x45d   : > { %21770 = vmatpush3.bf16.msra.mxu0 %v21767_v23 }
 0x45e   : > { %21772 = vmatprep.subr.bf16.mxu0 %v21771_v25 }
 0x461   : > { %21774 = vmatpush3.bf16.msra.mxu0 %v21771_v25 }
 0x462   : > { %21776 = vmatprep.subr.bf16.mxu0 %v21775_v10 }
 0x465   : > { %21778 = vmatpush3.bf16.msra.mxu0 %v21775_v10 }
 0x466   : > { %21780 = vmatprep.subr.bf16.mxu0 %v21779_v45 }
 0x469   : > { %21782 = vmatpush3.bf16.msra.mxu0 %v21779_v45 }
 0x46a   : > { %21784 = vmatprep.subr.bf16.mxu0 %v26173_v44 }
 0x4e4   : > { %v18937_v20 = vpop.f32.mrb[32].mxu1 }
 0x4e5   : > { %v5951_v8 = vmul.f32 %v18937_v20, %v26179_v41  ;;  %v5754_v3 = vpop.f32.mrb[33].mxu1 }
 0x4e6   : > { %v5950_v0 = vmul.f32 %v26179_v41, %v5754_v3 }
 0x4e7   : > { %v5988_v42 = vadd.f32 %v26184_v52, %v5951_v8 }
 0x4e8   : > { %v5987_v27 = vadd.f32 %v26184_v52, %v5950_v0  ;;  %v18940_v43 = vpop.f32.mrb[34].mxu1 }
 0x4e9   : > { %v6020_v39 = vmax.f32 %v5988_v42, 0.0  ;;  %v5953_v35 = vmul.f32 %v18940_v43, %v26179_v41  ;;  %v5764_v22 = vpop.f32.mrb[35].mxu1 }
 0x4ea   : > { %v6019_v38 = vmax.f32 %v5987_v27, 0.0  ;;  %v5952_v40 = vmul.f32 %v26179_v41, %v5764_v22 }
 0x4eb   : > { %6052 = vst [vmem:[#allocation2 + $0x21] sm:$0xff] %v6020_v39  ;;  %v5990_v16 = vadd.f32 %v26184_v52, %v5953_v35 }
 0x4ec   : > { %6051 = vst [vmem:[#allocation2 + $0x19] sm:$0xff] %v6019_v38  ;;  %v5989_v63 = vadd.f32 %v26184_v52, %v5952_v40  ;;  %v18943_v1 = vpop.f32.mrb[36].mxu1  ;;  %19018 = vmatprep.mubr.f32.mxu0 %v6019_v38 }
 0x4ed   : > { %v6022_v2 = vmax.f32 %v5990_v16, 0.0  ;;  %v5955_v12 = vmul.f32 %v18943_v1, %v26179_v41  ;;  %v5774_v36 = vpop.f32.mrb[37].mxu1  ;;  %19019 = vmatmul.mubr.f32.gmra.mrb[34].mxu0 %v6020_v39 }
 0x4ee   : > { %v6021_v32 = vmax.f32 %v5989_v63, 0.0  ;;  %v5954_v50 = vmul.f32 %v26179_v41, %v5774_v36 }
 0x4ef   : > { %6054 = vst [vmem:[#allocation2 + $0x39] sm:$0xff] %v6022_v2  ;;  %v5992_v4 = vadd.f32 %v26184_v52, %v5955_v12 }
 0x4f0   : > { %6053 = vst [vmem:[#allocation2 + $0x31] sm:$0xff] %v6021_v32  ;;  %v5991_v54 = vadd.f32 %v26184_v52, %v5954_v50  ;;  %v18946_v48 = vpop.f32.mrb[38].mxu1  ;;  %19021 = vmatprep.mubr.f32.mxu0 %v6021_v32 }
 0x4f1   : > { %v6024_v26 = vmax.f32 %v5992_v4, 0.0  ;;  %v5957_v29 = vmul.f32 %v18946_v48, %v26179_v41  ;;  %v5784_v18 = vpop.f32.mrb[39].mxu1  ;;  %19022 = vmatmul.mubr.f32.gmra.mrb[36].mxu0 %v6022_v2 }
 0x4f2   : > { %v6023_v31 = vmax.f32 %v5991_v54, 0.0  ;;  %v5956_v46 = vmul.f32 %v26179_v41, %v5784_v18 }
 0x4f3   : > { %6056 = vst [vmem:[#allocation2 + $0x51] sm:$0xff] %v6024_v26  ;;  %v5994_v21 = vadd.f32 %v26184_v52, %v5957_v29 }
 0x4f4   : > { %6055 = vst [vmem:[#allocation2 + $0x49] sm:$0xff] %v6023_v31  ;;  %v5993_v58 = vadd.f32 %v26184_v52, %v5956_v46  ;;  %v18949_v7 = vpop.f32.mrb[40].mxu1  ;;  %19024 = vmatprep.mubr.f32.mxu0 %v6023_v31 }
 0x4f5   : > { %v6026_v60 = vmax.f32 %v5994_v21, 0.0  ;;  %v5959_v53 = vmul.f32 %v18949_v7, %v26179_v41  ;;  %v5794_v49 = vpop.f32.mrb[41].mxu1  ;;  %19025 = vmatmul.mubr.f32.gmra.mrb[38].mxu0 %v6024_v26 }
 0x4f6   : > { %v6025_v28 = vmax.f32 %v5993_v58, 0.0  ;;  %v5958_v61 = vmul.f32 %v26179_v41, %v5794_v49 }
 0x4f7   : > { %6058 = vst [vmem:[#allocation2 + $0x69] sm:$0xff] %v6026_v60  ;;  %v5996_v56 = vadd.f32 %v26184_v52, %v5959_v53 }
 0x4f8   : > { %6057 = vst [vmem:[#allocation2 + $0x61] sm:$0xff] %v6025_v28  ;;  %v5995_v30 = vadd.f32 %v26184_v52, %v5958_v61  ;;  %v18952_v19 = vpop.f32.mrb[42].mxu1  ;;  %19027 = vmatprep.mubr.f32.mxu0 %v6025_v28 }
 0x4f9   : > { %v6028_v57 = vmax.f32 %v5996_v56, 0.0  ;;  %v5961_v24 = vmul.f32 %v18952_v19, %v26179_v41  ;;  %v5804_v33 = vpop.f32.mrb[43].mxu1  ;;  %19028 = vmatmul.mubr.f32.gmra.mrb[40].mxu0 %v6026_v60 }
 0x4fa   : > { %v6027_v14 = vmax.f32 %v5995_v30, 0.0  ;;  %v5960_v6 = vmul.f32 %v26179_v41, %v5804_v33 }
 0x4fb   : > { %6060 = vst [vmem:[#allocation2 + $0x81] sm:$0xff] %v6028_v57  ;;  %v5998_v62 = vadd.f32 %v26184_v52, %v5961_v24 }
 0x4fc   : > { %6059 = vst [vmem:[#allocation2 + $0x79] sm:$0xff] %v6027_v14  ;;  %v5997_v15 = vadd.f32 %v26184_v52, %v5960_v6  ;;  %v18955_v17 = vpop.f32.mrb[44].mxu1  ;;  %19030 = vmatprep.mubr.f32.mxu0 %v6027_v14 }
 0x4fd   : > { %v6030_v34 = vmax.f32 %v5998_v62, 0.0  ;;  %v5963_v23 = vmul.f32 %v18955_v17, %v26179_v41  ;;  %v5814_v59 = vpop.f32.mrb[45].mxu1  ;;  %19031 = vmatmul.mubr.f32.gmra.mrb[42].mxu0 %v6028_v57 }
 0x4fe   : > { %v6029_v37 = vmax.f32 %v5997_v15, 0.0  ;;  %v5962_v25 = vmul.f32 %v26179_v41, %v5814_v59 }
 0x4ff   : > { %6062 = vst [vmem:[#allocation2 + $0x99] sm:$0xff] %v6030_v34  ;;  %v6000_v55 = vadd.f32 %v26184_v52, %v5963_v23 }
 0x500   : > { %6061 = vst [vmem:[#allocation2 + $0x91] sm:$0xff] %v6029_v37  ;;  %v5999_v51 = vadd.f32 %v26184_v52, %v5962_v25  ;;  %v18958_v10 = vpop.f32.mrb[46].mxu1  ;;  %19033 = vmatprep.mubr.f32.mxu0 %v6029_v37 }
 0x501   : > { %v6032_v47 = vmax.f32 %v6000_v55, 0.0  ;;  %v5965_v11 = vmul.f32 %v18958_v10, %v26179_v41  ;;  %v5824_v45 = vpop.f32.mrb[47].mxu1  ;;  %19034 = vmatmul.mubr.f32.gmra.mrb[44].mxu0 %v6030_v34 }
 0x502   : > { %v6031_v13 = vmax.f32 %v5999_v51, 0.0  ;;  %v5964_v5 = vmul.f32 %v26179_v41, %v5824_v45 }
 0x503   : > { %6064 = vst [vmem:[#allocation2 + $0xb1] sm:$0xff] %v6032_v47  ;;  %v6002_v20 = vadd.f32 %v26184_v52, %v5965_v11 }
 0x504   : > { %6063 = vst [vmem:[#allocation2 + $0xa9] sm:$0xff] %v6031_v13  ;;  %v6001_v8 = vadd.f32 %v26184_v52, %v5964_v5  ;;  %v18961_v3 = vpop.f32.mrb[48].mxu1  ;;  %19036 = vmatprep.mubr.f32.mxu0 %v6031_v13 }
 0x505   : > { %v6034_v0 = vmax.f32 %v6002_v20, 0.0  ;;  %v5967_v42 = vmul.f32 %v18961_v3, %v26179_v41  ;;  %v5834_v27 = vpop.f32.mrb[49].mxu1  ;;  %19037 = vmatmul.mubr.f32.gmra.mrb[46].mxu0 %v6032_v47 }
 0x506   : > { %v6033_v43 = vmax.f32 %v6001_v8, 0.0  ;;  %v5966_v39 = vmul.f32 %v26179_v41, %v5834_v27 }
 0x507   : > { %6066 = vst [vmem:[#allocation2 + $0xc9] sm:$0xff] %v6034_v0  ;;  %v6004_v35 = vadd.f32 %v26184_v52, %v5967_v42 }
 0x508   : > { %6065 = vst [vmem:[#allocation2 + $0xc1] sm:$0xff] %v6033_v43  ;;  %v6003_v22 = vadd.f32 %v26184_v52, %v5966_v39  ;;  %v18964_v38 = vpop.f32.mrb[50].mxu1  ;;  %19039 = vmatprep.mubr.f32.mxu0 %v6033_v43  ;;  %v14975_v43 = vld [vmem:[%s28995_s1 + $0xa10] sm:$0xff] }
 0x509   : > { %v26222_v40 = vmax.f32 %v6004_v35, 0.0  ;;  %v5969_v16 = vmul.f32 %v18964_v38, %v26179_v41  ;;  %v5844_v63 = vpop.f32.mrb[51].mxu1  ;;  %19040 = vmatmul.mubr.f32.gmra.mrb[48].mxu0 %v6034_v0  ;;  %v14978_v38 = vld [vmem:[%s28995_s1 + $0xa28] sm:$0xff] }
 0x50a   : > { %v26225_v1 = vmax.f32 %v6003_v22, 0.0  ;;  %v5968_v2 = vmul.f32 %v26179_v41, %v5844_v63  ;;  %v14977_v22 = vld [vmem:[%s28995_s1 + $0xa20] sm:$0xff] }
 0x50b   : > { %6068 = vst [vmem:[#allocation2 + $0xe1] sm:$0xff] %v26222_v40  ;;  %v6006_v12 = vadd.f32 %v26184_v52, %v5969_v16  ;;  %v26330_v16 = vld [vmem:[#allocation2 + $0x18] sm:$0xff]  ;;  %v21791_v63 = vpack.c.bf16 %v14978_v38, %v14977_v22 }
 0x50c   : > { %6067 = vst [vmem:[#allocation2 + $0xd9] sm:$0xff] %v26225_v1  ;;  %v6005_v36 = vadd.f32 %v26184_v52, %v5968_v2  ;;  %v18967_v32 = vpop.f32.mrb[52].mxu1  ;;  %19042 = vmatprep.mubr.f32.mxu0 %v26225_v1  ;;  %v26334_v2 = vld [vmem:[#allocation2 + $0x20] sm:$0xff] }
 0x50d   : > { %v26233_v50 = vmax.f32 %v6006_v12, 0.0  ;;  %v5971_v4 = vmul.f32 %v18967_v32, %v26179_v41  ;;  %v5854_v54 = vpop.f32.mrb[53].mxu1  ;;  %19043 = vmatmul.mubr.f32.gmra.mrb[50].mxu0 %v26222_v40  ;;  %v14979_v12 = vld [vmem:[%s28995_s1 + $0xa30] sm:$0xff]  ;;  %v26346_v32 = vld [vmem:[#allocation2 + $0x38] sm:$0xff] }
 0x50e   : > { %v26237_v48 = vmax.f32 %v6005_v36, 0.0  ;;  %v5970_v26 = vmul.f32 %v26179_v41, %v5854_v54  ;;  %v14980_v36 = vld [vmem:[%s28995_s1 + $0xa38] sm:$0xff]  ;;  %v14982_v54 = vld [vmem:[%s28995_s1 + $0xa48] sm:$0xff] }
 0x50f   : > { %6070 = vst [vmem:[#allocation2 + $0xf9] sm:$0xff] %v26233_v50  ;;  %v6008_v29 = vadd.f32 %v26184_v52, %v5971_v4  ;;  %v14981_v4 = vld [vmem:[%s28995_s1 + $0xa40] sm:$0xff] }
 0x510   : > { %6069 = vst [vmem:[#allocation2 + $0xf1] sm:$0xff] %v26237_v48  ;;  %v6007_v18 = vadd.f32 %v26184_v52, %v5970_v26  ;;  %v18970_v31 = vpop.f32.mrb[54].mxu1  ;;  %19045 = vmatprep.mubr.f32.mxu0 %v26237_v48  ;;  %v26355_v26 = vld [vmem:[#allocation2 + $0x48] sm:$0xff] }
 0x511   : > { %v26245_v46 = vmax.f32 %v6008_v29, 0.0  ;;  %v5973_v21 = vmul.f32 %v18970_v31, %v26179_v41  ;;  %v5864_v58 = vpop.f32.mrb[55].mxu1  ;;  %19046 = vmatmul.mubr.f32.gmra.mrb[52].mxu0 %v26233_v50  ;;  %v21799_v29 = vpack.c.bf16 %v14982_v54, %v14981_v4  ;;  %v14983_v31 = vld [vmem:[%s28995_s1 + $0xa50] sm:$0xff]  ;;  %v14992_v54 = vld [vmem:[%s28995_s1 + $0xa98] sm:$0xff] }
 0x512   : > { %v26249_v7 = vmax.f32 %v6007_v18, 0.0  ;;  %v5972_v60 = vmul.f32 %v26179_v41, %v5864_v58  ;;  %v26358_v18 = vld [vmem:[#allocation2 + $0x50] sm:$0xff]  ;;  %v26367_v58 = vld [vmem:[#allocation2 + $0x60] sm:$0xff] }
 0x513   : > { %6072 = vst [vmem:[#allocation2 + $0x111] sm:$0xff] %v26245_v46  ;;  %v6010_v53 = vadd.f32 %v26184_v52, %v5973_v21  ;;  %v14984_v21 = vld [vmem:[%s28995_s1 + $0xa58] sm:$0xff]  ;;  %v14991_v4 = vld [vmem:[%s28995_s1 + $0xa90] sm:$0xff] }
 0x514   : > { %6071 = vst [vmem:[#allocation2 + $0x109] sm:$0xff] %v26249_v7  ;;  %v6009_v49 = vadd.f32 %v26184_v52, %v5972_v60  ;;  %v18973_v28 = vpop.f32.mrb[56].mxu1  ;;  %19048 = vmatprep.mubr.f32.mxu0 %v26249_v7  ;;  %v21803_v60 = vpack.c.bf16 %v14984_v21, %v14983_v31  ;;  %v21819_v31 = vpack.c.bf16 %v14992_v54, %v14991_v4  ;;  %v14993_v21 = vld [vmem:[%s28995_s1 + $0xaa0] sm:$0xff]  ;;  %v26493_v4 = vld [vmem:[#allocation2 + $0x4a] sm:$0xff] }
 0x515   : > { %v26257_v61 = vmax.f32 %v6010_v53, 0.0  ;;  %v5975_v56 = vmul.f32 %v18973_v28, %v26179_v41  ;;  %v5874_v30 = vpop.f32.mrb[57].mxu1  ;;  %19049 = vmatmul.mubr.f32.gmra.mrb[54].mxu0 %v26245_v46  ;;  %v26370_v53 = vld [vmem:[#allocation2 + $0x68] sm:$0xff] }
 0x516   : > { %v26261_v19 = vmax.f32 %v6009_v49, 0.0  ;;  %v5974_v57 = vmul.f32 %v26179_v41, %v5874_v30  ;;  %v14985_v49 = vld [vmem:[%s28995_s1 + $0xa60] sm:$0xff]  ;;  %v14986_v28 = vld [vmem:[%s28995_s1 + $0xa68] sm:$0xff] }
 0x517   : > { %6074 = vst [vmem:[#allocation2 + $0x129] sm:$0xff] %v26257_v61  ;;  %v6012_v24 = vadd.f32 %v26184_v52, %v5975_v56  ;;  %v26379_v56 = vld [vmem:[#allocation2 + $0x78] sm:$0xff]  ;;  %v21807_v30 = vpack.c.bf16 %v14986_v28, %v14985_v49 }
 0x518   : > { %6073 = vst [vmem:[#allocation2 + $0x121] sm:$0xff] %v26261_v19  ;;  %v6011_v33 = vadd.f32 %v26184_v52, %v5974_v57  ;;  %v18976_v14 = vpop.f32.mrb[58].mxu1  ;;  %19051 = vmatprep.mubr.f32.mxu0 %v26261_v19  ;;  %v26382_v57 = vld [vmem:[#allocation2 + $0x80] sm:$0xff] }
 0x519   : > { %v26269_v6 = vmax.f32 %v6012_v24, 0.0  ;;  %v5977_v62 = vmul.f32 %v18976_v14, %v26179_v41  ;;  %v5884_v15 = vpop.f32.mrb[59].mxu1  ;;  %19052 = vmatmul.mubr.f32.gmra.mrb[56].mxu0 %v26257_v61  ;;  %v14987_v24 = vld [vmem:[%s28995_s1 + $0xa70] sm:$0xff]  ;;  %v26469_v49 = vld [vmem:[#allocation2 + $0x1a] sm:$0xff] }
 0x51a   : > { %v26273_v17 = vmax.f32 %v6011_v33, 0.0  ;;  %v5976_v34 = vmul.f32 %v26179_v41, %v5884_v15  ;;  %v14988_v33 = vld [vmem:[%s28995_s1 + $0xa78] sm:$0xff]  ;;  %v26391_v14 = vld [vmem:[#allocation2 + $0x90] sm:$0xff] }
 0x51b   : > { %6076 = vst [vmem:[#allocation2 + $0x141] sm:$0xff] %v26269_v6  ;;  %v6014_v23 = vadd.f32 %v26184_v52, %v5977_v62  ;;  %v21811_v62 = vpack.c.bf16 %v14988_v33, %v14987_v24  ;;  %v26394_v15 = vld [vmem:[#allocation2 + $0x98] sm:$0xff]  ;;  %v14995_v24 = vld [vmem:[%s28995_s1 + $0xab0] sm:$0xff] }
 0x51c   : > { %6075 = vst [vmem:[#allocation2 + $0x139] sm:$0xff] %v26273_v17  ;;  %v6013_v59 = vadd.f32 %v26184_v52, %v5976_v34  ;;  %v18979_v37 = vpop.f32.mrb[60].mxu1  ;;  %19054 = vmatprep.mubr.f32.mxu0 %v26273_v17  ;;  %v14989_v34 = vld [vmem:[%s28995_s1 + $0xa80] sm:$0xff]  ;;  %v14996_v33 = vld [vmem:[%s28995_s1 + $0xab8] sm:$0xff] }
 0x51d   : > { %v26281_v25 = vmax.f32 %v6014_v23, 0.0  ;;  %v5979_v55 = vmul.f32 %v18979_v37, %v26179_v41  ;;  %v5894_v51 = vpop.f32.mrb[61].mxu1  ;;  %19055 = vmatmul.mubr.f32.gmra.mrb[58].mxu0 %v26269_v6  ;;  %v14990_v23 = vld [vmem:[%s28995_s1 + $0xa88] sm:$0xff] }
 0x51e   : > { %v26285_v10 = vmax.f32 %v6013_v59, 0.0  ;;  %v5978_v47 = vmul.f32 %v26179_v41, %v5894_v51  ;;  %v26403_v59 = vld [vmem:[#allocation2 + $0xa8] sm:$0xff]  ;;  %v21815_v37 = vpack.c.bf16 %v14990_v23, %v14989_v34  ;;  %v26409_v51 = vld [vmem:[#allocation2 + $0xc0] sm:$0xff]  ;;  %v21827_v34 = vpack.c.bf16 %v14996_v33, %v14995_v24 }
 0x51f   : > { %6078 = vst [vmem:[#allocation2 + $0x159] sm:$0xff] %v26281_v25  ;;  %v6016_v11 = vadd.f32 %v26184_v52, %v5979_v55  ;;  %v26406_v55 = vld [vmem:[#allocation2 + $0xb0] sm:$0xff]  ;;  %v26484_v23 = vld [vmem:[#allocation2 + $0x3a] sm:$0xff] }
 0x520   : > { %6077 = vst [vmem:[#allocation2 + $0x151] sm:$0xff] %v26285_v10  ;;  %v6015_v45 = vadd.f32 %v26184_v52, %v5978_v47  ;;  %v18982_v13 = vpop.f32.mrb[62].mxu1  ;;  %19057 = vmatprep.mubr.f32.mxu0 %v26285_v10  ;;  %v26412_v47 = vld [vmem:[#allocation2 + $0xc8] sm:$0xff]  ;;  %v15001_v33 = vld [vmem:[%s28995_s1 + $0xae0] sm:$0xff] }
 0x521   : > { %v26293_v5 = vmax.f32 %v6016_v11, 0.0  ;;  %v5981_v20 = vmul.f32 %v18982_v13, %v26179_v41  ;;  %v5904_v8 = vpop.f32.mrb[63].mxu1  ;;  %19058 = vmatmul.mubr.f32.gmra.mrb[60].mxu0 %v26281_v25  ;;  %v26415_v11 = vld [vmem:[#allocation2 + $0xd8] sm:$0xff]  ;;  %v26421_v13 = vld [vmem:[#allocation2 + $0xf0] sm:$0xff] }
 0x522   : > { %v26297_v3 = vmax.f32 %v6015_v45, 0.0  ;;  %v5980_v0 = vmul.f32 %v26179_v41, %v5904_v8  ;;  %v14976_v41 = vld [vmem:[%s28995_s1 + $0xa18] sm:$0xff]  ;;  %v26418_v45 = vld [vmem:[#allocation2 + $0xe0] sm:$0xff]  ;;  %v26427_v8 = vld [vmem:[#allocation2 + $0x108] sm:$0xff] }
 0x523   : > { %6080 = vst [vmem:[#allocation2 + $0x171] sm:$0xff] %v26293_v5  ;;  %v26302_v42 = vadd.f32 %v26184_v52, %v5981_v20  ;;  %v26424_v20 = vld [vmem:[#allocation2 + $0xf8] sm:$0xff]  ;;  %v26442_v22 = vld [vmem:[#allocation2 + $0x140] sm:$0xff]  ;;  %v26508_v24 = vld [vmem:[#allocation2 + $0x6a] sm:$0xff] }
 0x524   : > { %6079 = vst [vmem:[#allocation2 + $0x169] sm:$0xff] %v26297_v3  ;;  %v26306_v27 = vadd.f32 %v26184_v52, %v5980_v0  ;;  %19060 = vmatprep.mubr.f32.mxu0 %v26297_v3  ;;  %v21787_v52 = vpack.c.bf16 %v14976_v41, %v14975_v43  ;;  %v26430_v0 = vld [vmem:[#allocation2 + $0x110] sm:$0xff]  ;;  %v26433_v43 = vld [vmem:[#allocation2 + $0x120] sm:$0xff]  ;;  %v26436_v41 = vld [vmem:[#allocation2 + $0x128] sm:$0xff] }
 0x525   : > { %v29052_v39 = vmax.f32 %v26302_v42, 0.0  ;;  %19061 = vmatmul.mubr.f32.gmra.mrb[62].mxu0 %v26293_v5 }
 0x526   : > { %v29053_v35 = vmax.f32 %v26306_v27, 0.0  ;;  %19095 = vmatprep.mubr.f32.mxu0 %v26004_v9 }
 0x527   : > { %6082 = vst [vmem:[#allocation2 + $0x189] sm:$0xff] %v29052_v39  ;;  %v26445_v38 = vld [vmem:[#allocation2 + $0x150] sm:$0xff]  ;;  %v15004_v39 = vld [vmem:[%s28995_s1 + $0xaf8] sm:$0xff] }
 0x528   : > { %6081 = vst [vmem:[#allocation2 + $0x181] sm:$0xff] %v29053_v35  ;;  %v26529_v35 = vld [vmem:[#allocation2 + $0x92] sm:$0xff] }
 0x529   : > { %19096 = vmatmul.mubr.f32.vlgmr.msra.gmra.mrb[32].mxu0 %v26004_v9  ;;  %v26343_v9 = vld [vmem:[#allocation2 + $0x30] sm:$0xff]  ;;  %29250 = vst [vmem:[#allocation16_spill] sm:$0xff] %v26529_v35 }
 0x52a   : > { %19098 = vmatprep.mubr.f32.mxu0 %v26330_v16  ;;  %21786 = vmatpush3.bf16.msra.mxu0 %v26173_v44  ;;  %v21795_v44 = vpack.c.bf16 %v14980_v36, %v14979_v12  ;;  %v6631_v36 = vld [vmem:[#allocation2 + $0x2] sm:$0xff] }
 0x52b   : > { %21788 = vmatprep.subr.bf16.mxu0 %v21787_v52  ;;  %v26451_v12 = vld [vmem:[#allocation2 + $0x168] sm:$0xff] }
 0x52c   : > { %29246 = vst [vmem:[#allocation13_spill] sm:$0xff] %v26451_v12 }
 0x52d   : > { %19099 = vmatmul.mubr.f32.gmra.mrb[34].mxu0 %v26334_v2 }
 0x52e   : > { %19101 = vmatprep.mubr.f32.mxu0 %v26343_v9  ;;  %21790 = vmatpush3.bf16.msra.mxu0 %v21787_v52  ;;  %v26439_v52 = vld [vmem:[#allocation2 + $0x138] sm:$0xff] }
 0x52f   : > { %21792 = vmatprep.subr.bf16.mxu0 %v21791_v63 }
 0x531   : > { %19102 = vmatmul.mubr.f32.gmra.mrb[36].mxu0 %v26346_v32 }
 0x532   : > { %19104 = vmatprep.mubr.f32.mxu0 %v26355_v26  ;;  %21794 = vmatpush3.bf16.msra.mxu0 %v21791_v63  ;;  %v26448_v63 = vld [vmem:[#allocation2 + $0x158] sm:$0xff] }
 0x533   : > { %21796 = vmatprep.subr.bf16.mxu0 %v21795_v44 }
 0x535   : > { %19105 = vmatmul.mubr.f32.gmra.mrb[38].mxu0 %v26358_v18 }
 0x536   : > { %19107 = vmatprep.mubr.f32.mxu0 %v26367_v58  ;;  %21798 = vmatpush3.bf16.msra.mxu0 %v21795_v44  ;;  %v26454_v44 = vld [vmem:[#allocation2 + $0x170] sm:$0xff] }
 0x537   : > { %21800 = vmatprep.subr.bf16.mxu0 %v21799_v29  ;;  %29247 = vst [vmem:[#allocation14_spill] sm:$0xff] %v26454_v44 }
 0x539   : > { %19108 = vmatmul.mubr.f32.gmra.mrb[40].mxu0 %v26370_v53 }
 0x53a   : > { %19110 = vmatprep.mubr.f32.mxu0 %v26379_v56  ;;  %21802 = vmatpush3.bf16.msra.mxu0 %v21799_v29  ;;  %v6632_v29 = vld [vmem:[#allocation2 + $0xa] sm:$0xff] }
 0x53b   : > { %21804 = vmatprep.subr.bf16.mxu0 %v21803_v60 }
 0x53d   : > { %19111 = vmatmul.mubr.f32.gmra.mrb[42].mxu0 %v26382_v57 }
 0x53e   : > { %19113 = vmatprep.mubr.f32.mxu0 %v26391_v14  ;;  %21806 = vmatpush3.bf16.msra.mxu0 %v21803_v60  ;;  %v14994_v60 = vld [vmem:[%s28995_s1 + $0xaa8] sm:$0xff] }
 0x53f   : > { %21808 = vmatprep.subr.bf16.mxu0 %v21807_v30  ;;  %v21823_v28 = vpack.c.bf16 %v14994_v60, %v14993_v21  ;;  %v15000_v21 = vld [vmem:[%s28995_s1 + $0xad8] sm:$0xff]  ;;  %v26505_v60 = vld [vmem:[#allocation2 + $0x62] sm:$0xff] }
 0x541   : > { %19114 = vmatmul.mubr.f32.gmra.mrb[44].mxu0 %v26394_v15 }
 0x542   : > { %19116 = vmatprep.mubr.f32.mxu0 %v26403_v59  ;;  %21810 = vmatpush3.bf16.msra.mxu0 %v21807_v30  ;;  %v26472_v30 = vld [vmem:[#allocation2 + $0x22] sm:$0xff] }
 0x543   : > { %21812 = vmatprep.subr.bf16.mxu0 %v21811_v62 }
 0x545   : > { %19117 = vmatmul.mubr.f32.gmra.mrb[46].mxu0 %v26406_v55 }
 0x546   : > { %19119 = vmatprep.mubr.f32.mxu0 %v26409_v51  ;;  %21814 = vmatpush3.bf16.msra.mxu0 %v21811_v62  ;;  %v26481_v62 = vld [vmem:[#allocation2 + $0x32] sm:$0xff] }
 0x547   : > { %21816 = vmatprep.subr.bf16.mxu0 %v21815_v37 }
 0x549   : > { %19120 = vmatmul.mubr.f32.gmra.mrb[48].mxu0 %v26412_v47 }
 0x54a   : > { %19122 = vmatprep.mubr.f32.mxu0 %v26415_v11 }
 0x54d   : > { %19123 = vmatmul.mubr.f32.gmra.mrb[50].mxu0 %v26418_v45 }
 0x54e   : > { %19125 = vmatprep.mubr.f32.mxu0 %v26421_v13 }
 0x551   : > { %19126 = vmatmul.mubr.f32.gmra.mrb[52].mxu0 %v26424_v20 }
 0x552   : > { %19128 = vmatprep.mubr.f32.mxu0 %v26427_v8 }
 0x555   : > { %19129 = vmatmul.mubr.f32.gmra.mrb[54].mxu0 %v26430_v0 }
 0x556   : > { %19131 = vmatprep.mubr.f32.mxu0 %v26433_v43 }
 0x559   : > { %19132 = vmatmul.mubr.f32.gmra.mrb[56].mxu0 %v26436_v41 }
 0x55a   : > { %19134 = vmatprep.mubr.f32.mxu0 %v26439_v52 }
 0x55d   : > { %19135 = vmatmul.mubr.f32.gmra.mrb[58].mxu0 %v26442_v22 }
 0x55e   : > { %19137 = vmatprep.mubr.f32.mxu0 %v26445_v38 }
 0x561   : > { %19138 = vmatmul.mubr.f32.gmra.mrb[60].mxu0 %v26448_v63 }
 0x562   : > { %19140 = vmatprep.mubr.f32.mxu0 %v26451_v12 }
 0x565   : > { %19141 = vmatmul.mubr.f32.gmra.mrb[62].mxu0 %v26454_v44 }
 0x566   : > { %19175 = vmatprep.mubr.f32.mxu0 %v6631_v36  ;;  %v14998_v36 = vld [vmem:[%s28995_s1 + $0xac8] sm:$0xff] }
 0x569   : > { %19176 = vmatmul.mubr.f32.vlgmr.msra.gmra.mrb[32].mxu0 %v6632_v29  ;;  %v26496_v29 = vld [vmem:[#allocation2 + $0x52] sm:$0xff] }
 0x56a   : > { %19178 = vmatprep.mubr.f32.mxu0 %v26469_v49  ;;  %21818 = vmatpush3.bf16.msra.mxu0 %v21815_v37  ;;  %v14997_v37 = vld [vmem:[%s28995_s1 + $0xac0] sm:$0xff] }
 0x56b   : > { %21820 = vmatprep.subr.bf16.mxu0 %v21819_v31  ;;  %v21831_v54 = vpack.c.bf16 %v14998_v36, %v14997_v37  ;;  %v15002_v37 = vld [vmem:[%s28995_s1 + $0xae8] sm:$0xff]  ;;  %v26517_v36 = vld [vmem:[#allocation2 + $0x7a] sm:$0xff] }
 0x56c   : > { %29248 = vst [vmem:[#allocation6_spill] sm:$0xff] %v26517_v36 }
 0x56d   : > { %19179 = vmatmul.mubr.f32.gmra.mrb[34].mxu0 %v26472_v30 }
 0x56e   : > { %19181 = vmatprep.mubr.f32.mxu0 %v26481_v62  ;;  %21822 = vmatpush3.bf16.msra.mxu0 %v21819_v31  ;;  %v14999_v31 = vld [vmem:[%s28995_s1 + $0xad0] sm:$0xff] }
 0x56f   : > { %21824 = vmatprep.subr.bf16.mxu0 %v21823_v28 }
 0x571   : > { %19182 = vmatmul.mubr.f32.gmra.mrb[36].mxu0 %v26484_v23 }
 0x572   : > { %19184 = vmatprep.mubr.f32.mxu0 %v26493_v4  ;;  %21826 = vmatpush3.bf16.msra.mxu0 %v21823_v28  ;;  %v21835_v28 = vpack.c.bf16 %v15000_v21, %v14999_v31  ;;  %v26520_v31 = vld [vmem:[#allocation2 + $0x82] sm:$0xff]  ;;  %v15003_v21 = vld [vmem:[%s28995_s1 + $0xaf0] sm:$0xff] }
 0x573   : > { %21828 = vmatprep.subr.bf16.mxu0 %v21827_v34  ;;  %29249 = vst [vmem:[#allocation15_spill] sm:$0xff] %v26520_v31 }
 0x575   : > { %19185 = vmatmul.mubr.f32.gmra.mrb[38].mxu0 %v26496_v29 }
 0x576   : > { %19187 = vmatprep.mubr.f32.mxu0 %v26505_v60  ;;  %21830 = vmatpush3.bf16.msra.mxu0 %v21827_v34  ;;  %v21839_v34 = vpack.c.bf16 %v15002_v37, %v15001_v33  ;;  %v26532_v33 = vld [vmem:[#allocation2 + $0x9a] sm:$0xff] }
 0x577   : > { %21832 = vmatprep.subr.bf16.mxu0 %v21831_v54  ;;  %29251 = vst [vmem:[#allocation7_spill] sm:$0xff] %v26532_v33  ;;  %v15005_v37 = vld [vmem:[%s28995_s1 + $0xb00] sm:$0xff] }
 0x579   : > { %19188 = vmatmul.mubr.f32.gmra.mrb[40].mxu0 %v26508_v24 }
 0x57a   : > { %19190 = vmatprep.mubr.f32.mxu0 %v26517_v36  ;;  %21834 = vmatpush3.bf16.msra.mxu0 %v21831_v54  ;;  %v21843_v54 = vpack.c.bf16 %v15004_v39, %v15003_v21  ;;  %v15006_v36 = vld [vmem:[%s28995_s1 + $0xb08] sm:$0xff]  ;;  %v26544_v39 = vld [vmem:[#allocation2 + $0xb2] sm:$0xff] }
 0x57b   : > { %21836 = vmatprep.subr.bf16.mxu0 %v21835_v28  ;;  %v26547_v21 = vld [vmem:[#allocation2 + $0xc2] sm:$0xff] }
 0x57c   : > { %29252 = vst [vmem:[#allocation17_spill] sm:$0xff] %v26547_v21 }
 0x57d   : > { %19191 = vmatmul.mubr.f32.gmra.mrb[42].mxu0 %v26520_v31  ;;  %v26541_v31 = vld [vmem:[#allocation2 + $0xaa] sm:$0xff] }
 0x57e   : > { %19193 = vmatprep.mubr.f32.mxu0 %v26529_v35  ;;  %21838 = vmatpush3.bf16.msra.mxu0 %v21835_v28  ;;  %v21847_v28 = vpack.c.bf16 %v15006_v36, %v15005_v37  ;;  %v26550_v35 = vld [vmem:[#allocation2 + $0xca] sm:$0xff]  ;;  %v26559_v36 = vld [vmem:[#allocation2 + $0xf2] sm:$0xff]  ;;  %v26562_v37 = vld [vmem:[#allocation2 + $0xfa] sm:$0xff] }
 0x57f   : > { %21840 = vmatprep.subr.bf16.mxu0 %v21839_v34  ;;  %29253 = vst [vmem:[#allocation18_spill] sm:$0xff] %v26550_v35  ;;  %29256 = vst [vmem:[#allocation19_spill] sm:$0xff] %v26559_v36 }
 0x580   : > { %29257 = vst [vmem:[#allocation11_spill] sm:$0xff] %v26562_v37 }
 0x581   : > { %19194 = vmatmul.mubr.f32.gmra.mrb[44].mxu0 %v26532_v33  ;;  %v26553_v33 = vld [vmem:[#allocation2 + $0xda] sm:$0xff] }
 0x582   : > { %19196 = vmatprep.mubr.f32.mxu0 %v26541_v31  ;;  %21842 = vmatpush3.bf16.msra.mxu0 %v21839_v34  ;;  %29254 = vst [vmem:[#allocation10_spill] sm:$0xff] %v26553_v33  ;;  %v26556_v34 = vld [vmem:[#allocation2 + $0xe2] sm:$0xff] }
 0x583   : > { %21844 = vmatprep.subr.bf16.mxu0 %v21843_v54  ;;  %29255 = vst [vmem:[#allocation8_spill] sm:$0xff] %v26556_v34 }
 0x585   : > { %19197 = vmatmul.mubr.f32.gmra.mrb[46].mxu0 %v26544_v39 }
 0x586   : > { %19199 = vmatprep.mubr.f32.mxu0 %v26547_v21  ;;  %21846 = vmatpush3.bf16.msra.mxu0 %v21843_v54  ;;  %v26565_v54 = vld [vmem:[#allocation2 + $0x10a] sm:$0xff] }
 0x587   : > { %21848 = vmatprep.subr.bf16.mxu0 %v21847_v28  ;;  %29258 = vst [vmem:[#allocation20_spill] sm:$0xff] %v26565_v54 }
 0x589   : > { %19200 = vmatmul.mubr.f32.gmra.mrb[48].mxu0 %v26550_v35  ;;  %v26568_v35 = vld [vmem:[#allocation2 + $0x112] sm:$0xff] }
 0x58a   : > { %19202 = vmatprep.mubr.f32.mxu0 %v26553_v33  ;;  %29259 = vst [vmem:[#allocation9_spill] sm:$0xff] %v26568_v35  ;;  %v26571_v33 = vld [vmem:[#allocation2 + $0x122] sm:$0xff] }
 0x58b   : > { %29260 = vst [vmem:[#allocation12_spill] sm:$0xff] %v26571_v33 }
 0x58d   : > { %19203 = vmatmul.mubr.f32.gmra.mrb[50].mxu0 %v26556_v34  ;;  %v26574_v34 = vld [vmem:[#allocation2 + $0x12a] sm:$0xff] }
 0x58e   : > { %19205 = vmatprep.mubr.f32.mxu0 %v26559_v36  ;;  %29261 = vst [vmem:[#allocation5_spill] sm:$0xff] %v26574_v34  ;;  %v26577_v36 = vld [vmem:[#allocation2 + $0x13a] sm:$0xff] }
 0x58f   : > { %29262 = vst [vmem:[#allocation21_spill] sm:$0xff] %v26577_v36 }
 0x591   : > { %19206 = vmatmul.mubr.f32.gmra.mrb[52].mxu0 %v26562_v37  ;;  %v26580_v37 = vld [vmem:[#allocation2 + $0x142] sm:$0xff] }
 0x592   : > { %19208 = vmatprep.mubr.f32.mxu0 %v26565_v54  ;;  %29263 = vst [vmem:[#allocation22_spill] sm:$0xff] %v26580_v37  ;;  %v26583_v54 = vld [vmem:[#allocation2 + $0x152] sm:$0xff] }
 0x593   : > { %29264 = vst [vmem:[#allocation23_spill] sm:$0xff] %v26583_v54 }
 0x595   : > { %19209 = vmatmul.mubr.f32.gmra.mrb[54].mxu0 %v26568_v35  ;;  %v26586_v35 = vld [vmem:[#allocation2 + $0x15a] sm:$0xff] }
 0x596   : > { %19211 = vmatprep.mubr.f32.mxu0 %v26571_v33  ;;  %29265 = vst [vmem:[#allocation24_spill] sm:$0xff] %v26586_v35  ;;  %v26589_v33 = vld [vmem:[#allocation2 + $0x16a] sm:$0xff] }
 0x597   : > { %29266 = vst [vmem:[#allocation25_spill] sm:$0xff] %v26589_v33 }
 0x599   : > { %19212 = vmatmul.mubr.f32.gmra.mrb[56].mxu0 %v26574_v34  ;;  %v26592_v34 = vld [vmem:[#allocation2 + $0x172] sm:$0xff] }
 0x59a   : > { %19214 = vmatprep.mubr.f32.mxu0 %v26577_v36  ;;  %v15007_v36 = vld [vmem:[%s28995_s1 + $0xb10] sm:$0xff] }
 0x59d   : > { %19215 = vmatmul.mubr.f32.gmra.mrb[58].mxu0 %v26580_v37  ;;  %v15008_v37 = vld [vmem:[%s28995_s1 + $0xb18] sm:$0xff] }
 0x59e   : > { %19217 = vmatprep.mubr.f32.mxu0 %v26583_v54  ;;  %v21851_v54 = vpack.c.bf16 %v15008_v37, %v15007_v36  ;;  %v15012_v36 = vld [vmem:[%s28995_s1 + $0xb38] sm:$0xff]  ;;  %v15015_v37 = vld [vmem:[%s28995_s1 + $0xb50] sm:$0xff] }
 0x5a1   : > { %19218 = vmatmul.mubr.f32.gmra.mrb[60].mxu0 %v26586_v35  ;;  %v15009_v35 = vld [vmem:[%s28995_s1 + $0xb20] sm:$0xff] }
 0x5a2   : > { %19220 = vmatprep.mubr.f32.mxu0 %v26589_v33  ;;  %v15010_v33 = vld [vmem:[%s28995_s1 + $0xb28] sm:$0xff] }
 0x5a3   : > { %v21855_v21 = vpack.c.bf16 %v15010_v33, %v15009_v35  ;;  %v15014_v35 = vld [vmem:[%s28995_s1 + $0xb48] sm:$0xff] }
 0x5a5   : > { %19221 = vmatmul.mubr.f32.gmra.mrb[62].mxu0 %v26592_v34 }
 0x5a6   : > { %19255 = vmatprep.mubr.f32.mxu0 %v26330_v16  ;;  %v15011_v16 = vld [vmem:[%s28995_s1 + $0xb30] sm:$0xff] }
 0x5a9   : > { %19256 = vmatmul.mubr.f32.vlgmr.msra.gmra.mrb[32].mxu0 %v26334_v2  ;;  %v21859_v2 = vpack.c.bf16 %v15012_v36, %v15011_v16  ;;  %v15018_v36 = vld [vmem:[%s28995_s1 + $0xb68] sm:$0xff] }
 0x5aa   : > { %19258 = vmatprep.mubr.f32.mxu0 %v26343_v9  ;;  %21850 = vmatpush3.bf16.msra.mxu0 %v21847_v28  ;;  %v15013_v28 = vld [vmem:[%s28995_s1 + $0xb40] sm:$0xff] }
 0x5ab   : > { %21852 = vmatprep.subr.bf16.mxu0 %v21851_v54  ;;  %v21863_v33 = vpack.c.bf16 %v15014_v35, %v15013_v28  ;;  %v15020_v35 = vld [vmem:[%s28995_s1 + $0xb78] sm:$0xff] }
 0x5ad   : > { %19259 = vmatmul.mubr.f32.gmra.mrb[34].mxu0 %v26346_v32 }
 0x5ae   : > { %19261 = vmatprep.mubr.f32.mxu0 %v26355_v26  ;;  %21854 = vmatpush3.bf16.msra.mxu0 %v21851_v54  ;;  %v15016_v54 = vld [vmem:[%s28995_s1 + $0xb58] sm:$0xff] }
 0x5af   : > { %21856 = vmatprep.subr.bf16.mxu0 %v21855_v21  ;;  %v21867_v16 = vpack.c.bf16 %v15016_v54, %v15015_v37  ;;  %v15022_v54 = vld [vmem:[%s28995_s1 + $0xb88] sm:$0xff] }
 0x5b1   : > { %19262 = vmatmul.mubr.f32.gmra.mrb[36].mxu0 %v26358_v18 }
 0x5b2   : > { %19264 = vmatprep.mubr.f32.mxu0 %v26367_v58  ;;  %21858 = vmatpush3.bf16.msra.mxu0 %v21855_v21  ;;  %v15017_v21 = vld [vmem:[%s28995_s1 + $0xb60] sm:$0xff] }
 0x5b3   : > { %21860 = vmatprep.subr.bf16.mxu0 %v21859_v2  ;;  %v21871_v28 = vpack.c.bf16 %v15018_v36, %v15017_v21  ;;  %v26676_v36 = vld [vmem:[#allocation2 + $0x188] sm:$0xff] }
 0x5b4   : > { %29268 = vst [vmem:[#allocation27_spill] sm:$0xff] %v26676_v36 }
 0x5b5   : > { %19265 = vmatmul.mubr.f32.gmra.mrb[38].mxu0 %v26370_v53 }
 0x5b6   : > { %19267 = vmatprep.mubr.f32.mxu0 %v26379_v56  ;;  %21862 = vmatpush3.bf16.msra.mxu0 %v21859_v2  ;;  %v15019_v2 = vld [vmem:[%s28995_s1 + $0xb70] sm:$0xff] }
 0x5b7   : > { %21864 = vmatprep.subr.bf16.mxu0 %v21863_v33  ;;  %v21875_v37 = vpack.c.bf16 %v15020_v35, %v15019_v2  ;;  %v15024_v2 = vld [vmem:[%s28995_s1 + $0xb98] sm:$0xff] }
 0x5b8   : > { %v7243_v35 = vld [vmem:[#allocation2 + $0x19] sm:$0xff] }
 0x5b9   : > { %19268 = vmatmul.mubr.f32.gmra.mrb[40].mxu0 %v26382_v57 }
 0x5ba   : > { %19270 = vmatprep.mubr.f32.mxu0 %v26391_v14  ;;  %21866 = vmatpush3.bf16.msra.mxu0 %v21863_v33  ;;  %v15021_v33 = vld [vmem:[%s28995_s1 + $0xb80] sm:$0xff] }
 0x5bb   : > { %21868 = vmatprep.subr.bf16.mxu0 %v21867_v16  ;;  %v21879_v21 = vpack.c.bf16 %v15022_v54, %v15021_v33  ;;  %v7244_v33 = vld [vmem:[#allocation2 + $0x21] sm:$0xff] }
 0x5bc   : > { %v15025_v54 = vld [vmem:[%s28995_s1 + $0xba0] sm:$0xff] }
 0x5bd   : > { %19271 = vmatmul.mubr.f32.gmra.mrb[42].mxu0 %v26394_v15 }
 0x5be   : > { %19273 = vmatprep.mubr.f32.mxu0 %v26403_v59  ;;  %21870 = vmatpush3.bf16.msra.mxu0 %v21867_v16  ;;  %v26673_v16 = vld [vmem:[#allocation2 + $0x180] sm:$0xff] }
 0x5bf   : > { %21872 = vmatprep.subr.bf16.mxu0 %v21871_v28  ;;  %29267 = vst [vmem:[#allocation26_spill] sm:$0xff] %v26673_v16 }
 0x5c1   : > { %19274 = vmatmul.mubr.f32.gmra.mrb[44].mxu0 %v26406_v55 }
 0x5c2   : > { %19276 = vmatprep.mubr.f32.mxu0 %v26409_v51  ;;  %21874 = vmatpush3.bf16.msra.mxu0 %v21871_v28  ;;  %v15023_v28 = vld [vmem:[%s28995_s1 + $0xb90] sm:$0xff] }
 0x5c3   : > { %21876 = vmatprep.subr.bf16.mxu0 %v21875_v37 }
 0x5c5   : > { %19277 = vmatmul.mubr.f32.gmra.mrb[46].mxu0 %v26412_v47 }
 0x5c6   : > { %19279 = vmatprep.mubr.f32.mxu0 %v26415_v11  ;;  %21878 = vmatpush3.bf16.msra.mxu0 %v21875_v37  ;;  %v21883_v37 = vpack.c.bf16 %v15024_v2, %v15023_v28  ;;  %v15027_v28 = vld [vmem:[%s28995_s1 + $0xbb0] sm:$0xff]  ;;  %v15028_v2 = vld [vmem:[%s28995_s1 + $0xbb8] sm:$0xff] }
 0x5c7   : > { %21880 = vmatprep.subr.bf16.mxu0 %v21879_v21 }
 0x5c9   : > { %19280 = vmatmul.mubr.f32.gmra.mrb[48].mxu0 %v26418_v45 }
 0x5ca   : > { %19282 = vmatprep.mubr.f32.mxu0 %v26421_v13 }
 0x5cd   : > { %19283 = vmatmul.mubr.f32.gmra.mrb[50].mxu0 %v26424_v20 }
 0x5ce   : > { %19285 = vmatprep.mubr.f32.mxu0 %v26427_v8 }
 0x5d1   : > { %19286 = vmatmul.mubr.f32.gmra.mrb[52].mxu0 %v26430_v0 }
 0x5d2   : > { %19288 = vmatprep.mubr.f32.mxu0 %v26433_v43 }
 0x5d5   : > { %19289 = vmatmul.mubr.f32.gmra.mrb[54].mxu0 %v26436_v41 }
 0x5d6   : > { %19291 = vmatprep.mubr.f32.mxu0 %v26439_v52 }
 0x5d9   : > { %19292 = vmatmul.mubr.f32.gmra.mrb[56].mxu0 %v26442_v22 }
 0x5da   : > { %19294 = vmatprep.mubr.f32.mxu0 %v26445_v38 }
 0x5dd   : > { %19295 = vmatmul.mubr.f32.gmra.mrb[58].mxu0 %v26448_v63 }
 0x5de   : > { %19297 = vmatprep.mubr.f32.mxu0 %v26451_v12  ;;  %v26694_v12 = vld [vmem:[#allocation2 + $0x39] sm:$0xff] }
 0x5df   : > { %29269 = vst [vmem:[#allocation28_spill] sm:$0xff] %v26694_v12 }
 0x5e1   : > { %19298 = vmatmul.mubr.f32.gmra.mrb[60].mxu0 %v26454_v44  ;;  %v26691_v44 = vld [vmem:[#allocation2 + $0x31] sm:$0xff] }
 0x5e2   : > { %19300 = vmatprep.mubr.f32.mxu0 %v26673_v16  ;;  %v15026_v16 = vld [vmem:[%s28995_s1 + $0xba8] sm:$0xff] }
 0x5e5   : > { %19301 = vmatmul.mubr.f32.gmra.mrb[62].mxu0 %v26676_v36  ;;  %v21887_v36 = vpack.c.bf16 %v15026_v16, %v15025_v54  ;;  %v26706_v16 = vld [vmem:[#allocation2 + $0x51] sm:$0xff]  ;;  %v15030_v54 = vld [vmem:[%s28995_s1 + $0xbc8] sm:$0xff] }
 0x5e6   : > { %19335 = vmatprep.mubr.f32.mxu0 %v7243_v35  ;;  %v26703_v35 = vld [vmem:[#allocation2 + $0x49] sm:$0xff]  ;;  %29271 = vst [vmem:[#allocation30_spill] sm:$0xff] %v26706_v16 }
 0x5e7   : > { %29270 = vst [vmem:[#allocation29_spill] sm:$0xff] %v26703_v35 }
 0x5e9   : > { %19336 = vmatmul.mubr.f32.vlgmr.msra.gmra.mrb[32].mxu0 %v7244_v33  ;;  %v15029_v33 = vld [vmem:[%s28995_s1 + $0xbc0] sm:$0xff] }
 0x5ea   : > { %19338 = vmatprep.mubr.f32.mxu0 %v26691_v44  ;;  %21882 = vmatpush3.bf16.msra.mxu0 %v21879_v21  ;;  %v21891_v21 = vpack.c.bf16 %v15028_v2, %v15027_v28  ;;  %v26718_v28 = vld [vmem:[#allocation2 + $0x69] sm:$0xff] }
 0x5eb   : > { %21884 = vmatprep.subr.bf16.mxu0 %v21883_v37  ;;  %29273 = vst [vmem:[#allocation32_spill] sm:$0xff] %v26718_v28  ;;  %v15031_v2 = vld [vmem:[%s28995_s1 + $0xbd0] sm:$0xff] }
 0x5ed   : > { %19339 = vmatmul.mubr.f32.gmra.mrb[34].mxu0 %v26694_v12  ;;  %v26715_v12 = vld [vmem:[#allocation2 + $0x61] sm:$0xff] }
 0x5ee   : > { %19341 = vmatprep.mubr.f32.mxu0 %v26703_v35  ;;  %21886 = vmatpush3.bf16.msra.mxu0 %v21883_v37  ;;  %29272 = vst [vmem:[#allocation31_spill] sm:$0xff] %v26715_v12  ;;  %v21895_v37 = vpack.c.bf16 %v15030_v54, %v15029_v33  ;;  %v15032_v35 = vld [vmem:[%s28995_s1 + $0xbd8] sm:$0xff]  ;;  %v26730_v33 = vld [vmem:[#allocation2 + $0x81] sm:$0xff] }
 0x5ef   : > { %21888 = vmatprep.subr.bf16.mxu0 %v21887_v36  ;;  %29275 = vst [vmem:[#allocation34_spill] sm:$0xff] %v26730_v33  ;;  %v15033_v54 = vld [vmem:[%s28995_s1 + $0xbe0] sm:$0xff] }
 0x5f1   : > { %19342 = vmatmul.mubr.f32.gmra.mrb[36].mxu0 %v26706_v16  ;;  %v26727_v16 = vld [vmem:[#allocation2 + $0x79] sm:$0xff] }
 0x5f2   : > { %19344 = vmatprep.mubr.f32.mxu0 %v26715_v12  ;;  %21890 = vmatpush3.bf16.msra.mxu0 %v21887_v36  ;;  %29274 = vst [vmem:[#allocation33_spill] sm:$0xff] %v26727_v16  ;;  %v21899_v36 = vpack.c.bf16 %v15032_v35, %v15031_v2  ;;  %v15034_v12 = vld [vmem:[%s28995_s1 + $0xbe8] sm:$0xff]  ;;  %v26742_v35 = vld [vmem:[#allocation2 + $0x99] sm:$0xff]  ;;  %v15035_v2 = vld [vmem:[%s28995_s1 + $0xbf0] sm:$0xff] }
 0x5f3   : > { %21892 = vmatprep.subr.bf16.mxu0 %v21891_v21  ;;  %29277 = vst [vmem:[#allocation36_spill] sm:$0xff] %v26742_v35 }
 0x5f5   : > { %19345 = vmatmul.mubr.f32.gmra.mrb[38].mxu0 %v26718_v28  ;;  %v26739_v28 = vld [vmem:[#allocation2 + $0x91] sm:$0xff] }
 0x5f6   : > { %19347 = vmatprep.mubr.f32.mxu0 %v26727_v16  ;;  %21894 = vmatpush3.bf16.msra.mxu0 %v21891_v21  ;;  %29276 = vst [vmem:[#allocation35_spill] sm:$0xff] %v26739_v28  ;;  %v21903_v21 = vpack.c.bf16 %v15034_v12, %v15033_v54  ;;  %v15036_v16 = vld [vmem:[%s28995_s1 + $0xbf8] sm:$0xff]  ;;  %v15037_v54 = vld [vmem:[%s28995_s1 + $0xc00] sm:$0xff] }
 0x5f7   : > { %21896 = vmatprep.subr.bf16.mxu0 %v21895_v37  ;;  %v26754_v12 = vld [vmem:[#allocation2 + $0xb1] sm:$0xff] }
 0x5f9   : > { %19348 = vmatmul.mubr.f32.gmra.mrb[40].mxu0 %v26730_v33  ;;  %v26751_v33 = vld [vmem:[#allocation2 + $0xa9] sm:$0xff] }
 0x5fa   : > { %19350 = vmatprep.mubr.f32.mxu0 %v26739_v28  ;;  %21898 = vmatpush3.bf16.msra.mxu0 %v21895_v37  ;;  %v21907_v37 = vpack.c.bf16 %v15036_v16, %v15035_v2  ;;  %v15038_v28 = vld [vmem:[%s28995_s1 + $0xc08] sm:$0xff] }
 0x5fb   : > { %21900 = vmatprep.subr.bf16.mxu0 %v21899_v36  ;;  %v26766_v16 = vld [vmem:[#allocation2 + $0xc9] sm:$0xff] }
 0x5fd   : > { %19351 = vmatmul.mubr.f32.gmra.mrb[42].mxu0 %v26742_v35  ;;  %v26763_v35 = vld [vmem:[#allocation2 + $0xc1] sm:$0xff] }
 0x5fe   : > { %19353 = vmatprep.mubr.f32.mxu0 %v26751_v33  ;;  %21902 = vmatpush3.bf16.msra.mxu0 %v21899_v36  ;;  %v21911_v36 = vpack.c.bf16 %v15038_v28, %v15037_v54  ;;  %v15052_v28 = vld [vmem:[%s28995_s1 + $0xc78] sm:$0xff]  ;;  %v15054_v54 = vld [vmem:[%s28995_s1 + $0xc88] sm:$0xff] }
 0x5ff   : > { %21904 = vmatprep.subr.bf16.mxu0 %v21903_v21 }
 0x601   : > { %19354 = vmatmul.mubr.f32.gmra.mrb[44].mxu0 %v26754_v12 }
 0x602   : > { %19356 = vmatprep.mubr.f32.mxu0 %v26763_v35  ;;  %21906 = vmatpush3.bf16.msra.mxu0 %v21903_v21  ;;  %v29283_v21 = vld [vmem:[#allocation7_spill] sm:$0xff] }
 0x603   : > { %21908 = vmatprep.subr.bf16.mxu0 %v21907_v37 }
 0x605   : > { %19357 = vmatmul.mubr.f32.gmra.mrb[46].mxu0 %v26766_v16 }
 0x606   : > { %19359 = vmatprep.mubr.f32.mxu0 %v26225_v1  ;;  %21910 = vmatpush3.bf16.msra.mxu0 %v21907_v37  ;;  %v15039_v1 = vld [vmem:[%s28995_s1 + $0xc10] sm:$0xff]  ;;  %v15053_v37 = vld [vmem:[%s28995_s1 + $0xc80] sm:$0xff] }
 0x607   : > { %21912 = vmatprep.subr.bf16.mxu0 %v21911_v36 }
 0x609   : > { %19360 = vmatmul.mubr.f32.gmra.mrb[48].mxu0 %v26222_v40  ;;  %v29278_v40 = vmax.f32 %v26306_v27, 0.0  ;;  %v15048_v27 = vld [vmem:[%s28995_s1 + $0xc58] sm:$0xff] }
 0x60a   : > { %19362 = vmatprep.mubr.f32.mxu0 %v26237_v48  ;;  %v29279_v48 = vmax.f32 %v26302_v42, 0.0  ;;  %v15047_v42 = vld [vmem:[%s28995_s1 + $0xc50] sm:$0xff] }
 0x60d   : > { %19363 = vmatmul.mubr.f32.gmra.mrb[50].mxu0 %v26233_v50  ;;  %v15040_v50 = vld [vmem:[%s28995_s1 + $0xc18] sm:$0xff] }
 0x60e   : > { %19365 = vmatprep.mubr.f32.mxu0 %v26249_v7  ;;  %v15041_v7 = vld [vmem:[%s28995_s1 + $0xc20] sm:$0xff] }
 0x611   : > { %19366 = vmatmul.mubr.f32.gmra.mrb[52].mxu0 %v26245_v46  ;;  %v21915_v46 = vpack.c.bf16 %v15040_v50, %v15039_v1  ;;  %v29285_v1 = vld [vmem:[#allocation18_spill] sm:$0xff]  ;;  %v29287_v50 = vld [vmem:[#allocation8_spill] sm:$0xff] }
 0x612   : > { %19368 = vmatprep.mubr.f32.mxu0 %v26261_v19 }
 0x615   : > { %19369 = vmatmul.mubr.f32.gmra.mrb[54].mxu0 %v26257_v61  ;;  %v15042_v61 = vld [vmem:[%s28995_s1 + $0xc28] sm:$0xff] }
 0x616   : > { %19371 = vmatprep.mubr.f32.mxu0 %v26273_v17  ;;  %v21919_v19 = vpack.c.bf16 %v15042_v61, %v15041_v7  ;;  %v15044_v17 = vld [vmem:[%s28995_s1 + $0xc38] sm:$0xff]  ;;  %v29290_v7 = vld [vmem:[#allocation20_spill] sm:$0xff] }
 0x617   : > { %v29292_v61 = vld [vmem:[#allocation12_spill] sm:$0xff] }
 0x619   : > { %19372 = vmatmul.mubr.f32.gmra.mrb[56].mxu0 %v26269_v6  ;;  %v15043_v6 = vld [vmem:[%s28995_s1 + $0xc30] sm:$0xff] }
 0x61a   : > { %19374 = vmatprep.mubr.f32.mxu0 %v26285_v10  ;;  %v15045_v10 = vld [vmem:[%s28995_s1 + $0xc40] sm:$0xff] }
 0x61d   : > { %19375 = vmatmul.mubr.f32.gmra.mrb[58].mxu0 %v26281_v25  ;;  %v21923_v25 = vpack.c.bf16 %v15044_v17, %v15043_v6  ;;  %v29294_v6 = vld [vmem:[#allocation21_spill] sm:$0xff]  ;;  %v29295_v17 = vld [vmem:[#allocation22_spill] sm:$0xff] }
 0x61e   : > { %19377 = vmatprep.mubr.f32.mxu0 %v26297_v3 }
 0x621   : > { %19378 = vmatmul.mubr.f32.gmra.mrb[60].mxu0 %v26293_v5  ;;  %v15046_v5 = vld [vmem:[%s28995_s1 + $0xc48] sm:$0xff] }
 0x622   : > { %19380 = vmatprep.mubr.f32.mxu0 %v29278_v40  ;;  %v21927_v3 = vpack.c.bf16 %v15046_v5, %v15045_v10  ;;  %v21943_v40 = vpack.c.bf16 %v15054_v54, %v15053_v37  ;;  %v29297_v10 = vld [vmem:[#allocation24_spill] sm:$0xff]  ;;  %v29298_v5 = vld [vmem:[#allocation25_spill] sm:$0xff] }
 0x623   : > { %v15074_v37 = vld [vmem:[%s28995_s1 + $0xd28] sm:$0xff] }
 0x624   : > { %v15108_v54 = vld [vmem:[%s28995_s1 + $0xe28] sm:$0xff] }
 0x625   : > { %19381 = vmatmul.mubr.f32.gmra.mrb[62].mxu0 %v29279_v48  ;;  %v29288_v48 = vld [vmem:[#allocation19_spill] sm:$0xff] }
 0x626   : > { %19415 = vmatprep.mubr.f32.mxu0 %v26469_v49  ;;  %v29280_v49 = vld [vmem:[#allocation6_spill] sm:$0xff] }
 0x629   : > { %19416 = vmatmul.mubr.f32.vlgmr.msra.gmra.mrb[32].mxu0 %v26472_v30  ;;  %v21931_v30 = vpack.c.bf16 %v15048_v27, %v15047_v42  ;;  %v26868_v42 = vld [vmem:[#allocation2 + $0x18a] sm:$0xff] }
 0x62a   : > { %19418 = vmatprep.mubr.f32.mxu0 %v26481_v62  ;;  %21914 = vmatpush3.bf16.msra.mxu0 %v21911_v36  ;;  %v15049_v62 = vld [vmem:[%s28995_s1 + $0xc60] sm:$0xff]  ;;  %v29284_v36 = vld [vmem:[#allocation17_spill] sm:$0xff] }
 0x62b   : > { %21916 = vmatprep.subr.bf16.mxu0 %v21915_v46  ;;  %v15055_v27 = vld [vmem:[%s28995_s1 + $0xc90] sm:$0xff] }
 0x62d   : > { %19419 = vmatmul.mubr.f32.gmra.mrb[34].mxu0 %v26484_v23  ;;  %v15050_v23 = vld [vmem:[%s28995_s1 + $0xc68] sm:$0xff] }
 0x62e   : > { %19421 = vmatprep.mubr.f32.mxu0 %v26493_v4  ;;  %21918 = vmatpush3.bf16.msra.mxu0 %v21915_v46  ;;  %v29281_v4 = vld [vmem:[#allocation15_spill] sm:$0xff] }
 0x62f   : > { %21920 = vmatprep.subr.bf16.mxu0 %v21919_v19  ;;  %v29289_v46 = vld [vmem:[#allocation11_spill] sm:$0xff] }
 0x631   : > { %19422 = vmatmul.mubr.f32.gmra.mrb[36].mxu0 %v26496_v29  ;;  %v29282_v29 = vld [vmem:[#allocation16_spill] sm:$0xff] }
 0x632   : > { %19424 = vmatprep.mubr.f32.mxu0 %v26505_v60  ;;  %21922 = vmatpush3.bf16.msra.mxu0 %v21919_v19  ;;  %v21935_v60 = vpack.c.bf16 %v15050_v23, %v15049_v62  ;;  %v29293_v19 = vld [vmem:[#allocation5_spill] sm:$0xff]  ;;  %v15058_v62 = vld [vmem:[%s28995_s1 + $0xca8] sm:$0xff] }
 0x633   : > { %21924 = vmatprep.subr.bf16.mxu0 %v21923_v25 }
 0x635   : > { %19425 = vmatmul.mubr.f32.gmra.mrb[38].mxu0 %v26508_v24  ;;  %v15051_v24 = vld [vmem:[%s28995_s1 + $0xc70] sm:$0xff] }
 0x636   : > { %19427 = vmatprep.mubr.f32.mxu0 %v29280_v49  ;;  %21926 = vmatpush3.bf16.msra.mxu0 %v21923_v25  ;;  %v21939_v2 = vpack.c.bf16 %v15052_v28, %v15051_v24  ;;  %v29296_v25 = vld [vmem:[#allocation23_spill] sm:$0xff]  ;;  %v15056_v49 = vld [vmem:[%s28995_s1 + $0xc98] sm:$0xff]  ;;  %v15066_v24 = vld [vmem:[%s28995_s1 + $0xce8] sm:$0xff] }
 0x637   : > { %21928 = vmatprep.subr.bf16.mxu0 %v21927_v3  ;;  %v15068_v28 = vld [vmem:[%s28995_s1 + $0xcf8] sm:$0xff] }
 0x639   : > { %19428 = vmatmul.mubr.f32.gmra.mrb[40].mxu0 %v29281_v4  ;;  %v15060_v4 = vld [vmem:[%s28995_s1 + $0xcb8] sm:$0xff] }
 0x63a   : > { %19430 = vmatprep.mubr.f32.mxu0 %v29282_v29  ;;  %21930 = vmatpush3.bf16.msra.mxu0 %v21927_v3  ;;  %v26865_v3 = vld [vmem:[#allocation2 + $0x182] sm:$0xff] }
 0x63b   : > { %21932 = vmatprep.subr.bf16.mxu0 %v21931_v30  ;;  %v15062_v29 = vld [vmem:[%s28995_s1 + $0xcc8] sm:$0xff] }
 0x63d   : > { %19431 = vmatmul.mubr.f32.gmra.mrb[42].mxu0 %v29283_v21  ;;  %v15070_v21 = vld [vmem:[%s28995_s1 + $0xd08] sm:$0xff] }
 0x63e   : > { %19433 = vmatprep.mubr.f32.mxu0 %v26541_v31  ;;  %21934 = vmatpush3.bf16.msra.mxu0 %v21931_v30  ;;  %v29286_v31 = vld [vmem:[#allocation10_spill] sm:$0xff]  ;;  %v21947_v30 = vpack.c.bf16 %v15056_v49, %v15055_v27  ;;  %v29307_v27 = vld [vmem:[#allocation32_spill] sm:$0xff]  ;;  %v29308_v49 = vld [vmem:[#allocation33_spill] sm:$0xff] }
 0x63f   : > { %21936 = vmatprep.subr.bf16.mxu0 %v21935_v60 }
 0x641   : > { %19434 = vmatmul.mubr.f32.gmra.mrb[44].mxu0 %v26544_v39  ;;  %v29291_v39 = vld [vmem:[#allocation9_spill] sm:$0xff] }
 0x642   : > { %19436 = vmatprep.mubr.f32.mxu0 %v29284_v36  ;;  %21938 = vmatpush3.bf16.msra.mxu0 %v21935_v60  ;;  %v15064_v60 = vld [vmem:[%s28995_s1 + $0xcd8] sm:$0xff]  ;;  %v29303_v36 = vld [vmem:[#allocation28_spill] sm:$0xff] }
 0x643   : > { %21940 = vmatprep.subr.bf16.mxu0 %v21939_v2 }
 0x645   : > { %19437 = vmatmul.mubr.f32.gmra.mrb[46].mxu0 %v29285_v1 }
 0x646   : > { %19439 = vmatprep.mubr.f32.mxu0 %v29286_v31  ;;  %21942 = vmatpush3.bf16.msra.mxu0 %v21939_v2  ;;  %v15075_v31 = vld [vmem:[%s28995_s1 + $0xd30] sm:$0xff] }
 0x647   : > { %21944 = vmatprep.subr.bf16.mxu0 %v21943_v40 }
 0x649   : > { %19440 = vmatmul.mubr.f32.gmra.mrb[48].mxu0 %v29287_v50 }
 0x64a   : > { %19442 = vmatprep.mubr.f32.mxu0 %v29288_v48  ;;  %v15076_v48 = vld [vmem:[%s28995_s1 + $0xd38] sm:$0xff] }
 0x64d   : > { %19443 = vmatmul.mubr.f32.gmra.mrb[50].mxu0 %v29289_v46  ;;  %v15109_v46 = vld [vmem:[%s28995_s1 + $0xe30] sm:$0xff] }
 0x64e   : > { %19445 = vmatprep.mubr.f32.mxu0 %v29290_v7  ;;  %v15110_v7 = vld [vmem:[%s28995_s1 + $0xe38] sm:$0xff] }
 0x651   : > { %19446 = vmatmul.mubr.f32.gmra.mrb[52].mxu0 %v29291_v39  ;;  %v29305_v39 = vld [vmem:[#allocation30_spill] sm:$0xff] }
 0x652   : > { %19448 = vmatprep.mubr.f32.mxu0 %v29292_v61  ;;  %v29306_v61 = vld [vmem:[#allocation31_spill] sm:$0xff] }
 0x655   : > { %19449 = vmatmul.mubr.f32.gmra.mrb[54].mxu0 %v29293_v19  ;;  %v21987_v19 = vpack.c.bf16 %v15076_v48, %v15075_v31  ;;  %v8475_v31 = vld [vmem:[#allocation2 + $0x92] sm:$0xff]  ;;  %v8477_v48 = vld [vmem:[#allocation2 + $0xaa] sm:$0xff] }
 0x656   : > { %19451 = vmatprep.mubr.f32.mxu0 %v29294_v6  ;;  %v15077_v6 = vld [vmem:[%s28995_s1 + $0xd40] sm:$0xff] }
 0x659   : > { %19452 = vmatmul.mubr.f32.gmra.mrb[56].mxu0 %v29295_v17  ;;  %v22019_v17 = vpack.c.bf16 %v15110_v7, %v15109_v46  ;;  %v8478_v46 = vld [vmem:[#allocation2 + $0xb2] sm:$0xff]  ;;  %v8479_v7 = vld [vmem:[#allocation2 + $0xc2] sm:$0xff] }
 0x65a   : > { %19454 = vmatprep.mubr.f32.mxu0 %v29296_v25  ;;  %v15078_v25 = vld [vmem:[%s28995_s1 + $0xd48] sm:$0xff] }
 0x65d   : > { %19455 = vmatmul.mubr.f32.gmra.mrb[58].mxu0 %v29297_v10  ;;  %v15111_v10 = vld [vmem:[%s28995_s1 + $0xe40] sm:$0xff] }
 0x65e   : > { %19457 = vmatprep.mubr.f32.mxu0 %v29298_v5  ;;  %v15112_v5 = vld [vmem:[%s28995_s1 + $0xe48] sm:$0xff] }
 0x661   : > { %19458 = vmatmul.mubr.f32.gmra.mrb[60].mxu0 %v26592_v34  ;;  %v15057_v34 = vld [vmem:[%s28995_s1 + $0xca0] sm:$0xff] }
 0x662   : > { %19460 = vmatprep.mubr.f32.mxu0 %v26865_v3  ;;  %v21951_v23 = vpack.c.bf16 %v15058_v62, %v15057_v34  ;;  %v15079_v34 = vld [vmem:[%s28995_s1 + $0xd50] sm:$0xff]  ;;  %v22023_v62 = vpack.c.bf16 %v15112_v5, %v15111_v10  ;;  %v8487_v5 = vld [vmem:[#allocation2 + $0x122] sm:$0xff] }
 0x663   : > { %v8486_v10 = vld [vmem:[#allocation2 + $0x112] sm:$0xff] }
 0x665   : > { %19461 = vmatmul.mubr.f32.gmra.mrb[62].mxu0 %v26868_v42 }
 0x666   : > { %19495 = vmatprep.mubr.f32.mxu0 %v26343_v9  ;;  %v15059_v9 = vld [vmem:[%s28995_s1 + $0xcb0] sm:$0xff] }
 0x669   : > { %19496 = vmatmul.mubr.f32.vlgmr.msra.gmra.mrb[32].mxu0 %v26346_v32  ;;  %v21955_v32 = vpack.c.bf16 %v15060_v4, %v15059_v9  ;;  %v15113_v9 = vld [vmem:[%s28995_s1 + $0xe50] sm:$0xff]  ;;  %v15114_v4 = vld [vmem:[%s28995_s1 + $0xe58] sm:$0xff] }
 0x66a   : > { %19498 = vmatprep.mubr.f32.mxu0 %v26355_v26  ;;  %21946 = vmatpush3.bf16.msra.mxu0 %v21943_v40  ;;  %v15061_v26 = vld [vmem:[%s28995_s1 + $0xcc0] sm:$0xff]  ;;  %v29304_v40 = vld [vmem:[#allocation29_spill] sm:$0xff] }
 0x66b   : > { %21948 = vmatprep.subr.bf16.mxu0 %v21947_v30 }
 0x66d   : > { %19499 = vmatmul.mubr.f32.gmra.mrb[34].mxu0 %v26358_v18  ;;  %v21959_v18 = vpack.c.bf16 %v15062_v29, %v15061_v26  ;;  %v29310_v26 = vld [vmem:[#allocation35_spill] sm:$0xff] }
 0x66e   : > { %19501 = vmatprep.mubr.f32.mxu0 %v26367_v58  ;;  %21950 = vmatpush3.bf16.msra.mxu0 %v21947_v30  ;;  %v15063_v58 = vld [vmem:[%s28995_s1 + $0xcd0] sm:$0xff]  ;;  %v21991_v30 = vpack.c.bf16 %v15078_v25, %v15077_v6 }
 0x66f   : > { %21952 = vmatprep.subr.bf16.mxu0 %v21951_v23  ;;  %v8483_v6 = vld [vmem:[#allocation2 + $0xf2] sm:$0xff]  ;;  %v8485_v25 = vld [vmem:[#allocation2 + $0x10a] sm:$0xff] }
 0x671   : > { %19502 = vmatmul.mubr.f32.gmra.mrb[36].mxu0 %v26370_v53  ;;  %v21963_v53 = vpack.c.bf16 %v15064_v60, %v15063_v58  ;;  %v22027_v58 = vpack.c.bf16 %v15114_v4, %v15113_v9  ;;  %v15082_v60 = vld [vmem:[%s28995_s1 + $0xd68] sm:$0xff]  ;;  %v8494_v9 = vld [vmem:[#allocation2 + $0x172] sm:$0xff]  ;;  %v8497_v4 = vld [vmem:[#allocation2 + $0x19a] sm:$0xff] }
 0x672   : > { %19504 = vmatprep.mubr.f32.mxu0 %v26379_v56  ;;  %21954 = vmatpush3.bf16.msra.mxu0 %v21951_v23  ;;  %v15065_v56 = vld [vmem:[%s28995_s1 + $0xce0] sm:$0xff]  ;;  %v15080_v23 = vld [vmem:[%s28995_s1 + $0xd58] sm:$0xff] }
 0x673   : > { %21956 = vmatprep.subr.bf16.mxu0 %v21955_v32  ;;  %v21995_v29 = vpack.c.bf16 %v15080_v23, %v15079_v34  ;;  %v8491_v34 = vld [vmem:[#allocation2 + $0x152] sm:$0xff]  ;;  %v8493_v23 = vld [vmem:[#allocation2 + $0x16a] sm:$0xff] }
 0x675   : > { %19505 = vmatmul.mubr.f32.gmra.mrb[38].mxu0 %v26382_v57  ;;  %v21967_v57 = vpack.c.bf16 %v15066_v24, %v15065_v56  ;;  %v15116_v56 = vld [vmem:[%s28995_s1 + $0xe68] sm:$0xff] }
 0x676   : > { %19507 = vmatprep.mubr.f32.mxu0 %v26391_v14  ;;  %21958 = vmatpush3.bf16.msra.mxu0 %v21955_v32  ;;  %v15067_v14 = vld [vmem:[%s28995_s1 + $0xcf0] sm:$0xff]  ;;  %v29309_v32 = vld [vmem:[#allocation34_spill] sm:$0xff]  ;;  %v29311_v24 = vld [vmem:[#allocation36_spill] sm:$0xff] }
 0x677   : > { %21960 = vmatprep.subr.bf16.mxu0 %v21959_v18 }
 0x679   : > { %19508 = vmatmul.mubr.f32.gmra.mrb[40].mxu0 %v26394_v15  ;;  %v21971_v15 = vpack.c.bf16 %v15068_v28, %v15067_v14  ;;  %v15083_v28 = vld [vmem:[%s28995_s1 + $0xd70] sm:$0xff] }
 0x67a   : > { %19510 = vmatprep.mubr.f32.mxu0 %v26403_v59  ;;  %21962 = vmatpush3.bf16.msra.mxu0 %v21959_v18  ;;  %v15069_v59 = vld [vmem:[%s28995_s1 + $0xd00] sm:$0xff] }
 0x67b   : > { %21964 = vmatprep.subr.bf16.mxu0 %v21963_v53  ;;  %v15081_v18 = vld [vmem:[%s28995_s1 + $0xd60] sm:$0xff] }
 0x67d   : > { %19511 = vmatmul.mubr.f32.gmra.mrb[42].mxu0 %v26406_v55  ;;  %v21975_v55 = vpack.c.bf16 %v15070_v21, %v15069_v59  ;;  %v8175_v59 = vld [vmem:[#allocation2 + $0xd9] sm:$0xff]  ;;  %v8176_v21 = vld [vmem:[#allocation2 + $0xe1] sm:$0xff] }
 0x67e   : > { %19513 = vmatprep.mubr.f32.mxu0 %v26409_v51  ;;  %21966 = vmatpush3.bf16.msra.mxu0 %v21963_v53  ;;  %v29299_v51 = vld [vmem:[#allocation13_spill] sm:$0xff]  ;;  %v15115_v53 = vld [vmem:[%s28995_s1 + $0xe60] sm:$0xff] }
 0x67f   : > { %21968 = vmatprep.subr.bf16.mxu0 %v21967_v57  ;;  %v22031_v14 = vpack.c.bf16 %v15116_v56, %v15115_v53  ;;  %v15089_v56 = vld [vmem:[%s28995_s1 + $0xd90] sm:$0xff] }
 0x681   : > { %19514 = vmatmul.mubr.f32.gmra.mrb[44].mxu0 %v26412_v47  ;;  %v29300_v47 = vld [vmem:[#allocation14_spill] sm:$0xff] }
 0x682   : > { %19516 = vmatprep.mubr.f32.mxu0 %v26415_v11  ;;  %21970 = vmatpush3.bf16.msra.mxu0 %v21967_v57  ;;  %v29301_v11 = vld [vmem:[#allocation26_spill] sm:$0xff]  ;;  %v21999_v57 = vpack.c.bf16 %v15082_v60, %v15081_v18  ;;  %v15088_v60 = vld [vmem:[%s28995_s1 + $0xd88] sm:$0xff] }
 0x683   : > { %21972 = vmatprep.subr.bf16.mxu0 %v21971_v15 }
 0x685   : > { %19517 = vmatmul.mubr.f32.gmra.mrb[46].mxu0 %v26418_v45  ;;  %v29302_v45 = vld [vmem:[#allocation27_spill] sm:$0xff] }
 0x686   : > { %19519 = vmatprep.mubr.f32.mxu0 %v26421_v13  ;;  %21974 = vmatpush3.bf16.msra.mxu0 %v21971_v15  ;;  %v26949_v13 = vld [vmem:[#allocation2] sm:$0xff]  ;;  %v15084_v15 = vld [vmem:[%s28995_s1 + $0xd78] sm:$0xff] }
 0x687   : > { %21976 = vmatprep.subr.bf16.mxu0 %v21975_v55 }
 0x689   : > { %19520 = vmatmul.mubr.f32.gmra.mrb[48].mxu0 %v26424_v20  ;;  %v15071_v20 = vld [vmem:[%s28995_s1 + $0xd10] sm:$0xff] }
 0x68a   : > { %19522 = vmatprep.mubr.f32.mxu0 %v26427_v8  ;;  %v15072_v8 = vld [vmem:[%s28995_s1 + $0xd18] sm:$0xff] }
 0x68d   : > { %19523 = vmatmul.mubr.f32.gmra.mrb[50].mxu0 %v26430_v0  ;;  %v15103_v0 = vld [vmem:[%s28995_s1 + $0xe00] sm:$0xff] }
 0x68e   : > { %19525 = vmatprep.mubr.f32.mxu0 %v26433_v43  ;;  %v15104_v43 = vld [vmem:[%s28995_s1 + $0xe08] sm:$0xff] }
 0x691   : > { %19526 = vmatmul.mubr.f32.gmra.mrb[52].mxu0 %v26436_v41  ;;  %v15105_v41 = vld [vmem:[%s28995_s1 + $0xe10] sm:$0xff] }
 0x692   : > { %19528 = vmatprep.mubr.f32.mxu0 %v26439_v52  ;;  %v22007_v52 = vpack.c.bf16 %v15104_v43, %v15103_v0  ;;  %v8187_v0 = vld [vmem:[#allocation2 + $0x169] sm:$0xff]  ;;  %v8188_v43 = vld [vmem:[#allocation2 + $0x171] sm:$0xff] }
 0x694   : > { %22008 = vmatprep.subr.bf16.mxu1 %v22007_v52 }
 0x695   : > { %19529 = vmatmul.mubr.f32.gmra.mrb[54].mxu0 %v26442_v22  ;;  %v15106_v22 = vld [vmem:[%s28995_s1 + $0xe18] sm:$0xff]  ;;  %22010 = vmatpush3.bf16.msra.mxu1 %v22007_v52 }
 0x696   : > { %19531 = vmatprep.mubr.f32.mxu0 %v26445_v38  ;;  %v21979_v38 = vpack.c.bf16 %v15072_v8, %v15071_v20  ;;  %v22011_v2 = vpack.c.bf16 %v15106_v22, %v15105_v41  ;;  %v8185_v20 = vld [vmem:[#allocation2 + $0x151] sm:$0xff]  ;;  %v8186_v8 = vld [vmem:[#allocation2 + $0x159] sm:$0xff]  ;;  %v8189_v41 = vld [vmem:[#allocation2 + $0x181] sm:$0xff] }
 0x697   : > { %v8191_v52 = vld [vmem:[#allocation2 + $0x199] sm:$0xff]  ;;  %v8190_v22 = vld [vmem:[#allocation2 + $0x189] sm:$0xff] }
 0x698   : > { %22012 = vmatprep.subr.bf16.mxu1 %v22011_v2 }
 0x699   : > { %19532 = vmatmul.mubr.f32.gmra.mrb[56].mxu0 %v26448_v63  ;;  %v15073_v63 = vld [vmem:[%s28995_s1 + $0xd20] sm:$0xff]  ;;  %22014 = vmatpush3.bf16.msra.mxu1 %v22011_v2 }
 0x69a   : > { %19534 = vmatprep.mubr.f32.mxu0 %v29299_v51  ;;  %v21983_v1 = vpack.c.bf16 %v15074_v37, %v15073_v63  ;;  %v8179_v51 = vld [vmem:[#allocation2 + $0x109] sm:$0xff]  ;;  %v8467_v63 = vld [vmem:[#allocation2 + $0x32] sm:$0xff]  ;;  %v8468_v2 = vld [vmem:[#allocation2 + $0x3a] sm:$0xff] }
 0x69b   : > { %v8469_v37 = vld [vmem:[#allocation2 + $0x4a] sm:$0xff] }
 0x69d   : > { %19535 = vmatmul.mubr.f32.gmra.mrb[58].mxu0 %v29300_v47  ;;  %v8181_v47 = vld [vmem:[#allocation2 + $0x121] sm:$0xff] }
 0x69e   : > { %19537 = vmatprep.mubr.f32.mxu0 %v29301_v11  ;;  %v8182_v11 = vld [vmem:[#allocation2 + $0x129] sm:$0xff] }
 0x6a1   : > { %19538 = vmatmul.mubr.f32.gmra.mrb[60].mxu0 %v29302_v45  ;;  %v8184_v45 = vld [vmem:[#allocation2 + $0x141] sm:$0xff] }
 0x6a2   : > { %19540 = vmatprep.mubr.f32.mxu0 %v26949_v13 }
 0x6a5   : > { %19541 = vmatmul.mubr.f32.gmra.mrb[62].mxu0 %v26949_v13 }
 0x6a6   : > { %19575 = vmatprep.mubr.f32.mxu0 %v26691_v44  ;;  %v15107_v44 = vld [vmem:[%s28995_s1 + $0xe20] sm:$0xff] }
 0x6a7   : > { %v22015_v50 = vpack.c.bf16 %v15108_v54, %v15107_v44  ;;  %v8470_v44 = vld [vmem:[#allocation2 + $0x52] sm:$0xff]  ;;  %v8471_v54 = vld [vmem:[#allocation2 + $0x62] sm:$0xff] }
 0x6a9   : > { %19576 = vmatmul.mubr.f32.vlgmr.msra.gmra.mrb[32].mxu0 %v29303_v36  ;;  %22016 = vmatprep.subr.bf16.mxu1 %v22015_v50  ;;  %v8472_v36 = vld [vmem:[#allocation2 + $0x6a] sm:$0xff] }
 0x6aa   : > { %19578 = vmatprep.mubr.f32.mxu0 %v29304_v40  ;;  %21978 = vmatpush3.bf16.msra.mxu0 %v21975_v55  ;;  %v8177_v55 = vld [vmem:[#allocation2 + $0xf1] sm:$0xff]  ;;  %v8473_v40 = vld [vmem:[#allocation2 + $0x7a] sm:$0xff] }
 0x6ab   : > { %21980 = vmatprep.subr.bf16.mxu0 %v21979_v38  ;;  %22018 = vmatpush3.bf16.msra.mxu1 %v22015_v50  ;;  %v8476_v50 = vld [vmem:[#allocation2 + $0x9a] sm:$0xff] }
 0x6ac   : > { %22020 = vmatprep.subr.bf16.mxu1 %v22019_v17 }
 0x6ad   : > { %19579 = vmatmul.mubr.f32.gmra.mrb[34].mxu0 %v29305_v39  ;;  %v8480_v39 = vld [vmem:[#allocation2 + $0xca] sm:$0xff] }
 0x6ae   : > { %19581 = vmatprep.mubr.f32.mxu0 %v29306_v61  ;;  %21982 = vmatpush3.bf16.msra.mxu0 %v21979_v38  ;;  %v8192_v38 = vld [vmem:[#allocation2 + $0x1a1] sm:$0xff] }
 0x6af   : > { %21984 = vmatprep.subr.bf16.mxu0 %v21983_v1  ;;  %22022 = vmatpush3.bf16.msra.mxu1 %v22019_v17  ;;  %v8481_v61 = vld [vmem:[#allocation2 + $0xda] sm:$0xff] }
 0x6b0   : > { %22024 = vmatprep.subr.bf16.mxu1 %v22023_v62  ;;  %v8484_v17 = vld [vmem:[#allocation2 + $0xfa] sm:$0xff] }
 0x6b1   : > { %19582 = vmatmul.mubr.f32.gmra.mrb[36].mxu0 %v29307_v27  ;;  %v8488_v27 = vld [vmem:[#allocation2 + $0x12a] sm:$0xff] }
 0x6b2   : > { %19584 = vmatprep.mubr.f32.mxu0 %v29308_v49  ;;  %21986 = vmatpush3.bf16.msra.mxu0 %v21983_v1  ;;  %v8474_v1 = vld [vmem:[#allocation2 + $0x82] sm:$0xff]  ;;  %v8489_v49 = vld [vmem:[#allocation2 + $0x13a] sm:$0xff] }
 0x6b3   : > { %21988 = vmatprep.subr.bf16.mxu0 %v21987_v19  ;;  %22026 = vmatpush3.bf16.msra.mxu1 %v22023_v62  ;;  %v8492_v62 = vld [vmem:[#allocation2 + $0x15a] sm:$0xff] }
 0x6b4   : > { %22028 = vmatprep.subr.bf16.mxu1 %v22027_v58 }
 0x6b5   : > { %19585 = vmatmul.mubr.f32.gmra.mrb[38].mxu0 %v29309_v32  ;;  %v8498_v32 = vld [vmem:[#allocation2 + $0x1a2] sm:$0xff] }
 0x6b6   : > { %19587 = vmatprep.mubr.f32.mxu0 %v29310_v26  ;;  %21990 = vmatpush3.bf16.msra.mxu0 %v21987_v19  ;;  %v8482_v19 = vld [vmem:[#allocation2 + $0xe2] sm:$0xff]  ;;  %v15117_v26 = vld [vmem:[%s28995_s1 + $0xe70] sm:$0xff] }
 0x6b7   : > { %21992 = vmatprep.subr.bf16.mxu0 %v21991_v30  ;;  %22030 = vmatpush3.bf16.msra.mxu1 %v22027_v58  ;;  %v8961_v58 = vld [vmem:[#allocation3 + $0x1] sm:$0xff] }
 0x6b8   : > { %22032 = vmatprep.subr.bf16.mxu1 %v22031_v14  ;;  %19735 = vmatprep.mubr.f32.mxu1 %v8961_v58 }
 0x6b9   : > { %19588 = vmatmul.mubr.f32.gmra.mrb[40].mxu0 %v29311_v24  ;;  %v15090_v24 = vld [vmem:[%s28995_s1 + $0xd98] sm:$0xff] }
 0x6ba   : > { %19590 = vmatprep.mubr.f32.mxu0 %v26751_v33  ;;  %21994 = vmatpush3.bf16.msra.mxu0 %v21991_v30  ;;  %v22003_v33 = vpack.c.bf16 %v15084_v15, %v15083_v28  ;;  %v8490_v30 = vld [vmem:[#allocation2 + $0x142] sm:$0xff] }
 0x6bb   : > { %21996 = vmatprep.subr.bf16.mxu0 %v21995_v29  ;;  %22034 = vmatpush3.bf16.msra.mxu1 %v22031_v14  ;;  %v15091_v14 = vld [vmem:[%s28995_s1 + $0xda0] sm:$0xff]  ;;  %v15092_v28 = vld [vmem:[%s28995_s1 + $0xda8] sm:$0xff] }
 0x6bc   : > { %v22047_v15 = vpack.c.bf16 %v15092_v28, %v15091_v14 }
 0x6bd   : > { %19591 = vmatmul.mubr.f32.gmra.mrb[42].mxu0 %v26754_v12  ;;  %v8178_v12 = vld [vmem:[#allocation2 + $0xf9] sm:$0xff] }
 0x6be   : > { %19593 = vmatprep.mubr.f32.mxu0 %v26763_v35  ;;  %21998 = vmatpush3.bf16.msra.mxu0 %v21995_v29  ;;  %v8180_v35 = vld [vmem:[#allocation2 + $0x111] sm:$0xff] }
 0x6bf   : > { %22000 = vmatprep.subr.bf16.mxu0 %v21999_v57  ;;  %v15118_v29 = vld [vmem:[%s28995_s1 + $0xe78] sm:$0xff] }
 0x6c0   : > { %v22035_v18 = vpack.c.bf16 %v15118_v29, %v15117_v26 }
 0x6c1   : > { %19594 = vmatmul.mubr.f32.gmra.mrb[44].mxu0 %v26766_v16  ;;  %v8183_v16 = vld [vmem:[#allocation2 + $0x139] sm:$0xff] }
 0x6c2   : > { %19596 = vmatprep.mubr.f32.mxu0 %v8175_v59  ;;  %22002 = vmatpush3.bf16.msra.mxu0 %v21999_v57  ;;  %v22043_v57 = vpack.c.bf16 %v15090_v24, %v15089_v56  ;;  %v15094_v59 = vld [vmem:[%s28995_s1 + $0xdb8] sm:$0xff] }
 0x6c3   : > { %22004 = vmatprep.subr.bf16.mxu0 %v22003_v33  ;;  %22036 = vmatprep.subr.bf16.mxu1 %v22035_v18 }
 0x6c4   : > { %22038 = vmatpush3.bf16.msra.mxu1 %v22035_v18 }
 0x6c5   : > { %19597 = vmatmul.mubr.f32.gmra.mrb[46].mxu0 %v8176_v21 }
 0x6c6   : > { %19599 = vmatprep.mubr.f32.mxu0 %v8177_v55  ;;  %22006 = vmatpush3.bf16.msra.mxu0 %v22003_v33  ;;  %v15093_v33 = vld [vmem:[%s28995_s1 + $0xdb0] sm:$0xff]  ;;  %v15095_v55 = vld [vmem:[%s28995_s1 + $0xdc0] sm:$0xff] }
 0x6c7   : > { %v22051_v21 = vpack.c.bf16 %v15094_v59, %v15093_v33 }
 0x6c9   : > { %19600 = vmatmul.mubr.f32.gmra.mrb[48].mxu0 %v8178_v12  ;;  %v15096_v12 = vld [vmem:[%s28995_s1 + $0xdc8] sm:$0xff] }
 0x6ca   : > { %19602 = vmatprep.mubr.f32.mxu0 %v8179_v51  ;;  %v22055_v51 = vpack.c.bf16 %v15096_v12, %v15095_v55 }
 0x6cd   : > { %19603 = vmatmul.mubr.f32.gmra.mrb[50].mxu0 %v8180_v35  ;;  %v15097_v35 = vld [vmem:[%s28995_s1 + $0xdd0] sm:$0xff] }
 0x6ce   : > { %19605 = vmatprep.mubr.f32.mxu0 %v8181_v47  ;;  %v15098_v47 = vld [vmem:[%s28995_s1 + $0xdd8] sm:$0xff] }
 0x6d1   : > { %19606 = vmatmul.mubr.f32.gmra.mrb[52].mxu0 %v8182_v11  ;;  %v22059_v11 = vpack.c.bf16 %v15098_v47, %v15097_v35 }
 0x6d2   : > { %19608 = vmatprep.mubr.f32.mxu0 %v8183_v16  ;;  %v15099_v16 = vld [vmem:[%s28995_s1 + $0xde0] sm:$0xff] }
 0x6d5   : > { %19609 = vmatmul.mubr.f32.gmra.mrb[54].mxu0 %v8184_v45  ;;  %v15100_v45 = vld [vmem:[%s28995_s1 + $0xde8] sm:$0xff] }
 0x6d6   : > { %19611 = vmatprep.mubr.f32.mxu0 %v8185_v20  ;;  %v22063_v20 = vpack.c.bf16 %v15100_v45, %v15099_v16 }
 0x6d9   : > { %19612 = vmatmul.mubr.f32.gmra.mrb[56].mxu0 %v8186_v8  ;;  %v15101_v8 = vld [vmem:[%s28995_s1 + $0xdf0] sm:$0xff] }
 0x6da   : > { %19614 = vmatprep.mubr.f32.mxu0 %v8187_v0  ;;  %v15102_v0 = vld [vmem:[%s28995_s1 + $0xdf8] sm:$0xff] }
 0x6dd   : > { %19615 = vmatmul.mubr.f32.gmra.mrb[58].mxu0 %v8188_v43  ;;  %v22067_v43 = vpack.c.bf16 %v15102_v0, %v15101_v8 }
 0x6de   : > { %19617 = vmatprep.mubr.f32.mxu0 %v8189_v41  ;;  %v15119_v41 = vld [vmem:[%s28995_s1 + $0xe80] sm:$0xff] }
 0x6e1   : > { %19618 = vmatmul.mubr.f32.gmra.mrb[60].mxu0 %v8190_v22 }
 0x6e2   : > { %19620 = vmatprep.mubr.f32.mxu0 %v8191_v52  ;;  %v15120_v52 = vld [vmem:[%s28995_s1 + $0xe88] sm:$0xff] }
 0x6e3   : > { %v27113_v22 = vpack.c.bf16 %v15120_v52, %v15119_v41 }
 0x6e5   : > { %19621 = vmatmul.mubr.f32.gmra.mrb[62].mxu0 %v8192_v38  ;;  %v27119_v38 = vld [vmem:[%s28996_s2 + $0x2] ss:$0 sm:$0xff] }
 0x6e6   : > { %19655 = vmatprep.mubr.f32.mxu0 %v8467_v63 }
 0x6e9   : > { %19656 = vmatmul.mubr.f32.vlgmr.msra.gmra.mrb[32].mxu0 %v8468_v2  ;;  %v27124_v2 = vld [vmem:[%s28997_s3 + $0x2] ss:$0 sm:$0xff] }
 0x6ea   : > { %19658 = vmatprep.mubr.f32.mxu0 %v8469_v37 }
 0x6ed   : > { %19659 = vmatmul.mubr.f32.gmra.mrb[34].mxu0 %v8470_v44 }
 0x6ee   : > { %19661 = vmatprep.mubr.f32.mxu0 %v8471_v54 }
 0x6f1   : > { %19662 = vmatmul.mubr.f32.gmra.mrb[36].mxu0 %v8472_v36 }
 0x6f2   : > { %19664 = vmatprep.mubr.f32.mxu0 %v8473_v40 }
 0x6f5   : > { %19665 = vmatmul.mubr.f32.gmra.mrb[38].mxu0 %v8474_v1 }
 0x6f6   : > { %19667 = vmatprep.mubr.f32.mxu0 %v8475_v31 }
 0x6f9   : > { %19668 = vmatmul.mubr.f32.gmra.mrb[40].mxu0 %v8476_v50 }
 0x6fa   : > { %19670 = vmatprep.mubr.f32.mxu0 %v8477_v48 }
 0x6fd   : > { %19671 = vmatmul.mubr.f32.gmra.mrb[42].mxu0 %v8478_v46 }
 0x6fe   : > { %19673 = vmatprep.mubr.f32.mxu0 %v8479_v7 }
 0x701   : > { %19674 = vmatmul.mubr.f32.gmra.mrb[44].mxu0 %v8480_v39 }
 0x702   : > { %19676 = vmatprep.mubr.f32.mxu0 %v8481_v61 }
 0x705   : > { %19677 = vmatmul.mubr.f32.gmra.mrb[46].mxu0 %v8482_v19 }
 0x706   : > { %19679 = vmatprep.mubr.f32.mxu0 %v8483_v6 }
 0x709   : > { %19680 = vmatmul.mubr.f32.gmra.mrb[48].mxu0 %v8484_v17 }
 0x70a   : > { %19682 = vmatprep.mubr.f32.mxu0 %v8485_v25 }
 0x70d   : > { %19683 = vmatmul.mubr.f32.gmra.mrb[50].mxu0 %v8486_v10 }
 0x70e   : > { %19685 = vmatprep.mubr.f32.mxu0 %v8487_v5 }
 0x711   : > { %19686 = vmatmul.mubr.f32.gmra.mrb[52].mxu0 %v8488_v27 }
 0x712   : > { %19688 = vmatprep.mubr.f32.mxu0 %v8489_v49 }
 0x715   : > { %19689 = vmatmul.mubr.f32.gmra.mrb[54].mxu0 %v8490_v30 }
 0x716   : > { %19691 = vmatprep.mubr.f32.mxu0 %v8491_v34 }
 0x719   : > { %19692 = vmatmul.mubr.f32.gmra.mrb[56].mxu0 %v8492_v62 }
 0x71a   : > { %19694 = vmatprep.mubr.f32.mxu0 %v8493_v23 }
 0x71d   : > { %19695 = vmatmul.mubr.f32.gmra.mrb[58].mxu0 %v8494_v9 }
 0x71e   : > { %19697 = vmatprep.mubr.f32.mxu0 %v26865_v3  ;;  %v8962_v3 = vld [vmem:[#allocation3 + $0x9] sm:$0xff] }
 0x71f   : > { %19736 = vmatmul.mubr.f32.vlgmr.msra.gmra.mrb[64].mxu1 %v8962_v3 }
 0x721   : > { %19698 = vmatmul.mubr.f32.gmra.mrb[60].mxu0 %v26868_v42  ;;  %v15087_v42 = vld [vmem:[%s28995_s1 + $0xd80] sm:$0xff] }
 0x722   : > { %19700 = vmatprep.mubr.f32.mxu0 %v8497_v4  ;;  %v22039_v53 = vpack.c.bf16 %v15088_v60, %v15087_v42 }
 0x724   : > { %22040 = vmatprep.subr.bf16.mxu1 %v22039_v53 }
 0x725   : > { %19701 = vmatmul.mubr.f32.gmra.mrb[62].mxu0 %v8498_v32  ;;  %22042 = vmatpush3.bf16.msra.mxu1 %v22039_v53 }
 0x726   : > { %22044 = vmatprep.subr.bf16.mxu1 %v22043_v57 }
 0x729   : > { %22046 = vmatpush3.bf16.msra.mxu1 %v22043_v57 }
 0x72a   : > { %22048 = vmatprep.subr.bf16.mxu1 %v22047_v15 }
 0x72d   : > { %22050 = vmatpush3.bf16.msra.mxu1 %v22047_v15 }
 0x72e   : > { %22052 = vmatprep.subr.bf16.mxu1 %v22051_v21 }
 0x731   : > { %22054 = vmatpush3.bf16.msra.mxu1 %v22051_v21 }
 0x732   : > { %22056 = vmatprep.subr.bf16.mxu1 %v22055_v51 }
 0x735   : > { %22058 = vmatpush3.bf16.msra.mxu1 %v22055_v51 }
 0x736   : > { %22060 = vmatprep.subr.bf16.mxu1 %v22059_v11 }
 0x739   : > { %22062 = vmatpush3.bf16.msra.mxu1 %v22059_v11 }
 0x73a   : > { %22064 = vmatprep.subr.bf16.mxu1 %v22063_v20 }
 0x73d   : > { %22066 = vmatpush3.bf16.msra.mxu1 %v22063_v20 }
 0x73e   : > { %22068 = vmatprep.subr.bf16.mxu1 %v22067_v43 }
 0x741   : > { %22070 = vmatpush3.bf16.msra.mxu1 %v22067_v43 }
 0x742   : > { %22072 = vmatprep.subr.bf16.mxu1 %v27113_v22 }
 0x7bc   : > { %v19657_v63 = vpop.f32.mrb[32].mxu0 }
 0x7bd   : > { %v8779_v37 = vmul.f32 %v19657_v63, %v27119_v38  ;;  %v8582_v44 = vpop.f32.mrb[33].mxu0 }
 0x7be   : > { %v8778_v54 = vmul.f32 %v27119_v38, %v8582_v44 }
 0x7bf   : > { %v8816_v36 = vadd.f32 %v27124_v2, %v8779_v37 }
 0x7c0   : > { %v8815_v40 = vadd.f32 %v27124_v2, %v8778_v54  ;;  %v19660_v1 = vpop.f32.mrb[34].mxu0 }
 0x7c1   : > { %v8848_v31 = vmax.f32 %v8816_v36, 0.0  ;;  %v8781_v50 = vmul.f32 %v19660_v1, %v27119_v38  ;;  %v8592_v48 = vpop.f32.mrb[35].mxu0 }
 0x7c2   : > { %v8847_v46 = vmax.f32 %v8815_v40, 0.0  ;;  %v8780_v7 = vmul.f32 %v27119_v38, %v8592_v48 }
 0x7c3   : > { %8881 = vst [vmem:[#allocation3 + $0x21] sm:$0xff] %v8848_v31  ;;  %v8818_v39 = vadd.f32 %v27124_v2, %v8781_v50 }
 0x7c4   : > { %8880 = vst [vmem:[#allocation3 + $0x19] sm:$0xff] %v8847_v46  ;;  %v8817_v61 = vadd.f32 %v27124_v2, %v8780_v7  ;;  %v19663_v19 = vpop.f32.mrb[36].mxu0  ;;  %19738 = vmatprep.mubr.f32.mxu1 %v8847_v46 }
 0x7c5   : > { %v8850_v6 = vmax.f32 %v8818_v39, 0.0  ;;  %v8783_v17 = vmul.f32 %v19663_v19, %v27119_v38  ;;  %v8602_v25 = vpop.f32.mrb[37].mxu0  ;;  %19739 = vmatmul.mubr.f32.gmra.mrb[66].mxu1 %v8848_v31 }
 0x7c6   : > { %v8849_v10 = vmax.f32 %v8817_v61, 0.0  ;;  %v8782_v5 = vmul.f32 %v27119_v38, %v8602_v25 }
 0x7c7   : > { %8883 = vst [vmem:[#allocation3 + $0x39] sm:$0xff] %v8850_v6  ;;  %v8820_v27 = vadd.f32 %v27124_v2, %v8783_v17 }
 0x7c8   : > { %8882 = vst [vmem:[#allocation3 + $0x31] sm:$0xff] %v8849_v10  ;;  %v8819_v49 = vadd.f32 %v27124_v2, %v8782_v5  ;;  %v19666_v30 = vpop.f32.mrb[38].mxu0  ;;  %19741 = vmatprep.mubr.f32.mxu1 %v8849_v10 }
 0x7c9   : > { %v8852_v34 = vmax.f32 %v8820_v27, 0.0  ;;  %v8785_v62 = vmul.f32 %v19666_v30, %v27119_v38  ;;  %v8612_v23 = vpop.f32.mrb[39].mxu0  ;;  %19742 = vmatmul.mubr.f32.gmra.mrb[68].mxu1 %v8850_v6 }
 0x7ca   : > { %v8851_v9 = vmax.f32 %v8819_v49, 0.0  ;;  %v8784_v4 = vmul.f32 %v27119_v38, %v8612_v23 }
 0x7cb   : > { %8885 = vst [vmem:[#allocation3 + $0x51] sm:$0xff] %v8852_v34  ;;  %v8822_v32 = vadd.f32 %v27124_v2, %v8785_v62 }
 0x7cc   : > { %8884 = vst [vmem:[#allocation3 + $0x49] sm:$0xff] %v8851_v9  ;;  %v8821_v26 = vadd.f32 %v27124_v2, %v8784_v4  ;;  %v19669_v29 = vpop.f32.mrb[40].mxu0  ;;  %19744 = vmatprep.mubr.f32.mxu1 %v8851_v9 }
 0x7cd   : > { %v8854_v18 = vmax.f32 %v8822_v32, 0.0  ;;  %v8787_v58 = vmul.f32 %v19669_v29, %v27119_v38  ;;  %v8622_v3 = vpop.f32.mrb[41].mxu0  ;;  %19745 = vmatmul.mubr.f32.gmra.mrb[70].mxu1 %v8852_v34 }
 0x7ce   : > { %v8853_v42 = vmax.f32 %v8821_v26, 0.0  ;;  %v8786_v60 = vmul.f32 %v27119_v38, %v8622_v3 }
 0x7cf   : > { %8887 = vst [vmem:[#allocation3 + $0x69] sm:$0xff] %v8854_v18  ;;  %v8824_v53 = vadd.f32 %v27124_v2, %v8787_v58 }
 0x7d0   : > { %8886 = vst [vmem:[#allocation3 + $0x61] sm:$0xff] %v8853_v42  ;;  %v8823_v56 = vadd.f32 %v27124_v2, %v8786_v60  ;;  %v19672_v24 = vpop.f32.mrb[42].mxu0  ;;  %19747 = vmatprep.mubr.f32.mxu1 %v8853_v42 }
 0x7d1   : > { %v8856_v57 = vmax.f32 %v8824_v53, 0.0  ;;  %v8789_v14 = vmul.f32 %v19672_v24, %v27119_v38  ;;  %v8632_v28 = vpop.f32.mrb[43].mxu0  ;;  %19748 = vmatmul.mubr.f32.gmra.mrb[72].mxu1 %v8854_v18 }
 0x7d2   : > { %v8855_v15 = vmax.f32 %v8823_v56, 0.0  ;;  %v8788_v33 = vmul.f32 %v27119_v38, %v8632_v28 }
 0x7d3   : > { %8889 = vst [vmem:[#allocation3 + $0x81] sm:$0xff] %v8856_v57  ;;  %v8826_v59 = vadd.f32 %v27124_v2, %v8789_v14 }
 0x7d4   : > { %8888 = vst [vmem:[#allocation3 + $0x79] sm:$0xff] %v8855_v15  ;;  %v8825_v21 = vadd.f32 %v27124_v2, %v8788_v33  ;;  %v19675_v55 = vpop.f32.mrb[44].mxu0  ;;  %19750 = vmatprep.mubr.f32.mxu1 %v8855_v15 }
 0x7d5   : > { %v8858_v12 = vmax.f32 %v8826_v59, 0.0  ;;  %v8791_v51 = vmul.f32 %v19675_v55, %v27119_v38  ;;  %v8642_v35 = vpop.f32.mrb[45].mxu0  ;;  %19751 = vmatmul.mubr.f32.gmra.mrb[74].mxu1 %v8856_v57 }
 0x7d6   : > { %v8857_v47 = vmax.f32 %v8825_v21, 0.0  ;;  %v8790_v11 = vmul.f32 %v27119_v38, %v8642_v35 }
 0x7d7   : > { %8891 = vst [vmem:[#allocation3 + $0x99] sm:$0xff] %v8858_v12  ;;  %v8828_v16 = vadd.f32 %v27124_v2, %v8791_v51 }
 0x7d8   : > { %8890 = vst [vmem:[#allocation3 + $0x91] sm:$0xff] %v8857_v47  ;;  %v8827_v45 = vadd.f32 %v27124_v2, %v8790_v11  ;;  %v19678_v20 = vpop.f32.mrb[46].mxu0  ;;  %19753 = vmatprep.mubr.f32.mxu1 %v8857_v47 }
 0x7d9   : > { %v8860_v8 = vmax.f32 %v8828_v16, 0.0  ;;  %v8793_v0 = vmul.f32 %v19678_v20, %v27119_v38  ;;  %v8652_v43 = vpop.f32.mrb[47].mxu0  ;;  %19754 = vmatmul.mubr.f32.gmra.mrb[76].mxu1 %v8858_v12 }
 0x7da   : > { %v8859_v41 = vmax.f32 %v8827_v45, 0.0  ;;  %v8792_v52 = vmul.f32 %v27119_v38, %v8652_v43 }
 0x7db   : > { %8893 = vst [vmem:[#allocation3 + $0xb1] sm:$0xff] %v8860_v8  ;;  %v8830_v63 = vadd.f32 %v27124_v2, %v8793_v0 }
 0x7dc   : > { %8892 = vst [vmem:[#allocation3 + $0xa9] sm:$0xff] %v8859_v41  ;;  %v8829_v37 = vadd.f32 %v27124_v2, %v8792_v52  ;;  %v19681_v44 = vpop.f32.mrb[48].mxu0  ;;  %19756 = vmatprep.mubr.f32.mxu1 %v8859_v41 }
 0x7dd   : > { %v8862_v54 = vmax.f32 %v8830_v63, 0.0  ;;  %v8795_v36 = vmul.f32 %v19681_v44, %v27119_v38  ;;  %v8662_v40 = vpop.f32.mrb[49].mxu0  ;;  %19757 = vmatmul.mubr.f32.gmra.mrb[78].mxu1 %v8860_v8 }
 0x7de   : > { %v8861_v1 = vmax.f32 %v8829_v37, 0.0  ;;  %v8794_v31 = vmul.f32 %v27119_v38, %v8662_v40 }
 0x7df   : > { %8895 = vst [vmem:[#allocation3 + $0xc9] sm:$0xff] %v8862_v54  ;;  %v8832_v50 = vadd.f32 %v27124_v2, %v8795_v36 }
 0x7e0   : > { %8894 = vst [vmem:[#allocation3 + $0xc1] sm:$0xff] %v8861_v1  ;;  %v8831_v48 = vadd.f32 %v27124_v2, %v8794_v31  ;;  %v19684_v46 = vpop.f32.mrb[50].mxu0  ;;  %19759 = vmatprep.mubr.f32.mxu1 %v8861_v1  ;;  %v15121_v1 = vld [vmem:[%s28995_s1 + $0xe90] sm:$0xff] }
 0x7e1   : > { %v27162_v7 = vmax.f32 %v8832_v50, 0.0  ;;  %v8797_v39 = vmul.f32 %v19684_v46, %v27119_v38  ;;  %v8672_v61 = vpop.f32.mrb[51].mxu0  ;;  %19760 = vmatmul.mubr.f32.gmra.mrb[80].mxu1 %v8862_v54  ;;  %v15124_v46 = vld [vmem:[%s28995_s1 + $0xea8] sm:$0xff] }
 0x7e2   : > { %v27165_v19 = vmax.f32 %v8831_v48, 0.0  ;;  %v8796_v6 = vmul.f32 %v27119_v38, %v8672_v61  ;;  %v15123_v48 = vld [vmem:[%s28995_s1 + $0xea0] sm:$0xff] }
 0x7e3   : > { %8897 = vst [vmem:[#allocation3 + $0xe1] sm:$0xff] %v27162_v7  ;;  %v8834_v17 = vadd.f32 %v27124_v2, %v8797_v39  ;;  %v27270_v39 = vld [vmem:[#allocation3 + $0x18] sm:$0xff]  ;;  %v22079_v61 = vpack.c.bf16 %v15124_v46, %v15123_v48 }
 0x7e4   : > { %8896 = vst [vmem:[#allocation3 + $0xd9] sm:$0xff] %v27165_v19  ;;  %v8833_v25 = vadd.f32 %v27124_v2, %v8796_v6  ;;  %v19687_v10 = vpop.f32.mrb[52].mxu0  ;;  %19762 = vmatprep.mubr.f32.mxu1 %v27165_v19  ;;  %v27274_v6 = vld [vmem:[#allocation3 + $0x20] sm:$0xff] }
 0x7e5   : > { %v27173_v5 = vmax.f32 %v8834_v17, 0.0  ;;  %v8799_v27 = vmul.f32 %v19687_v10, %v27119_v38  ;;  %v8682_v49 = vpop.f32.mrb[53].mxu0  ;;  %19763 = vmatmul.mubr.f32.gmra.mrb[82].mxu1 %v27162_v7  ;;  %v15125_v17 = vld [vmem:[%s28995_s1 + $0xeb0] sm:$0xff]  ;;  %v27286_v10 = vld [vmem:[#allocation3 + $0x38] sm:$0xff] }
 0x7e6   : > { %v27177_v30 = vmax.f32 %v8833_v25, 0.0  ;;  %v8798_v34 = vmul.f32 %v27119_v38, %v8682_v49  ;;  %v15126_v25 = vld [vmem:[%s28995_s1 + $0xeb8] sm:$0xff]  ;;  %v15128_v49 = vld [vmem:[%s28995_s1 + $0xec8] sm:$0xff] }
 0x7e7   : > { %8899 = vst [vmem:[#allocation3 + $0xf9] sm:$0xff] %v27173_v5  ;;  %v8836_v62 = vadd.f32 %v27124_v2, %v8799_v27  ;;  %v15127_v27 = vld [vmem:[%s28995_s1 + $0xec0] sm:$0xff] }
 0x7e8   : > { %8898 = vst [vmem:[#allocation3 + $0xf1] sm:$0xff] %v27177_v30  ;;  %v8835_v23 = vadd.f32 %v27124_v2, %v8798_v34  ;;  %v19690_v9 = vpop.f32.mrb[54].mxu0  ;;  %19765 = vmatprep.mubr.f32.mxu1 %v27177_v30  ;;  %v27295_v34 = vld [vmem:[#allocation3 + $0x48] sm:$0xff] }
 0x7e9   : > { %v27185_v4 = vmax.f32 %v8836_v62, 0.0  ;;  %v8801_v32 = vmul.f32 %v19690_v9, %v27119_v38  ;;  %v8692_v26 = vpop.f32.mrb[55].mxu0  ;;  %19766 = vmatmul.mubr.f32.gmra.mrb[84].mxu1 %v27173_v5  ;;  %v22087_v62 = vpack.c.bf16 %v15128_v49, %v15127_v27  ;;  %v15129_v9 = vld [vmem:[%s28995_s1 + $0xed0] sm:$0xff]  ;;  %v15138_v49 = vld [vmem:[%s28995_s1 + $0xf18] sm:$0xff] }
 0x7ea   : > { %v27189_v29 = vmax.f32 %v8835_v23, 0.0  ;;  %v8800_v18 = vmul.f32 %v27119_v38, %v8692_v26  ;;  %v27298_v23 = vld [vmem:[#allocation3 + $0x50] sm:$0xff]  ;;  %v27307_v26 = vld [vmem:[#allocation3 + $0x60] sm:$0xff] }
 0x7eb   : > { %8901 = vst [vmem:[#allocation3 + $0x111] sm:$0xff] %v27185_v4  ;;  %v8838_v58 = vadd.f32 %v27124_v2, %v8801_v32  ;;  %v15130_v32 = vld [vmem:[%s28995_s1 + $0xed8] sm:$0xff]  ;;  %v15137_v27 = vld [vmem:[%s28995_s1 + $0xf10] sm:$0xff] }
 0x7ec   : > { %8900 = vst [vmem:[#allocation3 + $0x109] sm:$0xff] %v27189_v29  ;;  %v8837_v3 = vadd.f32 %v27124_v2, %v8800_v18  ;;  %v19693_v42 = vpop.f32.mrb[56].mxu0  ;;  %19768 = vmatprep.mubr.f32.mxu1 %v27189_v29  ;;  %v22091_v18 = vpack.c.bf16 %v15130_v32, %v15129_v9  ;;  %v22107_v9 = vpack.c.bf16 %v15138_v49, %v15137_v27  ;;  %v15139_v32 = vld [vmem:[%s28995_s1 + $0xf20] sm:$0xff] }
 0x7ed   : > { %v27197_v60 = vmax.f32 %v8838_v58, 0.0  ;;  %v8803_v53 = vmul.f32 %v19693_v42, %v27119_v38  ;;  %v8702_v56 = vpop.f32.mrb[57].mxu0  ;;  %19769 = vmatmul.mubr.f32.gmra.mrb[86].mxu1 %v27185_v4  ;;  %v27310_v58 = vld [vmem:[#allocation3 + $0x68] sm:$0xff]  ;;  %v15132_v42 = vld [vmem:[%s28995_s1 + $0xee8] sm:$0xff] }
 0x7ee   : > { %v27201_v24 = vmax.f32 %v8837_v3, 0.0  ;;  %v8802_v57 = vmul.f32 %v27119_v38, %v8702_v56  ;;  %v15131_v3 = vld [vmem:[%s28995_s1 + $0xee0] sm:$0xff] }
 0x7ef   : > { %8903 = vst [vmem:[#allocation3 + $0x129] sm:$0xff] %v27197_v60  ;;  %v8840_v14 = vadd.f32 %v27124_v2, %v8803_v53  ;;  %v27319_v53 = vld [vmem:[#allocation3 + $0x78] sm:$0xff]  ;;  %v22095_v56 = vpack.c.bf16 %v15132_v42, %v15131_v3  ;;  %v27433_v27 = vld [vmem:[#allocation3 + $0x4a] sm:$0xff] }
 0x7f0   : > { %8902 = vst [vmem:[#allocation3 + $0x121] sm:$0xff] %v27201_v24  ;;  %v8839_v28 = vadd.f32 %v27124_v2, %v8802_v57  ;;  %v19696_v15 = vpop.f32.mrb[58].mxu0  ;;  %19771 = vmatprep.mubr.f32.mxu1 %v27201_v24  ;;  %v27322_v57 = vld [vmem:[#allocation3 + $0x80] sm:$0xff] }
 0x7f1   : > { %v27209_v33 = vmax.f32 %v8840_v14, 0.0  ;;  %v8805_v59 = vmul.f32 %v19696_v15, %v27119_v38  ;;  %v8712_v21 = vpop.f32.mrb[59].mxu0  ;;  %19772 = vmatmul.mubr.f32.gmra.mrb[88].mxu1 %v27197_v60  ;;  %v15133_v14 = vld [vmem:[%s28995_s1 + $0xef0] sm:$0xff]  ;;  %v27331_v15 = vld [vmem:[#allocation3 + $0x90] sm:$0xff] }
 0x7f2   : > { %v27213_v55 = vmax.f32 %v8839_v28, 0.0  ;;  %v8804_v12 = vmul.f32 %v27119_v38, %v8712_v21  ;;  %v15134_v28 = vld [vmem:[%s28995_s1 + $0xef8] sm:$0xff]  ;;  %v27334_v21 = vld [vmem:[#allocation3 + $0x98] sm:$0xff] }
 0x7f3   : > { %8905 = vst [vmem:[#allocation3 + $0x141] sm:$0xff] %v27209_v33  ;;  %v8842_v51 = vadd.f32 %v27124_v2, %v8805_v59  ;;  %v22099_v59 = vpack.c.bf16 %v15134_v28, %v15133_v14  ;;  %v27409_v3 = vld [vmem:[#allocation3 + $0x1a] sm:$0xff]  ;;  %v15142_v28 = vld [vmem:[%s28995_s1 + $0xf38] sm:$0xff] }
 0x7f4   : > { %8904 = vst [vmem:[#allocation3 + $0x139] sm:$0xff] %v27213_v55  ;;  %v8841_v35 = vadd.f32 %v27124_v2, %v8804_v12  ;;  %v19699_v47 = vpop.f32.mrb[60].mxu0  ;;  %19774 = vmatprep.mubr.f32.mxu1 %v27213_v55  ;;  %v15135_v12 = vld [vmem:[%s28995_s1 + $0xf00] sm:$0xff]  ;;  %v15141_v14 = vld [vmem:[%s28995_s1 + $0xf30] sm:$0xff] }
 0x7f5   : > { %v27221_v11 = vmax.f32 %v8842_v51, 0.0  ;;  %v8807_v16 = vmul.f32 %v19699_v47, %v27119_v38  ;;  %v8722_v45 = vpop.f32.mrb[61].mxu0  ;;  %19775 = vmatmul.mubr.f32.gmra.mrb[90].mxu1 %v27209_v33  ;;  %v15136_v51 = vld [vmem:[%s28995_s1 + $0xf08] sm:$0xff] }
 0x7f6   : > { %v27225_v20 = vmax.f32 %v8841_v35, 0.0  ;;  %v8806_v8 = vmul.f32 %v27119_v38, %v8722_v45  ;;  %v27343_v35 = vld [vmem:[#allocation3 + $0xa8] sm:$0xff]  ;;  %v22103_v47 = vpack.c.bf16 %v15136_v51, %v15135_v12  ;;  %v27349_v45 = vld [vmem:[#allocation3 + $0xc0] sm:$0xff]  ;;  %v22115_v12 = vpack.c.bf16 %v15142_v28, %v15141_v14  ;;  %v15147_v28 = vld [vmem:[%s28995_s1 + $0xf60] sm:$0xff] }
 0x7f7   : > { %8907 = vst [vmem:[#allocation3 + $0x159] sm:$0xff] %v27221_v11  ;;  %v8844_v0 = vadd.f32 %v27124_v2, %v8807_v16  ;;  %v27346_v16 = vld [vmem:[#allocation3 + $0xb0] sm:$0xff]  ;;  %v27424_v51 = vld [vmem:[#allocation3 + $0x3a] sm:$0xff] }
 0x7f8   : > { %8906 = vst [vmem:[#allocation3 + $0x151] sm:$0xff] %v27225_v20  ;;  %v8843_v43 = vadd.f32 %v27124_v2, %v8806_v8  ;;  %v19702_v41 = vpop.f32.mrb[62].mxu0  ;;  %19777 = vmatprep.mubr.f32.mxu1 %v27225_v20  ;;  %v27352_v8 = vld [vmem:[#allocation3 + $0xc8] sm:$0xff] }
 0x7f9   : > { %v27233_v52 = vmax.f32 %v8844_v0, 0.0  ;;  %v8809_v63 = vmul.f32 %v19702_v41, %v27119_v38  ;;  %v8732_v37 = vpop.f32.mrb[63].mxu0  ;;  %19778 = vmatmul.mubr.f32.gmra.mrb[92].mxu1 %v27221_v11  ;;  %v27355_v0 = vld [vmem:[#allocation3 + $0xd8] sm:$0xff]  ;;  %v27361_v41 = vld [vmem:[#allocation3 + $0xf0] sm:$0xff] }
 0x7fa   : > { %v27237_v44 = vmax.f32 %v8843_v43, 0.0  ;;  %v8808_v54 = vmul.f32 %v27119_v38, %v8732_v37  ;;  %v15122_v38 = vld [vmem:[%s28995_s1 + $0xe98] sm:$0xff]  ;;  %v27358_v43 = vld [vmem:[#allocation3 + $0xe0] sm:$0xff] }
 0x7fb   : > { %8909 = vst [vmem:[#allocation3 + $0x171] sm:$0xff] %v27233_v52  ;;  %v27242_v36 = vadd.f32 %v27124_v2, %v8809_v63  ;;  %v27364_v63 = vld [vmem:[#allocation3 + $0xf8] sm:$0xff]  ;;  %v27367_v37 = vld [vmem:[#allocation3 + $0x108] sm:$0xff]  ;;  %v27382_v48 = vld [vmem:[#allocation3 + $0x140] sm:$0xff] }
 0x7fc   : > { %8908 = vst [vmem:[#allocation3 + $0x169] sm:$0xff] %v27237_v44  ;;  %v27246_v40 = vadd.f32 %v27124_v2, %v8808_v54  ;;  %19780 = vmatprep.mubr.f32.mxu1 %v27237_v44  ;;  %v22075_v2 = vpack.c.bf16 %v15122_v38, %v15121_v1  ;;  %v27370_v54 = vld [vmem:[#allocation3 + $0x110] sm:$0xff]  ;;  %v27373_v1 = vld [vmem:[#allocation3 + $0x120] sm:$0xff]  ;;  %v27376_v38 = vld [vmem:[#allocation3 + $0x128] sm:$0xff] }
 0x7fd   : > { %v29086_v31 = vmax.f32 %v27242_v36, 0.0  ;;  %19781 = vmatmul.mubr.f32.gmra.mrb[94].mxu1 %v27233_v52  ;;  %v27448_v14 = vld [vmem:[#allocation3 + $0x6a] sm:$0xff] }
 0x7fe   : > { %v29087_v50 = vmax.f32 %v27246_v40, 0.0  ;;  %19815 = vmatprep.mubr.f32.mxu1 %v26949_v13 }
 0x7ff   : > { %8911 = vst [vmem:[#allocation3 + $0x189] sm:$0xff] %v29086_v31  ;;  %v27385_v46 = vld [vmem:[#allocation3 + $0x150] sm:$0xff]  ;;  %v15150_v31 = vld [vmem:[%s28995_s1 + $0xf78] sm:$0xff] }
 0x800   : > { %8910 = vst [vmem:[#allocation3 + $0x181] sm:$0xff] %v29087_v50  ;;  %v27469_v50 = vld [vmem:[#allocation3 + $0x92] sm:$0xff] }
 0x801   : > { %19816 = vmatmul.mubr.f32.vlgmr.msra.gmra.mrb[64].mxu1 %v26949_v13  ;;  %v27283_v13 = vld [vmem:[#allocation3 + $0x30] sm:$0xff]  ;;  %29316 = vst [vmem:[#allocation17_spill] sm:$0xff] %v27469_v50 }
 0x802   : > { %19818 = vmatprep.mubr.f32.mxu1 %v27270_v39  ;;  %22074 = vmatpush3.bf16.msra.mxu1 %v27113_v22  ;;  %v22083_v22 = vpack.c.bf16 %v15126_v25, %v15125_v17  ;;  %v9460_v25 = vld [vmem:[#allocation3 + $0x2] sm:$0xff] }
 0x803   : > { %22076 = vmatprep.subr.bf16.mxu1 %v22075_v2  ;;  %v27391_v17 = vld [vmem:[#allocation3 + $0x168] sm:$0xff] }
 0x804   : > { %29312 = vst [vmem:[#allocation6_spill] sm:$0xff] %v27391_v17 }
 0x805   : > { %19819 = vmatmul.mubr.f32.gmra.mrb[66].mxu1 %v27274_v6 }
 0x806   : > { %19821 = vmatprep.mubr.f32.mxu1 %v27283_v13  ;;  %22078 = vmatpush3.bf16.msra.mxu1 %v22075_v2  ;;  %v27379_v2 = vld [vmem:[#allocation3 + $0x138] sm:$0xff] }
 0x807   : > { %22080 = vmatprep.subr.bf16.mxu1 %v22079_v61 }
 0x809   : > { %19822 = vmatmul.mubr.f32.gmra.mrb[68].mxu1 %v27286_v10 }
 0x80a   : > { %19824 = vmatprep.mubr.f32.mxu1 %v27295_v34  ;;  %22082 = vmatpush3.bf16.msra.mxu1 %v22079_v61  ;;  %v27388_v61 = vld [vmem:[#allocation3 + $0x158] sm:$0xff] }
 0x80b   : > { %22084 = vmatprep.subr.bf16.mxu1 %v22083_v22 }
 0x80d   : > { %19825 = vmatmul.mubr.f32.gmra.mrb[70].mxu1 %v27298_v23 }
 0x80e   : > { %19827 = vmatprep.mubr.f32.mxu1 %v27307_v26  ;;  %22086 = vmatpush3.bf16.msra.mxu1 %v22083_v22  ;;  %v27394_v22 = vld [vmem:[#allocation3 + $0x170] sm:$0xff] }
 0x80f   : > { %22088 = vmatprep.subr.bf16.mxu1 %v22087_v62  ;;  %29313 = vst [vmem:[#allocation15_spill] sm:$0xff] %v27394_v22 }
 0x811   : > { %19828 = vmatmul.mubr.f32.gmra.mrb[72].mxu1 %v27310_v58 }
 0x812   : > { %19830 = vmatprep.mubr.f32.mxu1 %v27319_v53  ;;  %22090 = vmatpush3.bf16.msra.mxu1 %v22087_v62  ;;  %v9461_v62 = vld [vmem:[#allocation3 + $0xa] sm:$0xff] }
 0x813   : > { %22092 = vmatprep.subr.bf16.mxu1 %v22091_v18 }
 0x815   : > { %19831 = vmatmul.mubr.f32.gmra.mrb[74].mxu1 %v27322_v57 }
 0x816   : > { %19833 = vmatprep.mubr.f32.mxu1 %v27331_v15  ;;  %22094 = vmatpush3.bf16.msra.mxu1 %v22091_v18  ;;  %v15140_v18 = vld [vmem:[%s28995_s1 + $0xf28] sm:$0xff] }
 0x817   : > { %22096 = vmatprep.subr.bf16.mxu1 %v22095_v56  ;;  %v22111_v42 = vpack.c.bf16 %v15140_v18, %v15139_v32  ;;  %v15146_v32 = vld [vmem:[%s28995_s1 + $0xf58] sm:$0xff] }
 0x818   : > { %v27445_v18 = vld [vmem:[#allocation3 + $0x62] sm:$0xff] }
 0x819   : > { %19834 = vmatmul.mubr.f32.gmra.mrb[76].mxu1 %v27334_v21 }
 0x81a   : > { %19836 = vmatprep.mubr.f32.mxu1 %v27343_v35  ;;  %22098 = vmatpush3.bf16.msra.mxu1 %v22095_v56  ;;  %v27412_v56 = vld [vmem:[#allocation3 + $0x22] sm:$0xff] }
 0x81b   : > { %22100 = vmatprep.subr.bf16.mxu1 %v22099_v59 }
 0x81d   : > { %19837 = vmatmul.mubr.f32.gmra.mrb[78].mxu1 %v27346_v16 }
 0x81e   : > { %19839 = vmatprep.mubr.f32.mxu1 %v27349_v45  ;;  %22102 = vmatpush3.bf16.msra.mxu1 %v22099_v59  ;;  %v27421_v59 = vld [vmem:[#allocation3 + $0x32] sm:$0xff] }
 0x81f   : > { %22104 = vmatprep.subr.bf16.mxu1 %v22103_v47 }
 0x821   : > { %19840 = vmatmul.mubr.f32.gmra.mrb[80].mxu1 %v27352_v8 }
 0x822   : > { %19842 = vmatprep.mubr.f32.mxu1 %v27355_v0 }
 0x825   : > { %19843 = vmatmul.mubr.f32.gmra.mrb[82].mxu1 %v27358_v43 }
 0x826   : > { %19845 = vmatprep.mubr.f32.mxu1 %v27361_v41 }
 0x829   : > { %19846 = vmatmul.mubr.f32.gmra.mrb[84].mxu1 %v27364_v63 }
 0x82a   : > { %19848 = vmatprep.mubr.f32.mxu1 %v27367_v37 }
 0x82d   : > { %19849 = vmatmul.mubr.f32.gmra.mrb[86].mxu1 %v27370_v54 }
 0x82e   : > { %19851 = vmatprep.mubr.f32.mxu1 %v27373_v1 }
 0x831   : > { %19852 = vmatmul.mubr.f32.gmra.mrb[88].mxu1 %v27376_v38 }
 0x832   : > { %19854 = vmatprep.mubr.f32.mxu1 %v27379_v2 }
 0x835   : > { %19855 = vmatmul.mubr.f32.gmra.mrb[90].mxu1 %v27382_v48 }
 0x836   : > { %19857 = vmatprep.mubr.f32.mxu1 %v27385_v46 }
 0x839   : > { %19858 = vmatmul.mubr.f32.gmra.mrb[92].mxu1 %v27388_v61 }
 0x83a   : > { %19860 = vmatprep.mubr.f32.mxu1 %v27391_v17 }
 0x83d   : > { %19861 = vmatmul.mubr.f32.gmra.mrb[94].mxu1 %v27394_v22 }
 0x83e   : > { %19895 = vmatprep.mubr.f32.mxu1 %v9460_v25  ;;  %v15144_v25 = vld [vmem:[%s28995_s1 + $0xf48] sm:$0xff] }
 0x841   : > { %19896 = vmatmul.mubr.f32.vlgmr.msra.gmra.mrb[64].mxu1 %v9461_v62  ;;  %v27436_v62 = vld [vmem:[#allocation3 + $0x52] sm:$0xff] }
 0x842   : > { %19898 = vmatprep.mubr.f32.mxu1 %v27409_v3  ;;  %22106 = vmatpush3.bf16.msra.mxu1 %v22103_v47  ;;  %v15143_v47 = vld [vmem:[%s28995_s1 + $0xf40] sm:$0xff] }
 0x843   : > { %22108 = vmatprep.subr.bf16.mxu1 %v22107_v9  ;;  %v22119_v49 = vpack.c.bf16 %v15144_v25, %v15143_v47  ;;  %v15148_v47 = vld [vmem:[%s28995_s1 + $0xf68] sm:$0xff] }
 0x844   : > { %v27457_v25 = vld [vmem:[#allocation3 + $0x7a] sm:$0xff] }
 0x845   : > { %19899 = vmatmul.mubr.f32.gmra.mrb[66].mxu1 %v27412_v56  ;;  %29314 = vst [vmem:[#allocation16_spill] sm:$0xff] %v27457_v25 }
 0x846   : > { %19901 = vmatprep.mubr.f32.mxu1 %v27421_v59  ;;  %22110 = vmatpush3.bf16.msra.mxu1 %v22107_v9  ;;  %v15145_v9 = vld [vmem:[%s28995_s1 + $0xf50] sm:$0xff] }
 0x847   : > { %22112 = vmatprep.subr.bf16.mxu1 %v22111_v42 }
 0x849   : > { %19902 = vmatmul.mubr.f32.gmra.mrb[68].mxu1 %v27424_v51 }
 0x84a   : > { %19904 = vmatprep.mubr.f32.mxu1 %v27433_v27  ;;  %22114 = vmatpush3.bf16.msra.mxu1 %v22111_v42  ;;  %v22123_v42 = vpack.c.bf16 %v15146_v32, %v15145_v9  ;;  %v27460_v9 = vld [vmem:[#allocation3 + $0x82] sm:$0xff] }
 0x84b   : > { %22116 = vmatprep.subr.bf16.mxu1 %v22115_v12  ;;  %29315 = vst [vmem:[#allocation7_spill] sm:$0xff] %v27460_v9  ;;  %v15149_v32 = vld [vmem:[%s28995_s1 + $0xf70] sm:$0xff] }
 0x84d   : > { %19905 = vmatmul.mubr.f32.gmra.mrb[70].mxu1 %v27436_v62 }
 0x84e   : > { %19907 = vmatprep.mubr.f32.mxu1 %v27445_v18  ;;  %22118 = vmatpush3.bf16.msra.mxu1 %v22115_v12  ;;  %v22127_v12 = vpack.c.bf16 %v15148_v47, %v15147_v28  ;;  %v27472_v28 = vld [vmem:[#allocation3 + $0x9a] sm:$0xff]  ;;  %v15151_v47 = vld [vmem:[%s28995_s1 + $0xf80] sm:$0xff] }
 0x84f   : > { %22120 = vmatprep.subr.bf16.mxu1 %v22119_v49  ;;  %29317 = vst [vmem:[#allocation18_spill] sm:$0xff] %v27472_v28 }
 0x851   : > { %19908 = vmatmul.mubr.f32.gmra.mrb[72].mxu1 %v27448_v14 }
 0x852   : > { %19910 = vmatprep.mubr.f32.mxu1 %v27457_v25  ;;  %22122 = vmatpush3.bf16.msra.mxu1 %v22119_v49  ;;  %v22131_v49 = vpack.c.bf16 %v15150_v31, %v15149_v32  ;;  %v15152_v25 = vld [vmem:[%s28995_s1 + $0xf88] sm:$0xff]  ;;  %v27487_v32 = vld [vmem:[#allocation3 + $0xc2] sm:$0xff] }
 0x853   : > { %22124 = vmatprep.subr.bf16.mxu1 %v22123_v42  ;;  %v27484_v31 = vld [vmem:[#allocation3 + $0xb2] sm:$0xff]  ;;  %29318 = vst [vmem:[#allocation10_spill] sm:$0xff] %v27487_v32 }
 0x855   : > { %19911 = vmatmul.mubr.f32.gmra.mrb[74].mxu1 %v27460_v9  ;;  %v27481_v9 = vld [vmem:[#allocation3 + $0xaa] sm:$0xff] }
 0x856   : > { %19913 = vmatprep.mubr.f32.mxu1 %v27469_v50  ;;  %22126 = vmatpush3.bf16.msra.mxu1 %v22123_v42  ;;  %v22135_v42 = vpack.c.bf16 %v15152_v25, %v15151_v47  ;;  %v27490_v50 = vld [vmem:[#allocation3 + $0xca] sm:$0xff]  ;;  %v27499_v25 = vld [vmem:[#allocation3 + $0xf2] sm:$0xff]  ;;  %v27502_v47 = vld [vmem:[#allocation3 + $0xfa] sm:$0xff] }
 0x857   : > { %22128 = vmatprep.subr.bf16.mxu1 %v22127_v12  ;;  %29319 = vst [vmem:[#allocation8_spill] sm:$0xff] %v27490_v50  ;;  %29322 = vst [vmem:[#allocation20_spill] sm:$0xff] %v27499_v25 }
 0x858   : > { %29323 = vst [vmem:[#allocation9_spill] sm:$0xff] %v27502_v47 }
 0x859   : > { %19914 = vmatmul.mubr.f32.gmra.mrb[76].mxu1 %v27472_v28  ;;  %v27493_v28 = vld [vmem:[#allocation3 + $0xda] sm:$0xff] }
 0x85a   : > { %19916 = vmatprep.mubr.f32.mxu1 %v27481_v9  ;;  %22130 = vmatpush3.bf16.msra.mxu1 %v22127_v12  ;;  %29320 = vst [vmem:[#allocation19_spill] sm:$0xff] %v27493_v28  ;;  %v27496_v12 = vld [vmem:[#allocation3 + $0xe2] sm:$0xff] }
 0x85b   : > { %22132 = vmatprep.subr.bf16.mxu1 %v22131_v49  ;;  %29321 = vst [vmem:[#allocation11_spill] sm:$0xff] %v27496_v12 }
 0x85d   : > { %19917 = vmatmul.mubr.f32.gmra.mrb[78].mxu1 %v27484_v31 }
 0x85e   : > { %19919 = vmatprep.mubr.f32.mxu1 %v27487_v32  ;;  %22134 = vmatpush3.bf16.msra.mxu1 %v22131_v49  ;;  %v27505_v49 = vld [vmem:[#allocation3 + $0x10a] sm:$0xff] }
 0x85f   : > { %22136 = vmatprep.subr.bf16.mxu1 %v22135_v42  ;;  %29324 = vst [vmem:[#allocation12_spill] sm:$0xff] %v27505_v49 }
 0x861   : > { %19920 = vmatmul.mubr.f32.gmra.mrb[80].mxu1 %v27490_v50  ;;  %v27508_v50 = vld [vmem:[#allocation3 + $0x112] sm:$0xff] }
 0x862   : > { %19922 = vmatprep.mubr.f32.mxu1 %v27493_v28  ;;  %29325 = vst [vmem:[#allocation5_spill] sm:$0xff] %v27508_v50  ;;  %v27511_v28 = vld [vmem:[#allocation3 + $0x122] sm:$0xff] }
 0x863   : > { %29326 = vst [vmem:[#allocation21_spill] sm:$0xff] %v27511_v28 }
 0x865   : > { %19923 = vmatmul.mubr.f32.gmra.mrb[82].mxu1 %v27496_v12  ;;  %v27514_v12 = vld [vmem:[#allocation3 + $0x12a] sm:$0xff] }
 0x866   : > { %19925 = vmatprep.mubr.f32.mxu1 %v27499_v25  ;;  %29327 = vst [vmem:[#allocation22_spill] sm:$0xff] %v27514_v12  ;;  %v27517_v25 = vld [vmem:[#allocation3 + $0x13a] sm:$0xff] }
 0x867   : > { %29328 = vst [vmem:[#allocation23_spill] sm:$0xff] %v27517_v25 }
 0x869   : > { %19926 = vmatmul.mubr.f32.gmra.mrb[84].mxu1 %v27502_v47  ;;  %v27520_v47 = vld [vmem:[#allocation3 + $0x142] sm:$0xff] }
 0x86a   : > { %19928 = vmatprep.mubr.f32.mxu1 %v27505_v49  ;;  %29329 = vst [vmem:[#allocation24_spill] sm:$0xff] %v27520_v47  ;;  %v27523_v49 = vld [vmem:[#allocation3 + $0x152] sm:$0xff] }
 0x86b   : > { %29330 = vst [vmem:[#allocation25_spill] sm:$0xff] %v27523_v49 }
 0x86d   : > { %19929 = vmatmul.mubr.f32.gmra.mrb[86].mxu1 %v27508_v50  ;;  %v27526_v50 = vld [vmem:[#allocation3 + $0x15a] sm:$0xff] }
 0x86e   : > { %19931 = vmatprep.mubr.f32.mxu1 %v27511_v28  ;;  %29331 = vst [vmem:[#allocation13_spill] sm:$0xff] %v27526_v50  ;;  %v27529_v28 = vld [vmem:[#allocation3 + $0x16a] sm:$0xff] }
 0x86f   : > { %29332 = vst [vmem:[#allocation14_spill] sm:$0xff] %v27529_v28 }
 0x871   : > { %19932 = vmatmul.mubr.f32.gmra.mrb[88].mxu1 %v27514_v12  ;;  %v27532_v12 = vld [vmem:[#allocation3 + $0x172] sm:$0xff] }
 0x872   : > { %19934 = vmatprep.mubr.f32.mxu1 %v27517_v25  ;;  %v15153_v25 = vld [vmem:[%s28995_s1 + $0xf90] sm:$0xff] }
 0x875   : > { %19935 = vmatmul.mubr.f32.gmra.mrb[90].mxu1 %v27520_v47  ;;  %v15154_v47 = vld [vmem:[%s28995_s1 + $0xf98] sm:$0xff] }
 0x876   : > { %19937 = vmatprep.mubr.f32.mxu1 %v27523_v49  ;;  %v22139_v49 = vpack.c.bf16 %v15154_v47, %v15153_v25  ;;  %v15158_v25 = vld [vmem:[%s28995_s1 + $0xfb8] sm:$0xff]  ;;  %v15161_v47 = vld [vmem:[%s28995_s1 + $0xfd0] sm:$0xff] }
 0x879   : > { %19938 = vmatmul.mubr.f32.gmra.mrb[92].mxu1 %v27526_v50  ;;  %v15155_v50 = vld [vmem:[%s28995_s1 + $0xfa0] sm:$0xff] }
 0x87a   : > { %19940 = vmatprep.mubr.f32.mxu1 %v27529_v28  ;;  %v15156_v28 = vld [vmem:[%s28995_s1 + $0xfa8] sm:$0xff] }
 0x87b   : > { %v22143_v32 = vpack.c.bf16 %v15156_v28, %v15155_v50  ;;  %v15160_v50 = vld [vmem:[%s28995_s1 + $0xfc8] sm:$0xff] }
 0x87d   : > { %19941 = vmatmul.mubr.f32.gmra.mrb[94].mxu1 %v27532_v12 }
 0x87e   : > { %19975 = vmatprep.mubr.f32.mxu1 %v27270_v39  ;;  %v15157_v39 = vld [vmem:[%s28995_s1 + $0xfb0] sm:$0xff] }
 0x881   : > { %19976 = vmatmul.mubr.f32.vlgmr.msra.gmra.mrb[64].mxu1 %v27274_v6  ;;  %v22147_v6 = vpack.c.bf16 %v15158_v25, %v15157_v39  ;;  %v15164_v25 = vld [vmem:[%s28995_s1 + $0xfe8] sm:$0xff] }
 0x882   : > { %19978 = vmatprep.mubr.f32.mxu1 %v27283_v13  ;;  %22138 = vmatpush3.bf16.msra.mxu1 %v22135_v42  ;;  %v15159_v42 = vld [vmem:[%s28995_s1 + $0xfc0] sm:$0xff] }
 0x883   : > { %22140 = vmatprep.subr.bf16.mxu1 %v22139_v49  ;;  %v22151_v28 = vpack.c.bf16 %v15160_v50, %v15159_v42  ;;  %v15166_v50 = vld [vmem:[%s28995_s1 + $0xff8] sm:$0xff] }
 0x885   : > { %19979 = vmatmul.mubr.f32.gmra.mrb[66].mxu1 %v27286_v10 }
 0x886   : > { %19981 = vmatprep.mubr.f32.mxu1 %v27295_v34  ;;  %22142 = vmatpush3.bf16.msra.mxu1 %v22139_v49  ;;  %v15162_v49 = vld [vmem:[%s28995_s1 + $0xfd8] sm:$0xff] }
 0x887   : > { %22144 = vmatprep.subr.bf16.mxu1 %v22143_v32  ;;  %v22155_v39 = vpack.c.bf16 %v15162_v49, %v15161_v47  ;;  %v15168_v49 = vld [vmem:[%s28995_s1 + $0x1008] sm:$0xff] }
 0x889   : > { %19982 = vmatmul.mubr.f32.gmra.mrb[68].mxu1 %v27298_v23 }
 0x88a   : > { %19984 = vmatprep.mubr.f32.mxu1 %v27307_v26  ;;  %22146 = vmatpush3.bf16.msra.mxu1 %v22143_v32  ;;  %v15163_v32 = vld [vmem:[%s28995_s1 + $0xfe0] sm:$0xff] }
 0x88b   : > { %22148 = vmatprep.subr.bf16.mxu1 %v22147_v6  ;;  %v22159_v42 = vpack.c.bf16 %v15164_v25, %v15163_v32  ;;  %v27616_v25 = vld [vmem:[#allocation3 + $0x188] sm:$0xff] }
 0x88c   : > { %29334 = vst [vmem:[#allocation27_spill] sm:$0xff] %v27616_v25 }
 0x88d   : > { %19985 = vmatmul.mubr.f32.gmra.mrb[70].mxu1 %v27310_v58 }
 0x88e   : > { %19987 = vmatprep.mubr.f32.mxu1 %v27319_v53  ;;  %22150 = vmatpush3.bf16.msra.mxu1 %v22147_v6  ;;  %v15165_v6 = vld [vmem:[%s28995_s1 + $0xff0] sm:$0xff] }
 0x88f   : > { %22152 = vmatprep.subr.bf16.mxu1 %v22151_v28  ;;  %v22163_v47 = vpack.c.bf16 %v15166_v50, %v15165_v6  ;;  %v15170_v6 = vld [vmem:[%s28995_s1 + $0x1018] sm:$0xff]  ;;  %v10072_v50 = vld [vmem:[#allocation3 + $0x19] sm:$0xff] }
 0x891   : > { %19988 = vmatmul.mubr.f32.gmra.mrb[72].mxu1 %v27322_v57 }
 0x892   : > { %19990 = vmatprep.mubr.f32.mxu1 %v27331_v15  ;;  %22154 = vmatpush3.bf16.msra.mxu1 %v22151_v28  ;;  %v15167_v28 = vld [vmem:[%s28995_s1 + $0x1000] sm:$0xff] }
 0x893   : > { %22156 = vmatprep.subr.bf16.mxu1 %v22155_v39  ;;  %v22167_v32 = vpack.c.bf16 %v15168_v49, %v15167_v28  ;;  %v10073_v28 = vld [vmem:[#allocation3 + $0x21] sm:$0xff]  ;;  %v15171_v49 = vld [vmem:[%s28995_s1 + $0x1020] sm:$0xff] }
 0x895   : > { %19991 = vmatmul.mubr.f32.gmra.mrb[74].mxu1 %v27334_v21 }
 0x896   : > { %19993 = vmatprep.mubr.f32.mxu1 %v27343_v35  ;;  %22158 = vmatpush3.bf16.msra.mxu1 %v22155_v39  ;;  %v27613_v39 = vld [vmem:[#allocation3 + $0x180] sm:$0xff] }
 0x897   : > { %22160 = vmatprep.subr.bf16.mxu1 %v22159_v42  ;;  %29333 = vst [vmem:[#allocation26_spill] sm:$0xff] %v27613_v39 }
 0x899   : > { %19994 = vmatmul.mubr.f32.gmra.mrb[76].mxu1 %v27346_v16 }
 0x89a   : > { %19996 = vmatprep.mubr.f32.mxu1 %v27349_v45  ;;  %22162 = vmatpush3.bf16.msra.mxu1 %v22159_v42  ;;  %v15169_v42 = vld [vmem:[%s28995_s1 + $0x1010] sm:$0xff] }
 0x89b   : > { %22164 = vmatprep.subr.bf16.mxu1 %v22163_v47 }
 0x89d   : > { %19997 = vmatmul.mubr.f32.gmra.mrb[78].mxu1 %v27352_v8 }
 0x89e   : > { %19999 = vmatprep.mubr.f32.mxu1 %v27355_v0  ;;  %22166 = vmatpush3.bf16.msra.mxu1 %v22163_v47  ;;  %v22171_v47 = vpack.c.bf16 %v15170_v6, %v15169_v42  ;;  %v15173_v42 = vld [vmem:[%s28995_s1 + $0x1030] sm:$0xff]  ;;  %v15174_v6 = vld [vmem:[%s28995_s1 + $0x1038] sm:$0xff] }
 0x89f   : > { %22168 = vmatprep.subr.bf16.mxu1 %v22167_v32 }
 0x8a1   : > { %20000 = vmatmul.mubr.f32.gmra.mrb[80].mxu1 %v27358_v43 }
 0x8a2   : > { %20002 = vmatprep.mubr.f32.mxu1 %v27361_v41 }
 0x8a5   : > { %20003 = vmatmul.mubr.f32.gmra.mrb[82].mxu1 %v27364_v63 }
 0x8a6   : > { %20005 = vmatprep.mubr.f32.mxu1 %v27367_v37 }
 0x8a9   : > { %20006 = vmatmul.mubr.f32.gmra.mrb[84].mxu1 %v27370_v54 }
 0x8aa   : > { %20008 = vmatprep.mubr.f32.mxu1 %v27373_v1 }
 0x8ad   : > { %20009 = vmatmul.mubr.f32.gmra.mrb[86].mxu1 %v27376_v38 }
 0x8ae   : > { %20011 = vmatprep.mubr.f32.mxu1 %v27379_v2 }
 0x8b1   : > { %20012 = vmatmul.mubr.f32.gmra.mrb[88].mxu1 %v27382_v48 }
 0x8b2   : > { %20014 = vmatprep.mubr.f32.mxu1 %v27385_v46 }
 0x8b5   : > { %20015 = vmatmul.mubr.f32.gmra.mrb[90].mxu1 %v27388_v61 }
 0x8b6   : > { %20017 = vmatprep.mubr.f32.mxu1 %v27391_v17  ;;  %v27634_v17 = vld [vmem:[#allocation3 + $0x39] sm:$0xff] }
 0x8b7   : > { %29335 = vst [vmem:[#allocation28_spill] sm:$0xff] %v27634_v17 }
 0x8b9   : > { %20018 = vmatmul.mubr.f32.gmra.mrb[92].mxu1 %v27394_v22  ;;  %v27631_v22 = vld [vmem:[#allocation3 + $0x31] sm:$0xff] }
 0x8ba   : > { %20020 = vmatprep.mubr.f32.mxu1 %v27613_v39  ;;  %v15172_v39 = vld [vmem:[%s28995_s1 + $0x1028] sm:$0xff] }
 0x8bd   : > { %20021 = vmatmul.mubr.f32.gmra.mrb[94].mxu1 %v27616_v25  ;;  %v22175_v25 = vpack.c.bf16 %v15172_v39, %v15171_v49  ;;  %v27646_v39 = vld [vmem:[#allocation3 + $0x51] sm:$0xff] }
 0x8be   : > { %20055 = vmatprep.mubr.f32.mxu1 %v10072_v50  ;;  %v27643_v50 = vld [vmem:[#allocation3 + $0x49] sm:$0xff]  ;;  %29337 = vst [vmem:[#allocation30_spill] sm:$0xff] %v27646_v39  ;;  %v15176_v49 = vld [vmem:[%s28995_s1 + $0x1048] sm:$0xff] }
 0x8bf   : > { %29336 = vst [vmem:[#allocation29_spill] sm:$0xff] %v27643_v50 }
 0x8c1   : > { %20056 = vmatmul.mubr.f32.vlgmr.msra.gmra.mrb[64].mxu1 %v10073_v28  ;;  %v15175_v28 = vld [vmem:[%s28995_s1 + $0x1040] sm:$0xff] }
 0x8c2   : > { %20058 = vmatprep.mubr.f32.mxu1 %v27631_v22  ;;  %22170 = vmatpush3.bf16.msra.mxu1 %v22167_v32  ;;  %v22179_v32 = vpack.c.bf16 %v15174_v6, %v15173_v42  ;;  %v27658_v42 = vld [vmem:[#allocation3 + $0x69] sm:$0xff]  ;;  %v15177_v6 = vld [vmem:[%s28995_s1 + $0x1050] sm:$0xff] }
 0x8c3   : > { %22172 = vmatprep.subr.bf16.mxu1 %v22171_v47  ;;  %29339 = vst [vmem:[#allocation32_spill] sm:$0xff] %v27658_v42 }
 0x8c5   : > { %20059 = vmatmul.mubr.f32.gmra.mrb[66].mxu1 %v27634_v17  ;;  %v27655_v17 = vld [vmem:[#allocation3 + $0x61] sm:$0xff] }
 0x8c6   : > { %20061 = vmatprep.mubr.f32.mxu1 %v27643_v50  ;;  %22174 = vmatpush3.bf16.msra.mxu1 %v22171_v47  ;;  %29338 = vst [vmem:[#allocation31_spill] sm:$0xff] %v27655_v17  ;;  %v22183_v47 = vpack.c.bf16 %v15176_v49, %v15175_v28  ;;  %v15178_v50 = vld [vmem:[%s28995_s1 + $0x1058] sm:$0xff]  ;;  %v15179_v49 = vld [vmem:[%s28995_s1 + $0x1060] sm:$0xff] }
 0x8c7   : > { %22176 = vmatprep.subr.bf16.mxu1 %v22175_v25  ;;  %v27670_v28 = vld [vmem:[#allocation3 + $0x81] sm:$0xff] }
 0x8c8   : > { %29341 = vst [vmem:[#allocation34_spill] sm:$0xff] %v27670_v28 }
 0x8c9   : > { %20062 = vmatmul.mubr.f32.gmra.mrb[68].mxu1 %v27646_v39  ;;  %v27667_v39 = vld [vmem:[#allocation3 + $0x79] sm:$0xff] }
 0x8ca   : > { %20064 = vmatprep.mubr.f32.mxu1 %v27655_v17  ;;  %22178 = vmatpush3.bf16.msra.mxu1 %v22175_v25  ;;  %29340 = vst [vmem:[#allocation33_spill] sm:$0xff] %v27667_v39  ;;  %v22187_v25 = vpack.c.bf16 %v15178_v50, %v15177_v6  ;;  %v15180_v17 = vld [vmem:[%s28995_s1 + $0x1068] sm:$0xff]  ;;  %v15181_v6 = vld [vmem:[%s28995_s1 + $0x1070] sm:$0xff] }
 0x8cb   : > { %22180 = vmatprep.subr.bf16.mxu1 %v22179_v32  ;;  %v27682_v50 = vld [vmem:[#allocation3 + $0x99] sm:$0xff] }
 0x8cc   : > { %29343 = vst [vmem:[#allocation36_spill] sm:$0xff] %v27682_v50 }
 0x8cd   : > { %20065 = vmatmul.mubr.f32.gmra.mrb[70].mxu1 %v27658_v42  ;;  %v27679_v42 = vld [vmem:[#allocation3 + $0x91] sm:$0xff] }
 0x8ce   : > { %20067 = vmatprep.mubr.f32.mxu1 %v27667_v39  ;;  %22182 = vmatpush3.bf16.msra.mxu1 %v22179_v32  ;;  %29342 = vst [vmem:[#allocation35_spill] sm:$0xff] %v27679_v42  ;;  %v22191_v32 = vpack.c.bf16 %v15180_v17, %v15179_v49  ;;  %v15182_v39 = vld [vmem:[%s28995_s1 + $0x1078] sm:$0xff]  ;;  %v27694_v17 = vld [vmem:[#allocation3 + $0xb1] sm:$0xff] }
 0x8cf   : > { %22184 = vmatprep.subr.bf16.mxu1 %v22183_v47  ;;  %v15183_v49 = vld [vmem:[%s28995_s1 + $0x1080] sm:$0xff] }
 0x8d1   : > { %20068 = vmatmul.mubr.f32.gmra.mrb[72].mxu1 %v27670_v28  ;;  %v27691_v28 = vld [vmem:[#allocation3 + $0xa9] sm:$0xff] }
 0x8d2   : > { %20070 = vmatprep.mubr.f32.mxu1 %v27679_v42  ;;  %22186 = vmatpush3.bf16.msra.mxu1 %v22183_v47  ;;  %v22195_v47 = vpack.c.bf16 %v15182_v39, %v15181_v6  ;;  %v15184_v42 = vld [vmem:[%s28995_s1 + $0x1088] sm:$0xff]  ;;  %v27706_v39 = vld [vmem:[#allocation3 + $0xc9] sm:$0xff] }
 0x8d3   : > { %22188 = vmatprep.subr.bf16.mxu1 %v22187_v25 }
 0x8d5   : > { %20071 = vmatmul.mubr.f32.gmra.mrb[74].mxu1 %v27682_v50  ;;  %v27703_v50 = vld [vmem:[#allocation3 + $0xc1] sm:$0xff] }
 0x8d6   : > { %20073 = vmatprep.mubr.f32.mxu1 %v27691_v28  ;;  %22190 = vmatpush3.bf16.msra.mxu1 %v22187_v25  ;;  %v22199_v25 = vpack.c.bf16 %v15184_v42, %v15183_v49  ;;  %v15198_v42 = vld [vmem:[%s28995_s1 + $0x10f8] sm:$0xff]  ;;  %v15200_v49 = vld [vmem:[%s28995_s1 + $0x1108] sm:$0xff] }
 0x8d7   : > { %22192 = vmatprep.subr.bf16.mxu1 %v22191_v32 }
 0x8d9   : > { %20074 = vmatmul.mubr.f32.gmra.mrb[76].mxu1 %v27694_v17 }
 0x8da   : > { %20076 = vmatprep.mubr.f32.mxu1 %v27703_v50  ;;  %22194 = vmatpush3.bf16.msra.mxu1 %v22191_v32  ;;  %v29349_v32 = vld [vmem:[#allocation18_spill] sm:$0xff] }
 0x8db   : > { %22196 = vmatprep.subr.bf16.mxu1 %v22195_v47 }
 0x8dd   : > { %20077 = vmatmul.mubr.f32.gmra.mrb[78].mxu1 %v27706_v39 }
 0x8de   : > { %20079 = vmatprep.mubr.f32.mxu1 %v27165_v19  ;;  %22198 = vmatpush3.bf16.msra.mxu1 %v22195_v47  ;;  %v15185_v19 = vld [vmem:[%s28995_s1 + $0x1090] sm:$0xff]  ;;  %v15199_v47 = vld [vmem:[%s28995_s1 + $0x1100] sm:$0xff] }
 0x8df   : > { %22200 = vmatprep.subr.bf16.mxu1 %v22199_v25 }
 0x8e1   : > { %20080 = vmatmul.mubr.f32.gmra.mrb[80].mxu1 %v27162_v7  ;;  %v29344_v7 = vmax.f32 %v27246_v40, 0.0  ;;  %v15194_v40 = vld [vmem:[%s28995_s1 + $0x10d8] sm:$0xff] }
 0x8e2   : > { %20082 = vmatprep.mubr.f32.mxu1 %v27177_v30  ;;  %v29345_v30 = vmax.f32 %v27242_v36, 0.0  ;;  %v15193_v36 = vld [vmem:[%s28995_s1 + $0x10d0] sm:$0xff] }
 0x8e5   : > { %20083 = vmatmul.mubr.f32.gmra.mrb[82].mxu1 %v27173_v5  ;;  %v15186_v5 = vld [vmem:[%s28995_s1 + $0x1098] sm:$0xff] }
 0x8e6   : > { %20085 = vmatprep.mubr.f32.mxu1 %v27189_v29  ;;  %v15187_v29 = vld [vmem:[%s28995_s1 + $0x10a0] sm:$0xff] }
 0x8e9   : > { %20086 = vmatmul.mubr.f32.gmra.mrb[84].mxu1 %v27185_v4  ;;  %v22203_v4 = vpack.c.bf16 %v15186_v5, %v15185_v19  ;;  %v29351_v19 = vld [vmem:[#allocation8_spill] sm:$0xff]  ;;  %v29353_v5 = vld [vmem:[#allocation11_spill] sm:$0xff] }
 0x8ea   : > { %20088 = vmatprep.mubr.f32.mxu1 %v27201_v24 }
 0x8ed   : > { %20089 = vmatmul.mubr.f32.gmra.mrb[86].mxu1 %v27197_v60  ;;  %v15188_v60 = vld [vmem:[%s28995_s1 + $0x10a8] sm:$0xff] }
 0x8ee   : > { %20091 = vmatprep.mubr.f32.mxu1 %v27213_v55  ;;  %v22207_v24 = vpack.c.bf16 %v15188_v60, %v15187_v29  ;;  %v15190_v55 = vld [vmem:[%s28995_s1 + $0x10b8] sm:$0xff]  ;;  %v29356_v29 = vld [vmem:[#allocation12_spill] sm:$0xff]  ;;  %v29358_v60 = vld [vmem:[#allocation21_spill] sm:$0xff] }
 0x8f1   : > { %20092 = vmatmul.mubr.f32.gmra.mrb[88].mxu1 %v27209_v33  ;;  %v15189_v33 = vld [vmem:[%s28995_s1 + $0x10b0] sm:$0xff] }
 0x8f2   : > { %20094 = vmatprep.mubr.f32.mxu1 %v27225_v20  ;;  %v15191_v20 = vld [vmem:[%s28995_s1 + $0x10c0] sm:$0xff] }
 0x8f5   : > { %20095 = vmatmul.mubr.f32.gmra.mrb[90].mxu1 %v27221_v11  ;;  %v22211_v11 = vpack.c.bf16 %v15190_v55, %v15189_v33  ;;  %v29360_v33 = vld [vmem:[#allocation23_spill] sm:$0xff]  ;;  %v29361_v55 = vld [vmem:[#allocation24_spill] sm:$0xff] }
 0x8f6   : > { %20097 = vmatprep.mubr.f32.mxu1 %v27237_v44 }
 0x8f9   : > { %20098 = vmatmul.mubr.f32.gmra.mrb[92].mxu1 %v27233_v52  ;;  %v15192_v52 = vld [vmem:[%s28995_s1 + $0x10c8] sm:$0xff] }
 0x8fa   : > { %20100 = vmatprep.mubr.f32.mxu1 %v29344_v7  ;;  %v22215_v44 = vpack.c.bf16 %v15192_v52, %v15191_v20  ;;  %v22231_v7 = vpack.c.bf16 %v15200_v49, %v15199_v47  ;;  %v29363_v20 = vld [vmem:[#allocation13_spill] sm:$0xff]  ;;  %v29364_v52 = vld [vmem:[#allocation14_spill] sm:$0xff]  ;;  %v15220_v47 = vld [vmem:[%s28995_s1 + $0x11a8] sm:$0xff] }
 0x8fb   : > { %v15254_v49 = vld [vmem:[%s28995_s1 + $0x12a8] sm:$0xff] }
 0x8fd   : > { %20101 = vmatmul.mubr.f32.gmra.mrb[94].mxu1 %v29345_v30  ;;  %v29354_v30 = vld [vmem:[#allocation20_spill] sm:$0xff] }
 0x8fe   : > { %20135 = vmatprep.mubr.f32.mxu1 %v27409_v3  ;;  %v29346_v3 = vld [vmem:[#allocation16_spill] sm:$0xff] }
 0x901   : > { %20136 = vmatmul.mubr.f32.vlgmr.msra.gmra.mrb[64].mxu1 %v27412_v56  ;;  %v22219_v56 = vpack.c.bf16 %v15194_v40, %v15193_v36  ;;  %v27808_v36 = vld [vmem:[#allocation3 + $0x18a] sm:$0xff]  ;;  %v15201_v40 = vld [vmem:[%s28995_s1 + $0x1110] sm:$0xff] }
 0x902   : > { %20138 = vmatprep.mubr.f32.mxu1 %v27421_v59  ;;  %22202 = vmatpush3.bf16.msra.mxu1 %v22199_v25  ;;  %v15195_v59 = vld [vmem:[%s28995_s1 + $0x10e0] sm:$0xff]  ;;  %v29350_v25 = vld [vmem:[#allocation10_spill] sm:$0xff] }
 0x903   : > { %22204 = vmatprep.subr.bf16.mxu1 %v22203_v4 }
 0x905   : > { %20139 = vmatmul.mubr.f32.gmra.mrb[66].mxu1 %v27424_v51  ;;  %v15196_v51 = vld [vmem:[%s28995_s1 + $0x10e8] sm:$0xff] }
 0x906   : > { %20141 = vmatprep.mubr.f32.mxu1 %v27433_v27  ;;  %22206 = vmatpush3.bf16.msra.mxu1 %v22203_v4  ;;  %v29347_v27 = vld [vmem:[#allocation7_spill] sm:$0xff]  ;;  %v29355_v4 = vld [vmem:[#allocation9_spill] sm:$0xff] }
 0x907   : > { %22208 = vmatprep.subr.bf16.mxu1 %v22207_v24 }
 0x909   : > { %20142 = vmatmul.mubr.f32.gmra.mrb[68].mxu1 %v27436_v62  ;;  %v29348_v62 = vld [vmem:[#allocation17_spill] sm:$0xff] }
 0x90a   : > { %20144 = vmatprep.mubr.f32.mxu1 %v27445_v18  ;;  %22210 = vmatpush3.bf16.msra.mxu1 %v22207_v24  ;;  %v22223_v18 = vpack.c.bf16 %v15196_v51, %v15195_v59  ;;  %v29359_v24 = vld [vmem:[#allocation22_spill] sm:$0xff]  ;;  %v15204_v59 = vld [vmem:[%s28995_s1 + $0x1128] sm:$0xff] }
 0x90b   : > { %22212 = vmatprep.subr.bf16.mxu1 %v22211_v11 }
 0x90d   : > { %20145 = vmatmul.mubr.f32.gmra.mrb[70].mxu1 %v27448_v14  ;;  %v15197_v14 = vld [vmem:[%s28995_s1 + $0x10f0] sm:$0xff] }
 0x90e   : > { %20147 = vmatprep.mubr.f32.mxu1 %v29346_v3  ;;  %22214 = vmatpush3.bf16.msra.mxu1 %v22211_v11  ;;  %v22227_v6 = vpack.c.bf16 %v15198_v42, %v15197_v14  ;;  %v29362_v11 = vld [vmem:[#allocation25_spill] sm:$0xff]  ;;  %v15202_v3 = vld [vmem:[%s28995_s1 + $0x1118] sm:$0xff]  ;;  %v15212_v14 = vld [vmem:[%s28995_s1 + $0x1168] sm:$0xff] }
 0x90f   : > { %22216 = vmatprep.subr.bf16.mxu1 %v22215_v44  ;;  %v15214_v42 = vld [vmem:[%s28995_s1 + $0x1178] sm:$0xff] }
 0x911   : > { %20148 = vmatmul.mubr.f32.gmra.mrb[72].mxu1 %v29347_v27  ;;  %v15206_v27 = vld [vmem:[%s28995_s1 + $0x1138] sm:$0xff] }
 0x912   : > { %20150 = vmatprep.mubr.f32.mxu1 %v29348_v62  ;;  %22218 = vmatpush3.bf16.msra.mxu1 %v22215_v44  ;;  %v27805_v44 = vld [vmem:[#allocation3 + $0x182] sm:$0xff]  ;;  %v15208_v62 = vld [vmem:[%s28995_s1 + $0x1148] sm:$0xff] }
 0x913   : > { %22220 = vmatprep.subr.bf16.mxu1 %v22219_v56 }
 0x915   : > { %20151 = vmatmul.mubr.f32.gmra.mrb[74].mxu1 %v29349_v32  ;;  %v15216_v32 = vld [vmem:[%s28995_s1 + $0x1188] sm:$0xff] }
 0x916   : > { %20153 = vmatprep.mubr.f32.mxu1 %v27481_v9  ;;  %22222 = vmatpush3.bf16.msra.mxu1 %v22219_v56  ;;  %v29352_v9 = vld [vmem:[#allocation19_spill] sm:$0xff]  ;;  %v22235_v56 = vpack.c.bf16 %v15202_v3, %v15201_v40  ;;  %v29373_v40 = vld [vmem:[#allocation32_spill] sm:$0xff]  ;;  %v29374_v3 = vld [vmem:[#allocation33_spill] sm:$0xff] }
 0x917   : > { %22224 = vmatprep.subr.bf16.mxu1 %v22223_v18 }
 0x919   : > { %20154 = vmatmul.mubr.f32.gmra.mrb[76].mxu1 %v27484_v31  ;;  %v29357_v31 = vld [vmem:[#allocation5_spill] sm:$0xff] }
 0x91a   : > { %20156 = vmatprep.mubr.f32.mxu1 %v29350_v25  ;;  %22226 = vmatpush3.bf16.msra.mxu1 %v22223_v18  ;;  %v15210_v18 = vld [vmem:[%s28995_s1 + $0x1158] sm:$0xff]  ;;  %v29369_v25 = vld [vmem:[#allocation28_spill] sm:$0xff] }
 0x91b   : > { %22228 = vmatprep.subr.bf16.mxu1 %v22227_v6 }
 0x91d   : > { %20157 = vmatmul.mubr.f32.gmra.mrb[78].mxu1 %v29351_v19 }
 0x91e   : > { %20159 = vmatprep.mubr.f32.mxu1 %v29352_v9  ;;  %22230 = vmatpush3.bf16.msra.mxu1 %v22227_v6  ;;  %v15221_v9 = vld [vmem:[%s28995_s1 + $0x11b0] sm:$0xff] }
 0x91f   : > { %22232 = vmatprep.subr.bf16.mxu1 %v22231_v7 }
 0x921   : > { %20160 = vmatmul.mubr.f32.gmra.mrb[80].mxu1 %v29353_v5 }
 0x922   : > { %20162 = vmatprep.mubr.f32.mxu1 %v29354_v30  ;;  %v15222_v30 = vld [vmem:[%s28995_s1 + $0x11b8] sm:$0xff] }
 0x925   : > { %20163 = vmatmul.mubr.f32.gmra.mrb[82].mxu1 %v29355_v4  ;;  %v15255_v4 = vld [vmem:[%s28995_s1 + $0x12b0] sm:$0xff] }
 0x926   : > { %20165 = vmatprep.mubr.f32.mxu1 %v29356_v29  ;;  %v15256_v29 = vld [vmem:[%s28995_s1 + $0x12b8] sm:$0xff] }
 0x929   : > { %20166 = vmatmul.mubr.f32.gmra.mrb[84].mxu1 %v29357_v31  ;;  %v29371_v31 = vld [vmem:[#allocation30_spill] sm:$0xff] }
 0x92a   : > { %20168 = vmatprep.mubr.f32.mxu1 %v29358_v60  ;;  %v29372_v60 = vld [vmem:[#allocation31_spill] sm:$0xff] }
 0x92d   : > { %20169 = vmatmul.mubr.f32.gmra.mrb[86].mxu1 %v29359_v24  ;;  %v22275_v24 = vpack.c.bf16 %v15222_v30, %v15221_v9  ;;  %v11305_v9 = vld [vmem:[#allocation3 + $0x92] sm:$0xff]  ;;  %v11307_v30 = vld [vmem:[#allocation3 + $0xaa] sm:$0xff] }
 0x92e   : > { %20171 = vmatprep.mubr.f32.mxu1 %v29360_v33  ;;  %v15223_v33 = vld [vmem:[%s28995_s1 + $0x11c0] sm:$0xff] }
 0x931   : > { %20172 = vmatmul.mubr.f32.gmra.mrb[88].mxu1 %v29361_v55  ;;  %v22307_v55 = vpack.c.bf16 %v15256_v29, %v15255_v4  ;;  %v11308_v4 = vld [vmem:[#allocation3 + $0xb2] sm:$0xff]  ;;  %v11309_v29 = vld [vmem:[#allocation3 + $0xc2] sm:$0xff] }
 0x932   : > { %20174 = vmatprep.mubr.f32.mxu1 %v29362_v11  ;;  %v15224_v11 = vld [vmem:[%s28995_s1 + $0x11c8] sm:$0xff] }
 0x935   : > { %20175 = vmatmul.mubr.f32.gmra.mrb[90].mxu1 %v29363_v20  ;;  %v15257_v20 = vld [vmem:[%s28995_s1 + $0x12c0] sm:$0xff] }
 0x936   : > { %20177 = vmatprep.mubr.f32.mxu1 %v29364_v52  ;;  %v15258_v52 = vld [vmem:[%s28995_s1 + $0x12c8] sm:$0xff] }
 0x939   : > { %20178 = vmatmul.mubr.f32.gmra.mrb[92].mxu1 %v27532_v12  ;;  %v15203_v12 = vld [vmem:[%s28995_s1 + $0x1120] sm:$0xff] }
 0x93a   : > { %20180 = vmatprep.mubr.f32.mxu1 %v27805_v44  ;;  %v22239_v51 = vpack.c.bf16 %v15204_v59, %v15203_v12  ;;  %v15225_v12 = vld [vmem:[%s28995_s1 + $0x11d0] sm:$0xff]  ;;  %v22311_v59 = vpack.c.bf16 %v15258_v52, %v15257_v20  ;;  %v11316_v20 = vld [vmem:[#allocation3 + $0x112] sm:$0xff] }
 0x93b   : > { %v11317_v52 = vld [vmem:[#allocation3 + $0x122] sm:$0xff] }
 0x93d   : > { %20181 = vmatmul.mubr.f32.gmra.mrb[94].mxu1 %v27808_v36 }
 0x93e   : > { %20215 = vmatprep.mubr.f32.mxu1 %v27283_v13  ;;  %v15205_v13 = vld [vmem:[%s28995_s1 + $0x1130] sm:$0xff] }
 0x941   : > { %20216 = vmatmul.mubr.f32.vlgmr.msra.gmra.mrb[64].mxu1 %v27286_v10  ;;  %v22243_v10 = vpack.c.bf16 %v15206_v27, %v15205_v13  ;;  %v15259_v13 = vld [vmem:[%s28995_s1 + $0x12d0] sm:$0xff]  ;;  %v15260_v27 = vld [vmem:[%s28995_s1 + $0x12d8] sm:$0xff] }
 0x942   : > { %20218 = vmatprep.mubr.f32.mxu1 %v27295_v34  ;;  %22234 = vmatpush3.bf16.msra.mxu1 %v22231_v7  ;;  %v15207_v34 = vld [vmem:[%s28995_s1 + $0x1140] sm:$0xff]  ;;  %v29370_v7 = vld [vmem:[#allocation29_spill] sm:$0xff] }
 0x943   : > { %22236 = vmatprep.subr.bf16.mxu1 %v22235_v56 }
 0x945   : > { %20219 = vmatmul.mubr.f32.gmra.mrb[66].mxu1 %v27298_v23  ;;  %v22247_v23 = vpack.c.bf16 %v15208_v62, %v15207_v34  ;;  %v29376_v34 = vld [vmem:[#allocation35_spill] sm:$0xff] }
 0x946   : > { %20221 = vmatprep.mubr.f32.mxu1 %v27307_v26  ;;  %22238 = vmatpush3.bf16.msra.mxu1 %v22235_v56  ;;  %v15209_v26 = vld [vmem:[%s28995_s1 + $0x1150] sm:$0xff]  ;;  %v22279_v56 = vpack.c.bf16 %v15224_v11, %v15223_v33  ;;  %v11313_v33 = vld [vmem:[#allocation3 + $0xf2] sm:$0xff]  ;;  %v11315_v11 = vld [vmem:[#allocation3 + $0x10a] sm:$0xff] }
 0x947   : > { %22240 = vmatprep.subr.bf16.mxu1 %v22239_v51 }
 0x949   : > { %20222 = vmatmul.mubr.f32.gmra.mrb[68].mxu1 %v27310_v58  ;;  %v22251_v58 = vpack.c.bf16 %v15210_v18, %v15209_v26  ;;  %v22315_v26 = vpack.c.bf16 %v15260_v27, %v15259_v13  ;;  %v15228_v18 = vld [vmem:[%s28995_s1 + $0x11e8] sm:$0xff] }
 0x94a   : > { %20224 = vmatprep.mubr.f32.mxu1 %v27319_v53  ;;  %22242 = vmatpush3.bf16.msra.mxu1 %v22239_v51  ;;  %v15211_v53 = vld [vmem:[%s28995_s1 + $0x1160] sm:$0xff]  ;;  %v15226_v51 = vld [vmem:[%s28995_s1 + $0x11d8] sm:$0xff]  ;;  %v11327_v27 = vld [vmem:[#allocation3 + $0x19a] sm:$0xff] }
 0x94b   : > { %22244 = vmatprep.subr.bf16.mxu1 %v22243_v10  ;;  %v22283_v62 = vpack.c.bf16 %v15226_v51, %v15225_v12  ;;  %v11321_v12 = vld [vmem:[#allocation3 + $0x152] sm:$0xff]  ;;  %v11323_v51 = vld [vmem:[#allocation3 + $0x16a] sm:$0xff] }
 0x94c   : > { %v11324_v13 = vld [vmem:[#allocation3 + $0x172] sm:$0xff] }
 0x94d   : > { %20225 = vmatmul.mubr.f32.gmra.mrb[70].mxu1 %v27322_v57  ;;  %v22255_v57 = vpack.c.bf16 %v15212_v14, %v15211_v53  ;;  %v15262_v53 = vld [vmem:[%s28995_s1 + $0x12e8] sm:$0xff] }
 0x94e   : > { %20227 = vmatprep.mubr.f32.mxu1 %v27331_v15  ;;  %22246 = vmatpush3.bf16.msra.mxu1 %v22243_v10  ;;  %v15213_v15 = vld [vmem:[%s28995_s1 + $0x1170] sm:$0xff]  ;;  %v29375_v10 = vld [vmem:[#allocation34_spill] sm:$0xff]  ;;  %v29377_v14 = vld [vmem:[#allocation36_spill] sm:$0xff] }
 0x94f   : > { %22248 = vmatprep.subr.bf16.mxu1 %v22247_v23 }
 0x951   : > { %20228 = vmatmul.mubr.f32.gmra.mrb[72].mxu1 %v27334_v21  ;;  %v22259_v21 = vpack.c.bf16 %v15214_v42, %v15213_v15  ;;  %v15229_v42 = vld [vmem:[%s28995_s1 + $0x11f0] sm:$0xff] }
 0x952   : > { %20230 = vmatprep.mubr.f32.mxu1 %v27343_v35  ;;  %22250 = vmatpush3.bf16.msra.mxu1 %v22247_v23  ;;  %v15215_v35 = vld [vmem:[%s28995_s1 + $0x1180] sm:$0xff] }
 0x953   : > { %22252 = vmatprep.subr.bf16.mxu1 %v22251_v58  ;;  %v15227_v23 = vld [vmem:[%s28995_s1 + $0x11e0] sm:$0xff] }
 0x955   : > { %20231 = vmatmul.mubr.f32.gmra.mrb[74].mxu1 %v27346_v16  ;;  %v22263_v16 = vpack.c.bf16 %v15216_v32, %v15215_v35  ;;  %v11005_v35 = vld [vmem:[#allocation3 + $0xd9] sm:$0xff]  ;;  %v11006_v32 = vld [vmem:[#allocation3 + $0xe1] sm:$0xff] }
 0x956   : > { %20233 = vmatprep.mubr.f32.mxu1 %v27349_v45  ;;  %22254 = vmatpush3.bf16.msra.mxu1 %v22251_v58  ;;  %v29365_v45 = vld [vmem:[#allocation6_spill] sm:$0xff]  ;;  %v15261_v58 = vld [vmem:[%s28995_s1 + $0x12e0] sm:$0xff] }
 0x957   : > { %22256 = vmatprep.subr.bf16.mxu1 %v22255_v57  ;;  %v22319_v15 = vpack.c.bf16 %v15262_v53, %v15261_v58  ;;  %v15235_v53 = vld [vmem:[%s28995_s1 + $0x1210] sm:$0xff] }
 0x959   : > { %20234 = vmatmul.mubr.f32.gmra.mrb[76].mxu1 %v27352_v8  ;;  %v29366_v8 = vld [vmem:[#allocation15_spill] sm:$0xff] }
 0x95a   : > { %20236 = vmatprep.mubr.f32.mxu1 %v27355_v0  ;;  %22258 = vmatpush3.bf16.msra.mxu1 %v22255_v57  ;;  %v29367_v0 = vld [vmem:[#allocation26_spill] sm:$0xff]  ;;  %v22287_v57 = vpack.c.bf16 %v15228_v18, %v15227_v23  ;;  %v15234_v18 = vld [vmem:[%s28995_s1 + $0x1208] sm:$0xff] }
 0x95b   : > { %22260 = vmatprep.subr.bf16.mxu1 %v22259_v21 }
 0x95d   : > { %20237 = vmatmul.mubr.f32.gmra.mrb[78].mxu1 %v27358_v43  ;;  %v29368_v43 = vld [vmem:[#allocation27_spill] sm:$0xff] }
 0x95e   : > { %20239 = vmatprep.mubr.f32.mxu1 %v27361_v41  ;;  %22262 = vmatpush3.bf16.msra.mxu1 %v22259_v21  ;;  %v27889_v41 = vld [vmem:[#allocation2] sm:$0xff]  ;;  %v15230_v21 = vld [vmem:[%s28995_s1 + $0x11f8] sm:$0xff] }
 0x95f   : > { %22264 = vmatprep.subr.bf16.mxu1 %v22263_v16 }
 0x961   : > { %20240 = vmatmul.mubr.f32.gmra.mrb[80].mxu1 %v27364_v63  ;;  %v15217_v63 = vld [vmem:[%s28995_s1 + $0x1190] sm:$0xff] }
 0x962   : > { %20242 = vmatprep.mubr.f32.mxu1 %v27367_v37  ;;  %v15218_v37 = vld [vmem:[%s28995_s1 + $0x1198] sm:$0xff] }
 0x965   : > { %20243 = vmatmul.mubr.f32.gmra.mrb[82].mxu1 %v27370_v54  ;;  %v15249_v54 = vld [vmem:[%s28995_s1 + $0x1280] sm:$0xff] }
 0x966   : > { %20245 = vmatprep.mubr.f32.mxu1 %v27373_v1  ;;  %v15250_v1 = vld [vmem:[%s28995_s1 + $0x1288] sm:$0xff] }
 0x969   : > { %20246 = vmatmul.mubr.f32.gmra.mrb[84].mxu1 %v27376_v38  ;;  %v15251_v38 = vld [vmem:[%s28995_s1 + $0x1290] sm:$0xff] }
 0x96a   : > { %20248 = vmatprep.mubr.f32.mxu1 %v27379_v2  ;;  %v22295_v2 = vpack.c.bf16 %v15250_v1, %v15249_v54  ;;  %v11017_v54 = vld [vmem:[#allocation3 + $0x169] sm:$0xff]  ;;  %v11018_v1 = vld [vmem:[#allocation3 + $0x171] sm:$0xff] }
 0x96c   : > { %22296 = vmatprep.subr.bf16.mxu0 %v22295_v2 }
 0x96d   : > { %20249 = vmatmul.mubr.f32.gmra.mrb[86].mxu1 %v27382_v48  ;;  %v15252_v48 = vld [vmem:[%s28995_s1 + $0x1298] sm:$0xff]  ;;  %22298 = vmatpush3.bf16.msra.mxu0 %v22295_v2  ;;  %v11021_v2 = vld [vmem:[#allocation3 + $0x199] sm:$0xff] }
 0x96e   : > { %20251 = vmatprep.mubr.f32.mxu1 %v27385_v46  ;;  %v22267_v46 = vpack.c.bf16 %v15218_v37, %v15217_v63  ;;  %v22299_v6 = vpack.c.bf16 %v15252_v48, %v15251_v38  ;;  %v11015_v63 = vld [vmem:[#allocation3 + $0x151] sm:$0xff]  ;;  %v11016_v37 = vld [vmem:[#allocation3 + $0x159] sm:$0xff]  ;;  %v11019_v38 = vld [vmem:[#allocation3 + $0x181] sm:$0xff] }
 0x96f   : > { %v11020_v48 = vld [vmem:[#allocation3 + $0x189] sm:$0xff] }
 0x970   : > { %22300 = vmatprep.subr.bf16.mxu0 %v22299_v6 }
 0x971   : > { %20252 = vmatmul.mubr.f32.gmra.mrb[88].mxu1 %v27388_v61  ;;  %v15219_v61 = vld [vmem:[%s28995_s1 + $0x11a0] sm:$0xff]  ;;  %22302 = vmatpush3.bf16.msra.mxu0 %v22299_v6  ;;  %v11298_v6 = vld [vmem:[#allocation3 + $0x3a] sm:$0xff] }
 0x972   : > { %20254 = vmatprep.mubr.f32.mxu1 %v29365_v45  ;;  %v22271_v19 = vpack.c.bf16 %v15220_v47, %v15219_v61  ;;  %v11009_v45 = vld [vmem:[#allocation3 + $0x109] sm:$0xff]  ;;  %v11297_v61 = vld [vmem:[#allocation3 + $0x32] sm:$0xff] }
 0x973   : > { %v11299_v47 = vld [vmem:[#allocation3 + $0x4a] sm:$0xff] }
 0x975   : > { %20255 = vmatmul.mubr.f32.gmra.mrb[90].mxu1 %v29366_v8  ;;  %v11011_v8 = vld [vmem:[#allocation3 + $0x121] sm:$0xff] }
 0x976   : > { %20257 = vmatprep.mubr.f32.mxu1 %v29367_v0  ;;  %v11012_v0 = vld [vmem:[#allocation3 + $0x129] sm:$0xff] }
 0x979   : > { %20258 = vmatmul.mubr.f32.gmra.mrb[92].mxu1 %v29368_v43  ;;  %v11014_v43 = vld [vmem:[#allocation3 + $0x141] sm:$0xff] }
 0x97a   : > { %20260 = vmatprep.mubr.f32.mxu1 %v27889_v41 }
 0x97d   : > { %20261 = vmatmul.mubr.f32.gmra.mrb[94].mxu1 %v27889_v41 }
 0x97e   : > { %20295 = vmatprep.mubr.f32.mxu1 %v27631_v22  ;;  %v15253_v22 = vld [vmem:[%s28995_s1 + $0x12a0] sm:$0xff] }
 0x97f   : > { %v22303_v5 = vpack.c.bf16 %v15254_v49, %v15253_v22  ;;  %v11300_v22 = vld [vmem:[#allocation3 + $0x52] sm:$0xff]  ;;  %v11301_v49 = vld [vmem:[#allocation3 + $0x62] sm:$0xff] }
 0x981   : > { %20296 = vmatmul.mubr.f32.vlgmr.msra.gmra.mrb[64].mxu1 %v29369_v25  ;;  %22304 = vmatprep.subr.bf16.mxu0 %v22303_v5  ;;  %v11302_v25 = vld [vmem:[#allocation3 + $0x6a] sm:$0xff] }
 0x982   : > { %20298 = vmatprep.mubr.f32.mxu1 %v29370_v7  ;;  %22266 = vmatpush3.bf16.msra.mxu1 %v22263_v16  ;;  %v11007_v16 = vld [vmem:[#allocation3 + $0xf1] sm:$0xff]  ;;  %v11303_v7 = vld [vmem:[#allocation3 + $0x7a] sm:$0xff] }
 0x983   : > { %22268 = vmatprep.subr.bf16.mxu1 %v22267_v46  ;;  %22306 = vmatpush3.bf16.msra.mxu0 %v22303_v5  ;;  %v11306_v5 = vld [vmem:[#allocation3 + $0x9a] sm:$0xff] }
 0x984   : > { %22308 = vmatprep.subr.bf16.mxu0 %v22307_v55 }
 0x985   : > { %20299 = vmatmul.mubr.f32.gmra.mrb[66].mxu1 %v29371_v31  ;;  %v11310_v31 = vld [vmem:[#allocation3 + $0xca] sm:$0xff] }
 0x986   : > { %20301 = vmatprep.mubr.f32.mxu1 %v29372_v60  ;;  %22270 = vmatpush3.bf16.msra.mxu1 %v22267_v46  ;;  %v11022_v46 = vld [vmem:[#allocation3 + $0x1a1] sm:$0xff] }
 0x987   : > { %22272 = vmatprep.subr.bf16.mxu1 %v22271_v19  ;;  %22310 = vmatpush3.bf16.msra.mxu0 %v22307_v55  ;;  %v11311_v60 = vld [vmem:[#allocation3 + $0xda] sm:$0xff] }
 0x988   : > { %22312 = vmatprep.subr.bf16.mxu0 %v22311_v59  ;;  %v11314_v55 = vld [vmem:[#allocation3 + $0xfa] sm:$0xff] }
 0x989   : > { %20302 = vmatmul.mubr.f32.gmra.mrb[68].mxu1 %v29373_v40  ;;  %v11318_v40 = vld [vmem:[#allocation3 + $0x12a] sm:$0xff] }
 0x98a   : > { %20304 = vmatprep.mubr.f32.mxu1 %v29374_v3  ;;  %22274 = vmatpush3.bf16.msra.mxu1 %v22271_v19  ;;  %v11304_v19 = vld [vmem:[#allocation3 + $0x82] sm:$0xff]  ;;  %v11319_v3 = vld [vmem:[#allocation3 + $0x13a] sm:$0xff] }
 0x98b   : > { %22276 = vmatprep.subr.bf16.mxu1 %v22275_v24  ;;  %22314 = vmatpush3.bf16.msra.mxu0 %v22311_v59  ;;  %v11322_v59 = vld [vmem:[#allocation3 + $0x15a] sm:$0xff] }
 0x98c   : > { %22316 = vmatprep.subr.bf16.mxu0 %v22315_v26 }
 0x98d   : > { %20305 = vmatmul.mubr.f32.gmra.mrb[70].mxu1 %v29375_v10  ;;  %v11328_v10 = vld [vmem:[#allocation3 + $0x1a2] sm:$0xff] }
 0x98e   : > { %20307 = vmatprep.mubr.f32.mxu1 %v29376_v34  ;;  %22278 = vmatpush3.bf16.msra.mxu1 %v22275_v24  ;;  %v11312_v24 = vld [vmem:[#allocation3 + $0xe2] sm:$0xff] }
 0x98f   : > { %22280 = vmatprep.subr.bf16.mxu1 %v22279_v56  ;;  %22318 = vmatpush3.bf16.msra.mxu0 %v22315_v26  ;;  %v15263_v34 = vld [vmem:[%s28995_s1 + $0x12f0] sm:$0xff]  ;;  %v11822_v26 = vld [vmem:[#allocation2 + $0x1] sm:$0xff] }
 0x990   : > { %22320 = vmatprep.subr.bf16.mxu0 %v22319_v15  ;;  %20455 = vmatprep.mubr.f32.mxu0 %v11822_v26 }
 0x991   : > { %20308 = vmatmul.mubr.f32.gmra.mrb[72].mxu1 %v29377_v14  ;;  %v15236_v14 = vld [vmem:[%s28995_s1 + $0x1218] sm:$0xff] }
 0x992   : > { %20310 = vmatprep.mubr.f32.mxu1 %v27691_v28  ;;  %22282 = vmatpush3.bf16.msra.mxu1 %v22279_v56  ;;  %v22291_v28 = vpack.c.bf16 %v15230_v21, %v15229_v42  ;;  %v11320_v56 = vld [vmem:[#allocation3 + $0x142] sm:$0xff]  ;;  %v15238_v42 = vld [vmem:[%s28995_s1 + $0x1228] sm:$0xff] }
 0x993   : > { %22284 = vmatprep.subr.bf16.mxu1 %v22283_v62  ;;  %22322 = vmatpush3.bf16.msra.mxu0 %v22319_v15  ;;  %v15237_v15 = vld [vmem:[%s28995_s1 + $0x1220] sm:$0xff] }
 0x994   : > { %v22335_v21 = vpack.c.bf16 %v15238_v42, %v15237_v15 }
 0x995   : > { %20311 = vmatmul.mubr.f32.gmra.mrb[74].mxu1 %v27694_v17  ;;  %v11008_v17 = vld [vmem:[#allocation3 + $0xf9] sm:$0xff] }
 0x996   : > { %20313 = vmatprep.mubr.f32.mxu1 %v27703_v50  ;;  %22286 = vmatpush3.bf16.msra.mxu1 %v22283_v62  ;;  %v11010_v50 = vld [vmem:[#allocation3 + $0x111] sm:$0xff]  ;;  %v15264_v62 = vld [vmem:[%s28995_s1 + $0x12f8] sm:$0xff] }
 0x997   : > { %22288 = vmatprep.subr.bf16.mxu1 %v22287_v57  ;;  %v22323_v23 = vpack.c.bf16 %v15264_v62, %v15263_v34  ;;  %v11681_v34 = vld [vmem:[#allocation4 + $0x49] sm:$0xff] }
 0x999   : > { %20314 = vmatmul.mubr.f32.gmra.mrb[76].mxu1 %v27706_v39  ;;  %v11013_v39 = vld [vmem:[#allocation3 + $0x139] sm:$0xff]  ;;  %22324 = vmatprep.subr.bf16.mxu0 %v22323_v23 }
 0x99a   : > { %20316 = vmatprep.mubr.f32.mxu1 %v11005_v35  ;;  %22290 = vmatpush3.bf16.msra.mxu1 %v22287_v57  ;;  %v22331_v57 = vpack.c.bf16 %v15236_v14, %v15235_v53  ;;  %v15240_v35 = vld [vmem:[%s28995_s1 + $0x1238] sm:$0xff] }
 0x99b   : > { %22292 = vmatprep.subr.bf16.mxu1 %v22291_v28  ;;  %22326 = vmatpush3.bf16.msra.mxu0 %v22323_v23 }
 0x99d   : > { %20317 = vmatmul.mubr.f32.gmra.mrb[78].mxu1 %v11006_v32 }
 0x99e   : > { %20319 = vmatprep.mubr.f32.mxu1 %v11007_v16  ;;  %22294 = vmatpush3.bf16.msra.mxu1 %v22291_v28  ;;  %v15239_v28 = vld [vmem:[%s28995_s1 + $0x1230] sm:$0xff]  ;;  %v15241_v16 = vld [vmem:[%s28995_s1 + $0x1240] sm:$0xff] }
 0x99f   : > { %v22339_v32 = vpack.c.bf16 %v15240_v35, %v15239_v28 }
 0x9a1   : > { %20320 = vmatmul.mubr.f32.gmra.mrb[80].mxu1 %v11008_v17  ;;  %v15242_v17 = vld [vmem:[%s28995_s1 + $0x1248] sm:$0xff] }
 0x9a2   : > { %20322 = vmatprep.mubr.f32.mxu1 %v11009_v45  ;;  %v22343_v45 = vpack.c.bf16 %v15242_v17, %v15241_v16 }
 0x9a5   : > { %20323 = vmatmul.mubr.f32.gmra.mrb[82].mxu1 %v11010_v50  ;;  %v15243_v50 = vld [vmem:[%s28995_s1 + $0x1250] sm:$0xff] }
 0x9a6   : > { %20325 = vmatprep.mubr.f32.mxu1 %v11011_v8  ;;  %v15244_v8 = vld [vmem:[%s28995_s1 + $0x1258] sm:$0xff] }
 0x9a9   : > { %20326 = vmatmul.mubr.f32.gmra.mrb[84].mxu1 %v11012_v0  ;;  %v22347_v0 = vpack.c.bf16 %v15244_v8, %v15243_v50  ;;  %v11685_v50 = vld [vmem:[#allocation4 + $0x79] sm:$0xff] }
 0x9aa   : > { %20328 = vmatprep.mubr.f32.mxu1 %v11013_v39  ;;  %v15245_v39 = vld [vmem:[%s28995_s1 + $0x1260] sm:$0xff] }
 0x9ad   : > { %20329 = vmatmul.mubr.f32.gmra.mrb[86].mxu1 %v11014_v43  ;;  %v15246_v43 = vld [vmem:[%s28995_s1 + $0x1268] sm:$0xff] }
 0x9ae   : > { %20331 = vmatprep.mubr.f32.mxu1 %v11015_v63  ;;  %v22351_v63 = vpack.c.bf16 %v15246_v43, %v15245_v39 }
 0x9b1   : > { %20332 = vmatmul.mubr.f32.gmra.mrb[88].mxu1 %v11016_v37  ;;  %v15247_v37 = vld [vmem:[%s28995_s1 + $0x1270] sm:$0xff] }
 0x9b2   : > { %20334 = vmatprep.mubr.f32.mxu1 %v11017_v54  ;;  %v15248_v54 = vld [vmem:[%s28995_s1 + $0x1278] sm:$0xff] }
 0x9b5   : > { %20335 = vmatmul.mubr.f32.gmra.mrb[90].mxu1 %v11018_v1  ;;  %v22355_v1 = vpack.c.bf16 %v15248_v54, %v15247_v37  ;;  %v11688_v37 = vld [vmem:[#allocation4 + $0x99] sm:$0xff] }
 0x9b6   : > { %20337 = vmatprep.mubr.f32.mxu1 %v11019_v38  ;;  %v15265_v38 = vld [vmem:[%s28995_s1 + $0x1300] sm:$0xff] }
 0x9b9   : > { %20338 = vmatmul.mubr.f32.gmra.mrb[92].mxu1 %v11020_v48 }
 0x9ba   : > { %20340 = vmatprep.mubr.f32.mxu1 %v11021_v2  ;;  %v15266_v2 = vld [vmem:[%s28995_s1 + $0x1308] sm:$0xff] }
 0x9bb   : > { %v28053_v48 = vpack.c.bf16 %v15266_v2, %v15265_v38  ;;  %v11687_v2 = vld [vmem:[#allocation4 + $0x91] sm:$0xff] }
 0x9bd   : > { %20341 = vmatmul.mubr.f32.gmra.mrb[94].mxu1 %v11022_v46  ;;  %v28059_v46 = vld [vmem:[%s28996_s2 + $0x3] ss:$0 sm:$0xff] }
 0x9be   : > { %20375 = vmatprep.mubr.f32.mxu1 %v11297_v61 }
 0x9c1   : > { %20376 = vmatmul.mubr.f32.vlgmr.msra.gmra.mrb[64].mxu1 %v11298_v6  ;;  %v28064_v6 = vld [vmem:[%s28997_s3 + $0x3] ss:$0 sm:$0xff] }
 0x9c2   : > { %20378 = vmatprep.mubr.f32.mxu1 %v11299_v47 }
 0x9c5   : > { %20379 = vmatmul.mubr.f32.gmra.mrb[66].mxu1 %v11300_v22 }
 0x9c6   : > { %20381 = vmatprep.mubr.f32.mxu1 %v11301_v49 }
 0x9c9   : > { %20382 = vmatmul.mubr.f32.gmra.mrb[68].mxu1 %v11302_v25 }
 0x9ca   : > { %20384 = vmatprep.mubr.f32.mxu1 %v11303_v7  ;;  %v11678_v7 = vld [vmem:[#allocation4 + $0x21] sm:$0xff] }
 0x9cd   : > { %20385 = vmatmul.mubr.f32.gmra.mrb[70].mxu1 %v11304_v19 }
 0x9ce   : > { %20387 = vmatprep.mubr.f32.mxu1 %v11305_v9 }
 0x9d1   : > { %20388 = vmatmul.mubr.f32.gmra.mrb[72].mxu1 %v11306_v5 }
 0x9d2   : > { %20390 = vmatprep.mubr.f32.mxu1 %v11307_v30  ;;  %v11677_v30 = vld [vmem:[#allocation4 + $0x19] sm:$0xff] }
 0x9d5   : > { %20391 = vmatmul.mubr.f32.gmra.mrb[74].mxu1 %v11308_v4 }
 0x9d6   : > { %20393 = vmatprep.mubr.f32.mxu1 %v11309_v29 }
 0x9d9   : > { %20394 = vmatmul.mubr.f32.gmra.mrb[76].mxu1 %v11310_v31 }
 0x9da   : > { %20396 = vmatprep.mubr.f32.mxu1 %v11311_v60 }
 0x9dd   : > { %20397 = vmatmul.mubr.f32.gmra.mrb[78].mxu1 %v11312_v24 }
 0x9de   : > { %20399 = vmatprep.mubr.f32.mxu1 %v11313_v33  ;;  %v11680_v33 = vld [vmem:[#allocation4 + $0x39] sm:$0xff] }
 0x9e1   : > { %20400 = vmatmul.mubr.f32.gmra.mrb[80].mxu1 %v11314_v55 }
 0x9e2   : > { %20402 = vmatprep.mubr.f32.mxu1 %v11315_v11 }
 0x9e5   : > { %20403 = vmatmul.mubr.f32.gmra.mrb[82].mxu1 %v11316_v20 }
 0x9e6   : > { %20405 = vmatprep.mubr.f32.mxu1 %v11317_v52  ;;  %v11679_v52 = vld [vmem:[#allocation4 + $0x31] sm:$0xff] }
 0x9e9   : > { %20406 = vmatmul.mubr.f32.gmra.mrb[84].mxu1 %v11318_v40 }
 0x9ea   : > { %20408 = vmatprep.mubr.f32.mxu1 %v11319_v3 }
 0x9ed   : > { %20409 = vmatmul.mubr.f32.gmra.mrb[86].mxu1 %v11320_v56 }
 0x9ee   : > { %20411 = vmatprep.mubr.f32.mxu1 %v11321_v12 }
 0x9f1   : > { %20412 = vmatmul.mubr.f32.gmra.mrb[88].mxu1 %v11322_v59 }
 0x9f2   : > { %20414 = vmatprep.mubr.f32.mxu1 %v11323_v51  ;;  %v11682_v51 = vld [vmem:[#allocation4 + $0x51] sm:$0xff] }
 0x9f5   : > { %20415 = vmatmul.mubr.f32.gmra.mrb[90].mxu1 %v11324_v13 }
 0x9f6   : > { %20417 = vmatprep.mubr.f32.mxu1 %v27805_v44  ;;  %v11823_v44 = vld [vmem:[#allocation2 + $0x9] sm:$0xff] }
 0x9f7   : > { %20456 = vmatmul.mubr.f32.vlgmr.msra.gmra.mrb[64].mxu0 %v11823_v44 }
 0x9f9   : > { %20418 = vmatmul.mubr.f32.gmra.mrb[92].mxu1 %v27808_v36  ;;  %v15233_v36 = vld [vmem:[%s28995_s1 + $0x1200] sm:$0xff] }
 0x9fa   : > { %20420 = vmatprep.mubr.f32.mxu1 %v11327_v27  ;;  %v22327_v58 = vpack.c.bf16 %v15234_v18, %v15233_v36  ;;  %v11684_v18 = vld [vmem:[#allocation4 + $0x69] sm:$0xff] }
 0x9fc   : > { %22328 = vmatprep.subr.bf16.mxu0 %v22327_v58 }
 0x9fd   : > { %20421 = vmatmul.mubr.f32.gmra.mrb[94].mxu1 %v11328_v10  ;;  %22330 = vmatpush3.bf16.msra.mxu0 %v22327_v58 }
 0x9fe   : > { %22332 = vmatprep.subr.bf16.mxu0 %v22331_v57 }
 0xa01   : > { %22334 = vmatpush3.bf16.msra.mxu0 %v22331_v57  ;;  %v11683_v57 = vld [vmem:[#allocation4 + $0x61] sm:$0xff] }
 0xa02   : > { %22336 = vmatprep.subr.bf16.mxu0 %v22335_v21 }
 0xa05   : > { %22338 = vmatpush3.bf16.msra.mxu0 %v22335_v21 }
 0xa06   : > { %22340 = vmatprep.subr.bf16.mxu0 %v22339_v32 }
 0xa09   : > { %22342 = vmatpush3.bf16.msra.mxu0 %v22339_v32  ;;  %v11686_v32 = vld [vmem:[#allocation4 + $0x81] sm:$0xff] }
 0xa0a   : > { %22344 = vmatprep.subr.bf16.mxu0 %v22343_v45 }
 0xa0d   : > { %22346 = vmatpush3.bf16.msra.mxu0 %v22343_v45 }
 0xa0e   : > { %22348 = vmatprep.subr.bf16.mxu0 %v22347_v0 }
 0xa11   : > { %22350 = vmatpush3.bf16.msra.mxu0 %v22347_v0 }
 0xa12   : > { %22352 = vmatprep.subr.bf16.mxu0 %v22351_v63 }
 0xa15   : > { %22354 = vmatpush3.bf16.msra.mxu0 %v22351_v63 }
 0xa16   : > { %22356 = vmatprep.subr.bf16.mxu0 %v22355_v1 }
 0xa19   : > { %22358 = vmatpush3.bf16.msra.mxu0 %v22355_v1 }
 0xa1a   : > { %22360 = vmatprep.subr.bf16.mxu0 %v28053_v48 }
 0xa94   : > { %v20377_v61 = vpop.f32.mrb[64].mxu1 }
 0xa95   : > { %v11609_v47 = vmul.f32 %v20377_v61, %v28059_v46  ;;  %v11412_v22 = vpop.f32.mrb[65].mxu1 }
 0xa96   : > { %v11608_v49 = vmul.f32 %v28059_v46, %v11412_v22 }
 0xa97   : > { %v11646_v25 = vadd.f32 %v28064_v6, %v11609_v47 }
 0xa98   : > { %v11645_v19 = vadd.f32 %v28064_v6, %v11608_v49  ;;  %v20380_v9 = vpop.f32.mrb[66].mxu1 }
 0xa99   : > { %v11710_v5 = vadd.f32 %v11678_v7, %v11646_v25  ;;  %v11611_v4 = vmul.f32 %v20380_v9, %v28059_v46  ;;  %v11422_v29 = vpop.f32.mrb[67].mxu1  ;;  %v11690_v7 = vld [vmem:[#allocation4 + $0xb1] sm:$0xff] }
 0xa9a   : > { %v11709_v31 = vadd.f32 %v11677_v30, %v11645_v19  ;;  %v11610_v60 = vmul.f32 %v28059_v46, %v11422_v29  ;;  %v11689_v30 = vld [vmem:[#allocation4 + $0xa9] sm:$0xff] }
 0xa9b   : > { %11742 = vst [vmem:[#allocation2 + $0x21] sm:$0xff] %v11710_v5  ;;  %v11648_v24 = vadd.f32 %v28064_v6, %v11611_v4 }
 0xa9c   : > { %11741 = vst [vmem:[#allocation2 + $0x19] sm:$0xff] %v11709_v31  ;;  %v11647_v55 = vadd.f32 %v28064_v6, %v11610_v60  ;;  %v20383_v11 = vpop.f32.mrb[68].mxu1  ;;  %20458 = vmatprep.mubr.f32.mxu0 %v11709_v31 }
 0xa9d   : > { %v11712_v20 = vadd.f32 %v11680_v33, %v11648_v24  ;;  %v11613_v40 = vmul.f32 %v20383_v11, %v28059_v46  ;;  %v11432_v3 = vpop.f32.mrb[69].mxu1  ;;  %20459 = vmatmul.mubr.f32.gmra.mrb[66].mxu0 %v11710_v5  ;;  %v11692_v33 = vld [vmem:[#allocation4 + $0xc9] sm:$0xff] }
 0xa9e   : > { %v11711_v56 = vadd.f32 %v11679_v52, %v11647_v55  ;;  %v11612_v12 = vmul.f32 %v28059_v46, %v11432_v3  ;;  %v11691_v52 = vld [vmem:[#allocation4 + $0xc1] sm:$0xff] }
 0xa9f   : > { %11744 = vst [vmem:[#allocation2 + $0x39] sm:$0xff] %v11712_v20  ;;  %v11650_v59 = vadd.f32 %v28064_v6, %v11613_v40 }
 0xaa0   : > { %11743 = vst [vmem:[#allocation2 + $0x31] sm:$0xff] %v11711_v56  ;;  %v11649_v13 = vadd.f32 %v28064_v6, %v11612_v12  ;;  %v20386_v27 = vpop.f32.mrb[70].mxu1  ;;  %20461 = vmatprep.mubr.f32.mxu0 %v11711_v56 }
 0xaa1   : > { %v11714_v10 = vadd.f32 %v11682_v51, %v11650_v59  ;;  %v11615_v62 = vmul.f32 %v20386_v27, %v28059_v46  ;;  %v11442_v23 = vpop.f32.mrb[71].mxu1  ;;  %20462 = vmatmul.mubr.f32.gmra.mrb[68].mxu0 %v11712_v20  ;;  %v11694_v51 = vld [vmem:[#allocation4 + $0xe1] sm:$0xff] }
 0xaa2   : > { %v11713_v26 = vadd.f32 %v11681_v34, %v11649_v13  ;;  %v11614_v44 = vmul.f32 %v28059_v46, %v11442_v23  ;;  %v11693_v34 = vld [vmem:[#allocation4 + $0xd9] sm:$0xff] }
 0xaa3   : > { %11746 = vst [vmem:[#allocation2 + $0x51] sm:$0xff] %v11714_v10  ;;  %v11652_v36 = vadd.f32 %v28064_v6, %v11615_v62 }
 0xaa4   : > { %11745 = vst [vmem:[#allocation2 + $0x49] sm:$0xff] %v11713_v26  ;;  %v11651_v58 = vadd.f32 %v28064_v6, %v11614_v44  ;;  %v20389_v53 = vpop.f32.mrb[72].mxu1  ;;  %20464 = vmatprep.mubr.f32.mxu0 %v11713_v26 }
 0xaa5   : > { %v11716_v14 = vadd.f32 %v11684_v18, %v11652_v36  ;;  %v11617_v15 = vmul.f32 %v20389_v53, %v28059_v46  ;;  %v11452_v42 = vpop.f32.mrb[73].mxu1  ;;  %20465 = vmatmul.mubr.f32.gmra.mrb[70].mxu0 %v11714_v10  ;;  %v11696_v18 = vld [vmem:[#allocation4 + $0xf9] sm:$0xff] }
 0xaa6   : > { %v11715_v21 = vadd.f32 %v11683_v57, %v11651_v58  ;;  %v11616_v28 = vmul.f32 %v28059_v46, %v11452_v42  ;;  %v11695_v57 = vld [vmem:[#allocation4 + $0xf1] sm:$0xff] }
 0xaa7   : > { %11748 = vst [vmem:[#allocation2 + $0x69] sm:$0xff] %v11716_v14  ;;  %v11654_v35 = vadd.f32 %v28064_v6, %v11617_v15 }
 0xaa8   : > { %11747 = vst [vmem:[#allocation2 + $0x61] sm:$0xff] %v11715_v21  ;;  %v11653_v16 = vadd.f32 %v28064_v6, %v11616_v28  ;;  %v20392_v17 = vpop.f32.mrb[74].mxu1  ;;  %20467 = vmatprep.mubr.f32.mxu0 %v11715_v21 }
 0xaa9   : > { %v11718_v45 = vadd.f32 %v11686_v32, %v11654_v35  ;;  %v11619_v8 = vmul.f32 %v20392_v17, %v28059_v46  ;;  %v11462_v0 = vpop.f32.mrb[75].mxu1  ;;  %20468 = vmatmul.mubr.f32.gmra.mrb[72].mxu0 %v11716_v14  ;;  %v11698_v32 = vld [vmem:[#allocation4 + $0x111] sm:$0xff] }
 0xaaa   : > { %v11717_v39 = vadd.f32 %v11685_v50, %v11653_v16  ;;  %v11618_v43 = vmul.f32 %v28059_v46, %v11462_v0  ;;  %v11697_v50 = vld [vmem:[#allocation4 + $0x109] sm:$0xff] }
 0xaab   : > { %11750 = vst [vmem:[#allocation2 + $0x81] sm:$0xff] %v11718_v45  ;;  %v11656_v63 = vadd.f32 %v28064_v6, %v11619_v8 }
 0xaac   : > { %11749 = vst [vmem:[#allocation2 + $0x79] sm:$0xff] %v11717_v39  ;;  %v11655_v54 = vadd.f32 %v28064_v6, %v11618_v43  ;;  %v20395_v1 = vpop.f32.mrb[76].mxu1  ;;  %20470 = vmatprep.mubr.f32.mxu0 %v11717_v39 }
 0xaad   : > { %v11720_v38 = vadd.f32 %v11688_v37, %v11656_v63  ;;  %v11621_v61 = vmul.f32 %v20395_v1, %v28059_v46  ;;  %v11472_v47 = vpop.f32.mrb[77].mxu1  ;;  %20471 = vmatmul.mubr.f32.gmra.mrb[74].mxu0 %v11718_v45  ;;  %v11700_v37 = vld [vmem:[#allocation4 + $0x129] sm:$0xff] }
 0xaae   : > { %v11719_v22 = vadd.f32 %v11687_v2, %v11655_v54  ;;  %v11620_v49 = vmul.f32 %v28059_v46, %v11472_v47  ;;  %v11699_v2 = vld [vmem:[#allocation4 + $0x121] sm:$0xff] }
 0xaaf   : > { %11752 = vst [vmem:[#allocation2 + $0x99] sm:$0xff] %v11720_v38  ;;  %v11658_v25 = vadd.f32 %v28064_v6, %v11621_v61 }
 0xab0   : > { %11751 = vst [vmem:[#allocation2 + $0x91] sm:$0xff] %v11719_v22  ;;  %v11657_v19 = vadd.f32 %v28064_v6, %v11620_v49  ;;  %v20398_v9 = vpop.f32.mrb[78].mxu1  ;;  %20473 = vmatprep.mubr.f32.mxu0 %v11719_v22 }
 0xab1   : > { %v11722_v5 = vadd.f32 %v11690_v7, %v11658_v25  ;;  %v11623_v4 = vmul.f32 %v20398_v9, %v28059_v46  ;;  %v11482_v29 = vpop.f32.mrb[79].mxu1  ;;  %20474 = vmatmul.mubr.f32.gmra.mrb[76].mxu0 %v11720_v38  ;;  %v11702_v7 = vld [vmem:[#allocation4 + $0x141] sm:$0xff] }
 0xab2   : > { %v11721_v31 = vadd.f32 %v11689_v30, %v11657_v19  ;;  %v11622_v60 = vmul.f32 %v28059_v46, %v11482_v29  ;;  %v11701_v30 = vld [vmem:[#allocation4 + $0x139] sm:$0xff] }
 0xab3   : > { %11754 = vst [vmem:[#allocation2 + $0xb1] sm:$0xff] %v11722_v5  ;;  %v11660_v24 = vadd.f32 %v28064_v6, %v11623_v4 }
 0xab4   : > { %11753 = vst [vmem:[#allocation2 + $0xa9] sm:$0xff] %v11721_v31  ;;  %v11659_v55 = vadd.f32 %v28064_v6, %v11622_v60  ;;  %v20401_v11 = vpop.f32.mrb[80].mxu1  ;;  %20476 = vmatprep.mubr.f32.mxu0 %v11721_v31 }
 0xab5   : > { %v11724_v20 = vadd.f32 %v11692_v33, %v11660_v24  ;;  %v11625_v40 = vmul.f32 %v20401_v11, %v28059_v46  ;;  %v11492_v3 = vpop.f32.mrb[81].mxu1  ;;  %20477 = vmatmul.mubr.f32.gmra.mrb[78].mxu0 %v11722_v5  ;;  %v11704_v33 = vld [vmem:[#allocation4 + $0x159] sm:$0xff] }
 0xab6   : > { %v11723_v56 = vadd.f32 %v11691_v52, %v11659_v55  ;;  %v11624_v12 = vmul.f32 %v28059_v46, %v11492_v3  ;;  %v11703_v52 = vld [vmem:[#allocation4 + $0x151] sm:$0xff] }
 0xab7   : > { %11756 = vst [vmem:[#allocation2 + $0xc9] sm:$0xff] %v11724_v20  ;;  %v11662_v59 = vadd.f32 %v28064_v6, %v11625_v40 }
 0xab8   : > { %11755 = vst [vmem:[#allocation2 + $0xc1] sm:$0xff] %v11723_v56  ;;  %v11661_v13 = vadd.f32 %v28064_v6, %v11624_v12  ;;  %v20404_v27 = vpop.f32.mrb[82].mxu1  ;;  %20479 = vmatprep.mubr.f32.mxu0 %v11723_v56 }
 0xab9   : > { %v11726_v10 = vadd.f32 %v11694_v51, %v11662_v59  ;;  %v11627_v62 = vmul.f32 %v20404_v27, %v28059_v46  ;;  %v11502_v23 = vpop.f32.mrb[83].mxu1  ;;  %20480 = vmatmul.mubr.f32.gmra.mrb[80].mxu0 %v11724_v20  ;;  %v11706_v51 = vld [vmem:[#allocation4 + $0x171] sm:$0xff] }
 0xaba   : > { %v11725_v26 = vadd.f32 %v11693_v34, %v11661_v13  ;;  %v11626_v44 = vmul.f32 %v28059_v46, %v11502_v23  ;;  %v11705_v34 = vld [vmem:[#allocation4 + $0x169] sm:$0xff] }
 0xabb   : > { %11758 = vst [vmem:[#allocation2 + $0xe1] sm:$0xff] %v11726_v10  ;;  %v11664_v36 = vadd.f32 %v28064_v6, %v11627_v62 }
 0xabc   : > { %11757 = vst [vmem:[#allocation2 + $0xd9] sm:$0xff] %v11725_v26  ;;  %v11663_v58 = vadd.f32 %v28064_v6, %v11626_v44  ;;  %v20407_v53 = vpop.f32.mrb[84].mxu1  ;;  %20482 = vmatprep.mubr.f32.mxu0 %v11725_v26 }
 0xabd   : > { %v11728_v14 = vadd.f32 %v11696_v18, %v11664_v36  ;;  %v11629_v15 = vmul.f32 %v20407_v53, %v28059_v46  ;;  %v11512_v42 = vpop.f32.mrb[85].mxu1  ;;  %20483 = vmatmul.mubr.f32.gmra.mrb[82].mxu0 %v11726_v10  ;;  %v11708_v18 = vld [vmem:[#allocation4 + $0x189] sm:$0xff] }
 0xabe   : > { %v28107_v21 = vadd.f32 %v11695_v57, %v11663_v58  ;;  %v11628_v28 = vmul.f32 %v28059_v46, %v11512_v42  ;;  %v15267_v53 = vld [vmem:[%s28995_s1 + $0x1310] sm:$0xff]  ;;  %v11707_v57 = vld [vmem:[#allocation4 + $0x181] sm:$0xff] }
 0xabf   : > { %11760 = vst [vmem:[#allocation2 + $0xf9] sm:$0xff] %v11728_v14  ;;  %v11666_v35 = vadd.f32 %v28064_v6, %v11629_v15  ;;  %v15269_v42 = vld [vmem:[%s28995_s1 + $0x1320] sm:$0xff] }
 0xac0   : > { %11759 = vst [vmem:[#allocation2 + $0xf1] sm:$0xff] %v28107_v21  ;;  %v11665_v16 = vadd.f32 %v28064_v6, %v11628_v28  ;;  %v20410_v17 = vpop.f32.mrb[86].mxu1  ;;  %20485 = vmatprep.mubr.f32.mxu0 %v28107_v21  ;;  %v15270_v28 = vld [vmem:[%s28995_s1 + $0x1328] sm:$0xff] }
 0xac1   : > { %v28114_v45 = vadd.f32 %v11698_v32, %v11666_v35  ;;  %v11631_v8 = vmul.f32 %v20410_v17, %v28059_v46  ;;  %v11522_v0 = vpop.f32.mrb[87].mxu1  ;;  %20486 = vmatmul.mubr.f32.gmra.mrb[84].mxu0 %v11728_v14  ;;  %v15268_v14 = vld [vmem:[%s28995_s1 + $0x1318] sm:$0xff]  ;;  %v22367_v32 = vpack.c.bf16 %v15270_v28, %v15269_v42  ;;  %v15271_v17 = vld [vmem:[%s28995_s1 + $0x1330] sm:$0xff] }
 0xac2   : > { %v28117_v39 = vadd.f32 %v11697_v50, %v11665_v16  ;;  %v11630_v43 = vmul.f32 %v28059_v46, %v11522_v0  ;;  %v28194_v35 = vld [vmem:[#allocation2 + $0x18] sm:$0xff]  ;;  %v28198_v16 = vld [vmem:[#allocation2 + $0x20] sm:$0xff]  ;;  %v15283_v28 = vld [vmem:[%s28995_s1 + $0x1390] sm:$0xff] }
 0xac3   : > { %11762 = vst [vmem:[#allocation2 + $0x111] sm:$0xff] %v28114_v45  ;;  %v11668_v63 = vadd.f32 %v28064_v6, %v11631_v8  ;;  %v15272_v50 = vld [vmem:[%s28995_s1 + $0x1338] sm:$0xff]  ;;  %v15273_v0 = vld [vmem:[%s28995_s1 + $0x1340] sm:$0xff] }
 0xac4   : > { %11761 = vst [vmem:[#allocation2 + $0x109] sm:$0xff] %v28117_v39  ;;  %v11667_v54 = vadd.f32 %v28064_v6, %v11630_v43  ;;  %v20413_v1 = vpop.f32.mrb[88].mxu1  ;;  %20488 = vmatprep.mubr.f32.mxu0 %v28117_v39  ;;  %v28210_v8 = vld [vmem:[#allocation2 + $0x38] sm:$0xff]  ;;  %v15274_v43 = vld [vmem:[%s28995_s1 + $0x1348] sm:$0xff] }
 0xac5   : > { %v28125_v38 = vadd.f32 %v11700_v37, %v11668_v63  ;;  %v11633_v61 = vmul.f32 %v20413_v1, %v28059_v46  ;;  %v11532_v47 = vpop.f32.mrb[89].mxu1  ;;  %20489 = vmatmul.mubr.f32.gmra.mrb[86].mxu0 %v28114_v45  ;;  %v28219_v63 = vld [vmem:[#allocation2 + $0x48] sm:$0xff]  ;;  %v22375_v37 = vpack.c.bf16 %v15274_v43, %v15273_v0  ;;  %v15275_v1 = vld [vmem:[%s28995_s1 + $0x1350] sm:$0xff]  ;;  %v28333_v43 = vld [vmem:[#allocation2 + $0x1a] sm:$0xff] }
 0xac6   : > { %v28129_v22 = vadd.f32 %v11699_v2, %v11667_v54  ;;  %v11632_v49 = vmul.f32 %v28059_v46, %v11532_v47  ;;  %v28222_v54 = vld [vmem:[#allocation2 + $0x50] sm:$0xff]  ;;  %v15276_v2 = vld [vmem:[%s28995_s1 + $0x1358] sm:$0xff]  ;;  %v15286_v0 = vld [vmem:[%s28995_s1 + $0x13a8] sm:$0xff] }
 0xac7   : > { %11764 = vst [vmem:[#allocation2 + $0x129] sm:$0xff] %v28125_v38  ;;  %v11670_v25 = vadd.f32 %v28064_v6, %v11633_v61  ;;  %v28231_v61 = vld [vmem:[#allocation2 + $0x60] sm:$0xff]  ;;  %v22379_v47 = vpack.c.bf16 %v15276_v2, %v15275_v1  ;;  %v15287_v2 = vld [vmem:[%s28995_s1 + $0x13b0] sm:$0xff] }
 0xac8   : > { %11763 = vst [vmem:[#allocation2 + $0x121] sm:$0xff] %v28129_v22  ;;  %v11669_v19 = vadd.f32 %v28064_v6, %v11632_v49  ;;  %v20416_v9 = vpop.f32.mrb[90].mxu1  ;;  %20491 = vmatprep.mubr.f32.mxu0 %v28129_v22  ;;  %v28234_v49 = vld [vmem:[#allocation2 + $0x68] sm:$0xff] }
 0xac9   : > { %v28137_v5 = vadd.f32 %v11702_v7, %v11670_v25  ;;  %v11635_v4 = vmul.f32 %v20416_v9, %v28059_v46  ;;  %v11542_v29 = vpop.f32.mrb[91].mxu1  ;;  %20492 = vmatmul.mubr.f32.gmra.mrb[88].mxu0 %v28125_v38  ;;  %v15277_v25 = vld [vmem:[%s28995_s1 + $0x1360] sm:$0xff]  ;;  %v15278_v7 = vld [vmem:[%s28995_s1 + $0x1368] sm:$0xff] }
 0xaca   : > { %v28141_v31 = vadd.f32 %v11701_v30, %v11669_v19  ;;  %v11634_v60 = vmul.f32 %v28059_v46, %v11542_v29  ;;  %v28243_v19 = vld [vmem:[#allocation2 + $0x78] sm:$0xff]  ;;  %v22383_v9 = vpack.c.bf16 %v15278_v7, %v15277_v25  ;;  %v28246_v30 = vld [vmem:[#allocation2 + $0x80] sm:$0xff] }
 0xacb   : > { %11766 = vst [vmem:[#allocation2 + $0x141] sm:$0xff] %v28137_v5  ;;  %v11672_v24 = vadd.f32 %v28064_v6, %v11635_v4  ;;  %v15279_v4 = vld [vmem:[%s28995_s1 + $0x1370] sm:$0xff]  ;;  %v15280_v29 = vld [vmem:[%s28995_s1 + $0x1378] sm:$0xff]  ;;  %v28336_v1 = vld [vmem:[#allocation2 + $0x22] sm:$0xff] }
 0xacc   : > { %11765 = vst [vmem:[#allocation2 + $0x139] sm:$0xff] %v28141_v31  ;;  %v11671_v55 = vadd.f32 %v28064_v6, %v11634_v60  ;;  %v20419_v11 = vpop.f32.mrb[92].mxu1  ;;  %20494 = vmatprep.mubr.f32.mxu0 %v28141_v31  ;;  %v28255_v60 = vld [vmem:[#allocation2 + $0x90] sm:$0xff] }
 0xacd   : > { %v28149_v20 = vadd.f32 %v11704_v33, %v11672_v24  ;;  %v11637_v40 = vmul.f32 %v20419_v11, %v28059_v46  ;;  %v11552_v3 = vpop.f32.mrb[93].mxu1  ;;  %20495 = vmatmul.mubr.f32.gmra.mrb[90].mxu0 %v28137_v5  ;;  %v22387_v24 = vpack.c.bf16 %v15280_v29, %v15279_v4  ;;  %v28258_v33 = vld [vmem:[#allocation2 + $0x98] sm:$0xff]  ;;  %v15282_v11 = vld [vmem:[%s28995_s1 + $0x1388] sm:$0xff]  ;;  %v15289_v4 = vld [vmem:[%s28995_s1 + $0x13c0] sm:$0xff] }
 0xace   : > { %v28153_v56 = vadd.f32 %v11703_v52, %v11671_v55  ;;  %v11636_v12 = vmul.f32 %v28059_v46, %v11552_v3  ;;  %v15281_v55 = vld [vmem:[%s28995_s1 + $0x1380] sm:$0xff]  ;;  %v28267_v52 = vld [vmem:[#allocation2 + $0xa8] sm:$0xff]  ;;  %v28270_v3 = vld [vmem:[#allocation2 + $0xb0] sm:$0xff] }
 0xacf   : > { %11768 = vst [vmem:[#allocation2 + $0x159] sm:$0xff] %v28149_v20  ;;  %v11674_v59 = vadd.f32 %v28064_v6, %v11637_v40  ;;  %v22391_v40 = vpack.c.bf16 %v15282_v11, %v15281_v55  ;;  %v28345_v25 = vld [vmem:[#allocation2 + $0x32] sm:$0xff]  ;;  %v15290_v29 = vld [vmem:[%s28995_s1 + $0x13c8] sm:$0xff] }
 0xad0   : > { %11767 = vst [vmem:[#allocation2 + $0x151] sm:$0xff] %v28153_v56  ;;  %v11673_v13 = vadd.f32 %v28064_v6, %v11636_v12  ;;  %v20422_v27 = vpop.f32.mrb[94].mxu1  ;;  %20497 = vmatprep.mubr.f32.mxu0 %v28153_v56  ;;  %v28273_v12 = vld [vmem:[#allocation2 + $0xc0] sm:$0xff]  ;;  %v22407_v55 = vpack.c.bf16 %v15290_v29, %v15289_v4  ;;  %v28360_v11 = vld [vmem:[#allocation2 + $0x52] sm:$0xff] }
 0xad1   : > { %v28161_v10 = vadd.f32 %v11706_v51, %v11674_v59  ;;  %v11639_v62 = vmul.f32 %v20422_v27, %v28059_v46  ;;  %v11562_v23 = vpop.f32.mrb[95].mxu1  ;;  %20498 = vmatmul.mubr.f32.gmra.mrb[92].mxu0 %v28149_v20  ;;  %v28276_v59 = vld [vmem:[#allocation2 + $0xc8] sm:$0xff]  ;;  %v28279_v51 = vld [vmem:[#allocation2 + $0xd8] sm:$0xff]  ;;  %v28285_v27 = vld [vmem:[#allocation2 + $0xf0] sm:$0xff] }
 0xad2   : > { %v28165_v26 = vadd.f32 %v11705_v34, %v11673_v13  ;;  %v11638_v44 = vmul.f32 %v28059_v46, %v11562_v23  ;;  %v28282_v13 = vld [vmem:[#allocation2 + $0xe0] sm:$0xff]  ;;  %v28288_v34 = vld [vmem:[#allocation2 + $0xf8] sm:$0xff]  ;;  %v28294_v23 = vld [vmem:[#allocation2 + $0x110] sm:$0xff] }
 0xad3   : > { %11770 = vst [vmem:[#allocation2 + $0x171] sm:$0xff] %v28161_v10  ;;  %v11676_v36 = vadd.f32 %v28064_v6, %v11639_v62  ;;  %v28291_v62 = vld [vmem:[#allocation2 + $0x108] sm:$0xff]  ;;  %v28393_v4 = vld [vmem:[#allocation2 + $0x92] sm:$0xff] }
 0xad4   : > { %11769 = vst [vmem:[#allocation2 + $0x169] sm:$0xff] %v28165_v26  ;;  %v11675_v58 = vadd.f32 %v28064_v6, %v11638_v44  ;;  %20500 = vmatprep.mubr.f32.mxu0 %v28165_v26  ;;  %v22363_v6 = vpack.c.bf16 %v15268_v14, %v15267_v53  ;;  %v28297_v44 = vld [vmem:[#allocation2 + $0x120] sm:$0xff] }
 0xad5   : > { %v28179_v46 = vadd.f32 %v11708_v18, %v11676_v36  ;;  %20501 = vmatmul.mubr.f32.gmra.mrb[94].mxu0 %v28161_v10  ;;  %v28300_v36 = vld [vmem:[#allocation2 + $0x128] sm:$0xff]  ;;  %v28303_v18 = vld [vmem:[#allocation2 + $0x138] sm:$0xff] }
 0xad6   : > { %v28182_v15 = vadd.f32 %v11707_v57, %v11675_v58  ;;  %20535 = vmatprep.mubr.f32.mxu0 %v27889_v41  ;;  %v28306_v58 = vld [vmem:[#allocation2 + $0x140] sm:$0xff] }
 0xad7   : > { %11772 = vst [vmem:[#allocation2 + $0x189] sm:$0xff] %v28179_v46  ;;  %v28309_v53 = vld [vmem:[#allocation2 + $0x150] sm:$0xff]  ;;  %v28312_v14 = vld [vmem:[#allocation2 + $0x158] sm:$0xff] }
 0xad8   : > { %11771 = vst [vmem:[#allocation2 + $0x181] sm:$0xff] %v28182_v15 }
 0xad9   : > { %20536 = vmatmul.mubr.f32.vlgmr.msra.gmra.mrb[64].mxu0 %v27889_v41  ;;  %v28207_v41 = vld [vmem:[#allocation2 + $0x30] sm:$0xff] }
 0xada   : > { %20538 = vmatprep.mubr.f32.mxu0 %v28194_v35  ;;  %22362 = vmatpush3.bf16.msra.mxu0 %v28053_v48  ;;  %v22371_v48 = vpack.c.bf16 %v15272_v50, %v15271_v17  ;;  %v12322_v17 = vld [vmem:[#allocation2 + $0xa] sm:$0xff] }
 0xadb   : > { %22364 = vmatprep.subr.bf16.mxu0 %v22363_v6  ;;  %v28315_v57 = vld [vmem:[#allocation2 + $0x168] sm:$0xff]  ;;  %v28318_v42 = vld [vmem:[#allocation2 + $0x170] sm:$0xff] }
 0xadc   : > { %29378 = vst [vmem:[#allocation16_spill] sm:$0xff] %v28315_v57  ;;  %29379 = vst [vmem:[#allocation7_spill] sm:$0xff] %v28318_v42 }
 0xadd   : > { %20539 = vmatmul.mubr.f32.gmra.mrb[66].mxu0 %v28198_v16 }
 0xade   : > { %20541 = vmatprep.mubr.f32.mxu0 %v28207_v41  ;;  %22366 = vmatpush3.bf16.msra.mxu0 %v22363_v6  ;;  %v12321_v6 = vld [vmem:[#allocation2 + $0x2] sm:$0xff] }
 0xadf   : > { %22368 = vmatprep.subr.bf16.mxu0 %v22367_v32 }
 0xae1   : > { %20542 = vmatmul.mubr.f32.gmra.mrb[68].mxu0 %v28210_v8 }
 0xae2   : > { %20544 = vmatprep.mubr.f32.mxu0 %v28219_v63  ;;  %22370 = vmatpush3.bf16.msra.mxu0 %v22367_v32  ;;  %v15284_v32 = vld [vmem:[%s28995_s1 + $0x1398] sm:$0xff] }
 0xae3   : > { %22372 = vmatprep.subr.bf16.mxu0 %v22371_v48  ;;  %v22395_v50 = vpack.c.bf16 %v15284_v32, %v15283_v28  ;;  %v28369_v28 = vld [vmem:[#allocation2 + $0x62] sm:$0xff] }
 0xae5   : > { %20545 = vmatmul.mubr.f32.gmra.mrb[70].mxu0 %v28222_v54 }
 0xae6   : > { %20547 = vmatprep.mubr.f32.mxu0 %v28231_v61  ;;  %22374 = vmatpush3.bf16.msra.mxu0 %v22371_v48  ;;  %v15285_v48 = vld [vmem:[%s28995_s1 + $0x13a0] sm:$0xff] }
 0xae7   : > { %22376 = vmatprep.subr.bf16.mxu0 %v22375_v37 }
 0xae9   : > { %20548 = vmatmul.mubr.f32.gmra.mrb[72].mxu0 %v28234_v49 }
 0xaea   : > { %20550 = vmatprep.mubr.f32.mxu0 %v28243_v19  ;;  %22378 = vmatpush3.bf16.msra.mxu0 %v22375_v37  ;;  %v22399_v37 = vpack.c.bf16 %v15286_v0, %v15285_v48  ;;  %v15294_v48 = vld [vmem:[%s28995_s1 + $0x13e8] sm:$0xff]  ;;  %v28381_v0 = vld [vmem:[#allocation2 + $0x7a] sm:$0xff] }
 0xaeb   : > { %22380 = vmatprep.subr.bf16.mxu0 %v22379_v47 }
 0xaed   : > { %20551 = vmatmul.mubr.f32.gmra.mrb[74].mxu0 %v28246_v30 }
 0xaee   : > { %20553 = vmatprep.mubr.f32.mxu0 %v28255_v60  ;;  %22382 = vmatpush3.bf16.msra.mxu0 %v22379_v47  ;;  %v15288_v47 = vld [vmem:[%s28995_s1 + $0x13b8] sm:$0xff] }
 0xaef   : > { %22384 = vmatprep.subr.bf16.mxu0 %v22383_v9  ;;  %v22403_v7 = vpack.c.bf16 %v15288_v47, %v15287_v2  ;;  %v28384_v2 = vld [vmem:[#allocation2 + $0x82] sm:$0xff]  ;;  %v15295_v47 = vld [vmem:[%s28995_s1 + $0x13f0] sm:$0xff] }
 0xaf1   : > { %20554 = vmatmul.mubr.f32.gmra.mrb[76].mxu0 %v28258_v33 }
 0xaf2   : > { %20556 = vmatprep.mubr.f32.mxu0 %v28267_v52  ;;  %22386 = vmatpush3.bf16.msra.mxu0 %v22383_v9  ;;  %v28348_v9 = vld [vmem:[#allocation2 + $0x3a] sm:$0xff] }
 0xaf3   : > { %22388 = vmatprep.subr.bf16.mxu0 %v22387_v24 }
 0xaf5   : > { %20557 = vmatmul.mubr.f32.gmra.mrb[78].mxu0 %v28270_v3 }
 0xaf6   : > { %20559 = vmatprep.mubr.f32.mxu0 %v28273_v12  ;;  %22390 = vmatpush3.bf16.msra.mxu0 %v22387_v24  ;;  %v28357_v24 = vld [vmem:[#allocation2 + $0x4a] sm:$0xff] }
 0xaf7   : > { %22392 = vmatprep.subr.bf16.mxu0 %v22391_v40 }
 0xaf9   : > { %20560 = vmatmul.mubr.f32.gmra.mrb[80].mxu0 %v28276_v59 }
 0xafa   : > { %20562 = vmatprep.mubr.f32.mxu0 %v28279_v51 }
 0xafd   : > { %20563 = vmatmul.mubr.f32.gmra.mrb[82].mxu0 %v28282_v13 }
 0xafe   : > { %20565 = vmatprep.mubr.f32.mxu0 %v28285_v27 }
 0xb01   : > { %20566 = vmatmul.mubr.f32.gmra.mrb[84].mxu0 %v28288_v34 }
 0xb02   : > { %20568 = vmatprep.mubr.f32.mxu0 %v28291_v62 }
 0xb05   : > { %20569 = vmatmul.mubr.f32.gmra.mrb[86].mxu0 %v28294_v23 }
 0xb06   : > { %20571 = vmatprep.mubr.f32.mxu0 %v28297_v44 }
 0xb09   : > { %20572 = vmatmul.mubr.f32.gmra.mrb[88].mxu0 %v28300_v36 }
 0xb0a   : > { %20574 = vmatprep.mubr.f32.mxu0 %v28303_v18 }
 0xb0d   : > { %20575 = vmatmul.mubr.f32.gmra.mrb[90].mxu0 %v28306_v58 }
 0xb0e   : > { %20577 = vmatprep.mubr.f32.mxu0 %v28309_v53 }
 0xb11   : > { %20578 = vmatmul.mubr.f32.gmra.mrb[92].mxu0 %v28312_v14 }
 0xb12   : > { %20580 = vmatprep.mubr.f32.mxu0 %v28315_v57 }
 0xb15   : > { %20581 = vmatmul.mubr.f32.gmra.mrb[94].mxu0 %v28318_v42 }
 0xb16   : > { %20615 = vmatprep.mubr.f32.mxu0 %v12321_v6  ;;  %v15292_v6 = vld [vmem:[%s28995_s1 + $0x13d8] sm:$0xff] }
 0xb19   : > { %20616 = vmatmul.mubr.f32.vlgmr.msra.gmra.mrb[64].mxu0 %v12322_v17  ;;  %v28372_v17 = vld [vmem:[#allocation2 + $0x6a] sm:$0xff] }
 0xb1a   : > { %20618 = vmatprep.mubr.f32.mxu0 %v28333_v43  ;;  %22394 = vmatpush3.bf16.msra.mxu0 %v22391_v40  ;;  %v15291_v40 = vld [vmem:[%s28995_s1 + $0x13d0] sm:$0xff] }
 0xb1b   : > { %22396 = vmatprep.subr.bf16.mxu0 %v22395_v50  ;;  %v22411_v32 = vpack.c.bf16 %v15292_v6, %v15291_v40  ;;  %v15297_v40 = vld [vmem:[%s28995_s1 + $0x1400] sm:$0xff]  ;;  %v15298_v6 = vld [vmem:[%s28995_s1 + $0x1408] sm:$0xff] }
 0xb1d   : > { %20619 = vmatmul.mubr.f32.gmra.mrb[66].mxu0 %v28336_v1 }
 0xb1e   : > { %20621 = vmatprep.mubr.f32.mxu0 %v28345_v25  ;;  %22398 = vmatpush3.bf16.msra.mxu0 %v22395_v50  ;;  %v15293_v50 = vld [vmem:[%s28995_s1 + $0x13e0] sm:$0xff] }
 0xb1f   : > { %22400 = vmatprep.subr.bf16.mxu0 %v22399_v37 }
 0xb21   : > { %20622 = vmatmul.mubr.f32.gmra.mrb[68].mxu0 %v28348_v9 }
 0xb22   : > { %20624 = vmatprep.mubr.f32.mxu0 %v28357_v24  ;;  %22402 = vmatpush3.bf16.msra.mxu0 %v22399_v37  ;;  %v22415_v37 = vpack.c.bf16 %v15294_v48, %v15293_v50  ;;  %v28405_v50 = vld [vmem:[#allocation2 + $0xaa] sm:$0xff]  ;;  %v28408_v48 = vld [vmem:[#allocation2 + $0xb2] sm:$0xff] }
 0xb23   : > { %22404 = vmatprep.subr.bf16.mxu0 %v22403_v7 }
 0xb25   : > { %20625 = vmatmul.mubr.f32.gmra.mrb[70].mxu0 %v28360_v11 }
 0xb26   : > { %20627 = vmatprep.mubr.f32.mxu0 %v28369_v28  ;;  %22406 = vmatpush3.bf16.msra.mxu0 %v22403_v7  ;;  %v15296_v7 = vld [vmem:[%s28995_s1 + $0x13f8] sm:$0xff] }
 0xb27   : > { %22408 = vmatprep.subr.bf16.mxu0 %v22407_v55  ;;  %v22419_v29 = vpack.c.bf16 %v15296_v7, %v15295_v47  ;;  %v28411_v47 = vld [vmem:[#allocation2 + $0xc2] sm:$0xff]  ;;  %v28414_v7 = vld [vmem:[#allocation2 + $0xca] sm:$0xff] }
 0xb28   : > { %29381 = vst [vmem:[#allocation18_spill] sm:$0xff] %v28411_v47  ;;  %29382 = vst [vmem:[#allocation10_spill] sm:$0xff] %v28414_v7 }
 0xb29   : > { %20628 = vmatmul.mubr.f32.gmra.mrb[72].mxu0 %v28372_v17 }
 0xb2a   : > { %20630 = vmatprep.mubr.f32.mxu0 %v28381_v0  ;;  %22410 = vmatpush3.bf16.msra.mxu0 %v22407_v55  ;;  %v28396_v55 = vld [vmem:[#allocation2 + $0x9a] sm:$0xff] }
 0xb2b   : > { %22412 = vmatprep.subr.bf16.mxu0 %v22411_v32  ;;  %29380 = vst [vmem:[#allocation17_spill] sm:$0xff] %v28396_v55 }
 0xb2d   : > { %20631 = vmatmul.mubr.f32.gmra.mrb[74].mxu0 %v28384_v2 }
 0xb2e   : > { %20633 = vmatprep.mubr.f32.mxu0 %v28393_v4  ;;  %22414 = vmatpush3.bf16.msra.mxu0 %v22411_v32  ;;  %v22423_v32 = vpack.c.bf16 %v15298_v6, %v15297_v40  ;;  %v28423_v40 = vld [vmem:[#allocation2 + $0xf2] sm:$0xff]  ;;  %v28426_v6 = vld [vmem:[#allocation2 + $0xfa] sm:$0xff] }
 0xb2f   : > { %22416 = vmatprep.subr.bf16.mxu0 %v22415_v37  ;;  %29385 = vst [vmem:[#allocation11_spill] sm:$0xff] %v28423_v40  ;;  %29386 = vst [vmem:[#allocation20_spill] sm:$0xff] %v28426_v6 }
 0xb31   : > { %20634 = vmatmul.mubr.f32.gmra.mrb[76].mxu0 %v28396_v55  ;;  %v28417_v55 = vld [vmem:[#allocation2 + $0xda] sm:$0xff] }
 0xb32   : > { %20636 = vmatprep.mubr.f32.mxu0 %v28405_v50  ;;  %22418 = vmatpush3.bf16.msra.mxu0 %v22415_v37  ;;  %29383 = vst [vmem:[#allocation8_spill] sm:$0xff] %v28417_v55  ;;  %v28420_v37 = vld [vmem:[#allocation2 + $0xe2] sm:$0xff] }
 0xb33   : > { %22420 = vmatprep.subr.bf16.mxu0 %v22419_v29  ;;  %29384 = vst [vmem:[#allocation19_spill] sm:$0xff] %v28420_v37 }
 0xb35   : > { %20637 = vmatmul.mubr.f32.gmra.mrb[78].mxu0 %v28408_v48 }
 0xb36   : > { %20639 = vmatprep.mubr.f32.mxu0 %v28411_v47  ;;  %22422 = vmatpush3.bf16.msra.mxu0 %v22419_v29  ;;  %v28429_v29 = vld [vmem:[#allocation2 + $0x10a] sm:$0xff] }
 0xb37   : > { %22424 = vmatprep.subr.bf16.mxu0 %v22423_v32  ;;  %29387 = vst [vmem:[#allocation9_spill] sm:$0xff] %v28429_v29 }
 0xb39   : > { %20640 = vmatmul.mubr.f32.gmra.mrb[80].mxu0 %v28414_v7  ;;  %v28432_v7 = vld [vmem:[#allocation2 + $0x112] sm:$0xff] }
 0xb3a   : > { %20642 = vmatprep.mubr.f32.mxu0 %v28417_v55  ;;  %29388 = vst [vmem:[#allocation12_spill] sm:$0xff] %v28432_v7  ;;  %v28435_v55 = vld [vmem:[#allocation2 + $0x122] sm:$0xff] }
 0xb3b   : > { %29389 = vst [vmem:[#allocation5_spill] sm:$0xff] %v28435_v55 }
 0xb3d   : > { %20643 = vmatmul.mubr.f32.gmra.mrb[82].mxu0 %v28420_v37  ;;  %v28438_v37 = vld [vmem:[#allocation2 + $0x12a] sm:$0xff] }
 0xb3e   : > { %20645 = vmatprep.mubr.f32.mxu0 %v28423_v40  ;;  %29390 = vst [vmem:[#allocation21_spill] sm:$0xff] %v28438_v37  ;;  %v28441_v40 = vld [vmem:[#allocation2 + $0x13a] sm:$0xff] }
 0xb3f   : > { %29391 = vst [vmem:[#allocation22_spill] sm:$0xff] %v28441_v40 }
 0xb41   : > { %20646 = vmatmul.mubr.f32.gmra.mrb[84].mxu0 %v28426_v6  ;;  %v28444_v6 = vld [vmem:[#allocation2 + $0x142] sm:$0xff] }
 0xb42   : > { %20648 = vmatprep.mubr.f32.mxu0 %v28429_v29  ;;  %29392 = vst [vmem:[#allocation23_spill] sm:$0xff] %v28444_v6  ;;  %v28447_v29 = vld [vmem:[#allocation2 + $0x152] sm:$0xff] }
 0xb43   : > { %29393 = vst [vmem:[#allocation24_spill] sm:$0xff] %v28447_v29 }
 0xb45   : > { %20649 = vmatmul.mubr.f32.gmra.mrb[86].mxu0 %v28432_v7  ;;  %v28450_v7 = vld [vmem:[#allocation2 + $0x15a] sm:$0xff] }
 0xb46   : > { %20651 = vmatprep.mubr.f32.mxu0 %v28435_v55  ;;  %29394 = vst [vmem:[#allocation25_spill] sm:$0xff] %v28450_v7  ;;  %v28453_v55 = vld [vmem:[#allocation2 + $0x16a] sm:$0xff] }
 0xb47   : > { %29395 = vst [vmem:[#allocation13_spill] sm:$0xff] %v28453_v55 }
 0xb49   : > { %20652 = vmatmul.mubr.f32.gmra.mrb[88].mxu0 %v28438_v37  ;;  %v28456_v37 = vld [vmem:[#allocation2 + $0x172] sm:$0xff] }
 0xb4a   : > { %20654 = vmatprep.mubr.f32.mxu0 %v28441_v40  ;;  %v15299_v40 = vld [vmem:[%s28995_s1 + $0x1410] sm:$0xff] }
 0xb4d   : > { %20655 = vmatmul.mubr.f32.gmra.mrb[90].mxu0 %v28444_v6  ;;  %v15300_v6 = vld [vmem:[%s28995_s1 + $0x1418] sm:$0xff] }
 0xb4e   : > { %20657 = vmatprep.mubr.f32.mxu0 %v28447_v29  ;;  %v22427_v29 = vpack.c.bf16 %v15300_v6, %v15299_v40  ;;  %v15304_v40 = vld [vmem:[%s28995_s1 + $0x1438] sm:$0xff]  ;;  %v15307_v6 = vld [vmem:[%s28995_s1 + $0x1450] sm:$0xff] }
 0xb51   : > { %20658 = vmatmul.mubr.f32.gmra.mrb[92].mxu0 %v28450_v7  ;;  %v15301_v7 = vld [vmem:[%s28995_s1 + $0x1420] sm:$0xff] }
 0xb52   : > { %20660 = vmatprep.mubr.f32.mxu0 %v28453_v55  ;;  %v15302_v55 = vld [vmem:[%s28995_s1 + $0x1428] sm:$0xff] }
 0xb53   : > { %v22431_v47 = vpack.c.bf16 %v15302_v55, %v15301_v7  ;;  %v15306_v55 = vld [vmem:[%s28995_s1 + $0x1448] sm:$0xff] }
 0xb55   : > { %20661 = vmatmul.mubr.f32.gmra.mrb[94].mxu0 %v28456_v37 }
 0xb56   : > { %20695 = vmatprep.mubr.f32.mxu0 %v28194_v35  ;;  %v15303_v35 = vld [vmem:[%s28995_s1 + $0x1430] sm:$0xff] }
 0xb59   : > { %20696 = vmatmul.mubr.f32.vlgmr.msra.gmra.mrb[64].mxu0 %v28198_v16  ;;  %v22435_v16 = vpack.c.bf16 %v15304_v40, %v15303_v35  ;;  %v15310_v40 = vld [vmem:[%s28995_s1 + $0x1468] sm:$0xff] }
 0xb5a   : > { %20698 = vmatprep.mubr.f32.mxu0 %v28207_v41  ;;  %22426 = vmatpush3.bf16.msra.mxu0 %v22423_v32  ;;  %v15305_v32 = vld [vmem:[%s28995_s1 + $0x1440] sm:$0xff] }
 0xb5b   : > { %22428 = vmatprep.subr.bf16.mxu0 %v22427_v29  ;;  %v22439_v7 = vpack.c.bf16 %v15306_v55, %v15305_v32  ;;  %v15312_v55 = vld [vmem:[%s28995_s1 + $0x1478] sm:$0xff] }
 0xb5d   : > { %20699 = vmatmul.mubr.f32.gmra.mrb[66].mxu0 %v28210_v8 }
 0xb5e   : > { %20701 = vmatprep.mubr.f32.mxu0 %v28219_v63  ;;  %22430 = vmatpush3.bf16.msra.mxu0 %v22427_v29  ;;  %v15308_v29 = vld [vmem:[%s28995_s1 + $0x1458] sm:$0xff] }
 0xb5f   : > { %22432 = vmatprep.subr.bf16.mxu0 %v22431_v47  ;;  %v22443_v35 = vpack.c.bf16 %v15308_v29, %v15307_v6  ;;  %v15314_v29 = vld [vmem:[%s28995_s1 + $0x1488] sm:$0xff] }
 0xb61   : > { %20702 = vmatmul.mubr.f32.gmra.mrb[68].mxu0 %v28222_v54 }
 0xb62   : > { %20704 = vmatprep.mubr.f32.mxu0 %v28231_v61  ;;  %22434 = vmatpush3.bf16.msra.mxu0 %v22431_v47  ;;  %v15309_v47 = vld [vmem:[%s28995_s1 + $0x1460] sm:$0xff] }
 0xb63   : > { %22436 = vmatprep.subr.bf16.mxu0 %v22435_v16  ;;  %v22447_v32 = vpack.c.bf16 %v15310_v40, %v15309_v47  ;;  %v28540_v40 = vld [vmem:[#allocation2 + $0x188] sm:$0xff] }
 0xb64   : > { %29397 = vst [vmem:[#allocation6_spill] sm:$0xff] %v28540_v40 }
 0xb65   : > { %20705 = vmatmul.mubr.f32.gmra.mrb[70].mxu0 %v28234_v49 }
 0xb66   : > { %20707 = vmatprep.mubr.f32.mxu0 %v28243_v19  ;;  %22438 = vmatpush3.bf16.msra.mxu0 %v22435_v16  ;;  %v15311_v16 = vld [vmem:[%s28995_s1 + $0x1470] sm:$0xff] }
 0xb67   : > { %22440 = vmatprep.subr.bf16.mxu0 %v22439_v7  ;;  %v22451_v6 = vpack.c.bf16 %v15312_v55, %v15311_v16  ;;  %v15316_v16 = vld [vmem:[%s28995_s1 + $0x1498] sm:$0xff] }
 0xb68   : > { %v12933_v55 = vld [vmem:[#allocation2 + $0x19] sm:$0xff] }
 0xb69   : > { %20708 = vmatmul.mubr.f32.gmra.mrb[72].mxu0 %v28246_v30 }
 0xb6a   : > { %20710 = vmatprep.mubr.f32.mxu0 %v28255_v60  ;;  %22442 = vmatpush3.bf16.msra.mxu0 %v22439_v7  ;;  %v15313_v7 = vld [vmem:[%s28995_s1 + $0x1480] sm:$0xff] }
 0xb6b   : > { %22444 = vmatprep.subr.bf16.mxu0 %v22443_v35  ;;  %v22455_v47 = vpack.c.bf16 %v15314_v29, %v15313_v7  ;;  %v12934_v7 = vld [vmem:[#allocation2 + $0x21] sm:$0xff] }
 0xb6c   : > { %v15317_v29 = vld [vmem:[%s28995_s1 + $0x14a0] sm:$0xff] }
 0xb6d   : > { %20711 = vmatmul.mubr.f32.gmra.mrb[74].mxu0 %v28258_v33 }
 0xb6e   : > { %20713 = vmatprep.mubr.f32.mxu0 %v28267_v52  ;;  %22446 = vmatpush3.bf16.msra.mxu0 %v22443_v35  ;;  %v28537_v35 = vld [vmem:[#allocation2 + $0x180] sm:$0xff] }
 0xb6f   : > { %22448 = vmatprep.subr.bf16.mxu0 %v22447_v32  ;;  %29396 = vst [vmem:[#allocation14_spill] sm:$0xff] %v28537_v35 }
 0xb71   : > { %20714 = vmatmul.mubr.f32.gmra.mrb[76].mxu0 %v28270_v3 }
 0xb72   : > { %20716 = vmatprep.mubr.f32.mxu0 %v28273_v12  ;;  %22450 = vmatpush3.bf16.msra.mxu0 %v22447_v32  ;;  %v15315_v32 = vld [vmem:[%s28995_s1 + $0x1490] sm:$0xff] }
 0xb73   : > { %22452 = vmatprep.subr.bf16.mxu0 %v22451_v6 }
 0xb75   : > { %20717 = vmatmul.mubr.f32.gmra.mrb[78].mxu0 %v28276_v59 }
 0xb76   : > { %20719 = vmatprep.mubr.f32.mxu0 %v28279_v51  ;;  %22454 = vmatpush3.bf16.msra.mxu0 %v22451_v6  ;;  %v22459_v6 = vpack.c.bf16 %v15316_v16, %v15315_v32  ;;  %v15319_v32 = vld [vmem:[%s28995_s1 + $0x14b0] sm:$0xff]  ;;  %v15320_v16 = vld [vmem:[%s28995_s1 + $0x14b8] sm:$0xff] }
 0xb77   : > { %22456 = vmatprep.subr.bf16.mxu0 %v22455_v47 }
 0xb79   : > { %20720 = vmatmul.mubr.f32.gmra.mrb[80].mxu0 %v28282_v13 }
 0xb7a   : > { %20722 = vmatprep.mubr.f32.mxu0 %v28285_v27 }
 0xb7d   : > { %20723 = vmatmul.mubr.f32.gmra.mrb[82].mxu0 %v28288_v34 }
 0xb7e   : > { %20725 = vmatprep.mubr.f32.mxu0 %v28291_v62 }
 0xb81   : > { %20726 = vmatmul.mubr.f32.gmra.mrb[84].mxu0 %v28294_v23 }
 0xb82   : > { %20728 = vmatprep.mubr.f32.mxu0 %v28297_v44 }
 0xb85   : > { %20729 = vmatmul.mubr.f32.gmra.mrb[86].mxu0 %v28300_v36 }
 0xb86   : > { %20731 = vmatprep.mubr.f32.mxu0 %v28303_v18 }
 0xb89   : > { %20732 = vmatmul.mubr.f32.gmra.mrb[88].mxu0 %v28306_v58 }
 0xb8a   : > { %20734 = vmatprep.mubr.f32.mxu0 %v28309_v53 }
 0xb8d   : > { %20735 = vmatmul.mubr.f32.gmra.mrb[90].mxu0 %v28312_v14 }
 0xb8e   : > { %20737 = vmatprep.mubr.f32.mxu0 %v28315_v57  ;;  %v28558_v57 = vld [vmem:[#allocation2 + $0x39] sm:$0xff] }
 0xb8f   : > { %29398 = vst [vmem:[#allocation15_spill] sm:$0xff] %v28558_v57 }
 0xb91   : > { %20738 = vmatmul.mubr.f32.gmra.mrb[92].mxu0 %v28318_v42  ;;  %v28555_v42 = vld [vmem:[#allocation2 + $0x31] sm:$0xff] }
 0xb92   : > { %20740 = vmatprep.mubr.f32.mxu0 %v28537_v35  ;;  %v15318_v35 = vld [vmem:[%s28995_s1 + $0x14a8] sm:$0xff] }
 0xb95   : > { %20741 = vmatmul.mubr.f32.gmra.mrb[94].mxu0 %v28540_v40  ;;  %v22463_v40 = vpack.c.bf16 %v15318_v35, %v15317_v29  ;;  %v28570_v35 = vld [vmem:[#allocation2 + $0x51] sm:$0xff]  ;;  %v15322_v29 = vld [vmem:[%s28995_s1 + $0x14c8] sm:$0xff] }
 0xb96   : > { %20775 = vmatprep.mubr.f32.mxu0 %v12933_v55  ;;  %v28567_v55 = vld [vmem:[#allocation2 + $0x49] sm:$0xff]  ;;  %29400 = vst [vmem:[#allocation27_spill] sm:$0xff] %v28570_v35 }
 0xb97   : > { %29399 = vst [vmem:[#allocation26_spill] sm:$0xff] %v28567_v55 }
 0xb99   : > { %20776 = vmatmul.mubr.f32.vlgmr.msra.gmra.mrb[64].mxu0 %v12934_v7  ;;  %v15321_v7 = vld [vmem:[%s28995_s1 + $0x14c0] sm:$0xff] }
 0xb9a   : > { %20778 = vmatprep.mubr.f32.mxu0 %v28555_v42  ;;  %22458 = vmatpush3.bf16.msra.mxu0 %v22455_v47  ;;  %v22467_v47 = vpack.c.bf16 %v15320_v16, %v15319_v32  ;;  %v28582_v32 = vld [vmem:[#allocation2 + $0x69] sm:$0xff] }
 0xb9b   : > { %22460 = vmatprep.subr.bf16.mxu0 %v22459_v6  ;;  %29402 = vst [vmem:[#allocation29_spill] sm:$0xff] %v28582_v32  ;;  %v15323_v16 = vld [vmem:[%s28995_s1 + $0x14d0] sm:$0xff] }
 0xb9d   : > { %20779 = vmatmul.mubr.f32.gmra.mrb[66].mxu0 %v28558_v57  ;;  %v28579_v57 = vld [vmem:[#allocation2 + $0x61] sm:$0xff] }
 0xb9e   : > { %20781 = vmatprep.mubr.f32.mxu0 %v28567_v55  ;;  %22462 = vmatpush3.bf16.msra.mxu0 %v22459_v6  ;;  %29401 = vst [vmem:[#allocation28_spill] sm:$0xff] %v28579_v57  ;;  %v22471_v6 = vpack.c.bf16 %v15322_v29, %v15321_v7  ;;  %v15324_v55 = vld [vmem:[%s28995_s1 + $0x14d8] sm:$0xff]  ;;  %v28594_v7 = vld [vmem:[#allocation2 + $0x81] sm:$0xff] }
 0xb9f   : > { %22464 = vmatprep.subr.bf16.mxu0 %v22463_v40  ;;  %29404 = vst [vmem:[#allocation31_spill] sm:$0xff] %v28594_v7  ;;  %v15325_v29 = vld [vmem:[%s28995_s1 + $0x14e0] sm:$0xff] }
 0xba1   : > { %20782 = vmatmul.mubr.f32.gmra.mrb[68].mxu0 %v28570_v35  ;;  %v28591_v35 = vld [vmem:[#allocation2 + $0x79] sm:$0xff] }
 0xba2   : > { %20784 = vmatprep.mubr.f32.mxu0 %v28579_v57  ;;  %22466 = vmatpush3.bf16.msra.mxu0 %v22463_v40  ;;  %29403 = vst [vmem:[#allocation30_spill] sm:$0xff] %v28591_v35  ;;  %v22475_v40 = vpack.c.bf16 %v15324_v55, %v15323_v16  ;;  %v15326_v57 = vld [vmem:[%s28995_s1 + $0x14e8] sm:$0xff]  ;;  %v28606_v55 = vld [vmem:[#allocation2 + $0x99] sm:$0xff]  ;;  %v15327_v16 = vld [vmem:[%s28995_s1 + $0x14f0] sm:$0xff] }
 0xba3   : > { %22468 = vmatprep.subr.bf16.mxu0 %v22467_v47  ;;  %29406 = vst [vmem:[#allocation33_spill] sm:$0xff] %v28606_v55 }
 0xba5   : > { %20785 = vmatmul.mubr.f32.gmra.mrb[70].mxu0 %v28582_v32  ;;  %v28603_v32 = vld [vmem:[#allocation2 + $0x91] sm:$0xff] }
 0xba6   : > { %20787 = vmatprep.mubr.f32.mxu0 %v28591_v35  ;;  %22470 = vmatpush3.bf16.msra.mxu0 %v22467_v47  ;;  %29405 = vst [vmem:[#allocation32_spill] sm:$0xff] %v28603_v32  ;;  %v22479_v47 = vpack.c.bf16 %v15326_v57, %v15325_v29  ;;  %v15328_v35 = vld [vmem:[%s28995_s1 + $0x14f8] sm:$0xff]  ;;  %v15329_v29 = vld [vmem:[%s28995_s1 + $0x1500] sm:$0xff] }
 0xba7   : > { %22472 = vmatprep.subr.bf16.mxu0 %v22471_v6  ;;  %v28618_v57 = vld [vmem:[#allocation2 + $0xb1] sm:$0xff] }
 0xba9   : > { %20788 = vmatmul.mubr.f32.gmra.mrb[72].mxu0 %v28594_v7  ;;  %v28615_v7 = vld [vmem:[#allocation2 + $0xa9] sm:$0xff] }
 0xbaa   : > { %20790 = vmatprep.mubr.f32.mxu0 %v28603_v32  ;;  %22474 = vmatpush3.bf16.msra.mxu0 %v22471_v6  ;;  %29407 = vst [vmem:[#allocation34_spill] sm:$0xff] %v28615_v7  ;;  %v22483_v6 = vpack.c.bf16 %v15328_v35, %v15327_v16  ;;  %v15330_v32 = vld [vmem:[%s28995_s1 + $0x1508] sm:$0xff]  ;;  %v28633_v16 = vld [vmem:[#allocation2 + $0xd9] sm:$0xff] }
 0xbab   : > { %22476 = vmatprep.subr.bf16.mxu0 %v22475_v40  ;;  %v28630_v35 = vld [vmem:[#allocation2 + $0xc9] sm:$0xff] }
 0xbad   : > { %20791 = vmatmul.mubr.f32.gmra.mrb[74].mxu0 %v28606_v55  ;;  %v28627_v55 = vld [vmem:[#allocation2 + $0xc1] sm:$0xff] }
 0xbae   : > { %20793 = vmatprep.mubr.f32.mxu0 %v28615_v7  ;;  %22478 = vmatpush3.bf16.msra.mxu0 %v22475_v40  ;;  %29408 = vst [vmem:[#allocation35_spill] sm:$0xff] %v28627_v55  ;;  %v22487_v40 = vpack.c.bf16 %v15330_v32, %v15329_v29  ;;  %v28636_v7 = vld [vmem:[#allocation2 + $0xe1] sm:$0xff]  ;;  %v29410_v32 = vld [vmem:[#allocation18_spill] sm:$0xff] }
 0xbaf   : > { %22480 = vmatprep.subr.bf16.mxu0 %v22479_v47  ;;  %v29413_v29 = vld [vmem:[#allocation19_spill] sm:$0xff] }
 0xbb1   : > { %20794 = vmatmul.mubr.f32.gmra.mrb[76].mxu0 %v28618_v57 }
 0xbb2   : > { %20796 = vmatprep.mubr.f32.mxu0 %v28627_v55  ;;  %22482 = vmatpush3.bf16.msra.mxu0 %v22479_v47  ;;  %v28640_v55 = vld [vmem:[#allocation2 + $0xf9] sm:$0xff] }
 0xbb3   : > { %22484 = vmatprep.subr.bf16.mxu0 %v22483_v6 }
 0xbb5   : > { %20797 = vmatmul.mubr.f32.gmra.mrb[78].mxu0 %v28630_v35 }
 0xbb6   : > { %20799 = vmatprep.mubr.f32.mxu0 %v28633_v16  ;;  %22486 = vmatpush3.bf16.msra.mxu0 %v22483_v6  ;;  %v29411_v6 = vld [vmem:[#allocation10_spill] sm:$0xff] }
 0xbb7   : > { %22488 = vmatprep.subr.bf16.mxu0 %v22487_v40 }
 0xbb9   : > { %20800 = vmatmul.mubr.f32.gmra.mrb[80].mxu0 %v28636_v7 }
 0xbba   : > { %20802 = vmatprep.mubr.f32.mxu0 %v28107_v21  ;;  %v15331_v21 = vld [vmem:[%s28995_s1 + $0x1510] sm:$0xff] }
 0xbbd   : > { %20803 = vmatmul.mubr.f32.gmra.mrb[82].mxu0 %v28640_v55 }
 0xbbe   : > { %20805 = vmatprep.mubr.f32.mxu0 %v28117_v39 }
 0xbc1   : > { %20806 = vmatmul.mubr.f32.gmra.mrb[84].mxu0 %v28114_v45  ;;  %v15332_v45 = vld [vmem:[%s28995_s1 + $0x1518] sm:$0xff] }
 0xbc2   : > { %20808 = vmatprep.mubr.f32.mxu0 %v28129_v22  ;;  %v22491_v39 = vpack.c.bf16 %v15332_v45, %v15331_v21  ;;  %v15334_v22 = vld [vmem:[%s28995_s1 + $0x1528] sm:$0xff]  ;;  %v29416_v45 = vld [vmem:[#allocation9_spill] sm:$0xff] }
 0xbc3   : > { %v29415_v21 = vld [vmem:[#allocation20_spill] sm:$0xff] }
 0xbc5   : > { %20809 = vmatmul.mubr.f32.gmra.mrb[86].mxu0 %v28125_v38  ;;  %v15333_v38 = vld [vmem:[%s28995_s1 + $0x1520] sm:$0xff] }
 0xbc6   : > { %20811 = vmatprep.mubr.f32.mxu0 %v28141_v31  ;;  %v15335_v31 = vld [vmem:[%s28995_s1 + $0x1530] sm:$0xff] }
 0xbc9   : > { %20812 = vmatmul.mubr.f32.gmra.mrb[88].mxu0 %v28137_v5  ;;  %v22495_v5 = vpack.c.bf16 %v15334_v22, %v15333_v38  ;;  %v29419_v38 = vld [vmem:[#allocation21_spill] sm:$0xff]  ;;  %v29420_v22 = vld [vmem:[#allocation22_spill] sm:$0xff] }
 0xbca   : > { %20814 = vmatprep.mubr.f32.mxu0 %v28153_v56 }
 0xbcd   : > { %20815 = vmatmul.mubr.f32.gmra.mrb[90].mxu0 %v28149_v20  ;;  %v15336_v20 = vld [vmem:[%s28995_s1 + $0x1538] sm:$0xff] }
 0xbce   : > { %20817 = vmatprep.mubr.f32.mxu0 %v28165_v26  ;;  %v22499_v56 = vpack.c.bf16 %v15336_v20, %v15335_v31  ;;  %v15338_v26 = vld [vmem:[%s28995_s1 + $0x1548] sm:$0xff]  ;;  %v29423_v20 = vld [vmem:[#allocation25_spill] sm:$0xff] }
 0xbcf   : > { %v29422_v31 = vld [vmem:[#allocation24_spill] sm:$0xff] }
 0xbd1   : > { %20818 = vmatmul.mubr.f32.gmra.mrb[92].mxu0 %v28161_v10  ;;  %v15337_v10 = vld [vmem:[%s28995_s1 + $0x1540] sm:$0xff] }
 0xbd2   : > { %20820 = vmatprep.mubr.f32.mxu0 %v28182_v15  ;;  %v15339_v15 = vld [vmem:[%s28995_s1 + $0x1550] sm:$0xff] }
 0xbd5   : > { %20821 = vmatmul.mubr.f32.gmra.mrb[94].mxu0 %v28179_v46  ;;  %v22503_v46 = vpack.c.bf16 %v15338_v26, %v15337_v10  ;;  %v28733_v10 = vld [vmem:[#allocation2 + $0x182] sm:$0xff]  ;;  %v28736_v26 = vld [vmem:[#allocation2 + $0x18a] sm:$0xff] }
 0xbd6   : > { %20855 = vmatprep.mubr.f32.mxu0 %v28333_v43  ;;  %v15340_v43 = vld [vmem:[%s28995_s1 + $0x1558] sm:$0xff] }
 0xbd9   : > { %20856 = vmatmul.mubr.f32.vlgmr.msra.gmra.mrb[64].mxu0 %v28336_v1  ;;  %v22507_v1 = vpack.c.bf16 %v15340_v43, %v15339_v15  ;;  %v15348_v15 = vld [vmem:[%s28995_s1 + $0x1598] sm:$0xff] }
 0xbda   : > { %20858 = vmatprep.mubr.f32.mxu0 %v28345_v25  ;;  %22490 = vmatpush3.bf16.msra.mxu0 %v22487_v40  ;;  %v15341_v25 = vld [vmem:[%s28995_s1 + $0x1560] sm:$0xff] }
 0xbdb   : > { %22492 = vmatprep.subr.bf16.mxu0 %v22491_v39  ;;  %v29414_v40 = vld [vmem:[#allocation11_spill] sm:$0xff] }
 0xbdd   : > { %20859 = vmatmul.mubr.f32.gmra.mrb[66].mxu0 %v28348_v9  ;;  %v15342_v9 = vld [vmem:[%s28995_s1 + $0x1568] sm:$0xff] }
 0xbde   : > { %20861 = vmatprep.mubr.f32.mxu0 %v28357_v24  ;;  %22494 = vmatpush3.bf16.msra.mxu0 %v22491_v39  ;;  %v22511_v24 = vpack.c.bf16 %v15342_v9, %v15341_v25  ;;  %v29418_v39 = vld [vmem:[#allocation5_spill] sm:$0xff]  ;;  %v15352_v9 = vld [vmem:[%s28995_s1 + $0x15b8] sm:$0xff] }
 0xbdf   : > { %22496 = vmatprep.subr.bf16.mxu0 %v22495_v5 }
 0xbe1   : > { %20862 = vmatmul.mubr.f32.gmra.mrb[68].mxu0 %v28360_v11  ;;  %v15343_v11 = vld [vmem:[%s28995_s1 + $0x1570] sm:$0xff] }
 0xbe2   : > { %20864 = vmatprep.mubr.f32.mxu0 %v28369_v28  ;;  %22498 = vmatpush3.bf16.msra.mxu0 %v22495_v5  ;;  %v15344_v28 = vld [vmem:[%s28995_s1 + $0x1578] sm:$0xff]  ;;  %v29421_v5 = vld [vmem:[#allocation23_spill] sm:$0xff] }
 0xbe3   : > { %22500 = vmatprep.subr.bf16.mxu0 %v22499_v56 }
 0xbe5   : > { %20865 = vmatmul.mubr.f32.gmra.mrb[70].mxu0 %v28372_v17  ;;  %v29409_v17 = vld [vmem:[#allocation17_spill] sm:$0xff] }
 0xbe6   : > { %20867 = vmatprep.mubr.f32.mxu0 %v28381_v0  ;;  %22502 = vmatpush3.bf16.msra.mxu0 %v22499_v56  ;;  %v22515_v0 = vpack.c.bf16 %v15344_v28, %v15343_v11  ;;  %v29424_v56 = vld [vmem:[#allocation13_spill] sm:$0xff]  ;;  %v15356_v11 = vld [vmem:[%s28995_s1 + $0x15d8] sm:$0xff]  ;;  %v15358_v28 = vld [vmem:[%s28995_s1 + $0x15e8] sm:$0xff] }
 0xbe7   : > { %22504 = vmatprep.subr.bf16.mxu0 %v22503_v46 }
 0xbe9   : > { %20868 = vmatmul.mubr.f32.gmra.mrb[72].mxu0 %v28384_v2  ;;  %v15345_v2 = vld [vmem:[%s28995_s1 + $0x1580] sm:$0xff] }
 0xbea   : > { %20870 = vmatprep.mubr.f32.mxu0 %v28393_v4  ;;  %22506 = vmatpush3.bf16.msra.mxu0 %v22503_v46  ;;  %v15346_v4 = vld [vmem:[%s28995_s1 + $0x1588] sm:$0xff]  ;;  %v15347_v46 = vld [vmem:[%s28995_s1 + $0x1590] sm:$0xff] }
 0xbeb   : > { %22508 = vmatprep.subr.bf16.mxu0 %v22507_v1  ;;  %v22519_v47 = vpack.c.bf16 %v15346_v4, %v15345_v2  ;;  %v22523_v43 = vpack.c.bf16 %v15348_v15, %v15347_v46  ;;  %v29431_v2 = vld [vmem:[#allocation27_spill] sm:$0xff]  ;;  %v29432_v4 = vld [vmem:[#allocation28_spill] sm:$0xff]  ;;  %v15375_v46 = vld [vmem:[%s28995_s1 + $0x1670] sm:$0xff] }
 0xbec   : > { %v15376_v15 = vld [vmem:[%s28995_s1 + $0x1678] sm:$0xff] }
 0xbed   : > { %20871 = vmatmul.mubr.f32.gmra.mrb[74].mxu0 %v29409_v17  ;;  %v15360_v17 = vld [vmem:[%s28995_s1 + $0x15f8] sm:$0xff] }
 0xbee   : > { %20873 = vmatprep.mubr.f32.mxu0 %v28405_v50  ;;  %22510 = vmatpush3.bf16.msra.mxu0 %v22507_v1  ;;  %v29412_v50 = vld [vmem:[#allocation8_spill] sm:$0xff] }
 0xbef   : > { %22512 = vmatprep.subr.bf16.mxu0 %v22511_v24  ;;  %v15350_v1 = vld [vmem:[%s28995_s1 + $0x15a8] sm:$0xff] }
 0xbf1   : > { %20874 = vmatmul.mubr.f32.gmra.mrb[76].mxu0 %v28408_v48  ;;  %v29417_v48 = vld [vmem:[#allocation12_spill] sm:$0xff] }
 0xbf2   : > { %20876 = vmatprep.mubr.f32.mxu0 %v29410_v32  ;;  %22514 = vmatpush3.bf16.msra.mxu0 %v22511_v24  ;;  %v15354_v24 = vld [vmem:[%s28995_s1 + $0x15c8] sm:$0xff] }
 0xbf3   : > { %22516 = vmatprep.subr.bf16.mxu0 %v22515_v0 }
 0xbf5   : > { %20877 = vmatmul.mubr.f32.gmra.mrb[78].mxu0 %v29411_v6  ;;  %v15370_v6 = vld [vmem:[%s28995_s1 + $0x1648] sm:$0xff] }
 0xbf6   : > { %20879 = vmatprep.mubr.f32.mxu0 %v29412_v50  ;;  %22518 = vmatpush3.bf16.msra.mxu0 %v22515_v0  ;;  %v15362_v0 = vld [vmem:[%s28995_s1 + $0x1608] sm:$0xff]  ;;  %v29433_v50 = vld [vmem:[#allocation29_spill] sm:$0xff] }
 0xbf7   : > { %22520 = vmatprep.subr.bf16.mxu0 %v22519_v47 }
 0xbf9   : > { %20880 = vmatmul.mubr.f32.gmra.mrb[80].mxu0 %v29413_v29  ;;  %v29434_v29 = vld [vmem:[#allocation30_spill] sm:$0xff] }
 0xbfa   : > { %20882 = vmatprep.mubr.f32.mxu0 %v29414_v40 }
 0xbfd   : > { %20883 = vmatmul.mubr.f32.gmra.mrb[82].mxu0 %v29415_v21  ;;  %v15371_v21 = vld [vmem:[%s28995_s1 + $0x1650] sm:$0xff] }
 0xbfe   : > { %20885 = vmatprep.mubr.f32.mxu0 %v29416_v45  ;;  %v15372_v45 = vld [vmem:[%s28995_s1 + $0x1658] sm:$0xff] }
 0xc01   : > { %20886 = vmatmul.mubr.f32.gmra.mrb[84].mxu0 %v29417_v48  ;;  %v29435_v48 = vld [vmem:[#allocation31_spill] sm:$0xff] }
 0xc02   : > { %20888 = vmatprep.mubr.f32.mxu0 %v29418_v39  ;;  %v29436_v39 = vld [vmem:[#allocation32_spill] sm:$0xff] }
 0xc05   : > { %20889 = vmatmul.mubr.f32.gmra.mrb[86].mxu0 %v29419_v38  ;;  %v22571_v38 = vpack.c.bf16 %v15372_v45, %v15371_v21 }
 0xc06   : > { %20891 = vmatprep.mubr.f32.mxu0 %v29420_v22  ;;  %v15373_v22 = vld [vmem:[%s28995_s1 + $0x1660] sm:$0xff] }
 0xc09   : > { %20892 = vmatmul.mubr.f32.gmra.mrb[88].mxu0 %v29421_v5  ;;  %v15374_v5 = vld [vmem:[%s28995_s1 + $0x1668] sm:$0xff] }
 0xc0a   : > { %20894 = vmatprep.mubr.f32.mxu0 %v29422_v31  ;;  %v29437_v31 = vld [vmem:[#allocation33_spill] sm:$0xff] }
 0xc0d   : > { %20895 = vmatmul.mubr.f32.gmra.mrb[90].mxu0 %v29423_v20  ;;  %v29438_v20 = vld [vmem:[#allocation34_spill] sm:$0xff] }
 0xc0e   : > { %20897 = vmatprep.mubr.f32.mxu0 %v29424_v56  ;;  %v22575_v56 = vpack.c.bf16 %v15374_v5, %v15373_v22 }
 0xc11   : > { %20898 = vmatmul.mubr.f32.gmra.mrb[92].mxu0 %v28456_v37  ;;  %v15349_v37 = vld [vmem:[%s28995_s1 + $0x15a0] sm:$0xff] }
 0xc12   : > { %20900 = vmatprep.mubr.f32.mxu0 %v28733_v10  ;;  %v22527_v25 = vpack.c.bf16 %v15350_v1, %v15349_v37  ;;  %v22579_v37 = vpack.c.bf16 %v15376_v15, %v15375_v46  ;;  %v13867_v1 = vld [vmem:[#allocation2 + $0xf1] sm:$0xff] }
 0xc15   : > { %20901 = vmatmul.mubr.f32.gmra.mrb[94].mxu0 %v28736_v26 }
 0xc16   : > { %20935 = vmatprep.mubr.f32.mxu0 %v28207_v41  ;;  %v15351_v41 = vld [vmem:[%s28995_s1 + $0x15b0] sm:$0xff] }
 0xc19   : > { %20936 = vmatmul.mubr.f32.vlgmr.msra.gmra.mrb[64].mxu0 %v28210_v8  ;;  %v22531_v8 = vpack.c.bf16 %v15352_v9, %v15351_v41  ;;  %v13871_v41 = vld [vmem:[#allocation2 + $0x121] sm:$0xff]  ;;  %v13872_v9 = vld [vmem:[#allocation2 + $0x129] sm:$0xff] }
 0xc1a   : > { %20938 = vmatprep.mubr.f32.mxu0 %v28219_v63  ;;  %22522 = vmatpush3.bf16.msra.mxu0 %v22519_v47  ;;  %v15353_v63 = vld [vmem:[%s28995_s1 + $0x15c0] sm:$0xff] }
 0xc1b   : > { %22524 = vmatprep.subr.bf16.mxu0 %v22523_v43  ;;  %v15369_v47 = vld [vmem:[%s28995_s1 + $0x1640] sm:$0xff] }
 0xc1c   : > { %v22567_v40 = vpack.c.bf16 %v15370_v6, %v15369_v47  ;;  %v14187_v47 = vld [vmem:[#allocation2 + $0x19a] sm:$0xff]  ;;  %v14188_v6 = vld [vmem:[#allocation2 + $0x1a2] sm:$0xff] }
 0xc1d   : > { %20939 = vmatmul.mubr.f32.gmra.mrb[66].mxu0 %v28222_v54  ;;  %v22535_v54 = vpack.c.bf16 %v15354_v24, %v15353_v63  ;;  %v13877_v63 = vld [vmem:[#allocation2 + $0x169] sm:$0xff]  ;;  %v13878_v24 = vld [vmem:[#allocation2 + $0x171] sm:$0xff] }
 0xc1e   : > { %20941 = vmatprep.mubr.f32.mxu0 %v28231_v61  ;;  %22526 = vmatpush3.bf16.msra.mxu0 %v22523_v43  ;;  %v15355_v61 = vld [vmem:[%s28995_s1 + $0x15d0] sm:$0xff]  ;;  %v29439_v43 = vld [vmem:[#allocation35_spill] sm:$0xff] }
 0xc1f   : > { %22528 = vmatprep.subr.bf16.mxu0 %v22527_v25 }
 0xc21   : > { %20942 = vmatmul.mubr.f32.gmra.mrb[68].mxu0 %v28234_v49  ;;  %v22539_v49 = vpack.c.bf16 %v15356_v11, %v15355_v61  ;;  %v13880_v61 = vld [vmem:[#allocation2 + $0x189] sm:$0xff]  ;;  %v13882_v11 = vld [vmem:[#allocation2 + $0x1a1] sm:$0xff] }
 0xc22   : > { %20944 = vmatprep.mubr.f32.mxu0 %v28243_v19  ;;  %22530 = vmatpush3.bf16.msra.mxu0 %v22527_v25  ;;  %v15357_v19 = vld [vmem:[%s28995_s1 + $0x15e0] sm:$0xff]  ;;  %v13869_v25 = vld [vmem:[#allocation2 + $0x109] sm:$0xff] }
 0xc23   : > { %22532 = vmatprep.subr.bf16.mxu0 %v22531_v8 }
 0xc25   : > { %20945 = vmatmul.mubr.f32.gmra.mrb[70].mxu0 %v28246_v30  ;;  %v22543_v30 = vpack.c.bf16 %v15358_v28, %v15357_v19  ;;  %v14158_v19 = vld [vmem:[#allocation2 + $0x3a] sm:$0xff]  ;;  %v14159_v28 = vld [vmem:[#allocation2 + $0x4a] sm:$0xff] }
 0xc26   : > { %20947 = vmatprep.mubr.f32.mxu0 %v28255_v60  ;;  %22534 = vmatpush3.bf16.msra.mxu0 %v22531_v8  ;;  %v15359_v60 = vld [vmem:[%s28995_s1 + $0x15f0] sm:$0xff] }
 0xc27   : > { %22536 = vmatprep.subr.bf16.mxu0 %v22535_v54  ;;  %v13875_v8 = vld [vmem:[#allocation2 + $0x151] sm:$0xff] }
 0xc29   : > { %20948 = vmatmul.mubr.f32.gmra.mrb[72].mxu0 %v28258_v33  ;;  %v22547_v33 = vpack.c.bf16 %v15360_v17, %v15359_v60  ;;  %v14161_v60 = vld [vmem:[#allocation2 + $0x62] sm:$0xff]  ;;  %v14162_v17 = vld [vmem:[#allocation2 + $0x6a] sm:$0xff] }
 0xc2a   : > { %20950 = vmatprep.mubr.f32.mxu0 %v28267_v52  ;;  %22538 = vmatpush3.bf16.msra.mxu0 %v22535_v54  ;;  %v15361_v52 = vld [vmem:[%s28995_s1 + $0x1600] sm:$0xff] }
 0xc2b   : > { %22540 = vmatprep.subr.bf16.mxu0 %v22539_v49  ;;  %v13881_v54 = vld [vmem:[#allocation2 + $0x199] sm:$0xff] }
 0xc2d   : > { %20951 = vmatmul.mubr.f32.gmra.mrb[74].mxu0 %v28270_v3  ;;  %v22551_v3 = vpack.c.bf16 %v15362_v0, %v15361_v52  ;;  %v14164_v52 = vld [vmem:[#allocation2 + $0x82] sm:$0xff]  ;;  %v14165_v0 = vld [vmem:[#allocation2 + $0x92] sm:$0xff] }
 0xc2e   : > { %20953 = vmatprep.mubr.f32.mxu0 %v28273_v12  ;;  %22542 = vmatpush3.bf16.msra.mxu0 %v22539_v49  ;;  %v29425_v12 = vld [vmem:[#allocation16_spill] sm:$0xff]  ;;  %v14157_v49 = vld [vmem:[#allocation2 + $0x32] sm:$0xff] }
 0xc2f   : > { %22544 = vmatprep.subr.bf16.mxu0 %v22543_v30 }
 0xc31   : > { %20954 = vmatmul.mubr.f32.gmra.mrb[76].mxu0 %v28276_v59  ;;  %v29426_v59 = vld [vmem:[#allocation7_spill] sm:$0xff] }
 0xc32   : > { %20956 = vmatprep.mubr.f32.mxu0 %v28279_v51  ;;  %22546 = vmatpush3.bf16.msra.mxu0 %v22543_v30  ;;  %v29427_v51 = vld [vmem:[#allocation14_spill] sm:$0xff] }
 0xc33   : > { %22548 = vmatprep.subr.bf16.mxu0 %v22547_v33  ;;  %v14160_v30 = vld [vmem:[#allocation2 + $0x52] sm:$0xff] }
 0xc35   : > { %20957 = vmatmul.mubr.f32.gmra.mrb[78].mxu0 %v28282_v13  ;;  %v29428_v13 = vld [vmem:[#allocation6_spill] sm:$0xff] }
 0xc36   : > { %20959 = vmatprep.mubr.f32.mxu0 %v28285_v27  ;;  %22550 = vmatpush3.bf16.msra.mxu0 %v22547_v33  ;;  %v23901_v27 = vld [vmem:[#allocation2] sm:$0xff] }
 0xc37   : > { %22552 = vmatprep.subr.bf16.mxu0 %v22551_v3  ;;  %v14163_v33 = vld [vmem:[#allocation2 + $0x7a] sm:$0xff] }
 0xc39   : > { %20960 = vmatmul.mubr.f32.gmra.mrb[80].mxu0 %v28288_v34  ;;  %v15363_v34 = vld [vmem:[%s28995_s1 + $0x1610] sm:$0xff] }
 0xc3a   : > { %20962 = vmatprep.mubr.f32.mxu0 %v28291_v62  ;;  %v15364_v62 = vld [vmem:[%s28995_s1 + $0x1618] sm:$0xff] }
 0xc3d   : > { %20963 = vmatmul.mubr.f32.gmra.mrb[82].mxu0 %v28294_v23  ;;  %v22555_v23 = vpack.c.bf16 %v15364_v62, %v15363_v34  ;;  %v14172_v34 = vld [vmem:[#allocation2 + $0xe2] sm:$0xff]  ;;  %v14173_v62 = vld [vmem:[#allocation2 + $0xf2] sm:$0xff] }
 0xc3e   : > { %20965 = vmatprep.mubr.f32.mxu0 %v28297_v44  ;;  %v15365_v44 = vld [vmem:[%s28995_s1 + $0x1620] sm:$0xff] }
 0xc41   : > { %20966 = vmatmul.mubr.f32.gmra.mrb[84].mxu0 %v28300_v36  ;;  %v15366_v36 = vld [vmem:[%s28995_s1 + $0x1628] sm:$0xff] }
 0xc42   : > { %20968 = vmatprep.mubr.f32.mxu0 %v28303_v18  ;;  %v29429_v18 = vld [vmem:[#allocation15_spill] sm:$0xff] }
 0xc45   : > { %20969 = vmatmul.mubr.f32.gmra.mrb[86].mxu0 %v28306_v58  ;;  %v29430_v58 = vld [vmem:[#allocation26_spill] sm:$0xff] }
 0xc46   : > { %20971 = vmatprep.mubr.f32.mxu0 %v28309_v53  ;;  %v22559_v53 = vpack.c.bf16 %v15366_v36, %v15365_v44  ;;  %v14175_v44 = vld [vmem:[#allocation2 + $0x10a] sm:$0xff]  ;;  %v14176_v36 = vld [vmem:[#allocation2 + $0x112] sm:$0xff] }
 0xc49   : > { %20972 = vmatmul.mubr.f32.gmra.mrb[88].mxu0 %v28312_v14  ;;  %v15367_v14 = vld [vmem:[%s28995_s1 + $0x1630] sm:$0xff] }
 0xc4a   : > { %20974 = vmatprep.mubr.f32.mxu0 %v29425_v12  ;;  %v14167_v12 = vld [vmem:[#allocation2 + $0xaa] sm:$0xff] }
 0xc4d   : > { %20975 = vmatmul.mubr.f32.gmra.mrb[90].mxu0 %v29426_v59  ;;  %v14168_v59 = vld [vmem:[#allocation2 + $0xb2] sm:$0xff] }
 0xc4e   : > { %20977 = vmatprep.mubr.f32.mxu0 %v29427_v51  ;;  %v14169_v51 = vld [vmem:[#allocation2 + $0xc2] sm:$0xff] }
 0xc51   : > { %20978 = vmatmul.mubr.f32.gmra.mrb[92].mxu0 %v29428_v13  ;;  %v14170_v13 = vld [vmem:[#allocation2 + $0xca] sm:$0xff] }
 0xc52   : > { %20980 = vmatprep.mubr.f32.mxu0 %v23901_v27 }
 0xc55   : > { %20981 = vmatmul.mubr.f32.gmra.mrb[94].mxu0 %v23901_v27  ;;  %v14171_v27 = vld [vmem:[#allocation2 + $0xda] sm:$0xff] }
 0xc56   : > { %21015 = vmatprep.mubr.f32.mxu0 %v28555_v42  ;;  %v15368_v42 = vld [vmem:[%s28995_s1 + $0x1638] sm:$0xff] }
 0xc57   : > { %v22563_v32 = vpack.c.bf16 %v15368_v42, %v15367_v14  ;;  %v14180_v14 = vld [vmem:[#allocation2 + $0x142] sm:$0xff]  ;;  %v14181_v42 = vld [vmem:[#allocation2 + $0x152] sm:$0xff] }
 0xc59   : > { %21016 = vmatmul.mubr.f32.vlgmr.msra.gmra.mrb[64].mxu0 %v29429_v18  ;;  %v14177_v18 = vld [vmem:[#allocation2 + $0x122] sm:$0xff] }
 0xc5a   : > { %21018 = vmatprep.mubr.f32.mxu0 %v29430_v58  ;;  %22554 = vmatpush3.bf16.msra.mxu0 %v22551_v3  ;;  %v14166_v3 = vld [vmem:[#allocation2 + $0x9a] sm:$0xff]  ;;  %v14178_v58 = vld [vmem:[#allocation2 + $0x12a] sm:$0xff] }
 0xc5b   : > { %22556 = vmatprep.subr.bf16.mxu0 %v22555_v23 }
 0xc5d   : > { %21019 = vmatmul.mubr.f32.gmra.mrb[66].mxu0 %v29431_v2  ;;  %v14182_v2 = vld [vmem:[#allocation2 + $0x15a] sm:$0xff] }
 0xc5e   : > { %21021 = vmatprep.mubr.f32.mxu0 %v29432_v4  ;;  %22558 = vmatpush3.bf16.msra.mxu0 %v22555_v23  ;;  %v14174_v23 = vld [vmem:[#allocation2 + $0xfa] sm:$0xff]  ;;  %v14183_v4 = vld [vmem:[#allocation2 + $0x16a] sm:$0xff] }
 0xc5f   : > { %22560 = vmatprep.subr.bf16.mxu0 %v22559_v53 }
 0xc61   : > { %21022 = vmatmul.mubr.f32.gmra.mrb[68].mxu0 %v29433_v50  ;;  %v28881_v50 = vld [vmem:[%s28996_s2 + $0x4] ss:$0 sm:$0xff] }
 0xc62   : > { %21024 = vmatprep.mubr.f32.mxu0 %v29434_v29  ;;  %22562 = vmatpush3.bf16.msra.mxu0 %v22559_v53  ;;  %v14179_v53 = vld [vmem:[#allocation2 + $0x13a] sm:$0xff] }
 0xc63   : > { %22564 = vmatprep.subr.bf16.mxu0 %v22563_v32 }
 0xc65   : > { %21025 = vmatmul.mubr.f32.gmra.mrb[70].mxu0 %v29435_v48 }
 0xc66   : > { %21027 = vmatprep.mubr.f32.mxu0 %v29436_v39  ;;  %22566 = vmatpush3.bf16.msra.mxu0 %v22563_v32  ;;  %v14184_v32 = vld [vmem:[#allocation2 + $0x172] sm:$0xff] }
 0xc67   : > { %22568 = vmatprep.subr.bf16.mxu0 %v22567_v40 }
 0xc69   : > { %21028 = vmatmul.mubr.f32.gmra.mrb[72].mxu0 %v29437_v31 }
 0xc6a   : > { %21030 = vmatprep.mubr.f32.mxu0 %v29438_v20  ;;  %22570 = vmatpush3.bf16.msra.mxu0 %v22567_v40  ;;  %v28886_v40 = vld [vmem:[%s28997_s3 + $0x4] ss:$0 sm:$0xff] }
 0xc6b   : > { %22572 = vmatprep.subr.bf16.mxu0 %v22571_v38 }
 0xc6d   : > { %21031 = vmatmul.mubr.f32.gmra.mrb[74].mxu0 %v28618_v57  ;;  %v13870_v57 = vld [vmem:[#allocation2 + $0x111] sm:$0xff] }
 0xc6e   : > { %21033 = vmatprep.mubr.f32.mxu0 %v29439_v43  ;;  %22574 = vmatpush3.bf16.msra.mxu0 %v22571_v38 }
 0xc6f   : > { %22576 = vmatprep.subr.bf16.mxu0 %v22575_v56 }
 0xc71   : > { %21034 = vmatmul.mubr.f32.gmra.mrb[76].mxu0 %v28630_v35  ;;  %v13873_v35 = vld [vmem:[#allocation2 + $0x139] sm:$0xff] }
 0xc72   : > { %21036 = vmatprep.mubr.f32.mxu0 %v28633_v16  ;;  %22578 = vmatpush3.bf16.msra.mxu0 %v22575_v56  ;;  %v13874_v16 = vld [vmem:[#allocation2 + $0x141] sm:$0xff] }
 0xc73   : > { %22580 = vmatprep.subr.bf16.mxu0 %v22579_v37 }
 0xc75   : > { %21037 = vmatmul.mubr.f32.gmra.mrb[78].mxu0 %v28636_v7  ;;  %v13876_v7 = vld [vmem:[#allocation2 + $0x159] sm:$0xff] }
 0xc76   : > { %21039 = vmatprep.mubr.f32.mxu0 %v13867_v1  ;;  %22582 = vmatpush3.bf16.msra.mxu0 %v22579_v37 }
 0xc79   : > { %21040 = vmatmul.mubr.f32.gmra.mrb[80].mxu0 %v28640_v55  ;;  %v13879_v55 = vld [vmem:[#allocation2 + $0x181] sm:$0xff] }
 0xc7a   : > { %21042 = vmatprep.mubr.f32.mxu0 %v13869_v25 }
 0xc7d   : > { %21043 = vmatmul.mubr.f32.gmra.mrb[82].mxu0 %v13870_v57 }
 0xc7e   : > { %21045 = vmatprep.mubr.f32.mxu0 %v13871_v41 }
 0xc81   : > { %21046 = vmatmul.mubr.f32.gmra.mrb[84].mxu0 %v13872_v9 }
 0xc82   : > { %21048 = vmatprep.mubr.f32.mxu0 %v13873_v35 }
 0xc85   : > { %21049 = vmatmul.mubr.f32.gmra.mrb[86].mxu0 %v13874_v16 }
 0xc86   : > { %21051 = vmatprep.mubr.f32.mxu0 %v13875_v8 }
 0xc89   : > { %21052 = vmatmul.mubr.f32.gmra.mrb[88].mxu0 %v13876_v7 }
 0xc8a   : > { %21054 = vmatprep.mubr.f32.mxu0 %v13877_v63 }
 0xc8d   : > { %21055 = vmatmul.mubr.f32.gmra.mrb[90].mxu0 %v13878_v24 }
 0xc8e   : > { %21057 = vmatprep.mubr.f32.mxu0 %v13879_v55 }
 0xc91   : > { %21058 = vmatmul.mubr.f32.gmra.mrb[92].mxu0 %v13880_v61 }
 0xc92   : > { %21060 = vmatprep.mubr.f32.mxu0 %v13881_v54 }
 0xc95   : > { %21061 = vmatmul.mubr.f32.gmra.mrb[94].mxu0 %v13882_v11 }
 0xc96   : > { %21095 = vmatprep.mubr.f32.mxu0 %v14157_v49 }
 0xc99   : > { %21096 = vmatmul.mubr.f32.vlgmr.msra.gmra.mrb[64].mxu0 %v14158_v19 }
 0xc9a   : > { %21098 = vmatprep.mubr.f32.mxu0 %v14159_v28 }
 0xc9d   : > { %21099 = vmatmul.mubr.f32.gmra.mrb[66].mxu0 %v14160_v30 }
 0xc9e   : > { %21101 = vmatprep.mubr.f32.mxu0 %v14161_v60 }
 0xca1   : > { %21102 = vmatmul.mubr.f32.gmra.mrb[68].mxu0 %v14162_v17 }
 0xca2   : > { %21104 = vmatprep.mubr.f32.mxu0 %v14163_v33 }
 0xca5   : > { %21105 = vmatmul.mubr.f32.gmra.mrb[70].mxu0 %v14164_v52 }
 0xca6   : > { %21107 = vmatprep.mubr.f32.mxu0 %v14165_v0 }
 0xca9   : > { %21108 = vmatmul.mubr.f32.gmra.mrb[72].mxu0 %v14166_v3 }
 0xcaa   : > { %21110 = vmatprep.mubr.f32.mxu0 %v14167_v12 }
 0xcad   : > { %21111 = vmatmul.mubr.f32.gmra.mrb[74].mxu0 %v14168_v59 }
 0xcae   : > { %21113 = vmatprep.mubr.f32.mxu0 %v14169_v51 }
 0xcb1   : > { %21114 = vmatmul.mubr.f32.gmra.mrb[76].mxu0 %v14170_v13 }
 0xcb2   : > { %21116 = vmatprep.mubr.f32.mxu0 %v14171_v27 }
 0xcb5   : > { %21117 = vmatmul.mubr.f32.gmra.mrb[78].mxu0 %v14172_v34 }
 0xcb6   : > { %21119 = vmatprep.mubr.f32.mxu0 %v14173_v62 }
 0xcb9   : > { %21120 = vmatmul.mubr.f32.gmra.mrb[80].mxu0 %v14174_v23 }
 0xcba   : > { %21122 = vmatprep.mubr.f32.mxu0 %v14175_v44 }
 0xcbd   : > { %21123 = vmatmul.mubr.f32.gmra.mrb[82].mxu0 %v14176_v36 }
 0xcbe   : > { %21125 = vmatprep.mubr.f32.mxu0 %v14177_v18 }
 0xcc1   : > { %21126 = vmatmul.mubr.f32.gmra.mrb[84].mxu0 %v14178_v58 }
 0xcc2   : > { %21128 = vmatprep.mubr.f32.mxu0 %v14179_v53 }
 0xcc5   : > { %21129 = vmatmul.mubr.f32.gmra.mrb[86].mxu0 %v14180_v14 }
 0xcc6   : > { %21131 = vmatprep.mubr.f32.mxu0 %v14181_v42 }
 0xcc9   : > { %21132 = vmatmul.mubr.f32.gmra.mrb[88].mxu0 %v14182_v2 }
 0xcca   : > { %21134 = vmatprep.mubr.f32.mxu0 %v14183_v4 }
 0xccd   : > { %21135 = vmatmul.mubr.f32.gmra.mrb[90].mxu0 %v14184_v32 }
 0xcce   : > { %21137 = vmatprep.mubr.f32.mxu0 %v28733_v10 }
 0xcd1   : > { %21138 = vmatmul.mubr.f32.gmra.mrb[92].mxu0 %v28736_v26 }
 0xcd2   : > { %21140 = vmatprep.mubr.f32.mxu0 %v14187_v47 }
 0xcd5   : > { %21141 = vmatmul.mubr.f32.gmra.mrb[94].mxu0 %v14188_v6 }
 0xd6c   : > { %v21097_v29 = vpop.f32.mrb[64].mxu0 }
 0xd6d   : > { %v14469_v21 = vmul.f32 %v21097_v29, %v28881_v50  ;;  %v14272_v10 = vpop.f32.mrb[65].mxu0 }
 0xd6e   : > { %v14468_v45 = vmul.f32 %v28881_v50, %v14272_v10 }
 0xd6f   : > { %v14506_v26 = vadd.f32 %v28886_v40, %v14469_v21 }
 0xd70   : > { %v14505_v48 = vadd.f32 %v28886_v40, %v14468_v45  ;;  %v21100_v39 = vpop.f32.mrb[66].mxu0 }
 0xd71   : > { %v14538_v38 = vmax.f32 %v14506_v26, 0.0  ;;  %v14471_v22 = vmul.f32 %v21100_v39, %v28881_v50  ;;  %v14282_v5 = vpop.f32.mrb[67].mxu0 }
 0xd72   : > { %v14537_v31 = vmax.f32 %v14505_v48, 0.0  ;;  %v14470_v20 = vmul.f32 %v28881_v50, %v14282_v5 }
 0xd73   : > { %14570 = vst [vmem:[%s28896_s11 + $0x8] sm:$0xff] %v14538_v38  ;;  %v14508_v56 = vadd.f32 %v28886_v40, %v14471_v22 }
 0xd74   : > { %14569 = vst [vmem:[%s28896_s11] sm:$0xff] %v14537_v31  ;;  %v14507_v46 = vadd.f32 %v28886_v40, %v14470_v20  ;;  %v21103_v15 = vpop.f32.mrb[68].mxu0 }
 0xd75   : > { %v14540_v43 = vmax.f32 %v14508_v56, 0.0  ;;  %v14473_v37 = vmul.f32 %v21103_v15, %v28881_v50  ;;  %v14292_v1 = vpop.f32.mrb[69].mxu0 }
 0xd76   : > { %v14539_v25 = vmax.f32 %v14507_v46, 0.0  ;;  %v14472_v57 = vmul.f32 %v28881_v50, %v14292_v1 }
 0xd77   : > { %14572 = vst [vmem:[%s28896_s11 + $0x18] sm:$0xff] %v14540_v43  ;;  %v14510_v41 = vadd.f32 %v28886_v40, %v14473_v37 }
 0xd78   : > { %14571 = vst [vmem:[%s28896_s11 + $0x10] sm:$0xff] %v14539_v25  ;;  %v14509_v9 = vadd.f32 %v28886_v40, %v14472_v57  ;;  %v21106_v35 = vpop.f32.mrb[70].mxu0 }
 0xd79   : > { %v14542_v16 = vmax.f32 %v14510_v41, 0.0  ;;  %v14475_v8 = vmul.f32 %v21106_v35, %v28881_v50  ;;  %v14302_v7 = vpop.f32.mrb[71].mxu0 }
 0xd7a   : > { %v14541_v63 = vmax.f32 %v14509_v9, 0.0  ;;  %v14474_v24 = vmul.f32 %v28881_v50, %v14302_v7 }
 0xd7b   : > { %14574 = vst [vmem:[%s28896_s11 + $0x28] sm:$0xff] %v14542_v16  ;;  %v14512_v55 = vadd.f32 %v28886_v40, %v14475_v8 }
 0xd7c   : > { %14573 = vst [vmem:[%s28896_s11 + $0x20] sm:$0xff] %v14541_v63  ;;  %v14511_v54 = vadd.f32 %v28886_v40, %v14474_v24  ;;  %v21109_v61 = vpop.f32.mrb[72].mxu0 }
 0xd7d   : > { %v14544_v11 = vmax.f32 %v14512_v55, 0.0  ;;  %v14477_v49 = vmul.f32 %v21109_v61, %v28881_v50  ;;  %v14312_v19 = vpop.f32.mrb[73].mxu0 }
 0xd7e   : > { %v14543_v28 = vmax.f32 %v14511_v54, 0.0  ;;  %v14476_v30 = vmul.f32 %v28881_v50, %v14312_v19 }
 0xd7f   : > { %14576 = vst [vmem:[%s28896_s11 + $0x38] sm:$0xff] %v14544_v11  ;;  %v14514_v60 = vadd.f32 %v28886_v40, %v14477_v49 }
 0xd80   : > { %14575 = vst [vmem:[%s28896_s11 + $0x30] sm:$0xff] %v14543_v28  ;;  %v14513_v17 = vadd.f32 %v28886_v40, %v14476_v30  ;;  %v21112_v33 = vpop.f32.mrb[74].mxu0 }
 0xd81   : > { %v14546_v52 = vmax.f32 %v14514_v60, 0.0  ;;  %v14479_v0 = vmul.f32 %v21112_v33, %v28881_v50  ;;  %v14322_v3 = vpop.f32.mrb[75].mxu0 }
 0xd82   : > { %v14545_v12 = vmax.f32 %v14513_v17, 0.0  ;;  %v14478_v59 = vmul.f32 %v28881_v50, %v14322_v3 }
 0xd83   : > { %14578 = vst [vmem:[%s28896_s11 + $0x48] sm:$0xff] %v14546_v52  ;;  %v14516_v51 = vadd.f32 %v28886_v40, %v14479_v0 }
 0xd84   : > { %14577 = vst [vmem:[%s28896_s11 + $0x40] sm:$0xff] %v14545_v12  ;;  %v14515_v13 = vadd.f32 %v28886_v40, %v14478_v59  ;;  %v21115_v27 = vpop.f32.mrb[76].mxu0 }
 0xd85   : > { %v14548_v34 = vmax.f32 %v14516_v51, 0.0  ;;  %v14481_v62 = vmul.f32 %v21115_v27, %v28881_v50  ;;  %v14332_v23 = vpop.f32.mrb[77].mxu0 }
 0xd86   : > { %v14547_v44 = vmax.f32 %v14515_v13, 0.0  ;;  %v14480_v36 = vmul.f32 %v28881_v50, %v14332_v23 }
 0xd87   : > { %14580 = vst [vmem:[%s28896_s11 + $0x58] sm:$0xff] %v14548_v34  ;;  %v14518_v18 = vadd.f32 %v28886_v40, %v14481_v62 }
 0xd88   : > { %14579 = vst [vmem:[%s28896_s11 + $0x50] sm:$0xff] %v14547_v44  ;;  %v14517_v58 = vadd.f32 %v28886_v40, %v14480_v36  ;;  %v21118_v53 = vpop.f32.mrb[78].mxu0 }
 0xd89   : > { %v14550_v14 = vmax.f32 %v14518_v18, 0.0  ;;  %v14483_v42 = vmul.f32 %v21118_v53, %v28881_v50  ;;  %v14342_v2 = vpop.f32.mrb[79].mxu0 }
 0xd8a   : > { %v14549_v4 = vmax.f32 %v14517_v58, 0.0  ;;  %v14482_v32 = vmul.f32 %v28881_v50, %v14342_v2 }
 0xd8b   : > { %14582 = vst [vmem:[%s28896_s11 + $0x68] sm:$0xff] %v14550_v14  ;;  %v14520_v47 = vadd.f32 %v28886_v40, %v14483_v42 }
 0xd8c   : > { %14581 = vst [vmem:[%s28896_s11 + $0x60] sm:$0xff] %v14549_v4  ;;  %v14519_v6 = vadd.f32 %v28886_v40, %v14482_v32  ;;  %v21121_v29 = vpop.f32.mrb[80].mxu0 }
 0xd8d   : > { %v14552_v21 = vmax.f32 %v14520_v47, 0.0  ;;  %v14485_v10 = vmul.f32 %v21121_v29, %v28881_v50  ;;  %v14352_v45 = vpop.f32.mrb[81].mxu0 }
 0xd8e   : > { %v14551_v26 = vmax.f32 %v14519_v6, 0.0  ;;  %v14484_v48 = vmul.f32 %v28881_v50, %v14352_v45 }
 0xd8f   : > { %14584 = vst [vmem:[%s28896_s11 + $0x78] sm:$0xff] %v14552_v21  ;;  %v14522_v39 = vadd.f32 %v28886_v40, %v14485_v10 }
 0xd90   : > { %14583 = vst [vmem:[%s28896_s11 + $0x70] sm:$0xff] %v14551_v26  ;;  %v14521_v38 = vadd.f32 %v28886_v40, %v14484_v48  ;;  %v21124_v22 = vpop.f32.mrb[82].mxu0 }
 0xd91   : > { %v14554_v5 = vmax.f32 %v14522_v39, 0.0  ;;  %v14487_v31 = vmul.f32 %v21124_v22, %v28881_v50  ;;  %v14362_v20 = vpop.f32.mrb[83].mxu0 }
 0xd92   : > { %v14553_v56 = vmax.f32 %v14521_v38, 0.0  ;;  %v14486_v46 = vmul.f32 %v28881_v50, %v14362_v20 }
 0xd93   : > { %14586 = vst [vmem:[%s28896_s11 + $0x88] sm:$0xff] %v14554_v5  ;;  %v14524_v15 = vadd.f32 %v28886_v40, %v14487_v31 }
 0xd94   : > { %14585 = vst [vmem:[%s28896_s11 + $0x80] sm:$0xff] %v14553_v56  ;;  %v14523_v43 = vadd.f32 %v28886_v40, %v14486_v46  ;;  %v21127_v37 = vpop.f32.mrb[84].mxu0 }
 0xd95   : > { %v14556_v1 = vmax.f32 %v14524_v15, 0.0  ;;  %v14489_v25 = vmul.f32 %v21127_v37, %v28881_v50  ;;  %v14372_v57 = vpop.f32.mrb[85].mxu0 }
 0xd96   : > { %v14555_v41 = vmax.f32 %v14523_v43, 0.0  ;;  %v14488_v9 = vmul.f32 %v28881_v50, %v14372_v57 }
 0xd97   : > { %14588 = vst [vmem:[%s28896_s11 + $0x98] sm:$0xff] %v14556_v1  ;;  %v14526_v35 = vadd.f32 %v28886_v40, %v14489_v25 }
 0xd98   : > { %14587 = vst [vmem:[%s28896_s11 + $0x90] sm:$0xff] %v14555_v41  ;;  %v14525_v16 = vadd.f32 %v28886_v40, %v14488_v9  ;;  %v21130_v8 = vpop.f32.mrb[86].mxu0 }
 0xd99   : > { %v14558_v7 = vmax.f32 %v14526_v35, 0.0  ;;  %v14491_v63 = vmul.f32 %v21130_v8, %v28881_v50  ;;  %v14382_v24 = vpop.f32.mrb[87].mxu0 }
 0xd9a   : > { %v14557_v55 = vmax.f32 %v14525_v16, 0.0  ;;  %v14490_v54 = vmul.f32 %v28881_v50, %v14382_v24 }
 0xd9b   : > { %14590 = vst [vmem:[%s28896_s11 + $0xa8] sm:$0xff] %v14558_v7  ;;  %v14528_v61 = vadd.f32 %v28886_v40, %v14491_v63 }
 0xd9c   : > { %14589 = vst [vmem:[%s28896_s11 + $0xa0] sm:$0xff] %v14557_v55  ;;  %v14527_v11 = vadd.f32 %v28886_v40, %v14490_v54  ;;  %v21133_v49 = vpop.f32.mrb[88].mxu0 }
 0xd9d   : > { %v14560_v19 = vmax.f32 %v14528_v61, 0.0  ;;  %v14493_v28 = vmul.f32 %v21133_v49, %v28881_v50  ;;  %v14392_v30 = vpop.f32.mrb[89].mxu0 }
 0xd9e   : > { %v14559_v60 = vmax.f32 %v14527_v11, 0.0  ;;  %v14492_v17 = vmul.f32 %v28881_v50, %v14392_v30 }
 0xd9f   : > { %14592 = vst [vmem:[%s28896_s11 + $0xb8] sm:$0xff] %v14560_v19  ;;  %v14530_v33 = vadd.f32 %v28886_v40, %v14493_v28 }
 0xda0   : > { %14591 = vst [vmem:[%s28896_s11 + $0xb0] sm:$0xff] %v14559_v60  ;;  %v14529_v52 = vadd.f32 %v28886_v40, %v14492_v17  ;;  %v21136_v0 = vpop.f32.mrb[90].mxu0 }
 0xda1   : > { %v14562_v3 = vmax.f32 %v14530_v33, 0.0  ;;  %v14495_v12 = vmul.f32 %v21136_v0, %v28881_v50  ;;  %v14402_v59 = vpop.f32.mrb[91].mxu0 }
 0xda2   : > { %v14561_v51 = vmax.f32 %v14529_v52, 0.0  ;;  %v14494_v13 = vmul.f32 %v28881_v50, %v14402_v59 }
 0xda3   : > { %14594 = vst [vmem:[%s28896_s11 + $0xc8] sm:$0xff] %v14562_v3  ;;  %v14532_v27 = vadd.f32 %v28886_v40, %v14495_v12 }
 0xda4   : > { %14593 = vst [vmem:[%s28896_s11 + $0xc0] sm:$0xff] %v14561_v51  ;;  %v14531_v34 = vadd.f32 %v28886_v40, %v14494_v13  ;;  %v21139_v62 = vpop.f32.mrb[92].mxu0 }
 0xda5   : > { %v14564_v23 = vmax.f32 %v14532_v27, 0.0  ;;  %v14497_v44 = vmul.f32 %v21139_v62, %v28881_v50  ;;  %v14412_v36 = vpop.f32.mrb[93].mxu0 }
 0xda6   : > { %v14563_v18 = vmax.f32 %v14531_v34, 0.0  ;;  %v14496_v58 = vmul.f32 %v28881_v50, %v14412_v36 }
 0xda7   : > { %14596 = vst [vmem:[%s28896_s11 + $0xd8] sm:$0xff] %v14564_v23  ;;  %v14534_v53 = vadd.f32 %v28886_v40, %v14497_v44 }
 0xda8   : > { %14595 = vst [vmem:[%s28896_s11 + $0xd0] sm:$0xff] %v14563_v18  ;;  %v14533_v14 = vadd.f32 %v28886_v40, %v14496_v58  ;;  %v21142_v42 = vpop.f32.mrb[94].mxu0 }
 0xda9   : > { %v14566_v2 = vmax.f32 %v14534_v53, 0.0  ;;  %v14499_v4 = vmul.f32 %v21142_v42, %v28881_v50  ;;  %v14422_v32 = vpop.f32.mrb[95].mxu0 }
 0xdaa   : > { %v14565_v47 = vmax.f32 %v14533_v14, 0.0  ;;  %v14498_v6 = vmul.f32 %v28881_v50, %v14422_v32 }
 0xdab   : > { %14598 = vst [vmem:[%s28896_s11 + $0xe8] sm:$0xff] %v14566_v2  ;;  %v14536_v29 = vadd.f32 %v28886_v40, %v14499_v4 }
 0xdac   : > { %14597 = vst [vmem:[%s28896_s11 + $0xe0] sm:$0xff] %v14565_v47  ;;  %v14535_v21 = vadd.f32 %v28886_v40, %v14498_v6 }
 0xdad   : > { %v14568_v10 = vmax.f32 %v14536_v29, 0.0 }
 0xdae   : > { %v14567_v45 = vmax.f32 %v14535_v21, 0.0 }
 0xdaf   : > { %14600 = vst [vmem:[%s28896_s11 + $0xf8] sm:$0xff] %v14568_v10 }
 0xdb0   : > { %14599 = vst [vmem:[%s28896_s11 + $0xf0] sm:$0xff] %v14567_v45 }
 0xdb1 PF: > { %s14_s15 = sadd.s32 1, %s23908_s15  }
 0xdb2   : > { %p11_p4 = scmp.ge.s32.totalorder %s14_s15, 4  }
 0xdb4   :  { %13 = sbr.rel (!%p11_p4) target bundleno = 1 (0x1), region = 116 }

</bundles_post_ra>
